<compile_context>
chip_gen: v7x
topology: tpu7x:2x2x1
jax: 0.10.0
libtpu: 0.0.40
codegen_flags: <defaults>
</compile_context>

<pallas_src>
import functools

import jax
import jax.numpy as jnp
from jax.experimental import pallas as pl
from jax.experimental.pallas import tpu as pltpu

BN_EPS = 1e-5
LANE = 128


def _round_up(v, m):
    return (v + m - 1) // m * m


def _fold_bn(gamma, beta, mean, var):
    scale = gamma / jnp.sqrt(var + BN_EPS)
    return scale, beta - mean * scale


def _taps_per_group(c):
    """How many of the nine 3x3 taps share one lane group (compact packing)."""
    if c >= LANE:
        return 1
    return min(9, LANE // c)


def _pack_conv3x3_weight(w, scale, c, c_p, g, cout, cout_p):
    """Fold BN scale into w and lay it out to match the kernel's compact
    (rolled) im2col packing: K = n_groups * c_p, tap t occupies rows
    [(t//g)*c_p + (t%g)*c, ... + c).  Returns f32 (K, cout_p)."""
    n_groups = -(-9 // g)
    wf = w.astype(jnp.float32) * scale.astype(jnp.float32)   # fold over Cout
    wp = jnp.zeros((n_groups * c_p, cout_p), jnp.float32)
    for t in range(9):
        kh, kw = divmod(t, 3)
        grp, u = divmod(t, g)
        r = grp * c_p + u * c
        wp = wp.at[r:r + c, :cout].set(wf[kh, kw])
    return wp


def _pad_bias(bias, cout, cout_p):
    return jnp.zeros((1, cout_p), jnp.float32).at[0, :cout].set(
        bias.astype(jnp.float32))


# ---------------------------------------------------------------------------
# Fused residual-block kernel (one grid step = BT images)
# ---------------------------------------------------------------------------
def _residual_block_kernel(x_ref, w1_ref, b1_ref, w2_ref, b2_ref,
                           out_ref, xpad_ref, hpad_ref, *,
                           hout, wout, stride, cin, cout, g1, g2):
    bt, h_in, w_in = x_ref.shape[0], x_ref.shape[1], x_ref.shape[2]
    cin_p = xpad_ref.shape[-1]
    cout_p = hpad_ref.shape[-1]
    m = bt * hout * wout

    # One-time scratch init (review item 2).  Only the halo border and the
    # channel-pad lanes need to stay zero; the interiors are fully rewritten
    # every grid step and the scratch persists across steps.  The grid axis
    # is "arbitrary", so exactly one core walks it and sees program_id == 0.
    @pl.when(pl.program_id(0) == 0)
    def _init():
        xpad_ref[...] = jnp.zeros_like(xpad_ref)
        hpad_ref[...] = jnp.zeros_like(hpad_ref)

    # Stage the batch tile (interior, real channels only; pad lanes stay 0).
    xpad_ref[:, 1:h_in + 1, 1:w_in + 1, :cin] = x_ref[...]

    def windows(src_ref, s):
        c_p = src_ref.shape[-1]
        wins = []
        for di in range(3):
            for dj in range(3):
                if s == 1:
                    v = src_ref[:, pl.ds(di, hout), pl.ds(dj, wout), :]
                else:
                    # TODO(synk): for stride>1 decimate into even/odd phase
                    # planes once per tile instead of 9 strided reads.
                    v = src_ref[:, pl.ds(di, hout, s), pl.ds(dj, wout, s), :]
                wins.append(v.reshape(m, c_p))
        return wins

    def pack(wins, c, g):
        """Compact im2col (review item 3): pack g taps x c channels into one
        lane group via XLU lane-rolls + adds.  Requires lanes >= c of every
        window to be zero (guaranteed by the staging writes), so the rolled
        taps land in disjoint lane ranges and summation == placement."""
        slabs = []
        for grp in range(-(-9 // g)):
            taps = wins[grp * g:(grp + 1) * g]
            slab = taps[0]
            for u in range(1, len(taps)):
                slab = slab + pltpu.roll(taps[u], shift=u * c, axis=1)
            slabs.append(slab)
        return slabs[0] if len(slabs) == 1 else jnp.concatenate(slabs, axis=-1)

    # conv1 (stride) + folded BN1 + ReLU: one lane-dense MXU matmul, f32 acc.
    wins1 = windows(xpad_ref, stride)
    h1 = jnp.dot(pack(wins1, cin, g1), w1_ref[...],
                 preferred_element_type=jnp.float32) + b1_ref[...]
    h1 = jnp.maximum(h1, 0.0)

    # Stage the intermediate for conv2 -- stays in VMEM, no HBM trip.  The
    # pad lanes of h1 are exactly zero (zero weights + zero bias + relu).
    hpad_ref[:, 1:hout + 1, 1:wout + 1, :] = (
        h1.reshape(bt, hout, wout, cout_p).astype(hpad_ref.dtype))

    # conv2 + folded BN2, with the shortcut fused into the same matmul along
    # K (review item 4).  The shortcut input reuses the conv1 centre tap
    # (review item 5); the identity / 1x1-projection weights were stacked
    # under conv2's weights at trace time, so the residual add happens inside
    # the f32 accumulator.
    patches2 = jnp.concatenate(
        [pack(windows(hpad_ref, 1), cout, g2), wins1[4]], axis=-1)
    out = jnp.dot(patches2, w2_ref[...], preferred_element_type=jnp.float32)
    out = jnp.maximum(out + b2_ref[...], 0.0)
    out_ref[...] = out.reshape(bt, hout, wout, cout_p).astype(out_ref.dtype)


# ---------------------------------------------------------------------------
# Wrapper: layout conversion, BN folding, weight packing, BlockSpecs / grid
# ---------------------------------------------------------------------------
def residual_block_forward(x_nchw, params, *, stride=1,
                           compute_dtype=jnp.bfloat16):
    """x_nchw: (N, Cin, H, W) float32 -> (N, Cout, Hout, Wout) float32."""
    n, cin, h, w = x_nchw.shape
    cout = params["w1"].shape[-1]
    has_projection = (stride != 1) or (cin != cout)

    cin_p, cout_p = _round_up(cin, LANE), _round_up(cout, LANE)
    g1, g2 = _taps_per_group(cin), _taps_per_group(cout)
    hout = (h + 2 - 3) // stride + 1
    wout = (w + 2 - 3) // stride + 1

    # NCHW -> NHWC (channels on lanes).  TODO(synk): when stacking blocks,
    # keep activations NHWC / channel-padded in HBM between blocks so these
    # transposes and the trailing channel slice disappear (review item 11).
    x = jnp.transpose(x_nchw, (0, 2, 3, 1)).astype(compute_dtype)

    s1, b1 = _fold_bn(*params["bn1"])
    s2, b2 = _fold_bn(*params["bn2"])
    w1p = _pack_conv3x3_weight(params["w1"], s1, cin, cin_p, g1, cout, cout_p)
    w2p = _pack_conv3x3_weight(params["w2"], s2, cout, cout_p, g2, cout, cout_p)
    b1p = _pad_bias(b1, cout, cout_p)

    # Shortcut weights (1x1 projection + BN, or identity) stacked under the
    # conv2 weights along K; shortcut bias merged into the conv2 bias.
    if has_projection:
        ssc, bsc = _fold_bn(*params["bn_sc"])
        wsc = params["w_sc"][0, 0].astype(jnp.float32) * ssc.astype(jnp.float32)
    else:
        wsc = jnp.eye(cin, dtype=jnp.float32)        # identity (cin == cout)
        bsc = jnp.zeros((cout,), jnp.float32)
    wsc_blk = jnp.zeros((cin_p, cout_p), jnp.float32).at[:cin, :cout].set(wsc)
    w2sc = jnp.concatenate([w2p, wsc_blk], axis=0).astype(compute_dtype)
    b2sc = _pad_bias(b2, cout, cout_p) + _pad_bias(bsc, cout, cout_p)
    w1p = w1p.astype(compute_dtype)

    itemsize = jnp.dtype(compute_dtype).itemsize
    k1, k2 = w1p.shape[0], w2sc.shape[0]

    # Batch tile (review item 1): fold several images into the matmul M dim.
    # Pick the largest divisor of n whose per-step working set stays modest.
    per_image = itemsize * (
        (h + 2) * (w + 2) * cin_p + (hout + 2) * (wout + 2) * cout_p   # scratch
        + h * w * cin + hout * wout * cout_p                           # in/out
        + hout * wout * (k1 + k2))                                     # patches
    per_image += 4 * hout * wout * cout_p * 2                          # f32 temps
    bt = 1
    for d in range(min(n, 16), 0, -1):
        if n % d == 0 and d * per_image <= 6 * 1024 * 1024:
            bt = d
            break

    # VMEM request derived from the actual working set (review item 8); the
    # pipeline double-buffers the x/out blocks and the (grid-invariant)
    # weights.  Clamp to [16, 48] MiB so v7x (64 MiB/TC) keeps headroom.
    weight_bytes = (w1p.size + w2sc.size) * itemsize + (b1p.size + b2sc.size) * 4
    footprint = (bt * per_image + 2 * weight_bytes
                 + 2 * itemsize * bt * (h * w * cin + hout * wout * cout_p))
    vmem_limit = int(min(48 * 1024 * 1024, max(16 * 1024 * 1024, 2 * footprint)))

    # Cost estimate with true (unpadded) channel counts.
    flops = 2 * n * hout * wout * 9 * (cin + cout) * cout
    if has_projection:
        flops += 2 * n * hout * wout * cin * cout
    bytes_accessed = ((x.size + n * hout * wout * cout_p) * itemsize
                      + weight_bytes)

    kernel = functools.partial(
        _residual_block_kernel, hout=hout, wout=wout, stride=stride,
        cin=cin, cout=cout, g1=g1, g2=g2)

    # TODO(synk): for ResNet-scale spatial extents (e.g. 56x56) add an
    # output-row grid axis with a 2-row halo so the per-step live set also
    # fits v7x's 64 MiB VMEM.
    out = pl.pallas_call(
        kernel,
        out_shape=jax.ShapeDtypeStruct((n, hout, wout, cout_p), compute_dtype),
        grid_spec=pltpu.PrefetchScalarGridSpec(
            num_scalar_prefetch=0,
            grid=(n // bt,),
            in_specs=[
                pl.BlockSpec((bt, h, w, cin), lambda nb: (nb, 0, 0, 0)),
                pl.BlockSpec(w1p.shape, lambda nb: (0, 0)),
                pl.BlockSpec(b1p.shape, lambda nb: (0, 0)),
                pl.BlockSpec(w2sc.shape, lambda nb: (0, 0)),
                pl.BlockSpec(b2sc.shape, lambda nb: (0, 0)),
            ],
            out_specs=pl.BlockSpec((bt, hout, wout, cout_p),
                                   lambda nb: (nb, 0, 0, 0)),
            scratch_shapes=[
                pltpu.VMEM((bt, h + 2, w + 2, cin_p), compute_dtype),      # x pad
                pltpu.VMEM((bt, hout + 2, wout + 2, cout_p), compute_dtype),  # h pad
            ]),
        # "arbitrary": the zero-once scratch init relies on a single core
        # walking the whole (short) grid sequentially.
        compiler_params=pltpu.CompilerParams(
            dimension_semantics=("arbitrary",),
            vmem_limit_bytes=vmem_limit),
        cost_estimate=pl.CostEstimate(flops=int(flops), transcendentals=0,
                                      bytes_accessed=int(bytes_accessed)),
    )(x, w1p, b1p, w2sc, b2sc)

    # Kernel output is compute-dtype, channel-padded NHWC; upcast + slice +
    # NCHW transpose back to the PyTorch contract here (fused by XLA).
    return jnp.transpose(out[:, :, :, :cout].astype(jnp.float32), (0, 3, 1, 2))


# ---------------------------------------------------------------------------
# Pure-JAX reference (correctness check)
# ---------------------------------------------------------------------------
def _conv_bn_ref(x, w, scale, bias, *, stride, padding, relu, residual=None):
    y = jax.lax.conv_general_dilated(
        x, w, window_strides=(stride, stride),
        padding=[(padding, padding), (padding, padding)],
        dimension_numbers=("NHWC", "HWIO", "NHWC"))
    y = y * scale + bias
    if residual is not None:
        y = y + residual
    if relu:
        y = jnp.maximum(y, 0.0)
    return y


def residual_block_ref(x_nchw, params, *, stride=1):
    cin = x_nchw.shape[1]
    cout = params["w1"].shape[-1]
    x = jnp.transpose(x_nchw, (0, 2, 3, 1)).astype(jnp.float32)
    s1, b1 = _fold_bn(*params["bn1"])
    s2, b2 = _fold_bn(*params["bn2"])
    h = _conv_bn_ref(x, params["w1"], s1, b1, stride=stride, padding=1, relu=True)
    if stride != 1 or cin != cout:
        s3, b3 = _fold_bn(*params["bn_sc"])
        sc = _conv_bn_ref(x, params["w_sc"], s3, b3, stride=stride, padding=0,
                          relu=False)
    else:
        sc = x
    out = _conv_bn_ref(h, params["w2"], s2, b2, stride=1, padding=1,
                       relu=True, residual=sc)
    return jnp.transpose(out, (0, 3, 1, 2))


# ---------------------------------------------------------------------------
# Deterministic synthetic parameters
# ---------------------------------------------------------------------------
def make_params(key, inchannel, outchannel, stride):
    keys = jax.random.split(key, 6)

    def bn_params(k, c):
        kg, kb, km, kv = jax.random.split(k, 4)
        gamma = 1.0 + 0.1 * jax.random.normal(kg, (c,), jnp.float32)
        beta = 0.1 * jax.random.normal(kb, (c,), jnp.float32)
        mean = 0.1 * jax.random.normal(km, (c,), jnp.float32)
        var = jnp.abs(jax.random.normal(kv, (c,), jnp.float32)) + 0.5
        return (gamma, beta, mean, var)

    params = {
        # conv weights stored directly in HWIO = (KH, KW, Cin, Cout)
        "w1": 0.1 * jax.random.normal(keys[0], (3, 3, inchannel, outchannel),
                                      jnp.float32),
        "w2": 0.1 * jax.random.normal(keys[1], (3, 3, outchannel, outchannel),
                                      jnp.float32),
        "bn1": bn_params(keys[2], outchannel),
        "bn2": bn_params(keys[3], outchannel),
    }
    if stride != 1 or inchannel != outchannel:
        params["w_sc"] = 0.1 * jax.random.normal(
            keys[4], (1, 1, inchannel, outchannel), jnp.float32)
        params["bn_sc"] = bn_params(keys[5], outchannel)
    return params


if __name__ == "__main__":
    key = jax.random.PRNGKey(0)

    configs = [
        # (batch, inchannel, outchannel, spatial, stride)
        (2, 4, 8, 16, 1),    # projection shortcut, fully packed K (1 group)
        (2, 8, 8, 16, 1),    # identity shortcut,   fully packed K (1 group)
        (2, 16, 32, 16, 1),  # projection shortcut, multi-group packed K
    ]

    for idx, (batch, cin, cout, spatial, stride) in enumerate(configs):
        k_x, k_p = jax.random.split(jax.random.fold_in(key, idx))
        x = jax.random.normal(k_x, (batch, cin, spatial, spatial), jnp.float32)
        params = make_params(k_p, cin, cout, stride)

        ref = jax.block_until_ready(residual_block_ref(x, params, stride=stride))

        # Exact-math path (f32 MXU operands): tight tolerance.
        out_f32 = jax.block_until_ready(
            residual_block_forward(x, params, stride=stride,
                                   compute_dtype=jnp.float32))
        assert out_f32.shape == ref.shape
        assert jnp.allclose(out_f32, ref, atol=1e-3, rtol=1e-3), (
            "f32 path mismatch", float(jnp.max(jnp.abs(out_f32 - ref))))

        # Optimized path: bf16 operands / output, f32 accumulation.
        out_bf16 = jax.block_until_ready(
            residual_block_forward(x, params, stride=stride,
                                   compute_dtype=jnp.bfloat16))
        assert out_bf16.shape == ref.shape
        assert jnp.allclose(out_bf16, ref, atol=6e-2, rtol=6e-2), (
            "bf16 path mismatch", float(jnp.max(jnp.abs(out_bf16 - ref))))

    print("KERNEL_OK")
</pallas_src>

<mosaic_0001>
module attributes {stable_mosaic.version = 11 : i64} {
  func.func @_residual_block_kernel(%arg0: i32, %arg1: memref<2x16x16x4xf32, #tpu.memory_space<vmem>>, %arg2: memref<128x128xf32, #tpu.memory_space<vmem>>, %arg3: memref<1x128xf32, #tpu.memory_space<vmem>>, %arg4: memref<256x128xf32, #tpu.memory_space<vmem>>, %arg5: memref<1x128xf32, #tpu.memory_space<vmem>>, %arg6: memref<2x16x16x128xf32, #tpu.memory_space<vmem>>, %arg7: memref<2x18x18x128xf32, #tpu.memory_space<vmem>>, %arg8: memref<2x18x18x128xf32, #tpu.memory_space<vmem>>) attributes {dimension_semantics = [#tpu.dimension_semantics<arbitrary>], iteration_bounds = array<i64: 1>, scalar_prefetch = 0 : i64, scratch_operands = 2 : i64, tpu.core_type = #tpu.core_type<tc>, window_params = [{transform_indices = @transform_0, window_bounds = array<i64: 2, 16, 16, 4>}, {pipeline_mode = #tpu.pipeline_mode<synchronous>, transform_indices = @transform_1, window_bounds = array<i64: 128, 128>}, {pipeline_mode = #tpu.pipeline_mode<synchronous>, transform_indices = @transform_2, window_bounds = array<i64: 1, 128>}, {pipeline_mode = #tpu.pipeline_mode<synchronous>, transform_indices = @transform_3, window_bounds = array<i64: 256, 128>}, {pipeline_mode = #tpu.pipeline_mode<synchronous>, transform_indices = @transform_4, window_bounds = array<i64: 1, 128>}, {transform_indices = @transform_5, window_bounds = array<i64: 2, 16, 16, 128>}]} {
    %c0_i32 = arith.constant 0 : i32
    %0 = arith.cmpi eq, %arg0, %c0_i32 : i32
    %1 = arith.extui %0 : i1 to i32
    %c0_i32_0 = arith.constant 0 : i32
    %2 = arith.cmpi ne, %1, %c0_i32_0 : i32
    scf.if %2 {
      %cst_101 = arith.constant 0.000000e+00 : f32
      %92 = vector.broadcast %cst_101 : f32 to vector<2x18x18x128xf32>
      %c0_102 = arith.constant 0 : index
      %c0_103 = arith.constant 0 : index
      %c0_104 = arith.constant 0 : index
      %c0_105 = arith.constant 0 : index
      %93 = vector.load %arg7[%c0_102, %c0_103, %c0_104, %c0_105] : memref<2x18x18x128xf32, #tpu.memory_space<vmem>>, vector<2x18x18x128xf32>
      tpu.vector_store %arg7[%c0_102, %c0_103, %c0_104, %c0_105], %92 {strides = array<i32>} : memref<2x18x18x128xf32, #tpu.memory_space<vmem>>, vector<2x18x18x128xf32>,
      %cst_106 = arith.constant 0.000000e+00 : f32
      %94 = vector.broadcast %cst_106 : f32 to vector<2x18x18x128xf32>
      %c0_107 = arith.constant 0 : index
      %c0_108 = arith.constant 0 : index
      %c0_109 = arith.constant 0 : index
      %c0_110 = arith.constant 0 : index
      %95 = vector.load %arg8[%c0_107, %c0_108, %c0_109, %c0_110] : memref<2x18x18x128xf32, #tpu.memory_space<vmem>>, vector<2x18x18x128xf32>
      tpu.vector_store %arg8[%c0_107, %c0_108, %c0_109, %c0_110], %94 {strides = array<i32>} : memref<2x18x18x128xf32, #tpu.memory_space<vmem>>, vector<2x18x18x128xf32>,
    } else {
    }
    %c0 = arith.constant 0 : index
    %c0_1 = arith.constant 0 : index
    %c0_2 = arith.constant 0 : index
    %c0_3 = arith.constant 0 : index
    %3 = vector.load %arg1[%c0, %c0_1, %c0_2, %c0_3] : memref<2x16x16x4xf32, #tpu.memory_space<vmem>>, vector<2x16x16x4xf32>
    %c0_4 = arith.constant 0 : index
    %c1 = arith.constant 1 : index
    %c1_5 = arith.constant 1 : index
    %c0_6 = arith.constant 0 : index
    %4 = vector.load %arg7[%c0_4, %c1, %c1_5, %c0_6] : memref<2x18x18x128xf32, #tpu.memory_space<vmem>>, vector<2x16x16x4xf32>
    tpu.vector_store %arg7[%c0_4, %c1, %c1_5, %c0_6], %3 {strides = array<i32>} : memref<2x18x18x128xf32, #tpu.memory_space<vmem>>, vector<2x16x16x4xf32>,
    %c0_7 = arith.constant 0 : index
    %c0_8 = arith.constant 0 : index
    %c0_9 = arith.constant 0 : index
    %c0_10 = arith.constant 0 : index
    %5 = vector.load %arg7[%c0_7, %c0_8, %c0_9, %c0_10] : memref<2x18x18x128xf32, #tpu.memory_space<vmem>>, vector<2x16x16x128xf32>
    %6 = vector.shape_cast %5 : vector<2x16x16x128xf32> to vector<512x128xf32>
    %c0_11 = arith.constant 0 : index
    %c0_12 = arith.constant 0 : index
    %c1_13 = arith.constant 1 : index
    %c0_14 = arith.constant 0 : index
    %7 = vector.load %arg7[%c0_11, %c0_12, %c1_13, %c0_14] : memref<2x18x18x128xf32, #tpu.memory_space<vmem>>, vector<2x16x16x128xf32>
    %8 = vector.shape_cast %7 : vector<2x16x16x128xf32> to vector<512x128xf32>
    %c0_15 = arith.constant 0 : index
    %c0_16 = arith.constant 0 : index
    %c2 = arith.constant 2 : index
    %c0_17 = arith.constant 0 : index
    %9 = vector.load %arg7[%c0_15, %c0_16, %c2, %c0_17] : memref<2x18x18x128xf32, #tpu.memory_space<vmem>>, vector<2x16x16x128xf32>
    %10 = vector.shape_cast %9 : vector<2x16x16x128xf32> to vector<512x128xf32>
    %c0_18 = arith.constant 0 : index
    %c1_19 = arith.constant 1 : index
    %c0_20 = arith.constant 0 : index
    %c0_21 = arith.constant 0 : index
    %11 = vector.load %arg7[%c0_18, %c1_19, %c0_20, %c0_21] : memref<2x18x18x128xf32, #tpu.memory_space<vmem>>, vector<2x16x16x128xf32>
    %12 = vector.shape_cast %11 : vector<2x16x16x128xf32> to vector<512x128xf32>
    %c0_22 = arith.constant 0 : index
    %c1_23 = arith.constant 1 : index
    %c1_24 = arith.constant 1 : index
    %c0_25 = arith.constant 0 : index
    %13 = vector.load %arg7[%c0_22, %c1_23, %c1_24, %c0_25] : memref<2x18x18x128xf32, #tpu.memory_space<vmem>>, vector<2x16x16x128xf32>
    %14 = vector.shape_cast %13 : vector<2x16x16x128xf32> to vector<512x128xf32>
    %c0_26 = arith.constant 0 : index
    %c1_27 = arith.constant 1 : index
    %c2_28 = arith.constant 2 : index
    %c0_29 = arith.constant 0 : index
    %15 = vector.load %arg7[%c0_26, %c1_27, %c2_28, %c0_29] : memref<2x18x18x128xf32, #tpu.memory_space<vmem>>, vector<2x16x16x128xf32>
    %16 = vector.shape_cast %15 : vector<2x16x16x128xf32> to vector<512x128xf32>
    %c0_30 = arith.constant 0 : index
    %c2_31 = arith.constant 2 : index
    %c0_32 = arith.constant 0 : index
    %c0_33 = arith.constant 0 : index
    %17 = vector.load %arg7[%c0_30, %c2_31, %c0_32, %c0_33] : memref<2x18x18x128xf32, #tpu.memory_space<vmem>>, vector<2x16x16x128xf32>
    %18 = vector.shape_cast %17 : vector<2x16x16x128xf32> to vector<512x128xf32>
    %c0_34 = arith.constant 0 : index
    %c2_35 = arith.constant 2 : index
    %c1_36 = arith.constant 1 : index
    %c0_37 = arith.constant 0 : index
    %19 = vector.load %arg7[%c0_34, %c2_35, %c1_36, %c0_37] : memref<2x18x18x128xf32, #tpu.memory_space<vmem>>, vector<2x16x16x128xf32>
    %20 = vector.shape_cast %19 : vector<2x16x16x128xf32> to vector<512x128xf32>
    %c0_38 = arith.constant 0 : index
    %c2_39 = arith.constant 2 : index
    %c2_40 = arith.constant 2 : index
    %c0_41 = arith.constant 0 : index
    %21 = vector.load %arg7[%c0_38, %c2_39, %c2_40, %c0_41] : memref<2x18x18x128xf32, #tpu.memory_space<vmem>>, vector<2x16x16x128xf32>
    %22 = vector.shape_cast %21 : vector<2x16x16x128xf32> to vector<512x128xf32>
    %c4_i32 = arith.constant 4 : i32
    %23 = tpu.dynamic_rotate %8 by %c4_i32 dim 1 : vector<512x128xf32>, i32 -> vector<512x128xf32>
    %24 = arith.addf %6, %23 : vector<512x128xf32>
    %c8_i32 = arith.constant 8 : i32
    %25 = tpu.dynamic_rotate %10 by %c8_i32 dim 1 : vector<512x128xf32>, i32 -> vector<512x128xf32>
    %26 = arith.addf %24, %25 : vector<512x128xf32>
    %c12_i32 = arith.constant 12 : i32
    %27 = tpu.dynamic_rotate %12 by %c12_i32 dim 1 : vector<512x128xf32>, i32 -> vector<512x128xf32>
    %28 = arith.addf %26, %27 : vector<512x128xf32>
    %c16_i32 = arith.constant 16 : i32
    %29 = tpu.dynamic_rotate %14 by %c16_i32 dim 1 : vector<512x128xf32>, i32 -> vector<512x128xf32>
    %30 = arith.addf %28, %29 : vector<512x128xf32>
    %c20_i32 = arith.constant 20 : i32
    %31 = tpu.dynamic_rotate %16 by %c20_i32 dim 1 : vector<512x128xf32>, i32 -> vector<512x128xf32>
    %32 = arith.addf %30, %31 : vector<512x128xf32>
    %c24_i32 = arith.constant 24 : i32
    %33 = tpu.dynamic_rotate %18 by %c24_i32 dim 1 : vector<512x128xf32>, i32 -> vector<512x128xf32>
    %34 = arith.addf %32, %33 : vector<512x128xf32>
    %c28_i32 = arith.constant 28 : i32
    %35 = tpu.dynamic_rotate %20 by %c28_i32 dim 1 : vector<512x128xf32>, i32 -> vector<512x128xf32>
    %36 = arith.addf %34, %35 : vector<512x128xf32>
    %c32_i32 = arith.constant 32 : i32
    %37 = tpu.dynamic_rotate %22 by %c32_i32 dim 1 : vector<512x128xf32>, i32 -> vector<512x128xf32>
    %38 = arith.addf %36, %37 : vector<512x128xf32>
    %c0_42 = arith.constant 0 : index
    %c0_43 = arith.constant 0 : index
    %39 = vector.load %arg2[%c0_42, %c0_43] : memref<128x128xf32, #tpu.memory_space<vmem>>, vector<128x128xf32>
    %cst = arith.constant dense<0.000000e+00> : vector<512x128xf32>
    %40 = tpu.matmul %38, %39, %cst {dimension_numbers = #tpu.dot_dimension_numbers<[1], [0], [0], [1], [0, 0, 1, 1], [], []>} : vector<512x128xf32>, vector<128x128xf32>, vector<512x128xf32> -> vector<512x128xf32>
    %c0_44 = arith.constant 0 : index
    %c0_45 = arith.constant 0 : index
    %41 = vector.load %arg3[%c0_44, %c0_45] : memref<1x128xf32, #tpu.memory_space<vmem>>, vector<1x128xf32>
    %42 = vector.broadcast %41 : vector<1x128xf32> to vector<512x128xf32>
    %43 = arith.addf %40, %42 : vector<512x128xf32>
    %cst_46 = arith.constant 0.000000e+00 : f32
    %44 = vector.broadcast %cst_46 : f32 to vector<512x128xf32>
    %45 = arith.maximumf %43, %44 : vector<512x128xf32>
    %46 = vector.shape_cast %45 : vector<512x128xf32> to vector<2x16x16x128xf32>
    %c0_47 = arith.constant 0 : index
    %c1_48 = arith.constant 1 : index
    %c1_49 = arith.constant 1 : index
    %c0_50 = arith.constant 0 : index
    %47 = vector.load %arg8[%c0_47, %c1_48, %c1_49, %c0_50] : memref<2x18x18x128xf32, #tpu.memory_space<vmem>>, vector<2x16x16x128xf32>
    tpu.vector_store %arg8[%c0_47, %c1_48, %c1_49, %c0_50], %46 {strides = array<i32>} : memref<2x18x18x128xf32, #tpu.memory_space<vmem>>, vector<2x16x16x128xf32>,
    %c0_51 = arith.constant 0 : index
    %c0_52 = arith.constant 0 : index
    %c0_53 = arith.constant 0 : index
    %c0_54 = arith.constant 0 : index
    %48 = vector.load %arg8[%c0_51, %c0_52, %c0_53, %c0_54] : memref<2x18x18x128xf32, #tpu.memory_space<vmem>>, vector<2x16x16x128xf32>
    %49 = vector.shape_cast %48 : vector<2x16x16x128xf32> to vector<512x128xf32>
    %c0_55 = arith.constant 0 : index
    %c0_56 = arith.constant 0 : index
    %c1_57 = arith.constant 1 : index
    %c0_58 = arith.constant 0 : index
    %50 = vector.load %arg8[%c0_55, %c0_56, %c1_57, %c0_58] : memref<2x18x18x128xf32, #tpu.memory_space<vmem>>, vector<2x16x16x128xf32>
    %51 = vector.shape_cast %50 : vector<2x16x16x128xf32> to vector<512x128xf32>
    %c0_59 = arith.constant 0 : index
    %c0_60 = arith.constant 0 : index
    %c2_61 = arith.constant 2 : index
    %c0_62 = arith.constant 0 : index
    %52 = vector.load %arg8[%c0_59, %c0_60, %c2_61, %c0_62] : memref<2x18x18x128xf32, #tpu.memory_space<vmem>>, vector<2x16x16x128xf32>
    %53 = vector.shape_cast %52 : vector<2x16x16x128xf32> to vector<512x128xf32>
    %c0_63 = arith.constant 0 : index
    %c1_64 = arith.constant 1 : index
    %c0_65 = arith.constant 0 : index
    %c0_66 = arith.constant 0 : index
    %54 = vector.load %arg8[%c0_63, %c1_64, %c0_65, %c0_66] : memref<2x18x18x128xf32, #tpu.memory_space<vmem>>, vector<2x16x16x128xf32>
    %55 = vector.shape_cast %54 : vector<2x16x16x128xf32> to vector<512x128xf32>
    %c0_67 = arith.constant 0 : index
    %c1_68 = arith.constant 1 : index
    %c1_69 = arith.constant 1 : index
    %c0_70 = arith.constant 0 : index
    %56 = vector.load %arg8[%c0_67, %c1_68, %c1_69, %c0_70] : memref<2x18x18x128xf32, #tpu.memory_space<vmem>>, vector<2x16x16x128xf32>
    %57 = vector.shape_cast %56 : vector<2x16x16x128xf32> to vector<512x128xf32>
    %c0_71 = arith.constant 0 : index
    %c1_72 = arith.constant 1 : index
    %c2_73 = arith.constant 2 : index
    %c0_74 = arith.constant 0 : index
    %58 = vector.load %arg8[%c0_71, %c1_72, %c2_73, %c0_74] : memref<2x18x18x128xf32, #tpu.memory_space<vmem>>, vector<2x16x16x128xf32>
    %59 = vector.shape_cast %58 : vector<2x16x16x128xf32> to vector<512x128xf32>
    %c0_75 = arith.constant 0 : index
    %c2_76 = arith.constant 2 : index
    %c0_77 = arith.constant 0 : index
    %c0_78 = arith.constant 0 : index
    %60 = vector.load %arg8[%c0_75, %c2_76, %c0_77, %c0_78] : memref<2x18x18x128xf32, #tpu.memory_space<vmem>>, vector<2x16x16x128xf32>
    %61 = vector.shape_cast %60 : vector<2x16x16x128xf32> to vector<512x128xf32>
    %c0_79 = arith.constant 0 : index
    %c2_80 = arith.constant 2 : index
    %c1_81 = arith.constant 1 : index
    %c0_82 = arith.constant 0 : index
    %62 = vector.load %arg8[%c0_79, %c2_80, %c1_81, %c0_82] : memref<2x18x18x128xf32, #tpu.memory_space<vmem>>, vector<2x16x16x128xf32>
    %63 = vector.shape_cast %62 : vector<2x16x16x128xf32> to vector<512x128xf32>
    %c0_83 = arith.constant 0 : index
    %c2_84 = arith.constant 2 : index
    %c2_85 = arith.constant 2 : index
    %c0_86 = arith.constant 0 : index
    %64 = vector.load %arg8[%c0_83, %c2_84, %c2_85, %c0_86] : memref<2x18x18x128xf32, #tpu.memory_space<vmem>>, vector<2x16x16x128xf32>
    %65 = vector.shape_cast %64 : vector<2x16x16x128xf32> to vector<512x128xf32>
    %c8_i32_87 = arith.constant 8 : i32
    %66 = tpu.dynamic_rotate %51 by %c8_i32_87 dim 1 : vector<512x128xf32>, i32 -> vector<512x128xf32>
    %67 = arith.addf %49, %66 : vector<512x128xf32>
    %c16_i32_88 = arith.constant 16 : i32
    %68 = tpu.dynamic_rotate %53 by %c16_i32_88 dim 1 : vector<512x128xf32>, i32 -> vector<512x128xf32>
    %69 = arith.addf %67, %68 : vector<512x128xf32>
    %c24_i32_89 = arith.constant 24 : i32
    %70 = tpu.dynamic_rotate %55 by %c24_i32_89 dim 1 : vector<512x128xf32>, i32 -> vector<512x128xf32>
    %71 = arith.addf %69, %70 : vector<512x128xf32>
    %c32_i32_90 = arith.constant 32 : i32
    %72 = tpu.dynamic_rotate %57 by %c32_i32_90 dim 1 : vector<512x128xf32>, i32 -> vector<512x128xf32>
    %73 = arith.addf %71, %72 : vector<512x128xf32>
    %c40_i32 = arith.constant 40 : i32
    %74 = tpu.dynamic_rotate %59 by %c40_i32 dim 1 : vector<512x128xf32>, i32 -> vector<512x128xf32>
    %75 = arith.addf %73, %74 : vector<512x128xf32>
    %c48_i32 = arith.constant 48 : i32
    %76 = tpu.dynamic_rotate %61 by %c48_i32 dim 1 : vector<512x128xf32>, i32 -> vector<512x128xf32>
    %77 = arith.addf %75, %76 : vector<512x128xf32>
    %c56_i32 = arith.constant 56 : i32
    %78 = tpu.dynamic_rotate %63 by %c56_i32 dim 1 : vector<512x128xf32>, i32 -> vector<512x128xf32>
    %79 = arith.addf %77, %78 : vector<512x128xf32>
    %c64_i32 = arith.constant 64 : i32
    %80 = tpu.dynamic_rotate %65 by %c64_i32 dim 1 : vector<512x128xf32>, i32 -> vector<512x128xf32>
    %81 = arith.addf %79, %80 : vector<512x128xf32>
    %82 = tpu.concatenate %81, %14 in 1 : vector<512x128xf32>, vector<512x128xf32> -> vector<512x256xf32>
    %c0_91 = arith.constant 0 : index
    %c0_92 = arith.constant 0 : index
    %83 = vector.load %arg4[%c0_91, %c0_92] : memref<256x128xf32, #tpu.memory_space<vmem>>, vector<256x128xf32>
    %cst_93 = arith.constant dense<0.000000e+00> : vector<512x128xf32>
    %84 = tpu.matmul %82, %83, %cst_93 {dimension_numbers = #tpu.dot_dimension_numbers<[1], [0], [0], [1], [0, 0, 1, 1], [], []>} : vector<512x256xf32>, vector<256x128xf32>, vector<512x128xf32> -> vector<512x128xf32>
    %c0_94 = arith.constant 0 : index
    %c0_95 = arith.constant 0 : index
    %85 = vector.load %arg5[%c0_94, %c0_95] : memref<1x128xf32, #tpu.memory_space<vmem>>, vector<1x128xf32>
    %86 = vector.broadcast %85 : vector<1x128xf32> to vector<512x128xf32>
    %87 = arith.addf %84, %86 : vector<512x128xf32>
    %cst_96 = arith.constant 0.000000e+00 : f32
    %88 = vector.broadcast %cst_96 : f32 to vector<512x128xf32>
    %89 = arith.maximumf %87, %88 : vector<512x128xf32>
    %90 = vector.shape_cast %89 : vector<512x128xf32> to vector<2x16x16x128xf32>
    %c0_97 = arith.constant 0 : index
    %c0_98 = arith.constant 0 : index
    %c0_99 = arith.constant 0 : index
    %c0_100 = arith.constant 0 : index
    %91 = vector.load %arg6[%c0_97, %c0_98, %c0_99, %c0_100] : memref<2x16x16x128xf32, #tpu.memory_space<vmem>>, vector<2x16x16x128xf32>
    tpu.vector_store %arg6[%c0_97, %c0_98, %c0_99, %c0_100], %90 {strides = array<i32>} : memref<2x16x16x128xf32, #tpu.memory_space<vmem>>, vector<2x16x16x128xf32>,
    return
  }
  func.func @transform_0(%arg0: i32) -> (i32, i32, i32, i32) {
    %c0_i32 = arith.constant 0 : i32
    %c0_i32_0 = arith.constant 0 : i32
    %c0_i32_1 = arith.constant 0 : i32
    %c0_i32_2 = arith.constant 0 : i32
    return %arg0, %c0_i32, %c0_i32_0, %c0_i32_1 : i32, i32, i32, i32
  }
  func.func @transform_1(%arg0: i32) -> (i32, i32) {
    %c0_i32 = arith.constant 0 : i32
    %c0_i32_0 = arith.constant 0 : i32
    %c0_i32_1 = arith.constant 0 : i32
    return %c0_i32, %c0_i32_0 : i32, i32
  }
  func.func @transform_2(%arg0: i32) -> (i32, i32) {
    %c0_i32 = arith.constant 0 : i32
    %c0_i32_0 = arith.constant 0 : i32
    %c0_i32_1 = arith.constant 0 : i32
    return %c0_i32, %c0_i32_0 : i32, i32
  }
  func.func @transform_3(%arg0: i32) -> (i32, i32) {
    %c0_i32 = arith.constant 0 : i32
    %c0_i32_0 = arith.constant 0 : i32
    %c0_i32_1 = arith.constant 0 : i32
    return %c0_i32, %c0_i32_0 : i32, i32
  }
  func.func @transform_4(%arg0: i32) -> (i32, i32) {
    %c0_i32 = arith.constant 0 : i32
    %c0_i32_0 = arith.constant 0 : i32
    %c0_i32_1 = arith.constant 0 : i32
    return %c0_i32, %c0_i32_0 : i32, i32
  }
  func.func @transform_5(%arg0: i32) -> (i32, i32, i32, i32) {
    %c0_i32 = arith.constant 0 : i32
    %c0_i32_0 = arith.constant 0 : i32
    %c0_i32_1 = arith.constant 0 : i32
    %c0_i32_2 = arith.constant 0 : i32
    return %arg0, %c0_i32, %c0_i32_0, %c0_i32_1 : i32, i32, i32, i32
  }
}

</mosaic_0001>

<bundles_post_ra>
// kernel: tpu_custom_call.1
= control target key start
LH: loop header
LB: loop body
LE: loop exit
PB: predicated region body
PF: predicated region fallthrough
CT: control target
= control target key end

     0   :  { %vm306_vm0 = vcmask 31744   ;;  %v6378_v3 = vmov 0.0   ;;  %s6379_s18 = smov 4   ;;  %s10638_s0 = inlined_call_operand.vmem [shape: f32[2,16,16,4], index: 0, kind: input, shape index: {}]   ;;  %s10639_s1 = inlined_call_operand.vmem [shape: f32[128,128], index: 1, kind: input, shape index: {}]   ;;  %s10640_s2 = inlined_call_operand.vmem [shape: f32[1,128], index: 2, kind: input, shape index: {}]   ;;  %s10641_s3 = inlined_call_operand.vmem [shape: f32[256,128], index: 3, kind: input, shape index: {}]   ;;  %s10642_s4 = inlined_call_operand.vmem [shape: f32[1,128], index: 4, kind: input, shape index: {}]   ;;  %s10643_s5 = inlined_call_operand.hbm [shape: f32[2,16,16,128], index: 5, kind: output, shape index: {}]  }
   0x1   :  { %v6427_v0 = vld [vmem:[%s10638_s0 + $0x8] sm:$0xff]  ;;  %v6432_v1 = vld [vmem:[%s10638_s0 + $0x10] sm:$0xff]  ;;  %v6437_v2 = vld [vmem:[%s10638_s0] sm:$0xff]  ;;  %29 = vst [vmem:[#allocation2 + $0x20] sm:$0xff] %v6378_v3 }
   0x2   :  { %30 = vst [vmem:[#allocation2 + $0x28] sm:$0x3] %v6378_v3  ;;  %25 = vst [vmem:[#allocation2] sm:$0xff] %v6378_v3  ;;  %v245_v4 = vld [vmem:[%s10638_s0 + $0x20] sm:$0xff]  ;;  %v244_v5 = vld [vmem:[%s10638_s0 + $0x18] sm:$0xff] }
   0x3   :  { %26 = vst [vmem:[#allocation2 + $0x8] sm:$0xff] %v6378_v3  ;;  %27 = vst [vmem:[#allocation2 + $0x10] sm:$0x3] %v6378_v3  ;;  %v247_v6 = vld [vmem:[%s10638_s0 + $0x30] sm:$0xff]  ;;  %v246_v7 = vld [vmem:[%s10638_s0 + $0x28] sm:$0xff] }
   0x4   :  { %28 = vst [vmem:[#allocation2 + $0x18] sm:$0xff] %v6378_v3  ;;  %31 = vst [vmem:[#allocation2 + $0x30] sm:$0xff] %v6378_v3  ;;  %v249_v8 = vld [vmem:[%s10638_s0 + $0x40] sm:$0xff]  ;;  %v248_v9 = vld [vmem:[%s10638_s0 + $0x38] sm:$0xff] }
   0x5   :  { %32 = vst [vmem:[#allocation2 + $0x38] sm:$0xff] %v6378_v3  ;;  %33 = vst [vmem:[#allocation2 + $0x40] sm:$0x3] %v6378_v3  ;;  %v251_v10 = vld [vmem:[%s10638_s0 + $0x50] sm:$0xff]  ;;  %v250_v11 = vld [vmem:[%s10638_s0 + $0x48] sm:$0xff] }
   0x6   :  { %34 = vst [vmem:[#allocation2 + $0x48] sm:$0xff] %v6378_v3  ;;  %35 = vst [vmem:[#allocation2 + $0x50] sm:$0xff] %v6378_v3  ;;  %v253_v12 = vld [vmem:[%s10638_s0 + $0x60] sm:$0xff]  ;;  %v252_v13 = vld [vmem:[%s10638_s0 + $0x58] sm:$0xff] }
   0x7   :  { %36 = vst [vmem:[#allocation2 + $0x58] sm:$0x3] %v6378_v3  ;;  %37 = vst [vmem:[#allocation2 + $0x60] sm:$0xff] %v6378_v3  ;;  %v255_v14 = vld [vmem:[%s10638_s0 + $0x70] sm:$0xff]  ;;  %v254_v15 = vld [vmem:[%s10638_s0 + $0x68] sm:$0xff] }
   0x8   :  { %38 = vst [vmem:[#allocation2 + $0x68] sm:$0xff] %v6378_v3  ;;  %39 = vst [vmem:[#allocation2 + $0x70] sm:$0x3] %v6378_v3  ;;  %v257_v16 = vld [vmem:[%s10638_s0 + $0x80] sm:$0xff]  ;;  %v256_v17 = vld [vmem:[%s10638_s0 + $0x78] sm:$0xff] }
   0x9   :  { %40 = vst [vmem:[#allocation2 + $0x78] sm:$0xff] %v6378_v3  ;;  %41 = vst [vmem:[#allocation2 + $0x80] sm:$0xff] %v6378_v3  ;;  %v259_v18 = vld [vmem:[%s10638_s0 + $0x90] sm:$0xff]  ;;  %v258_v19 = vld [vmem:[%s10638_s0 + $0x88] sm:$0xff] }
   0xa   :  { %42 = vst [vmem:[#allocation2 + $0x88] sm:$0x3] %v6378_v3  ;;  %43 = vst [vmem:[#allocation2 + $0x90] sm:$0xff] %v6378_v3  ;;  %v261_v20 = vld [vmem:[%s10638_s0 + $0xa0] sm:$0xff]  ;;  %v260_v21 = vld [vmem:[%s10638_s0 + $0x98] sm:$0xff] }
   0xb   :  { %44 = vst [vmem:[#allocation2 + $0x98] sm:$0xff] %v6378_v3  ;;  %45 = vst [vmem:[#allocation2 + $0xa0] sm:$0x3] %v6378_v3  ;;  %v263_v22 = vld [vmem:[%s10638_s0 + $0xb0] sm:$0xff]  ;;  %v262_v23 = vld [vmem:[%s10638_s0 + $0xa8] sm:$0xff] }
   0xc   :  { %46 = vst [vmem:[#allocation2 + $0xa8] sm:$0xff] %v6378_v3  ;;  %47 = vst [vmem:[#allocation2 + $0xb0] sm:$0xff] %v6378_v3  ;;  %v265_v24 = vld [vmem:[%s10638_s0 + $0xc0] sm:$0xff]  ;;  %v436_v26 = vld [vmem:[#allocation2 + $0x9] sm:$0xff] }
   0xd   :  { %48 = vst [vmem:[#allocation2 + $0xb8] sm:$0x3] %v6378_v3  ;;  %49 = vst [vmem:[#allocation2 + $0xc0] sm:$0xff] %v6378_v3  ;;  %v435_v25 = vld [vmem:[#allocation2 + $0x1] sm:$0xff]  ;;  %v264_v27 = vld [vmem:[%s10638_s0 + $0xb8] sm:$0xff] }
   0xe   :  { %50 = vst [vmem:[#allocation2 + $0xc8] sm:$0xff] %v6378_v3  ;;  %51 = vst [vmem:[#allocation2 + $0xd0] sm:$0x3] %v6378_v3  ;;  %v6040_v29 = vpack.i.bf16 %v436_v26, %v435_v25  ;;  %v267_v34 = vld [vmem:[%s10638_s0 + $0xd0] sm:$0xff]  ;;  %v266_v35 = vld [vmem:[%s10638_s0 + $0xc8] sm:$0xff] }
   0xf   :  { %52 = vst [vmem:[#allocation2 + $0xd8] sm:$0xff] %v6378_v3  ;;  %53 = vst [vmem:[#allocation2 + $0xe0] sm:$0xff] %v6378_v3  ;;  %v269_v37 = vld [vmem:[%s10638_s0 + $0xe0] sm:$0xff]  ;;  %v268_v38 = vld [vmem:[%s10638_s0 + $0xd8] sm:$0xff] }
  0x10   :  { %54 = vst [vmem:[#allocation2 + $0xe8] sm:$0x3] %v6378_v3  ;;  %55 = vst [vmem:[#allocation2 + $0xf0] sm:$0xff] %v6378_v3  ;;  %6041 = vrot.lane.b32.xlu0 %v6040_v29, %s6379_s18  ;;  %v270_v40 = vld [vmem:[%s10638_s0 + $0xe8] sm:$0xff]  ;;  %v273_v42 = vld [vmem:[%s10638_s0 + $0x100] sm:$0xff] }
  0x11   :  { %56 = vst [vmem:[#allocation2 + $0xf8] sm:$0xff] %v6378_v3  ;;  %57 = vst [vmem:[#allocation2 + $0x100] sm:$0x3] %v6378_v3  ;;  %v274_v41 = vld [vmem:[%s10638_s0 + $0x108] sm:$0xff]  ;;  %v276_v43 = vld [vmem:[%s10638_s0 + $0x118] sm:$0xff] }
  0x12   :  { %58 = vst [vmem:[#allocation2 + $0x108] sm:$0xff] %v6378_v3  ;;  %59 = vst [vmem:[#allocation2 + $0x110] sm:$0xff] %v6378_v3  ;;  %v275_v44 = vld [vmem:[%s10638_s0 + $0x110] sm:$0xff]  ;;  %v278_v46 = vld [vmem:[%s10638_s0 + $0x128] sm:$0xff] }
  0x13   :  { %60 = vst [vmem:[#allocation2 + $0x118] sm:$0x3] %v6378_v3  ;;  %61 = vst [vmem:[#allocation2 + $0x120] sm:$0xff] %v6378_v3  ;;  %v277_v47 = vld [vmem:[%s10638_s0 + $0x120] sm:$0xff]  ;;  %v280_v48 = vld [vmem:[%s10638_s0 + $0x138] sm:$0xff] }
  0x14   :  { %62 = vst [vmem:[#allocation2 + $0x128] sm:$0xff] %v6378_v3  ;;  %63 = vst [vmem:[#allocation2 + $0x130] sm:$0x3] %v6378_v3  ;;  %v279_v50 = vld [vmem:[%s10638_s0 + $0x130] sm:$0xff]  ;;  %v282_v51 = vld [vmem:[%s10638_s0 + $0x148] sm:$0xff] }
  0x15   :  { %64 = vst [vmem:[#allocation2 + $0x138] sm:$0xff] %v6378_v3  ;;  %65 = vst [vmem:[#allocation2 + $0x140] sm:$0xff] %v6378_v3  ;;  %v281_v52 = vld [vmem:[%s10638_s0 + $0x140] sm:$0xff]  ;;  %v284_v53 = vld [vmem:[%s10638_s0 + $0x158] sm:$0xff] }
  0x16   :  { %66 = vst [vmem:[#allocation2 + $0x148] sm:$0x3] %v6378_v3  ;;  %67 = vst [vmem:[#allocation2 + $0x150] sm:$0xff] %v6378_v3  ;;  %v283_v54 = vld [vmem:[%s10638_s0 + $0x150] sm:$0xff]  ;;  %v286_v55 = vld [vmem:[%s10638_s0 + $0x168] sm:$0xff] }
  0x17   :  { %68 = vst [vmem:[#allocation2 + $0x158] sm:$0xff] %v6378_v3  ;;  %69 = vst [vmem:[#allocation2 + $0x160] sm:$0x3] %v6378_v3  ;;  %v285_v56 = vld [vmem:[%s10638_s0 + $0x160] sm:$0xff]  ;;  %v288_v57 = vld [vmem:[%s10638_s0 + $0x178] sm:$0xff] }
  0x18   :  { %70 = vst [vmem:[#allocation2 + $0x168] sm:$0xff] %v6378_v3  ;;  %71 = vst [vmem:[#allocation2 + $0x170] sm:$0xff] %v6378_v3  ;;  %v287_v58 = vld [vmem:[%s10638_s0 + $0x170] sm:$0xff]  ;;  %v290_v59 = vld [vmem:[%s10638_s0 + $0x188] sm:$0xff] }
  0x19   :  { %72 = vst [vmem:[#allocation2 + $0x178] sm:$0x3] %v6378_v3  ;;  %73 = vst [vmem:[#allocation2 + $0x180] sm:$0xff] %v6378_v3  ;;  %v289_v60 = vld [vmem:[%s10638_s0 + $0x180] sm:$0xff]  ;;  %v292_v62 = vld [vmem:[%s10638_s0 + $0x198] sm:$0xff] }
  0x1a   :  { %74 = vst [vmem:[#allocation2 + $0x188] sm:$0xff] %v6378_v3  ;;  %75 = vst [vmem:[#allocation2 + $0x190] sm:$0x3] %v6378_v3 }
  0x1b   :  { %76 = vst [vmem:[#allocation2 + $0x198] sm:$0xff] %v6378_v3  ;;  %77 = vst [vmem:[#allocation2 + $0x1a0] sm:$0xff] %v6378_v3 }
  0x1c   :  { %78 = vst [vmem:[#allocation2 + $0x1a8] sm:$0x3] %v6378_v3  ;;  %79 = vst [vmem:[#allocation2 + $0x1b0] sm:$0xff] %v6378_v3 }
  0x1d   :  { %80 = vst [vmem:[#allocation2 + $0x1b8] sm:$0xff] %v6378_v3  ;;  %81 = vst [vmem:[#allocation2 + $0x1c0] sm:$0x3] %v6378_v3 }
  0x1e   :  { %82 = vst [vmem:[#allocation2 + $0x1c8] sm:$0xff] %v6378_v3  ;;  %83 = vst [vmem:[#allocation2 + $0x1d0] sm:$0xff] %v6378_v3 }
  0x1f   :  { %84 = vst [vmem:[#allocation2 + $0x1d8] sm:$0x3] %v6378_v3  ;;  %85 = vst [vmem:[#allocation2 + $0x1e0] sm:$0xff] %v6378_v3 }
  0x20   :  { %86 = vst [vmem:[#allocation2 + $0x1e8] sm:$0xff] %v6378_v3  ;;  %87 = vst [vmem:[#allocation2 + $0x1f0] sm:$0x3] %v6378_v3 }
  0x21   :  { %88 = vst [vmem:[#allocation2 + $0x1f8] sm:$0xff] %v6378_v3  ;;  %89 = vst [vmem:[#allocation2 + $0x200] sm:$0xff] %v6378_v3 }
  0x22   :  { %90 = vst [vmem:[#allocation2 + $0x208] sm:$0x3] %v6378_v3  ;;  %91 = vst [vmem:[#allocation2 + $0x210] sm:$0xff] %v6378_v3 }
  0x23   :  { %92 = vst [vmem:[#allocation2 + $0x218] sm:$0xff] %v6378_v3  ;;  %93 = vst [vmem:[#allocation2 + $0x220] sm:$0x3] %v6378_v3 }
  0x24   :  { %94 = vst [vmem:[#allocation2 + $0x228] sm:$0xff] %v6378_v3  ;;  %95 = vst [vmem:[#allocation2 + $0x230] sm:$0xff] %v6378_v3 }
  0x25   :  { %96 = vst [vmem:[#allocation2 + $0x238] sm:$0x3] %v6378_v3  ;;  %97 = vst [vmem:[#allocation2 + $0x240] sm:$0xff] %v6378_v3 }
  0x26   :  { %98 = vst [vmem:[#allocation2 + $0x248] sm:$0xff] %v6378_v3  ;;  %99 = vst [vmem:[#allocation2 + $0x250] sm:$0x3] %v6378_v3 }
  0x27   :  { %100 = vst [vmem:[#allocation2 + $0x258] sm:$0xff] %v6378_v3  ;;  %101 = vst [vmem:[#allocation2 + $0x260] sm:$0xff] %v6378_v3 }
  0x28   :  { %102 = vst [vmem:[#allocation2 + $0x268] sm:$0x3] %v6378_v3  ;;  %103 = vst [vmem:[#allocation2 + $0x270] sm:$0xff] %v6378_v3 }
  0x29   :  { %104 = vst [vmem:[#allocation2 + $0x278] sm:$0xff] %v6378_v3  ;;  %105 = vst [vmem:[#allocation2 + $0x280] sm:$0x3] %v6378_v3 }
  0x2a   :  { %106 = vst [vmem:[#allocation2 + $0x288] sm:$0xff] %v6378_v3  ;;  %107 = vst [vmem:[#allocation2 + $0x290] sm:$0xff] %v6378_v3 }
  0x2b   :  { %108 = vst [vmem:[#allocation2 + $0x298] sm:$0x3] %v6378_v3  ;;  %109 = vst [vmem:[#allocation2 + $0x2a0] sm:$0xff] %v6378_v3 }
  0x2c   :  { %110 = vst [vmem:[#allocation2 + $0x2a8] sm:$0xff] %v6378_v3  ;;  %111 = vst [vmem:[#allocation2 + $0x2b0] sm:$0x3] %v6378_v3 }
  0x2d   :  { %112 = vst [vmem:[#allocation2 + $0x2b8] sm:$0xff] %v6378_v3  ;;  %113 = vst [vmem:[#allocation2 + $0x2c0] sm:$0xff] %v6378_v3 }
  0x2e   :  { %114 = vst [vmem:[#allocation2 + $0x2c8] sm:$0x3] %v6378_v3  ;;  %115 = vst [vmem:[#allocation2 + $0x2d0] sm:$0xff] %v6378_v3 }
  0x2f   :  { %116 = vst [vmem:[#allocation2 + $0x2d8] sm:$0xff] %v6378_v3  ;;  %117 = vst [vmem:[#allocation2 + $0x2e0] sm:$0x3] %v6378_v3 }
  0x30   :  { %118 = vst [vmem:[#allocation2 + $0x2e8] sm:$0xff] %v6378_v3  ;;  %119 = vst [vmem:[#allocation2 + $0x2f0] sm:$0xff] %v6378_v3 }
  0x31   :  { %120 = vst [vmem:[#allocation2 + $0x2f8] sm:$0x3] %v6378_v3  ;;  %121 = vst [vmem:[#allocation2 + $0x300] sm:$0xff] %v6378_v3 }
  0x32   :  { %122 = vst [vmem:[#allocation2 + $0x308] sm:$0xff] %v6378_v3  ;;  %123 = vst [vmem:[#allocation2 + $0x310] sm:$0x3] %v6378_v3 }
  0x33   :  { %124 = vst [vmem:[#allocation2 + $0x318] sm:$0xff] %v6378_v3  ;;  %125 = vst [vmem:[#allocation2 + $0x320] sm:$0xff] %v6378_v3 }
  0x34   :  { %126 = vst [vmem:[#allocation2 + $0x328] sm:$0x3] %v6378_v3  ;;  %127 = vst [vmem:[#allocation2 + $0x330] sm:$0xff] %v6378_v3 }
  0x35   :  { %128 = vst [vmem:[#allocation2 + $0x338] sm:$0xff] %v6378_v3  ;;  %129 = vst [vmem:[#allocation2 + $0x340] sm:$0x3] %v6378_v3 }
  0x36   :  { %130 = vst [vmem:[#allocation2 + $0x348] sm:$0xff] %v6378_v3  ;;  %131 = vst [vmem:[#allocation2 + $0x350] sm:$0xff] %v6378_v3 }
  0x37   :  { %132 = vst [vmem:[#allocation2 + $0x358] sm:$0x3] %v6378_v3  ;;  %133 = vst [vmem:[#allocation3] sm:$0xff] %v6378_v3 }
  0x38   :  { %134 = vst [vmem:[#allocation3 + $0x8] sm:$0xff] %v6378_v3  ;;  %135 = vst [vmem:[#allocation3 + $0x10] sm:$0x3] %v6378_v3 }
  0x39   :  { %136 = vst [vmem:[#allocation3 + $0x18] sm:$0xff] %v6378_v3  ;;  %137 = vst [vmem:[#allocation3 + $0x20] sm:$0xff] %v6378_v3 }
  0x3a   :  { %138 = vst [vmem:[#allocation3 + $0x28] sm:$0x3] %v6378_v3  ;;  %139 = vst [vmem:[#allocation3 + $0x30] sm:$0xff] %v6378_v3 }
  0x3b   :  { %140 = vst [vmem:[#allocation3 + $0x38] sm:$0xff] %v6378_v3  ;;  %141 = vst [vmem:[#allocation3 + $0x40] sm:$0x3] %v6378_v3 }
  0x3c   :  { %142 = vst [vmem:[#allocation3 + $0x48] sm:$0xff] %v6378_v3  ;;  %143 = vst [vmem:[#allocation3 + $0x50] sm:$0xff] %v6378_v3 }
  0x3d   :  { %144 = vst [vmem:[#allocation3 + $0x58] sm:$0x3] %v6378_v3  ;;  %145 = vst [vmem:[#allocation3 + $0x60] sm:$0xff] %v6378_v3 }
  0x3e   :  { %146 = vst [vmem:[#allocation3 + $0x68] sm:$0xff] %v6378_v3  ;;  %147 = vst [vmem:[#allocation3 + $0x70] sm:$0x3] %v6378_v3 }
  0x3f   :  { %148 = vst [vmem:[#allocation3 + $0x78] sm:$0xff] %v6378_v3  ;;  %149 = vst [vmem:[#allocation3 + $0x80] sm:$0xff] %v6378_v3 }
  0x40   :  { %150 = vst [vmem:[#allocation3 + $0x88] sm:$0x3] %v6378_v3  ;;  %151 = vst [vmem:[#allocation3 + $0x90] sm:$0xff] %v6378_v3 }
  0x41   :  { %152 = vst [vmem:[#allocation3 + $0x98] sm:$0xff] %v6378_v3  ;;  %153 = vst [vmem:[#allocation3 + $0xa0] sm:$0x3] %v6378_v3 }
  0x42   :  { %154 = vst [vmem:[#allocation3 + $0xa8] sm:$0xff] %v6378_v3  ;;  %155 = vst [vmem:[#allocation3 + $0xb0] sm:$0xff] %v6378_v3 }
  0x43   :  { %156 = vst [vmem:[#allocation3 + $0xb8] sm:$0x3] %v6378_v3  ;;  %157 = vst [vmem:[#allocation3 + $0xc0] sm:$0xff] %v6378_v3 }
  0x44   :  { %158 = vst [vmem:[#allocation3 + $0xc8] sm:$0xff] %v6378_v3  ;;  %159 = vst [vmem:[#allocation3 + $0xd0] sm:$0x3] %v6378_v3 }
  0x45   :  { %160 = vst [vmem:[#allocation3 + $0xd8] sm:$0xff] %v6378_v3  ;;  %161 = vst [vmem:[#allocation3 + $0xe0] sm:$0xff] %v6378_v3 }
  0x46   :  { %162 = vst [vmem:[#allocation3 + $0xe8] sm:$0x3] %v6378_v3  ;;  %163 = vst [vmem:[#allocation3 + $0xf0] sm:$0xff] %v6378_v3 }
  0x47   :  { %164 = vst [vmem:[#allocation3 + $0xf8] sm:$0xff] %v6378_v3  ;;  %165 = vst [vmem:[#allocation3 + $0x100] sm:$0x3] %v6378_v3 }
  0x48   :  { %166 = vst [vmem:[#allocation3 + $0x108] sm:$0xff] %v6378_v3  ;;  %167 = vst [vmem:[#allocation3 + $0x110] sm:$0xff] %v6378_v3 }
  0x49   :  { %168 = vst [vmem:[#allocation3 + $0x118] sm:$0x3] %v6378_v3  ;;  %169 = vst [vmem:[#allocation3 + $0x120] sm:$0xff] %v6378_v3 }
  0x4a   :  { %170 = vst [vmem:[#allocation3 + $0x128] sm:$0xff] %v6378_v3  ;;  %171 = vst [vmem:[#allocation3 + $0x130] sm:$0x3] %v6378_v3 }
  0x4b   :  { %172 = vst [vmem:[#allocation3 + $0x138] sm:$0xff] %v6378_v3  ;;  %173 = vst [vmem:[#allocation3 + $0x140] sm:$0xff] %v6378_v3 }
  0x4c   :  { %174 = vst [vmem:[#allocation3 + $0x148] sm:$0x3] %v6378_v3  ;;  %175 = vst [vmem:[#allocation3 + $0x150] sm:$0xff] %v6378_v3 }
  0x4d   :  { %176 = vst [vmem:[#allocation3 + $0x158] sm:$0xff] %v6378_v3  ;;  %177 = vst [vmem:[#allocation3 + $0x160] sm:$0x3] %v6378_v3 }
  0x4e   :  { %178 = vst [vmem:[#allocation3 + $0x168] sm:$0xff] %v6378_v3  ;;  %179 = vst [vmem:[#allocation3 + $0x170] sm:$0xff] %v6378_v3 }
  0x4f   :  { %180 = vst [vmem:[#allocation3 + $0x178] sm:$0x3] %v6378_v3  ;;  %181 = vst [vmem:[#allocation3 + $0x180] sm:$0xff] %v6378_v3 }
  0x50   :  { %182 = vst [vmem:[#allocation3 + $0x188] sm:$0xff] %v6378_v3  ;;  %183 = vst [vmem:[#allocation3 + $0x190] sm:$0x3] %v6378_v3 }
  0x51   :  { %184 = vst [vmem:[#allocation3 + $0x198] sm:$0xff] %v6378_v3  ;;  %185 = vst [vmem:[#allocation3 + $0x1a0] sm:$0xff] %v6378_v3 }
  0x52   :  { %186 = vst [vmem:[#allocation3 + $0x1a8] sm:$0x3] %v6378_v3  ;;  %187 = vst [vmem:[#allocation3 + $0x1b0] sm:$0xff] %v6378_v3 }
  0x53   :  { %188 = vst [vmem:[#allocation3 + $0x1b8] sm:$0xff] %v6378_v3  ;;  %189 = vst [vmem:[#allocation3 + $0x1c0] sm:$0x3] %v6378_v3 }
  0x54   :  { %190 = vst [vmem:[#allocation3 + $0x1c8] sm:$0xff] %v6378_v3  ;;  %191 = vst [vmem:[#allocation3 + $0x1d0] sm:$0xff] %v6378_v3 }
  0x55   :  { %192 = vst [vmem:[#allocation3 + $0x1d8] sm:$0x3] %v6378_v3  ;;  %193 = vst [vmem:[#allocation3 + $0x1e0] sm:$0xff] %v6378_v3 }
  0x56   :  { %194 = vst [vmem:[#allocation3 + $0x1e8] sm:$0xff] %v6378_v3  ;;  %195 = vst [vmem:[#allocation3 + $0x1f0] sm:$0x3] %v6378_v3 }
  0x57   :  { %196 = vst [vmem:[#allocation3 + $0x1f8] sm:$0xff] %v6378_v3  ;;  %197 = vst [vmem:[#allocation3 + $0x200] sm:$0xff] %v6378_v3 }
  0x58   :  { %198 = vst [vmem:[#allocation3 + $0x208] sm:$0x3] %v6378_v3  ;;  %199 = vst [vmem:[#allocation3 + $0x210] sm:$0xff] %v6378_v3 }
  0x59   :  { %200 = vst [vmem:[#allocation3 + $0x218] sm:$0xff] %v6378_v3  ;;  %201 = vst [vmem:[#allocation3 + $0x220] sm:$0x3] %v6378_v3 }
  0x5a   :  { %202 = vst [vmem:[#allocation3 + $0x228] sm:$0xff] %v6378_v3  ;;  %203 = vst [vmem:[#allocation3 + $0x230] sm:$0xff] %v6378_v3 }
  0x5b   :  { %204 = vst [vmem:[#allocation3 + $0x238] sm:$0x3] %v6378_v3  ;;  %205 = vst [vmem:[#allocation3 + $0x240] sm:$0xff] %v6378_v3 }
  0x5c   :  { %206 = vst [vmem:[#allocation3 + $0x248] sm:$0xff] %v6378_v3  ;;  %207 = vst [vmem:[#allocation3 + $0x250] sm:$0x3] %v6378_v3 }
  0x5d   :  { %208 = vst [vmem:[#allocation3 + $0x258] sm:$0xff] %v6378_v3  ;;  %209 = vst [vmem:[#allocation3 + $0x260] sm:$0xff] %v6378_v3 }
  0x5e   :  { %210 = vst [vmem:[#allocation3 + $0x268] sm:$0x3] %v6378_v3  ;;  %211 = vst [vmem:[#allocation3 + $0x270] sm:$0xff] %v6378_v3 }
  0x5f   :  { %212 = vst [vmem:[#allocation3 + $0x278] sm:$0xff] %v6378_v3  ;;  %213 = vst [vmem:[#allocation3 + $0x280] sm:$0x3] %v6378_v3 }
  0x60   :  { %214 = vst [vmem:[#allocation3 + $0x288] sm:$0xff] %v6378_v3  ;;  %215 = vst [vmem:[#allocation3 + $0x290] sm:$0xff] %v6378_v3 }
  0x61   :  { %216 = vst [vmem:[#allocation3 + $0x298] sm:$0x3] %v6378_v3  ;;  %217 = vst [vmem:[#allocation3 + $0x2a0] sm:$0xff] %v6378_v3 }
  0x62   :  { %218 = vst [vmem:[#allocation3 + $0x2a8] sm:$0xff] %v6378_v3  ;;  %219 = vst [vmem:[#allocation3 + $0x2b0] sm:$0x3] %v6378_v3 }
  0x63   :  { %220 = vst [vmem:[#allocation3 + $0x2b8] sm:$0xff] %v6378_v3  ;;  %221 = vst [vmem:[#allocation3 + $0x2c0] sm:$0xff] %v6378_v3 }
  0x64   :  { %222 = vst [vmem:[#allocation3 + $0x2c8] sm:$0x3] %v6378_v3  ;;  %223 = vst [vmem:[#allocation3 + $0x2d0] sm:$0xff] %v6378_v3 }
  0x65   :  { %224 = vst [vmem:[#allocation3 + $0x2d8] sm:$0xff] %v6378_v3  ;;  %225 = vst [vmem:[#allocation3 + $0x2e0] sm:$0x3] %v6378_v3 }
  0x66   :  { %226 = vst [vmem:[#allocation3 + $0x2e8] sm:$0xff] %v6378_v3  ;;  %227 = vst [vmem:[#allocation3 + $0x2f0] sm:$0xff] %v6378_v3 }
  0x67   :  { %228 = vst [vmem:[#allocation3 + $0x2f8] sm:$0x3] %v6378_v3  ;;  %229 = vst [vmem:[#allocation3 + $0x300] sm:$0xff] %v6378_v3 }
  0x68   :  { %230 = vst [vmem:[#allocation3 + $0x308] sm:$0xff] %v6378_v3  ;;  %231 = vst [vmem:[#allocation3 + $0x310] sm:$0x3] %v6378_v3 }
  0x69   :  { %232 = vst [vmem:[#allocation3 + $0x318] sm:$0xff] %v6378_v3  ;;  %233 = vst [vmem:[#allocation3 + $0x320] sm:$0xff] %v6378_v3 }
  0x6a   :  { %234 = vst [vmem:[#allocation3 + $0x328] sm:$0x3] %v6378_v3  ;;  %235 = vst [vmem:[#allocation3 + $0x330] sm:$0xff] %v6378_v3 }
  0x6b   :  { %236 = vst [vmem:[#allocation3 + $0x338] sm:$0xff] %v6378_v3  ;;  %237 = vst [vmem:[#allocation3 + $0x340] sm:$0x3] %v6378_v3 }
  0x6c   :  { %238 = vst [vmem:[#allocation3 + $0x348] sm:$0xff] %v6378_v3  ;;  %239 = vst [vmem:[#allocation3 + $0x350] sm:$0xff] %v6378_v3 }
  0x6d   :  { %240 = vst [vmem:[#allocation3 + $0x358] sm:$0x3] %v6378_v3  ;;  %308 = vst.msk [vmem:[#allocation2 + $0x21] sm:$0xff] %vm306_vm0, %v6427_v0  ;;  %v294_v3 = vld [vmem:[%s10638_s0 + $0x1a8] sm:$0xff] }
  0x6e   :  { %309 = vst.msk [vmem:[#allocation2 + $0x31] sm:$0xff] %vm306_vm0, %v6432_v1  ;;  %307 = vst.msk [vmem:[#allocation2 + $0x19] sm:$0xff] %vm306_vm0, %v6437_v2  ;;  %v291_v2 = vld [vmem:[%s10638_s0 + $0x190] sm:$0xff] }
  0x6f   :  { %311 = vst.msk [vmem:[#allocation2 + $0x49] sm:$0xff] %vm306_vm0, %v245_v4  ;;  %310 = vst.msk [vmem:[#allocation2 + $0x39] sm:$0xff] %vm306_vm0, %v244_v5  ;;  %v293_v4 = vld [vmem:[%s10638_s0 + $0x1a0] sm:$0xff]  ;;  %v296_v5 = vld [vmem:[%s10638_s0 + $0x1b8] sm:$0xff] }
  0x70   :  { %313 = vst.msk [vmem:[#allocation2 + $0x61] sm:$0xff] %vm306_vm0, %v247_v6  ;;  %312 = vst.msk [vmem:[#allocation2 + $0x51] sm:$0xff] %vm306_vm0, %v246_v7  ;;  %v295_v7 = vld [vmem:[%s10638_s0 + $0x1b0] sm:$0xff] }
  0x71   :  { %315 = vst.msk [vmem:[#allocation2 + $0x79] sm:$0xff] %vm306_vm0, %v249_v8  ;;  %314 = vst.msk [vmem:[#allocation2 + $0x69] sm:$0xff] %vm306_vm0, %v248_v9  ;;  %v298_v8 = vld [vmem:[%s10638_s0 + $0x1c8] sm:$0xff] }
  0x72   :  { %317 = vst.msk [vmem:[#allocation2 + $0x91] sm:$0xff] %vm306_vm0, %v251_v10  ;;  %316 = vst.msk [vmem:[#allocation2 + $0x81] sm:$0xff] %vm306_vm0, %v250_v11  ;;  %v297_v10 = vld [vmem:[%s10638_s0 + $0x1c0] sm:$0xff]  ;;  %v300_v11 = vld [vmem:[%s10638_s0 + $0x1d8] sm:$0xff] }
  0x73   :  { %319 = vst.msk [vmem:[#allocation2 + $0xa9] sm:$0xff] %vm306_vm0, %v253_v12  ;;  %318 = vst.msk [vmem:[#allocation2 + $0x99] sm:$0xff] %vm306_vm0, %v252_v13  ;;  %v299_v12 = vld [vmem:[%s10638_s0 + $0x1d0] sm:$0xff]  ;;  %v302_v13 = vld [vmem:[%s10638_s0 + $0x1e8] sm:$0xff] }
  0x74   :  { %321 = vst.msk [vmem:[#allocation2 + $0xc1] sm:$0xff] %vm306_vm0, %v255_v14  ;;  %320 = vst.msk [vmem:[#allocation2 + $0xb1] sm:$0xff] %vm306_vm0, %v254_v15  ;;  %v438_v28 = vld [vmem:[#allocation2 + $0x21] sm:$0xff] }
  0x75   :  { %323 = vst.msk [vmem:[#allocation2 + $0xd9] sm:$0xff] %vm306_vm0, %v257_v16  ;;  %322 = vst.msk [vmem:[#allocation2 + $0xc9] sm:$0xff] %vm306_vm0, %v256_v17  ;;  %954 = vrot.lane.b32.xlu1 %v438_v28, %s6379_s18  ;;  %v439_v30 = vld [vmem:[#allocation2 + $0x31] sm:$0xff]  ;;  %v437_v31 = vld [vmem:[#allocation2 + $0x19] sm:$0xff] }
  0x76   :  { %325 = vst.msk [vmem:[#allocation2 + $0xf1] sm:$0xff] %vm306_vm0, %v259_v18  ;;  %324 = vst.msk [vmem:[#allocation2 + $0xe1] sm:$0xff] %vm306_vm0, %v258_v19  ;;  %952 = vrot.lane.b32.xlu0 %v437_v31, %s6379_s18  ;;  %v441_v32 = vld [vmem:[#allocation2 + $0x49] sm:$0xff]  ;;  %v440_v33 = vld [vmem:[#allocation2 + $0x39] sm:$0xff] }
  0x77   :  { %327 = vst.msk [vmem:[#allocation2 + $0x109] sm:$0xff] %vm306_vm0, %v261_v20  ;;  %326 = vst.msk [vmem:[#allocation2 + $0xf9] sm:$0xff] %vm306_vm0, %v260_v21  ;;  %v443_v36 = vld [vmem:[#allocation2 + $0x61] sm:$0xff]  ;;  %v442_v39 = vld [vmem:[#allocation2 + $0x51] sm:$0xff] }
  0x78   :  { %329 = vst.msk [vmem:[#allocation2 + $0x121] sm:$0xff] %vm306_vm0, %v263_v22  ;;  %328 = vst.msk [vmem:[#allocation2 + $0x111] sm:$0xff] %vm306_vm0, %v262_v23  ;;  %v445_v45 = vld [vmem:[#allocation2 + $0x79] sm:$0xff]  ;;  %v444_v49 = vld [vmem:[#allocation2 + $0x69] sm:$0xff] }
  0x79   :  { %331 = vst.msk [vmem:[#allocation2 + $0x139] sm:$0xff] %vm306_vm0, %v265_v24  ;;  %330 = vst.msk [vmem:[#allocation2 + $0x129] sm:$0xff] %vm306_vm0, %v264_v27  ;;  %956 = vrot.lane.b32.xlu1 %v439_v30, %s6379_s18  ;;  %v447_v61 = vld [vmem:[#allocation2 + $0x91] sm:$0xff]  ;;  %v446_v63 = vld [vmem:[#allocation2 + $0x81] sm:$0xff] }
  0x7a   :  { %333 = vst.msk [vmem:[#allocation2 + $0x151] sm:$0xff] %vm306_vm0, %v267_v34  ;;  %332 = vst.msk [vmem:[#allocation2 + $0x141] sm:$0xff] %vm306_vm0, %v266_v35  ;;  %958 = vrot.lane.b32.xlu0 %v440_v33, %s6379_s18  ;;  %v449_v0 = vld [vmem:[#allocation2 + $0xa9] sm:$0xff]  ;;  %v448_v1 = vld [vmem:[#allocation2 + $0x99] sm:$0xff] }
  0x7b   :  { %335 = vst.msk [vmem:[#allocation2 + $0x169] sm:$0xff] %vm306_vm0, %v269_v37  ;;  %334 = vst.msk [vmem:[#allocation2 + $0x159] sm:$0xff] %vm306_vm0, %v268_v38  ;;  %v451_v6 = vld [vmem:[#allocation2 + $0xc1] sm:$0xff]  ;;  %v450_v9 = vld [vmem:[#allocation2 + $0xb1] sm:$0xff] }
  0x7c   :  { %336 = vst.msk [vmem:[#allocation2 + $0x171] sm:$0xff] %vm306_vm0, %v270_v40  ;;  %340 = vst.msk [vmem:[#allocation2 + $0x1d1] sm:$0xff] %vm306_vm0, %v274_v41  ;;  %v301_v14 = vld [vmem:[%s10638_s0 + $0x1e0] sm:$0xff]  ;;  %v452_v16 = vld [vmem:[#allocation2 + $0xc9] sm:$0xff] }
  0x7d   :  { %960 = vrot.lane.b32.xlu1 %v441_v32, %s6379_s18  ;;  %339 = vst.msk [vmem:[#allocation2 + $0x1c9] sm:$0xff] %vm306_vm0, %v273_v42  ;;  %342 = vst.msk [vmem:[#allocation2 + $0x1e9] sm:$0xff] %vm306_vm0, %v276_v43  ;;  %v453_v15 = vld [vmem:[#allocation2 + $0xd9] sm:$0xff]  ;;  %v455_v17 = vld [vmem:[#allocation2 + $0xf1] sm:$0xff] }
  0x7e   :  { %341 = vst.msk [vmem:[#allocation2 + $0x1e1] sm:$0xff] %vm306_vm0, %v275_v44  ;;  %344 = vst.msk [vmem:[#allocation2 + $0x201] sm:$0xff] %vm306_vm0, %v278_v46  ;;  %962 = vrot.lane.b32.xlu0 %v442_v39, %s6379_s18  ;;  %v454_v18 = vld [vmem:[#allocation2 + $0xe1] sm:$0xff]  ;;  %v457_v19 = vld [vmem:[#allocation2 + $0x109] sm:$0xff] }
  0x7f   :  { %343 = vst.msk [vmem:[#allocation2 + $0x1f9] sm:$0xff] %vm306_vm0, %v277_v47  ;;  %346 = vst.msk [vmem:[#allocation2 + $0x219] sm:$0xff] %vm306_vm0, %v280_v48  ;;  %v456_v20 = vld [vmem:[#allocation2 + $0xf9] sm:$0xff]  ;;  %v459_v21 = vld [vmem:[#allocation2 + $0x121] sm:$0xff] }
  0x80   :  { %345 = vst.msk [vmem:[#allocation2 + $0x211] sm:$0xff] %vm306_vm0, %v279_v50  ;;  %348 = vst.msk [vmem:[#allocation2 + $0x231] sm:$0xff] %vm306_vm0, %v282_v51  ;;  %v458_v22 = vld [vmem:[#allocation2 + $0x111] sm:$0xff]  ;;  %v461_v23 = vld [vmem:[#allocation2 + $0x139] sm:$0xff] }
  0x81   :  { %964 = vrot.lane.b32.xlu1 %v443_v36, %s6379_s18  ;;  %347 = vst.msk [vmem:[#allocation2 + $0x229] sm:$0xff] %vm306_vm0, %v281_v52  ;;  %350 = vst.msk [vmem:[#allocation2 + $0x249] sm:$0xff] %vm306_vm0, %v284_v53  ;;  %v460_v24 = vld [vmem:[#allocation2 + $0x129] sm:$0xff]  ;;  %v463_v25 = vld [vmem:[#allocation2 + $0x151] sm:$0xff] }
  0x82   :  { %349 = vst.msk [vmem:[#allocation2 + $0x241] sm:$0xff] %vm306_vm0, %v283_v54  ;;  %352 = vst.msk [vmem:[#allocation2 + $0x261] sm:$0xff] %vm306_vm0, %v286_v55  ;;  %966 = vrot.lane.b32.xlu0 %v444_v49, %s6379_s18  ;;  %v462_v26 = vld [vmem:[#allocation2 + $0x141] sm:$0xff] }
  0x83   :  { %351 = vst.msk [vmem:[#allocation2 + $0x259] sm:$0xff] %vm306_vm0, %v285_v56  ;;  %354 = vst.msk [vmem:[#allocation2 + $0x279] sm:$0xff] %vm306_vm0, %v288_v57 }
  0x84   :  { %353 = vst.msk [vmem:[#allocation2 + $0x271] sm:$0xff] %vm306_vm0, %v287_v58  ;;  %356 = vst.msk [vmem:[#allocation2 + $0x291] sm:$0xff] %vm306_vm0, %v290_v59 }
  0x85   :  { %968 = vrot.lane.b32.xlu1 %v445_v45, %s6379_s18  ;;  %355 = vst.msk [vmem:[#allocation2 + $0x289] sm:$0xff] %vm306_vm0, %v289_v60  ;;  %358 = vst.msk [vmem:[#allocation2 + $0x2a9] sm:$0xff] %vm306_vm0, %v292_v62 }
  0x86   :  { %970 = vrot.lane.b32.xlu0 %v446_v63, %s6379_s18  ;;  %357 = vst.msk [vmem:[#allocation2 + $0x2a1] sm:$0xff] %vm306_vm0, %v291_v2  ;;  %360 = vst.msk [vmem:[#allocation2 + $0x2c1] sm:$0xff] %vm306_vm0, %v294_v3 }
  0x87   :  { %359 = vst.msk [vmem:[#allocation2 + $0x2b9] sm:$0xff] %vm306_vm0, %v293_v4  ;;  %362 = vst.msk [vmem:[#allocation2 + $0x2d9] sm:$0xff] %vm306_vm0, %v296_v5 }
  0x88   :  { %361 = vst.msk [vmem:[#allocation2 + $0x2d1] sm:$0xff] %vm306_vm0, %v295_v7  ;;  %364 = vst.msk [vmem:[#allocation2 + $0x2f1] sm:$0xff] %vm306_vm0, %v298_v8 }
  0x89   :  { %972 = vrot.lane.b32.xlu1 %v447_v61, %s6379_s18  ;;  %363 = vst.msk [vmem:[#allocation2 + $0x2e9] sm:$0xff] %vm306_vm0, %v297_v10  ;;  %366 = vst.msk [vmem:[#allocation2 + $0x309] sm:$0xff] %vm306_vm0, %v300_v11 }
  0x8a   :  { %974 = vrot.lane.b32.xlu0 %v448_v1, %s6379_s18  ;;  %365 = vst.msk [vmem:[#allocation2 + $0x301] sm:$0xff] %vm306_vm0, %v299_v12  ;;  %368 = vst.msk [vmem:[#allocation2 + $0x321] sm:$0xff] %vm306_vm0, %v302_v13 }
  0x8b   :  { %367 = vst.msk [vmem:[#allocation2 + $0x319] sm:$0xff] %vm306_vm0, %v301_v14 }
  0x8d   :  { %976 = vrot.lane.b32.xlu1 %v449_v0, %s6379_s18 }
  0x8e   :  { %978 = vrot.lane.b32.xlu0 %v450_v9, %s6379_s18 }
  0x91   :  { %980 = vrot.lane.b32.xlu1 %v451_v6, %s6379_s18 }
  0x92   :  { %982 = vrot.lane.b32.xlu0 %v452_v16, %s6379_s18 }
  0x95   :  { %984 = vrot.lane.b32.xlu1 %v453_v15, %s6379_s18 }
  0x96   :  { %986 = vrot.lane.b32.xlu0 %v454_v18, %s6379_s18 }
  0x99   :  { %988 = vrot.lane.b32.xlu1 %v455_v17, %s6379_s18 }
  0x9a   :  { %990 = vrot.lane.b32.xlu0 %v456_v20, %s6379_s18 }
  0x9d   :  { %992 = vrot.lane.b32.xlu1 %v457_v19, %s6379_s18 }
  0x9e   :  { %994 = vrot.lane.b32.xlu0 %v458_v22, %s6379_s18 }
  0xa1   :  { %996 = vrot.lane.b32.xlu1 %v459_v21, %s6379_s18 }
  0xa2   :  { %998 = vrot.lane.b32.xlu0 %v460_v24, %s6379_s18 }
  0xa5   :  { %1000 = vrot.lane.b32.xlu1 %v461_v23, %s6379_s18 }
  0xa9   :  { %1004 = vrot.lane.b32.xlu1 %v463_v25, %s6379_s18 }
  0xaa   :  { %10 = vsyncpa [#allocation5], 0  ;;  %1002 = vrot.lane.b32.xlu0 %v462_v26, %s6379_s18  ;;  %v465_v27 = vld [vmem:[#allocation2 + $0x169] sm:$0xff]  ;;  %v467_v28 = vld [vmem:[#allocation2 + $0x1b1] sm:$0xff]  ;;  %v6949_v62 = vpop.permute.xlu0 %6041  ;;  %s6380_s16 = smov 8   ;;  %s6382_s25 = smov 16  }
  0xab   :  { %v468_v29 = vld [vmem:[#allocation2 + $0x1b9] sm:$0xff]  ;;  %v466_v32 = vld [vmem:[#allocation2 + $0x171] sm:$0xff]  ;;  %v469_v34 = vld [vmem:[#allocation2 + $0x1c9] sm:$0xff]  ;;  %s6383_s26 = smov 20   ;;  %s6384_s27 = smov 24  }
  0xac   :  { %v464_v30 = vld [vmem:[#allocation2 + $0x159] sm:$0xff]  ;;  %v6045_v31 = vpack.i.bf16 %v468_v29, %v467_v28  ;;  %v470_v33 = vld [vmem:[#allocation2 + $0x1d1] sm:$0xff]  ;;  %v472_v35 = vld [vmem:[#allocation2 + $0x1e9] sm:$0xff]  ;;  %s6385_s28 = smov 28   ;;  %s6391_s29 = smov 64  }
  0xad   :  { %1008 = vrot.lane.b32.xlu1 %v465_v27, %s6379_s18  ;;  %v471_v36 = vld [vmem:[#allocation2 + $0x1e1] sm:$0xff]  ;;  %v473_v38 = vld [vmem:[#allocation2 + $0x1f9] sm:$0xff]  ;;  %v475_v40 = vld [vmem:[#allocation2 + $0x211] sm:$0xff] }
  0xae   :  { %1006 = vrot.lane.b32.xlu0 %v464_v30, %s6379_s18  ;;  %v474_v37 = vld [vmem:[#allocation2 + $0x201] sm:$0xff]  ;;  %v476_v39 = vld [vmem:[#allocation2 + $0x219] sm:$0xff]  ;;  %v478_v41 = vld [vmem:[#allocation2 + $0x231] sm:$0xff] }
  0xaf   :  { %v477_v42 = vld [vmem:[#allocation2 + $0x229] sm:$0xff]  ;;  %v479_v44 = vld [vmem:[#allocation2 + $0x241] sm:$0xff]  ;;  %v481_v46 = vld [vmem:[#allocation2 + $0x259] sm:$0xff] }
  0xb0   :  { %v480_v43 = vld [vmem:[#allocation2 + $0x249] sm:$0xff]  ;;  %v482_v45 = vld [vmem:[#allocation2 + $0x261] sm:$0xff]  ;;  %v484_v47 = vld [vmem:[#allocation2 + $0x279] sm:$0xff] }
  0xb1   :  { %6046 = vrot.lane.b32.xlu1 %v6045_v31, %s6379_s18  ;;  %v483_v48 = vld [vmem:[#allocation2 + $0x271] sm:$0xff]  ;;  %v485_v50 = vld [vmem:[#allocation2 + $0x289] sm:$0xff]  ;;  %v487_v52 = vld [vmem:[#allocation2 + $0x2a1] sm:$0xff] }
  0xb2   :  { %1010 = vrot.lane.b32.xlu0 %v466_v32, %s6379_s18  ;;  %v486_v49 = vld [vmem:[#allocation2 + $0x291] sm:$0xff]  ;;  %v488_v51 = vld [vmem:[#allocation2 + $0x2a9] sm:$0xff]  ;;  %v490_v53 = vld [vmem:[#allocation2 + $0x2c1] sm:$0xff] }
  0xb3   :  { %v489_v54 = vld [vmem:[#allocation2 + $0x2b9] sm:$0xff]  ;;  %v491_v56 = vld [vmem:[#allocation2 + $0x2d1] sm:$0xff]  ;;  %v493_v58 = vld [vmem:[#allocation2 + $0x2e9] sm:$0xff] }
  0xb4   :  { %v492_v55 = vld [vmem:[#allocation2 + $0x2d9] sm:$0xff]  ;;  %v494_v57 = vld [vmem:[#allocation2 + $0x2f1] sm:$0xff]  ;;  %v496_v59 = vld [vmem:[#allocation2 + $0x309] sm:$0xff] }
  0xb5   :  { %1018 = vrot.lane.b32.xlu1 %v470_v33, %s6379_s18  ;;  %v495_v61 = vld [vmem:[#allocation2 + $0x301] sm:$0xff]  ;;  %v497_v1 = vld [vmem:[#allocation2 + $0x319] sm:$0xff]  ;;  %v500_v3 = vld [vmem:[#allocation2 + $0xa] sm:$0xff] }
  0xb6   :  { %1016 = vrot.lane.b32.xlu0 %v469_v34, %s6379_s18  ;;  %v498_v63 = vld [vmem:[#allocation2 + $0x321] sm:$0xff]  ;;  %v503_v9 = vld [vmem:[#allocation2 + $0x32] sm:$0xff]  ;;  %v505_v13 = vld [vmem:[#allocation2 + $0x4a] sm:$0xff] }
  0xb7   :  { %v499_v2 = vld [vmem:[#allocation2 + $0x2] sm:$0xff]  ;;  %v501_v5 = vld [vmem:[#allocation2 + $0x1a] sm:$0xff]  ;;  %v506_v19 = vld [vmem:[#allocation2 + $0x52] sm:$0xff] }
  0xb8   :  { %v6050_v6 = vpack.i.bf16 %v500_v3, %v499_v2  ;;  %v502_v11 = vld [vmem:[#allocation2 + $0x22] sm:$0xff]  ;;  %v504_v15 = vld [vmem:[#allocation2 + $0x3a] sm:$0xff]  ;;  %v508_v23 = vld [vmem:[#allocation2 + $0x6a] sm:$0xff] }
  0xb9   :  { %1022 = vrot.lane.b32.xlu1 %v472_v35, %s6379_s18  ;;  %v507_v17 = vld [vmem:[#allocation2 + $0x62] sm:$0xff]  ;;  %v509_v21 = vld [vmem:[#allocation2 + $0x7a] sm:$0xff]  ;;  %v511_v25 = vld [vmem:[#allocation2 + $0x92] sm:$0xff] }
  0xba   :  { %1020 = vrot.lane.b32.xlu0 %v471_v36, %s6379_s18  ;;  %v510_v27 = vld [vmem:[#allocation2 + $0x82] sm:$0xff]  ;;  %v513_v29 = vld [vmem:[#allocation2 + $0xaa] sm:$0xff]  ;;  %v512_v31 = vld [vmem:[#allocation2 + $0x9a] sm:$0xff] }
  0xbb   :  { %v515_v33 = vld [vmem:[#allocation2 + $0xc2] sm:$0xff]  ;;  %v514_v35 = vld [vmem:[#allocation2 + $0xb2] sm:$0xff]  ;;  %v529_v2 = vld [vmem:[#allocation2 + $0x16a] sm:$0xff] }
  0xbc   :  { %v531_v3 = vld [vmem:[#allocation2 + $0x1b2] sm:$0xff] }
  0xbd   :  { %1026 = vrot.lane.b32.xlu1 %v474_v37, %s6379_s18  ;;  %v517_v37 = vld [vmem:[#allocation2 + $0xda] sm:$0xff] }
  0xbe   :  { %1024 = vrot.lane.b32.xlu0 %v473_v38, %s6379_s18 }
  0xc1   :  { %1030 = vrot.lane.b32.xlu1 %v476_v39, %s6379_s18  ;;  %v516_v39 = vld [vmem:[#allocation2 + $0xca] sm:$0xff] }
  0xc2   :  { %1028 = vrot.lane.b32.xlu0 %v475_v40, %s6379_s18 }
  0xc5   :  { %1034 = vrot.lane.b32.xlu1 %v478_v41, %s6379_s18  ;;  %v519_v41 = vld [vmem:[#allocation2 + $0xf2] sm:$0xff] }
  0xc6   :  { %1032 = vrot.lane.b32.xlu0 %v477_v42, %s6379_s18 }
  0xc9   :  { %1038 = vrot.lane.b32.xlu1 %v480_v43, %s6379_s18  ;;  %v518_v43 = vld [vmem:[#allocation2 + $0xe2] sm:$0xff] }
  0xca   :  { %1036 = vrot.lane.b32.xlu0 %v479_v44, %s6379_s18 }
  0xcd   :  { %1042 = vrot.lane.b32.xlu1 %v482_v45, %s6379_s18  ;;  %v521_v45 = vld [vmem:[#allocation2 + $0x10a] sm:$0xff] }
  0xce   :  { %1040 = vrot.lane.b32.xlu0 %v481_v46, %s6379_s18 }
  0xd1   :  { %1046 = vrot.lane.b32.xlu1 %v484_v47, %s6379_s18  ;;  %v520_v47 = vld [vmem:[#allocation2 + $0xfa] sm:$0xff] }
  0xd2   :  { %1044 = vrot.lane.b32.xlu0 %v483_v48, %s6379_s18 }
  0xd5   :  { %1050 = vrot.lane.b32.xlu1 %v486_v49, %s6379_s18  ;;  %v523_v49 = vld [vmem:[#allocation2 + $0x122] sm:$0xff] }
  0xd6   :  { %1048 = vrot.lane.b32.xlu0 %v485_v50, %s6379_s18 }
  0xd9   :  { %1054 = vrot.lane.b32.xlu1 %v488_v51, %s6379_s18  ;;  %v522_v51 = vld [vmem:[#allocation2 + $0x112] sm:$0xff] }
  0xda   :  { %1052 = vrot.lane.b32.xlu0 %v487_v52, %s6379_s18 }
  0xdd   :  { %1058 = vrot.lane.b32.xlu1 %v490_v53, %s6379_s18  ;;  %v525_v53 = vld [vmem:[#allocation2 + $0x13a] sm:$0xff] }
  0xde   :  { %1056 = vrot.lane.b32.xlu0 %v489_v54, %s6379_s18 }
  0xe1   :  { %1062 = vrot.lane.b32.xlu1 %v492_v55, %s6379_s18  ;;  %v524_v55 = vld [vmem:[#allocation2 + $0x12a] sm:$0xff] }
  0xe2   :  { %1060 = vrot.lane.b32.xlu0 %v491_v56, %s6379_s18 }
  0xe5   :  { %1066 = vrot.lane.b32.xlu1 %v494_v57, %s6379_s18  ;;  %v271_v57 = vld [vmem:[%s10638_s0 + $0xf0] sm:$0xff] }
  0xe6   :  { %1064 = vrot.lane.b32.xlu0 %v493_v58, %s6379_s18  ;;  %v272_v58 = vld [vmem:[%s10638_s0 + $0xf8] sm:$0xff]  ;;  %337 = vst.msk [vmem:[#allocation2 + $0x181] sm:$0xff] %vm306_vm0, %v271_v57  ;;  %v541_v57 = vld [vmem:[#allocation2 + $0x22a] sm:$0xff] }
  0xe7   :  { %v6947_v60 = vpop.permute.xlu1 %954  ;;  %338 = vst.msk [vmem:[#allocation2 + $0x189] sm:$0xff] %vm306_vm0, %v272_v58 }
  0xe8   :  { %v6955_v4 = vpop.permute.xlu0 %952 }
  0xe9   :  { %1070 = vrot.lane.b32.xlu1 %v496_v59, %s6379_s18  ;;  %v527_v59 = vld [vmem:[#allocation2 + $0x152] sm:$0xff] }
  0xea   :  { %1068 = vrot.lane.b32.xlu0 %v495_v61, %s6379_s18 }
  0xeb   :  { %v6953_v0 = vpop.permute.xlu1 %956 }
  0xec   :  { %v6961_v8 = vpop.permute.xlu0 %958 }
  0xed   :  { %1074 = vrot.lane.b32.xlu1 %v498_v63, %s6379_s18  ;;  %v526_v63 = vld [vmem:[#allocation2 + $0x142] sm:$0xff] }
  0xee   :  { %1072 = vrot.lane.b32.xlu0 %v497_v1, %s6379_s18 }
  0xef   :  { %v6959_v7 = vpop.permute.xlu1 %960 }
  0xf0   :  { %v6967_v12 = vpop.permute.xlu0 %962 }
  0xf1   :  { %1144 = vrot.lane.b32.xlu1 %v501_v5, %s6380_s16  ;;  %v532_v5 = vld [vmem:[#allocation2 + $0x1ba] sm:$0xff] }
  0xf2   :  { %6051 = vrot.lane.b32.xlu0 %v6050_v6, %s6380_s16 }
  0xf3   :  { %v6965_v10 = vpop.permute.xlu1 %964 }
  0xf4   :  { %v6973_v16 = vpop.permute.xlu0 %966 }
  0xf5   :  { %1148 = vrot.lane.b32.xlu1 %v503_v9, %s6380_s16  ;;  %v528_v9 = vld [vmem:[#allocation2 + $0x15a] sm:$0xff] }
  0xf6   :  { %1146 = vrot.lane.b32.xlu0 %v502_v11, %s6380_s16 }
  0xf7   :  { %v6971_v14 = vpop.permute.xlu1 %968 }
  0xf8   :  { %v6979_v20 = vpop.permute.xlu0 %970 }
  0xf9   :  { %1152 = vrot.lane.b32.xlu1 %v505_v13, %s6380_s16  ;;  %v6055_v13 = vpack.i.bf16 %v532_v5, %v531_v3  ;;  %v546_v5 = vld [vmem:[#allocation2 + $0x262] sm:$0xff] }
  0xfa   :  { %1150 = vrot.lane.b32.xlu0 %v504_v15, %s6380_s16 }
  0xfb   :  { %v6977_v18 = vpop.permute.xlu1 %972 }
  0xfc   :  { %v6985_v24 = vpop.permute.xlu0 %974 }
  0xfd   :  { %1156 = vrot.lane.b32.xlu1 %v507_v17, %s6380_s16  ;;  %v530_v17 = vld [vmem:[#allocation2 + $0x172] sm:$0xff] }
  0xfe   :  { %1154 = vrot.lane.b32.xlu0 %v506_v19, %s6380_s16 }
  0xff   :  { %v6983_v22 = vpop.permute.xlu1 %976 }
 0x100   :  { %v6991_v28 = vpop.permute.xlu0 %978 }
 0x101   :  { %1160 = vrot.lane.b32.xlu1 %v509_v21, %s6380_s16  ;;  %v534_v21 = vld [vmem:[#allocation2 + $0x1d2] sm:$0xff] }
 0x102   :  { %1158 = vrot.lane.b32.xlu0 %v508_v23, %s6380_s16 }
 0x103   :  { %v6989_v26 = vpop.permute.xlu1 %980 }
 0x104   :  { %v6997_v32 = vpop.permute.xlu0 %982 }
 0x105   :  { %1164 = vrot.lane.b32.xlu1 %v511_v25, %s6380_s16  ;;  %10654 = vst [vmem:[#allocation8_spill] sm:$0xff] %v6997_v32  ;;  %v533_v25 = vld [vmem:[#allocation2 + $0x1ca] sm:$0xff] }
 0x106   :  { %1162 = vrot.lane.b32.xlu0 %v510_v27, %s6380_s16  ;;  %v822_v32 = vld [vmem:[#allocation2 + $0x49] sm:$0xff] }
 0x107   :  { %v6995_v30 = vpop.permute.xlu1 %984 }
 0x108   :  { %10653 = vst [vmem:[#allocation7_spill] sm:$0xff] %v6995_v30  ;;  %v7003_v36 = vpop.permute.xlu0 %986 }
 0x109   :  { %1168 = vrot.lane.b32.xlu1 %v513_v29, %s6380_s16  ;;  %10656 = vst [vmem:[#allocation10_spill] sm:$0xff] %v7003_v36  ;;  %v536_v29 = vld [vmem:[#allocation2 + $0x1ea] sm:$0xff] }
 0x10a   :  { %1166 = vrot.lane.b32.xlu0 %v512_v31, %s6380_s16  ;;  %v756_v36 = vld [vmem:[#allocation2 + $0x30] sm:$0xff] }
 0x10b   :  { %v7001_v34 = vpop.permute.xlu1 %988 }
 0x10c   :  { %10655 = vst [vmem:[#allocation9_spill] sm:$0xff] %v7001_v34  ;;  %v7009_v40 = vpop.permute.xlu0 %990  ;;  %v758_v34 = vld [vmem:[#allocation2 + $0x48] sm:$0xff] }
 0x10d   :  { %1172 = vrot.lane.b32.xlu1 %v515_v33, %s6380_s16  ;;  %10658 = vst [vmem:[#allocation12_spill] sm:$0xff] %v7009_v40  ;;  %v535_v33 = vld [vmem:[#allocation2 + $0x1e2] sm:$0xff]  ;;  %v695_v40 = vld [vmem:[#allocation2 + $0x4a] sm:$0xff] }
 0x10e   :  { %1170 = vrot.lane.b32.xlu0 %v514_v35, %s6380_s16 }
 0x10f   :  { %v7007_v38 = vpop.permute.xlu1 %992 }
 0x110   :  { %10657 = vst [vmem:[#allocation11_spill] sm:$0xff] %v7007_v38  ;;  %v7015_v44 = vpop.permute.xlu0 %994  ;;  %v697_v38 = vld [vmem:[#allocation2 + $0x62] sm:$0xff] }
 0x111   :  { %1176 = vrot.lane.b32.xlu1 %v517_v37, %s6380_s16  ;;  %10660 = vst [vmem:[#allocation14_spill] sm:$0xff] %v7015_v44  ;;  %v538_v37 = vld [vmem:[#allocation2 + $0x202] sm:$0xff] }
 0x112   :  { %1174 = vrot.lane.b32.xlu0 %v516_v39, %s6380_s16 }
 0x113   :  { %v7013_v42 = vpop.permute.xlu1 %996 }
 0x114   :  { %10659 = vst [vmem:[#allocation13_spill] sm:$0xff] %v7013_v42  ;;  %v7021_v48 = vpop.permute.xlu0 %998  ;;  %v691_v42 = vld [vmem:[#allocation2 + $0x1a] sm:$0xff] }
 0x115   :  { %1180 = vrot.lane.b32.xlu1 %v519_v41, %s6380_s16  ;;  %10662 = vst [vmem:[#allocation16_spill] sm:$0xff] %v7021_v48  ;;  %v537_v41 = vld [vmem:[#allocation2 + $0x1fa] sm:$0xff] }
 0x116   :  { %1178 = vrot.lane.b32.xlu0 %v518_v43, %s6380_s16  ;;  %v635_v48 = vld [vmem:[#allocation2 + $0x79] sm:$0xff] }
 0x117   :  { %v7019_v46 = vpop.permute.xlu1 %1000 }
 0x118   :  { %10661 = vst [vmem:[#allocation15_spill] sm:$0xff] %v7019_v46 }
 0x119   :  { %1184 = vrot.lane.b32.xlu1 %v521_v45, %s6380_s16  ;;  %v540_v45 = vld [vmem:[#allocation2 + $0x21a] sm:$0xff] }
 0x11a   :  { %1182 = vrot.lane.b32.xlu0 %v520_v47, %s6380_s16 }
 0x11b   :  { %v7025_v50 = vpop.permute.xlu1 %1004 }
 0x11c   :  { %10663 = vst [vmem:[#allocation17_spill] sm:$0xff] %v7025_v50  ;;  %v7027_v52 = vpop.permute.xlu0 %1002 }
 0x11d   :  { %10664 = vst [vmem:[#allocation18_spill] sm:$0xff] %v7027_v52  ;;  %1188 = vrot.lane.b32.xlu1 %v523_v49, %s6380_s16  ;;  %v539_v49 = vld [vmem:[#allocation2 + $0x212] sm:$0xff]  ;;  %v631_v52 = vld [vmem:[#allocation2 + $0x49] sm:$0xff] }
 0x11e   :  { %1186 = vrot.lane.b32.xlu0 %v522_v51, %s6380_s16 }
 0x11f   :  { %v7031_v54 = vpop.permute.xlu1 %1008 }
 0x120   :  { %10665 = vst [vmem:[#allocation19_spill] sm:$0xff] %v7031_v54  ;;  %v7033_v56 = vpop.permute.xlu0 %1006 }
 0x121   :  { %10666 = vst [vmem:[#allocation20_spill] sm:$0xff] %v7033_v56  ;;  %1192 = vrot.lane.b32.xlu1 %v525_v53, %s6380_s16  ;;  %v542_v53 = vld [vmem:[#allocation2 + $0x232] sm:$0xff] }
 0x122   :  { %1190 = vrot.lane.b32.xlu0 %v524_v55, %s6380_s16  ;;  %v627_v56 = vld [vmem:[#allocation2 + $0x19] sm:$0xff] }
 0x123   :  { %v7045_v61 = vpop.permute.xlu1 %6046 }
 0x124   :  { %10667 = vst [vmem:[#allocation21_spill] sm:$0xff] %v7045_v61  ;;  %v7047_v1 = vpop.permute.xlu0 %1010  ;;  %v396_v61 = vld [vmem:[#allocation2 + $0x128] sm:$0xff] }
 0x125   :  { %10668 = vst [vmem:[#allocation22_spill] sm:$0xff] %v7047_v1  ;;  %1196 = vrot.lane.b32.xlu1 %v527_v59, %s6380_s16  ;;  %v544_v59 = vld [vmem:[#allocation2 + $0x24a] sm:$0xff]  ;;  %v398_v1 = vld [vmem:[#allocation2 + $0x140] sm:$0xff] }
 0x126   :  { %1194 = vrot.lane.b32.xlu0 %v526_v63, %s6380_s16 }
 0x127   :  { %v7051_v6 = vpop.permute.xlu1 %1018 }
 0x128   :  { %10669 = vst [vmem:[#allocation23_spill] sm:$0xff] %v7051_v6  ;;  %v7053_v11 = vpop.permute.xlu0 %1016  ;;  %v393_v6 = vld [vmem:[#allocation2 + $0x108] sm:$0xff] }
 0x129   :  { %10670 = vst [vmem:[#allocation24_spill] sm:$0xff] %v7053_v11  ;;  %1200 = vrot.lane.b32.xlu1 %v529_v2, %s6380_s16  ;;  %v543_v2 = vld [vmem:[#allocation2 + $0x242] sm:$0xff] }
 0x12a   :  { %1198 = vrot.lane.b32.xlu0 %v528_v9, %s6380_s16 }
 0x12b   :  { %v7057_v15 = vpop.permute.xlu1 %1022 }
 0x12c   :  { %10671 = vst [vmem:[#allocation25_spill] sm:$0xff] %v7057_v15  ;;  %v7059_v19 = vpop.permute.xlu0 %1020 }
 0x12d   :  { %10672 = vst [vmem:[#allocation26_spill] sm:$0xff] %v7059_v19  ;;  %6056 = vrot.lane.b32.xlu1 %v6055_v13, %s6380_s16  ;;  %v545_v13 = vld [vmem:[#allocation2 + $0x25a] sm:$0xff]  ;;  %v391_v19 = vld [vmem:[#allocation2 + $0xf0] sm:$0xff] }
 0x12e   :  { %1202 = vrot.lane.b32.xlu0 %v530_v17, %s6380_s16 }
 0x12f   :  { %v7063_v23 = vpop.permute.xlu1 %1026 }
 0x130   :  { %10673 = vst [vmem:[#allocation27_spill] sm:$0xff] %v7063_v23  ;;  %v7065_v27 = vpop.permute.xlu0 %1024 }
 0x131   :  { %10674 = vst [vmem:[#allocation28_spill] sm:$0xff] %v7065_v27  ;;  %1210 = vrot.lane.b32.xlu1 %v534_v21, %s6380_s16  ;;  %v548_v21 = vld [vmem:[#allocation2 + $0x27a] sm:$0xff] }
 0x132   :  { %1208 = vrot.lane.b32.xlu0 %v533_v25, %s6380_s16  ;;  %v389_v27 = vld [vmem:[#allocation2 + $0xd8] sm:$0xff] }
 0x133   :  { %v7069_v31 = vpop.permute.xlu1 %1030 }
 0x134   :  { %10675 = vst [vmem:[#allocation29_spill] sm:$0xff] %v7069_v31  ;;  %v7071_v35 = vpop.permute.xlu0 %1028  ;;  %v387_v31 = vld [vmem:[#allocation2 + $0xc0] sm:$0xff] }
 0x135   :  { %10676 = vst [vmem:[#allocation30_spill] sm:$0xff] %v7071_v35  ;;  %1214 = vrot.lane.b32.xlu1 %v536_v29, %s6380_s16  ;;  %v547_v29 = vld [vmem:[#allocation2 + $0x272] sm:$0xff] }
 0x136   :  { %1212 = vrot.lane.b32.xlu0 %v535_v33, %s6380_s16 }
 0x137   :  { %v7075_v39 = vpop.permute.xlu1 %1034 }
 0x138   :  { %10677 = vst [vmem:[#allocation31_spill] sm:$0xff] %v7075_v39  ;;  %v7077_v43 = vpop.permute.xlu0 %1032  ;;  %v385_v39 = vld [vmem:[#allocation2 + $0xa8] sm:$0xff] }
 0x139   :  { %10678 = vst [vmem:[#allocation32_spill] sm:$0xff] %v7077_v43  ;;  %1218 = vrot.lane.b32.xlu1 %v538_v37, %s6380_s16  ;;  %v550_v37 = vld [vmem:[#allocation2 + $0x292] sm:$0xff] }
 0x13a   :  { %1216 = vrot.lane.b32.xlu0 %v537_v41, %s6380_s16 }
 0x13b   :  { %v7081_v47 = vpop.permute.xlu1 %1038 }
 0x13c   :  { %10679 = vst [vmem:[#allocation33_spill] sm:$0xff] %v7081_v47  ;;  %v7083_v51 = vpop.permute.xlu0 %1036  ;;  %v383_v47 = vld [vmem:[#allocation2 + $0x90] sm:$0xff] }
 0x13d   :  { %10680 = vst [vmem:[#allocation34_spill] sm:$0xff] %v7083_v51  ;;  %1222 = vrot.lane.b32.xlu1 %v540_v45, %s6380_s16  ;;  %v549_v45 = vld [vmem:[#allocation2 + $0x28a] sm:$0xff] }
 0x13e   :  { %1220 = vrot.lane.b32.xlu0 %v539_v49, %s6380_s16 }
 0x13f   :  { %v7087_v55 = vpop.permute.xlu1 %1042 }
 0x140   :  { %10681 = vst [vmem:[#allocation35_spill] sm:$0xff] %v7087_v55  ;;  %v7089_v58 = vpop.permute.xlu0 %1040  ;;  %v381_v55 = vld [vmem:[#allocation2 + $0x78] sm:$0xff] }
 0x141   :  { %10682 = vst [vmem:[#allocation36_spill] sm:$0xff] %v7089_v58  ;;  %1226 = vrot.lane.b32.xlu1 %v542_v53, %s6380_s16  ;;  %v552_v53 = vld [vmem:[#allocation2 + $0x2aa] sm:$0xff] }
 0x142   :  { %1224 = vrot.lane.b32.xlu0 %v541_v57, %s6380_s16 }
 0x143   :  { %v7093_v63 = vpop.permute.xlu1 %1046 }
 0x144   :  { %10683 = vst [vmem:[#allocation37_spill] sm:$0xff] %v7093_v63  ;;  %v7095_v3 = vpop.permute.xlu0 %1044  ;;  %v379_v63 = vld [vmem:[#allocation2 + $0x60] sm:$0xff] }
 0x145   :  { %10684 = vst [vmem:[#allocation38_spill] sm:$0xff] %v7095_v3  ;;  %1230 = vrot.lane.b32.xlu1 %v544_v59, %s6380_s16  ;;  %v551_v59 = vld [vmem:[#allocation2 + $0x2a2] sm:$0xff] }
 0x146   :  { %1228 = vrot.lane.b32.xlu0 %v543_v2, %s6380_s16 }
 0x147   :  { %v7099_v9 = vpop.permute.xlu1 %1050 }
 0x148   :  { %10685 = vst [vmem:[#allocation39_spill] sm:$0xff] %v7099_v9  ;;  %v7101_v17 = vpop.permute.xlu0 %1048 }
 0x149   :  { %10686 = vst [vmem:[#allocation40_spill] sm:$0xff] %v7101_v17  ;;  %1234 = vrot.lane.b32.xlu1 %v546_v5, %s6380_s16  ;;  %v554_v5 = vld [vmem:[#allocation2 + $0x2c2] sm:$0xff] }
 0x14a   :  { %1232 = vrot.lane.b32.xlu0 %v545_v13, %s6380_s16  ;;  %v377_v17 = vld [vmem:[#allocation2 + $0x48] sm:$0xff] }
 0x14b   :  { %v7105_v25 = vpop.permute.xlu1 %1054 }
 0x14c   :  { %10687 = vst [vmem:[#allocation41_spill] sm:$0xff] %v7105_v25  ;;  %v7107_v33 = vpop.permute.xlu0 %1052 }
 0x14d   :  { %10688 = vst [vmem:[#allocation42_spill] sm:$0xff] %v7107_v33  ;;  %1238 = vrot.lane.b32.xlu1 %v548_v21, %s6380_s16  ;;  %v553_v21 = vld [vmem:[#allocation2 + $0x2ba] sm:$0xff]  ;;  %v375_v33 = vld [vmem:[#allocation2 + $0x30] sm:$0xff] }
 0x14e   :  { %1236 = vrot.lane.b32.xlu0 %v547_v29, %s6380_s16 }
 0x14f   :  { %v7111_v41 = vpop.permute.xlu1 %1058 }
 0x150   :  { %10689 = vst [vmem:[#allocation43_spill] sm:$0xff] %v7111_v41  ;;  %v7113_v49 = vpop.permute.xlu0 %1056 }
 0x151   :  { %10690 = vst [vmem:[#allocation44_spill] sm:$0xff] %v7113_v49  ;;  %1242 = vrot.lane.b32.xlu1 %v550_v37, %s6380_s16  ;;  %v556_v37 = vld [vmem:[#allocation2 + $0x2da] sm:$0xff] }
 0x152   :  { %1240 = vrot.lane.b32.xlu0 %v549_v45, %s6380_s16  ;;  %v373_v49 = vld [vmem:[#allocation2 + $0x18] sm:$0xff] }
 0x153   :  { %v7117_v57 = vpop.permute.xlu1 %1062 }
 0x154   :  { %10691 = vst [vmem:[#allocation45_spill] sm:$0xff] %v7117_v57  ;;  %v7119_v2 = vpop.permute.xlu0 %1060  ;;  %v555_v57 = vld [vmem:[#allocation2 + $0x2d2] sm:$0xff] }
 0x155   :  { %10692 = vst [vmem:[#allocation46_spill] sm:$0xff] %v7119_v2  ;;  %1246 = vrot.lane.b32.xlu1 %v552_v53, %s6380_s16  ;;  %v558_v53 = vld [vmem:[#allocation2 + $0x2f2] sm:$0xff] }
 0x156   :  { %1244 = vrot.lane.b32.xlu0 %v551_v59, %s6380_s16 }
 0x157   :  { %v7123_v13 = vpop.permute.xlu1 %1066 }
 0x158   :  { %10693 = vst [vmem:[#allocation47_spill] sm:$0xff] %v7123_v13  ;;  %v7125_v29 = vpop.permute.xlu0 %1064  ;;  %v557_v13 = vld [vmem:[#allocation2 + $0x2ea] sm:$0xff] }
 0x159   :  { %10694 = vst [vmem:[#allocation48_spill] sm:$0xff] %v7125_v29  ;;  %1250 = vrot.lane.b32.xlu1 %v554_v5, %s6380_s16  ;;  %v303_v5 = vld [vmem:[%s10638_s0 + $0x1f0] sm:$0xff] }
 0x15a   :  { %1248 = vrot.lane.b32.xlu0 %v553_v21, %s6380_s16  ;;  %v304_v21 = vld [vmem:[%s10638_s0 + $0x1f8] sm:$0xff]  ;;  %369 = vst.msk [vmem:[#allocation2 + $0x331] sm:$0xff] %vm306_vm0, %v303_v5  ;;  %v374_v5 = vld [vmem:[#allocation2 + $0x20] sm:$0xff]  ;;  %s6381_s0 = smov 12  }
 0x15b   :  { %v7129_v45 = vpop.permute.xlu1 %1070  ;;  %370 = vst.msk [vmem:[#allocation2 + $0x339] sm:$0xff] %vm306_vm0, %v304_v21 }
 0x15c   :  { %10695 = vst [vmem:[#allocation49_spill] sm:$0xff] %v7129_v45  ;;  %v7131_v41 = vpop.permute.xlu0 %1068  ;;  %v562_v45 = vld [vmem:[#allocation2 + $0x322] sm:$0xff] }
 0x15d   :  { %10696 = vst [vmem:[#allocation50_spill] sm:$0xff] %v7131_v41  ;;  %1254 = vrot.lane.b32.xlu1 %v556_v37, %s6380_s16 }
 0x15e   :  { %1252 = vrot.lane.b32.xlu0 %v555_v57, %s6380_s16  ;;  %v560_v57 = vld [vmem:[#allocation2 + $0x30a] sm:$0xff] }
 0x15f   :  { %v7135_v59 = vpop.permute.xlu1 %1074 }
 0x160   :  { %10697 = vst [vmem:[#allocation51_spill] sm:$0xff] %v7135_v59  ;;  %v7137_v2 = vpop.permute.xlu0 %1072  ;;  %v559_v59 = vld [vmem:[#allocation2 + $0x302] sm:$0xff] }
 0x161   :  { %10698 = vst [vmem:[#allocation52_spill] sm:$0xff] %v7137_v2  ;;  %1258 = vrot.lane.b32.xlu1 %v558_v53, %s6380_s16  ;;  %v561_v53 = vld [vmem:[#allocation2 + $0x31a] sm:$0xff] }
 0x162   :  { %1256 = vrot.lane.b32.xlu0 %v557_v13, %s6380_s16 }
 0x163   :  { %v7149_v37 = vpop.permute.xlu1 %1144 }
 0x164   :  { %v7151_v2 = vpop.permute.xlu0 %6051 }
 0x165   :  { %1262 = vrot.lane.b32.xlu1 %v560_v57, %s6380_s16  ;;  %v376_v57 = vld [vmem:[#allocation2 + $0x38] sm:$0xff] }
 0x166   :  { %1260 = vrot.lane.b32.xlu0 %v559_v59, %s6380_s16 }
 0x167   :  { %v7155_v41 = vpop.permute.xlu1 %1148 }
 0x168   :  { %v7157_v29 = vpop.permute.xlu0 %1146 }
 0x169   :  { %1266 = vrot.lane.b32.xlu1 %v562_v45, %s6380_s16 }
 0x16a   :  { %1264 = vrot.lane.b32.xlu0 %v561_v53, %s6380_s16  ;;  %v378_v53 = vld [vmem:[#allocation2 + $0x50] sm:$0xff] }
 0x16b   :  { %v7161_v13 = vpop.permute.xlu1 %1152 }
 0x16c   :  { %v7163_v21 = vpop.permute.xlu0 %1150 }
 0x16d   :  { %1334 = vrot.lane.b32.xlu1 %v374_v5, %s6381_s0  ;;  %v380_v5 = vld [vmem:[#allocation2 + $0x68] sm:$0xff] }
 0x16e   :  { %1332 = vrot.lane.b32.xlu0 %v373_v49, %s6381_s0 }
 0x16f   :  { %v7167_v59 = vpop.permute.xlu1 %1156 }
 0x170   :  { %10699 = vst [vmem:[#allocation53_spill] sm:$0xff] %v7167_v59  ;;  %v7169_v25 = vpop.permute.xlu0 %1154 }
 0x171   :  { %1338 = vrot.lane.b32.xlu1 %v376_v57, %s6381_s0  ;;  %v382_v57 = vld [vmem:[#allocation2 + $0x80] sm:$0xff] }
 0x172   :  { %1336 = vrot.lane.b32.xlu0 %v375_v33, %s6381_s0 }
 0x173   :  { %v7173_v45 = vpop.permute.xlu1 %1160 }
 0x174   :  { %10700 = vst [vmem:[#allocation54_spill] sm:$0xff] %v7173_v45  ;;  %v7175_v9 = vpop.permute.xlu0 %1158 }
 0x175   :  { %10701 = vst [vmem:[#allocation55_spill] sm:$0xff] %v7175_v9  ;;  %1342 = vrot.lane.b32.xlu1 %v378_v53, %s6381_s0  ;;  %v384_v53 = vld [vmem:[#allocation2 + $0x98] sm:$0xff] }
 0x176   :  { %1340 = vrot.lane.b32.xlu0 %v377_v17, %s6381_s0 }
 0x177   :  { %v7179_v49 = vpop.permute.xlu1 %1164 }
 0x178   :  { %10702 = vst [vmem:[#allocation56_spill] sm:$0xff] %v7179_v49  ;;  %v7181_v3 = vpop.permute.xlu0 %1162 }
 0x179   :  { %10703 = vst [vmem:[#allocation57_spill] sm:$0xff] %v7181_v3  ;;  %1346 = vrot.lane.b32.xlu1 %v380_v5, %s6381_s0  ;;  %v386_v5 = vld [vmem:[#allocation2 + $0xb0] sm:$0xff]  ;;  %v760_v3 = vld [vmem:[#allocation2 + $0x60] sm:$0xff] }
 0x17a   :  { %1344 = vrot.lane.b32.xlu0 %v379_v63, %s6381_s0 }
 0x17b   :  { %v7185_v33 = vpop.permute.xlu1 %1168 }
 0x17c   :  { %10704 = vst [vmem:[#allocation58_spill] sm:$0xff] %v7185_v33  ;;  %v7187_v58 = vpop.permute.xlu0 %1166  ;;  %v693_v33 = vld [vmem:[#allocation2 + $0x32] sm:$0xff] }
 0x17d   :  { %10705 = vst [vmem:[#allocation59_spill] sm:$0xff] %v7187_v58  ;;  %1350 = vrot.lane.b32.xlu1 %v382_v57, %s6381_s0  ;;  %v388_v57 = vld [vmem:[#allocation2 + $0xc8] sm:$0xff] }
 0x17e   :  { %1348 = vrot.lane.b32.xlu0 %v381_v55, %s6381_s0 }
 0x17f   :  { %v7191_v17 = vpop.permute.xlu1 %1172 }
 0x180   :  { %10706 = vst [vmem:[#allocation60_spill] sm:$0xff] %v7191_v17  ;;  %v7193_v51 = vpop.permute.xlu0 %1170 }
 0x181   :  { %10707 = vst [vmem:[#allocation61_spill] sm:$0xff] %v7193_v51  ;;  %1354 = vrot.lane.b32.xlu1 %v384_v53, %s6381_s0  ;;  %v390_v53 = vld [vmem:[#allocation2 + $0xe0] sm:$0xff] }
 0x182   :  { %1352 = vrot.lane.b32.xlu0 %v383_v47, %s6381_s0 }
 0x183   :  { %v7197_v63 = vpop.permute.xlu1 %1176 }
 0x184   :  { %10708 = vst [vmem:[#allocation62_spill] sm:$0xff] %v7197_v63  ;;  %v7199_v43 = vpop.permute.xlu0 %1174 }
 0x185   :  { %10709 = vst [vmem:[#allocation63_spill] sm:$0xff] %v7199_v43  ;;  %1358 = vrot.lane.b32.xlu1 %v386_v5, %s6381_s0  ;;  %v392_v5 = vld [vmem:[#allocation2 + $0xf8] sm:$0xff] }
 0x186   :  { %1356 = vrot.lane.b32.xlu0 %v385_v39, %s6381_s0  ;;  %v637_v43 = vld [vmem:[#allocation2 + $0x91] sm:$0xff] }
 0x187   :  { %v7203_v55 = vpop.permute.xlu1 %1180 }
 0x188   :  { %10710 = vst [vmem:[#allocation64_spill] sm:$0xff] %v7203_v55  ;;  %v7205_v35 = vpop.permute.xlu0 %1178 }
 0x189   :  { %10711 = vst [vmem:[#allocation65_spill] sm:$0xff] %v7205_v35  ;;  %1362 = vrot.lane.b32.xlu1 %v388_v57, %s6381_s0  ;;  %v394_v57 = vld [vmem:[#allocation2 + $0x110] sm:$0xff]  ;;  %v633_v35 = vld [vmem:[#allocation2 + $0x61] sm:$0xff] }
 0x18a   :  { %1360 = vrot.lane.b32.xlu0 %v387_v31, %s6381_s0 }
 0x18b   :  { %v7209_v47 = vpop.permute.xlu1 %1184 }
 0x18c   :  { %10712 = vst [vmem:[#allocation66_spill] sm:$0xff] %v7209_v47  ;;  %v7211_v23 = vpop.permute.xlu0 %1182 }
 0x18d   :  { %10713 = vst [vmem:[#allocation67_spill] sm:$0xff] %v7211_v23  ;;  %1366 = vrot.lane.b32.xlu1 %v390_v53, %s6381_s0  ;;  %v7226_v53 = vld [vmem:[#allocation2 + $0x109] sm:$0xff]  ;;  %v629_v23 = vld [vmem:[#allocation2 + $0x31] sm:$0xff] }
 0x18e   :  { %1364 = vrot.lane.b32.xlu0 %v389_v27, %s6381_s0  ;;  %5337 = vmatprep.mubr.f32.mxu1 %v7226_v53 }
 0x18f   :  { %v7215_v39 = vpop.permute.xlu1 %1188 }
 0x190   :  { %10714 = vst [vmem:[#allocation68_spill] sm:$0xff] %v7215_v39  ;;  %v7217_v15 = vpop.permute.xlu0 %1186 }
 0x191   :  { %10715 = vst [vmem:[#allocation69_spill] sm:$0xff] %v7217_v15  ;;  %1370 = vrot.lane.b32.xlu1 %v392_v5, %s6381_s0  ;;  %v625_v15 = vld [vmem:[#allocation2 + $0x330] sm:$0xff] }
 0x192   :  { %1368 = vrot.lane.b32.xlu0 %v391_v19, %s6381_s0  ;;  %v395_v19 = vld [vmem:[#allocation2 + $0x120] sm:$0xff] }
 0x193   :  { %v7221_v31 = vpop.permute.xlu1 %1192 }
 0x194   :  { %10716 = vst [vmem:[#allocation70_spill] sm:$0xff] %v7221_v31  ;;  %v7223_v11 = vpop.permute.xlu0 %1190 }
 0x195   :  { %10717 = vst [vmem:[#allocation71_spill] sm:$0xff] %v7223_v11  ;;  %1374 = vrot.lane.b32.xlu1 %v394_v57, %s6381_s0  ;;  %v397_v11 = vld [vmem:[#allocation2 + $0x138] sm:$0xff] }
 0x196   :  { %1372 = vrot.lane.b32.xlu0 %v393_v6, %s6381_s0 }
 0x197   :  { %v7230_v27 = vpop.permute.xlu1 %1196 }
 0x198   :  { %10718 = vst [vmem:[#allocation72_spill] sm:$0xff] %v7230_v27  ;;  %v7232_v5 = vpop.permute.xlu0 %1194  ;;  %v400_v27 = vld [vmem:[#allocation2 + $0x158] sm:$0xff] }
 0x199   :  { %10719 = vst [vmem:[#allocation73_spill] sm:$0xff] %v7232_v5  ;;  %1378 = vrot.lane.b32.xlu1 %v396_v61, %s6381_s0  ;;  %v399_v5 = vld [vmem:[#allocation2 + $0x150] sm:$0xff] }
 0x19a   :  { %1376 = vrot.lane.b32.xlu0 %v395_v19, %s6381_s0  ;;  %v402_v19 = vld [vmem:[#allocation2 + $0x170] sm:$0xff] }
 0x19b   :  { %v7236_v31 = vpop.permute.xlu1 %1200 }
 0x19c   :  { %10720 = vst [vmem:[#allocation74_spill] sm:$0xff] %v7236_v31  ;;  %v7238_v57 = vpop.permute.xlu0 %1198 }
 0x19d   :  { %10721 = vst [vmem:[#allocation75_spill] sm:$0xff] %v7238_v57  ;;  %1382 = vrot.lane.b32.xlu1 %v398_v1, %s6381_s0  ;;  %v401_v57 = vld [vmem:[#allocation2 + $0x168] sm:$0xff] }
 0x19e   :  { %1380 = vrot.lane.b32.xlu0 %v397_v11, %s6381_s0  ;;  %v594_v1 = vld [vmem:[#allocation2 + $0x188] sm:$0xff] }
 0x19f   :  { %v7242_v6 = vpop.permute.xlu1 %6056 }
 0x1a0   :  { %10722 = vst [vmem:[#allocation76_spill] sm:$0xff] %v7242_v6  ;;  %v7244_v39 = vpop.permute.xlu0 %1202  ;;  %v593_v6 = vld [vmem:[#allocation2 + $0x180] sm:$0xff] }
 0x1a1   :  { %10723 = vst [vmem:[#allocation77_spill] sm:$0xff] %v7244_v39  ;;  %1386 = vrot.lane.b32.xlu1 %v400_v27, %s6381_s0 }
 0x1a2   :  { %1384 = vrot.lane.b32.xlu0 %v399_v5, %s6381_s0  ;;  %v406_v5 = vld [vmem:[#allocation2 + $0x1d0] sm:$0xff] }
 0x1a3   :  { %v7248_v61 = vpop.permute.xlu1 %1210 }
 0x1a4   :  { %10724 = vst [vmem:[#allocation78_spill] sm:$0xff] %v7248_v61  ;;  %v7250_v31 = vpop.permute.xlu0 %1208 }
 0x1a5   :  { %10725 = vst [vmem:[#allocation79_spill] sm:$0xff] %v7250_v31  ;;  %1390 = vrot.lane.b32.xlu1 %v402_v19, %s6381_s0  ;;  %v405_v31 = vld [vmem:[#allocation2 + $0x1c8] sm:$0xff] }
 0x1a6   :  { %1388 = vrot.lane.b32.xlu0 %v401_v57, %s6381_s0  ;;  %v408_v19 = vld [vmem:[#allocation2 + $0x1e8] sm:$0xff] }
 0x1a7   :  { %v7254_v11 = vpop.permute.xlu1 %1214 }
 0x1a8   :  { %10726 = vst [vmem:[#allocation80_spill] sm:$0xff] %v7254_v11  ;;  %v7256_v39 = vpop.permute.xlu0 %1212 }
 0x1a9   :  { %10727 = vst [vmem:[#allocation81_spill] sm:$0xff] %v7256_v39  ;;  %1394 = vrot.lane.b32.xlu1 %v594_v1, %s6381_s0  ;;  %v407_v39 = vld [vmem:[#allocation2 + $0x1e0] sm:$0xff] }
 0x1aa   :  { %1392 = vrot.lane.b32.xlu0 %v593_v6, %s6381_s0  ;;  %v410_v1 = vld [vmem:[#allocation2 + $0x200] sm:$0xff] }
 0x1ab   :  { %v7260_v27 = vpop.permute.xlu1 %1218 }
 0x1ac   :  { %10728 = vst [vmem:[#allocation82_spill] sm:$0xff] %v7260_v27  ;;  %v7262_v61 = vpop.permute.xlu0 %1216 }
 0x1ad   :  { %10729 = vst [vmem:[#allocation83_spill] sm:$0xff] %v7262_v61  ;;  %1398 = vrot.lane.b32.xlu1 %v406_v5, %s6381_s0  ;;  %v409_v61 = vld [vmem:[#allocation2 + $0x1f8] sm:$0xff] }
 0x1ae   :  { %1396 = vrot.lane.b32.xlu0 %v405_v31, %s6381_s0  ;;  %v412_v5 = vld [vmem:[#allocation2 + $0x218] sm:$0xff] }
 0x1af   :  { %v7266_v57 = vpop.permute.xlu1 %1222 }
 0x1b0   :  { %10730 = vst [vmem:[#allocation84_spill] sm:$0xff] %v7266_v57  ;;  %v7268_v11 = vpop.permute.xlu0 %1220 }
 0x1b1   :  { %10731 = vst [vmem:[#allocation85_spill] sm:$0xff] %v7268_v11  ;;  %1402 = vrot.lane.b32.xlu1 %v408_v19, %s6381_s0  ;;  %v411_v11 = vld [vmem:[#allocation2 + $0x210] sm:$0xff] }
 0x1b2   :  { %1400 = vrot.lane.b32.xlu0 %v407_v39, %s6381_s0  ;;  %v414_v19 = vld [vmem:[#allocation2 + $0x230] sm:$0xff] }
 0x1b3   :  { %v7272_v6 = vpop.permute.xlu1 %1226 }
 0x1b4   :  { %10732 = vst [vmem:[#allocation86_spill] sm:$0xff] %v7272_v6  ;;  %v7274_v27 = vpop.permute.xlu0 %1224 }
 0x1b5   :  { %10733 = vst [vmem:[#allocation87_spill] sm:$0xff] %v7274_v27  ;;  %1406 = vrot.lane.b32.xlu1 %v410_v1, %s6381_s0  ;;  %v413_v27 = vld [vmem:[#allocation2 + $0x228] sm:$0xff] }
 0x1b6   :  { %1404 = vrot.lane.b32.xlu0 %v409_v61, %s6381_s0  ;;  %v416_v1 = vld [vmem:[#allocation2 + $0x248] sm:$0xff] }
 0x1b7   :  { %v7278_v31 = vpop.permute.xlu1 %1230 }
 0x1b8   :  { %10734 = vst [vmem:[#allocation88_spill] sm:$0xff] %v7278_v31  ;;  %v7280_v57 = vpop.permute.xlu0 %1228 }
 0x1b9   :  { %10735 = vst [vmem:[#allocation89_spill] sm:$0xff] %v7280_v57  ;;  %1410 = vrot.lane.b32.xlu1 %v412_v5, %s6381_s0  ;;  %v415_v57 = vld [vmem:[#allocation2 + $0x240] sm:$0xff] }
 0x1ba   :  { %1408 = vrot.lane.b32.xlu0 %v411_v11, %s6381_s0  ;;  %v418_v5 = vld [vmem:[#allocation2 + $0x260] sm:$0xff] }
 0x1bb   :  { %v7284_v39 = vpop.permute.xlu1 %1234 }
 0x1bc   :  { %10736 = vst [vmem:[#allocation90_spill] sm:$0xff] %v7284_v39  ;;  %v7286_v6 = vpop.permute.xlu0 %1232 }
 0x1bd   :  { %10737 = vst [vmem:[#allocation91_spill] sm:$0xff] %v7286_v6  ;;  %1414 = vrot.lane.b32.xlu1 %v414_v19, %s6381_s0  ;;  %v417_v6 = vld [vmem:[#allocation2 + $0x258] sm:$0xff] }
 0x1be   :  { %1412 = vrot.lane.b32.xlu0 %v413_v27, %s6381_s0  ;;  %v420_v19 = vld [vmem:[#allocation2 + $0x278] sm:$0xff] }
 0x1bf   :  { %v7290_v61 = vpop.permute.xlu1 %1238 }
 0x1c0   :  { %10738 = vst [vmem:[#allocation92_spill] sm:$0xff] %v7290_v61  ;;  %v7292_v31 = vpop.permute.xlu0 %1236 }
 0x1c1   :  { %10739 = vst [vmem:[#allocation93_spill] sm:$0xff] %v7292_v31  ;;  %1418 = vrot.lane.b32.xlu1 %v416_v1, %s6381_s0  ;;  %v419_v31 = vld [vmem:[#allocation2 + $0x270] sm:$0xff] }
 0x1c2   :  { %1416 = vrot.lane.b32.xlu0 %v415_v57, %s6381_s0  ;;  %v422_v1 = vld [vmem:[#allocation2 + $0x290] sm:$0xff] }
 0x1c3   :  { %v7296_v11 = vpop.permute.xlu1 %1242 }
 0x1c4   :  { %10740 = vst [vmem:[#allocation94_spill] sm:$0xff] %v7296_v11  ;;  %v7298_v39 = vpop.permute.xlu0 %1240 }
 0x1c5   :  { %10741 = vst [vmem:[#allocation95_spill] sm:$0xff] %v7298_v39  ;;  %1422 = vrot.lane.b32.xlu1 %v418_v5, %s6381_s0  ;;  %v421_v39 = vld [vmem:[#allocation2 + $0x288] sm:$0xff] }
 0x1c6   :  { %1420 = vrot.lane.b32.xlu0 %v417_v6, %s6381_s0  ;;  %v424_v5 = vld [vmem:[#allocation2 + $0x2a8] sm:$0xff] }
 0x1c7   :  { %v7302_v27 = vpop.permute.xlu1 %1246 }
 0x1c8   :  { %10742 = vst [vmem:[#allocation96_spill] sm:$0xff] %v7302_v27  ;;  %v7304_v61 = vpop.permute.xlu0 %1244 }
 0x1c9   :  { %10743 = vst [vmem:[#allocation97_spill] sm:$0xff] %v7304_v61  ;;  %1426 = vrot.lane.b32.xlu1 %v420_v19, %s6381_s0  ;;  %v423_v61 = vld [vmem:[#allocation2 + $0x2a0] sm:$0xff] }
 0x1ca   :  { %1424 = vrot.lane.b32.xlu0 %v419_v31, %s6381_s0  ;;  %v426_v19 = vld [vmem:[#allocation2 + $0x2c0] sm:$0xff] }
 0x1cb   :  { %v7308_v57 = vpop.permute.xlu1 %1250 }
 0x1cc   :  { %10744 = vst [vmem:[#allocation98_spill] sm:$0xff] %v7308_v57  ;;  %v7310_v11 = vpop.permute.xlu0 %1248 }
 0x1cd   :  { %10745 = vst [vmem:[#allocation99_spill] sm:$0xff] %v7310_v11  ;;  %1430 = vrot.lane.b32.xlu1 %v422_v1, %s6381_s0  ;;  %v425_v11 = vld [vmem:[#allocation2 + $0x2b8] sm:$0xff] }
 0x1ce   :  { %1428 = vrot.lane.b32.xlu0 %v421_v39, %s6381_s0  ;;  %v428_v1 = vld [vmem:[#allocation2 + $0x2d8] sm:$0xff] }
 0x1cf   :  { %v7314_v6 = vpop.permute.xlu1 %1254 }
 0x1d0   :  { %10746 = vst [vmem:[#allocation100_spill] sm:$0xff] %v7314_v6  ;;  %v7316_v27 = vpop.permute.xlu0 %1252 }
 0x1d1   :  { %10747 = vst [vmem:[#allocation101_spill] sm:$0xff] %v7316_v27  ;;  %1434 = vrot.lane.b32.xlu1 %v424_v5, %s6381_s0  ;;  %v427_v27 = vld [vmem:[#allocation2 + $0x2d0] sm:$0xff] }
 0x1d2   :  { %1432 = vrot.lane.b32.xlu0 %v423_v61, %s6381_s0  ;;  %v430_v5 = vld [vmem:[#allocation2 + $0x2f0] sm:$0xff] }
 0x1d3   :  { %v7320_v31 = vpop.permute.xlu1 %1258 }
 0x1d4   :  { %10748 = vst [vmem:[#allocation102_spill] sm:$0xff] %v7320_v31  ;;  %v7322_v57 = vpop.permute.xlu0 %1256 }
 0x1d5   :  { %10749 = vst [vmem:[#allocation103_spill] sm:$0xff] %v7322_v57  ;;  %1438 = vrot.lane.b32.xlu1 %v426_v19, %s6381_s0  ;;  %v429_v57 = vld [vmem:[#allocation2 + $0x2e8] sm:$0xff] }
 0x1d6   :  { %1436 = vrot.lane.b32.xlu0 %v425_v11, %s6381_s0  ;;  %v432_v19 = vld [vmem:[#allocation2 + $0x308] sm:$0xff] }
 0x1d7   :  { %v7326_v39 = vpop.permute.xlu1 %1262 }
 0x1d8   :  { %10750 = vst [vmem:[#allocation104_spill] sm:$0xff] %v7326_v39  ;;  %v7328_v6 = vpop.permute.xlu0 %1260 }
 0x1d9   :  { %10751 = vst [vmem:[#allocation105_spill] sm:$0xff] %v7328_v6  ;;  %1442 = vrot.lane.b32.xlu1 %v428_v1, %s6381_s0  ;;  %v431_v6 = vld [vmem:[#allocation2 + $0x300] sm:$0xff] }
 0x1da   :  { %1440 = vrot.lane.b32.xlu0 %v427_v27, %s6381_s0  ;;  %v434_v1 = vld [vmem:[#allocation2 + $0x320] sm:$0xff] }
 0x1db   :  { %v7332_v61 = vpop.permute.xlu1 %1266 }
 0x1dc   :  { %10752 = vst [vmem:[#allocation106_spill] sm:$0xff] %v7332_v61  ;;  %v7334_v31 = vpop.permute.xlu0 %1264 }
 0x1dd   :  { %10753 = vst [vmem:[#allocation107_spill] sm:$0xff] %v7334_v31  ;;  %1446 = vrot.lane.b32.xlu1 %v430_v5, %s6381_s0  ;;  %v433_v31 = vld [vmem:[#allocation2 + $0x318] sm:$0xff] }
 0x1de   :  { %1444 = vrot.lane.b32.xlu0 %v429_v57, %s6381_s0  ;;  %v626_v57 = vld [vmem:[#allocation2 + $0x338] sm:$0xff] }
 0x1df   :  { %v7338_v11 = vpop.permute.xlu1 %1334 }
 0x1e0   :  { %v7340_v39 = vpop.permute.xlu0 %1332 }
 0x1e1   :  { %1450 = vrot.lane.b32.xlu1 %v432_v19, %s6381_s0 }
 0x1e2   :  { %1448 = vrot.lane.b32.xlu0 %v431_v6, %s6381_s0  ;;  %v628_v6 = vld [vmem:[#allocation2 + $0x21] sm:$0xff] }
 0x1e3   :  { %v7344_v27 = vpop.permute.xlu1 %1338 }
 0x1e4   :  { %v7346_v61 = vpop.permute.xlu0 %1336 }
 0x1e5   :  { %1454 = vrot.lane.b32.xlu1 %v434_v1, %s6381_s0 }
 0x1e6   :  { %1452 = vrot.lane.b32.xlu0 %v433_v31, %s6381_s0  ;;  %v630_v31 = vld [vmem:[#allocation2 + $0x39] sm:$0xff] }
 0x1e7   :  { %v7350_v5 = vpop.permute.xlu1 %1342 }
 0x1e8   :  { %v7352_v47 = vpop.permute.xlu0 %1340 }
 0x1e9   :  { %1458 = vrot.lane.b32.xlu1 %v626_v57, %s6381_s0 }
 0x1ea   :  { %1456 = vrot.lane.b32.xlu0 %v625_v15, %s6381_s0  ;;  %v632_v15 = vld [vmem:[#allocation2 + $0x51] sm:$0xff]  ;;  %s6388_s0 = smov 40  }
 0x1eb   :  { %v7356_v19 = vpop.permute.xlu1 %1346 }
 0x1ec   :  { %v7358_v54 = vpop.permute.xlu0 %1344 }
 0x1ed   :  { %1526 = vrot.lane.b32.xlu1 %v628_v6, %s6382_s25 }
 0x1ee   :  { %1524 = vrot.lane.b32.xlu0 %v627_v56, %s6382_s25  ;;  %v634_v56 = vld [vmem:[#allocation2 + $0x69] sm:$0xff] }
 0x1ef   :  { %v7362_v1 = vpop.permute.xlu1 %1350 }
 0x1f0   :  { %10754 = vst [vmem:[#allocation108_spill] sm:$0xff] %v7362_v1  ;;  %v7364_v55 = vpop.permute.xlu0 %1348 }
 0x1f1   :  { %10755 = vst [vmem:[#allocation109_spill] sm:$0xff] %v7364_v55  ;;  %1530 = vrot.lane.b32.xlu1 %v630_v31, %s6382_s25  ;;  %v824_v55 = vld [vmem:[#allocation2 + $0x61] sm:$0xff] }
 0x1f2   :  { %1528 = vrot.lane.b32.xlu0 %v629_v23, %s6382_s25  ;;  %v636_v23 = vld [vmem:[#allocation2 + $0x81] sm:$0xff] }
 0x1f3   :  { %v7368_v57 = vpop.permute.xlu1 %1354 }
 0x1f4   :  { %10756 = vst [vmem:[#allocation110_spill] sm:$0xff] %v7368_v57  ;;  %v7370_v50 = vpop.permute.xlu0 %1352 }
 0x1f5   :  { %10757 = vst [vmem:[#allocation111_spill] sm:$0xff] %v7370_v50  ;;  %1534 = vrot.lane.b32.xlu1 %v632_v15, %s6382_s25 }
 0x1f6   :  { %1532 = vrot.lane.b32.xlu0 %v631_v52, %s6382_s25  ;;  %v638_v52 = vld [vmem:[#allocation2 + $0x99] sm:$0xff] }
 0x1f7   :  { %v7374_v6 = vpop.permute.xlu1 %1358 }
 0x1f8   :  { %10758 = vst [vmem:[#allocation112_spill] sm:$0xff] %v7374_v6  ;;  %v7376_v63 = vpop.permute.xlu0 %1356 }
 0x1f9   :  { %10759 = vst [vmem:[#allocation113_spill] sm:$0xff] %v7376_v63  ;;  %1538 = vrot.lane.b32.xlu1 %v634_v56, %s6382_s25 }
 0x1fa   :  { %1536 = vrot.lane.b32.xlu0 %v633_v35, %s6382_s25  ;;  %v640_v35 = vld [vmem:[#allocation2 + $0xb1] sm:$0xff] }
 0x1fb   :  { %v7380_v31 = vpop.permute.xlu1 %1362 }
 0x1fc   :  { %10760 = vst [vmem:[#allocation114_spill] sm:$0xff] %v7380_v31  ;;  %v7382_v46 = vpop.permute.xlu0 %1360  ;;  %v639_v31 = vld [vmem:[#allocation2 + $0xa9] sm:$0xff] }
 0x1fd   :  { %10761 = vst [vmem:[#allocation115_spill] sm:$0xff] %v7382_v46  ;;  %1542 = vrot.lane.b32.xlu1 %v636_v23, %s6382_s25 }
 0x1fe   :  { %1540 = vrot.lane.b32.xlu0 %v635_v48, %s6382_s25  ;;  %v642_v48 = vld [vmem:[#allocation2 + $0xc9] sm:$0xff] }
 0x1ff   :  { %v7386_v15 = vpop.permute.xlu1 %1366 }
 0x200   :  { %10762 = vst [vmem:[#allocation116_spill] sm:$0xff] %v7386_v15  ;;  %v7388_v17 = vpop.permute.xlu0 %1364  ;;  %v641_v15 = vld [vmem:[#allocation2 + $0xc1] sm:$0xff] }
 0x201   :  { %10763 = vst [vmem:[#allocation117_spill] sm:$0xff] %v7388_v17  ;;  %1546 = vrot.lane.b32.xlu1 %v638_v52, %s6382_s25 }
 0x202   :  { %1544 = vrot.lane.b32.xlu0 %v637_v43, %s6382_s25  ;;  %v644_v43 = vld [vmem:[#allocation2 + $0xe1] sm:$0xff] }
 0x203   :  { %v7392_v56 = vpop.permute.xlu1 %1370 }
 0x204   :  { %10764 = vst [vmem:[#allocation118_spill] sm:$0xff] %v7392_v56  ;;  %v7394_v44 = vpop.permute.xlu0 %1368  ;;  %v643_v56 = vld [vmem:[#allocation2 + $0xd9] sm:$0xff] }
 0x205   :  { %10765 = vst [vmem:[#allocation119_spill] sm:$0xff] %v7394_v44  ;;  %1550 = vrot.lane.b32.xlu1 %v640_v35, %s6382_s25 }
 0x206   :  { %1548 = vrot.lane.b32.xlu0 %v639_v31, %s6382_s25  ;;  %v646_v31 = vld [vmem:[#allocation2 + $0xf9] sm:$0xff] }
 0x207   :  { %v7398_v23 = vpop.permute.xlu1 %1374 }
 0x208   :  { %10766 = vst [vmem:[#allocation120_spill] sm:$0xff] %v7398_v23  ;;  %v7400_v46 = vpop.permute.xlu0 %1372  ;;  %v645_v23 = vld [vmem:[#allocation2 + $0xf1] sm:$0xff] }
 0x209   :  { %10767 = vst [vmem:[#allocation121_spill] sm:$0xff] %v7400_v46  ;;  %1554 = vrot.lane.b32.xlu1 %v642_v48, %s6382_s25 }
 0x20a   :  { %1552 = vrot.lane.b32.xlu0 %v641_v15, %s6382_s25  ;;  %v648_v15 = vld [vmem:[#allocation2 + $0x111] sm:$0xff] }
 0x20b   :  { %v7404_v52 = vpop.permute.xlu1 %1378 }
 0x20c   :  { %10768 = vst [vmem:[#allocation122_spill] sm:$0xff] %v7404_v52  ;;  %v7406_v17 = vpop.permute.xlu0 %1376 }
 0x20d   :  { %10769 = vst [vmem:[#allocation123_spill] sm:$0xff] %v7406_v17  ;;  %1558 = vrot.lane.b32.xlu1 %v644_v43, %s6382_s25 }
 0x20e   :  { %1556 = vrot.lane.b32.xlu0 %v643_v56, %s6382_s25  ;;  %v650_v56 = vld [vmem:[#allocation2 + $0x129] sm:$0xff] }
 0x20f   :  { %v7410_v35 = vpop.permute.xlu1 %1382 }
 0x210   :  { %10770 = vst [vmem:[#allocation124_spill] sm:$0xff] %v7410_v35  ;;  %v7412_v44 = vpop.permute.xlu0 %1380  ;;  %v649_v35 = vld [vmem:[#allocation2 + $0x121] sm:$0xff] }
 0x211   :  { %10771 = vst [vmem:[#allocation125_spill] sm:$0xff] %v7412_v44  ;;  %1562 = vrot.lane.b32.xlu1 %v646_v31, %s6382_s25 }
 0x212   :  { %1560 = vrot.lane.b32.xlu0 %v645_v23, %s6382_s25  ;;  %v652_v23 = vld [vmem:[#allocation2 + $0x141] sm:$0xff] }
 0x213   :  { %v7416_v48 = vpop.permute.xlu1 %1386 }
 0x214   :  { %10772 = vst [vmem:[#allocation126_spill] sm:$0xff] %v7416_v48  ;;  %v7418_v52 = vpop.permute.xlu0 %1384  ;;  %v651_v48 = vld [vmem:[#allocation2 + $0x139] sm:$0xff] }
 0x215   :  { %10773 = vst [vmem:[#allocation127_spill] sm:$0xff] %v7418_v52  ;;  %1566 = vrot.lane.b32.xlu1 %v648_v15, %s6382_s25 }
 0x216   :  { %1564 = vrot.lane.b32.xlu0 %v7226_v53, %s6382_s25  ;;  %v654_v53 = vld [vmem:[#allocation2 + $0x159] sm:$0xff] }
 0x217   :  { %v7423_v43 = vpop.permute.xlu1 %1390 }
 0x218   :  { %10774 = vst [vmem:[#allocation128_spill] sm:$0xff] %v7423_v43  ;;  %v7425_v17 = vpop.permute.xlu0 %1388  ;;  %v653_v43 = vld [vmem:[#allocation2 + $0x151] sm:$0xff] }
 0x219   :  { %10775 = vst [vmem:[#allocation129_spill] sm:$0xff] %v7425_v17  ;;  %1570 = vrot.lane.b32.xlu1 %v650_v56, %s6382_s25 }
 0x21a   :  { %1568 = vrot.lane.b32.xlu0 %v649_v35, %s6382_s25  ;;  %v656_v35 = vld [vmem:[#allocation2 + $0x171] sm:$0xff] }
 0x21b   :  { %v7429_v31 = vpop.permute.xlu1 %1394 }
 0x21c   :  { %10776 = vst [vmem:[#allocation130_spill] sm:$0xff] %v7429_v31  ;;  %v7431_v52 = vpop.permute.xlu0 %1392  ;;  %v655_v31 = vld [vmem:[#allocation2 + $0x169] sm:$0xff] }
 0x21d   :  { %10777 = vst [vmem:[#allocation131_spill] sm:$0xff] %v7431_v52  ;;  %1574 = vrot.lane.b32.xlu1 %v652_v23, %s6382_s25 }
 0x21e   :  { %1572 = vrot.lane.b32.xlu0 %v651_v48, %s6382_s25  ;;  %v658_v48 = vld [vmem:[#allocation2 + $0x189] sm:$0xff] }
 0x21f   :  { %v7435_v15 = vpop.permute.xlu1 %1398 }
 0x220   :  { %10778 = vst [vmem:[#allocation132_spill] sm:$0xff] %v7435_v15  ;;  %v7437_v44 = vpop.permute.xlu0 %1396  ;;  %v657_v15 = vld [vmem:[#allocation2 + $0x181] sm:$0xff] }
 0x221   :  { %10779 = vst [vmem:[#allocation133_spill] sm:$0xff] %v7437_v44  ;;  %1578 = vrot.lane.b32.xlu1 %v654_v53, %s6382_s25 }
 0x222   :  { %1576 = vrot.lane.b32.xlu0 %v653_v43, %s6382_s25  ;;  %v660_v43 = vld [vmem:[#allocation2 + $0x1d1] sm:$0xff] }
 0x223   :  { %v7441_v56 = vpop.permute.xlu1 %1402 }
 0x224   :  { %10780 = vst [vmem:[#allocation134_spill] sm:$0xff] %v7441_v56  ;;  %v7443_v17 = vpop.permute.xlu0 %1400  ;;  %v659_v56 = vld [vmem:[#allocation2 + $0x1c9] sm:$0xff] }
 0x225   :  { %10781 = vst [vmem:[#allocation135_spill] sm:$0xff] %v7443_v17  ;;  %1582 = vrot.lane.b32.xlu1 %v656_v35, %s6382_s25 }
 0x226   :  { %1580 = vrot.lane.b32.xlu0 %v655_v31, %s6382_s25  ;;  %v662_v31 = vld [vmem:[#allocation2 + $0x1e9] sm:$0xff] }
 0x227   :  { %v7447_v23 = vpop.permute.xlu1 %1406 }
 0x228   :  { %10782 = vst [vmem:[#allocation136_spill] sm:$0xff] %v7447_v23  ;;  %v7449_v52 = vpop.permute.xlu0 %1404  ;;  %v661_v23 = vld [vmem:[#allocation2 + $0x1e1] sm:$0xff] }
 0x229   :  { %10783 = vst [vmem:[#allocation137_spill] sm:$0xff] %v7449_v52  ;;  %1586 = vrot.lane.b32.xlu1 %v658_v48, %s6382_s25 }
 0x22a   :  { %1584 = vrot.lane.b32.xlu0 %v657_v15, %s6382_s25  ;;  %v664_v15 = vld [vmem:[#allocation2 + $0x201] sm:$0xff] }
 0x22b   :  { %v7453_v53 = vpop.permute.xlu1 %1410 }
 0x22c   :  { %10784 = vst [vmem:[#allocation138_spill] sm:$0xff] %v7453_v53  ;;  %v7455_v44 = vpop.permute.xlu0 %1408  ;;  %v663_v53 = vld [vmem:[#allocation2 + $0x1f9] sm:$0xff] }
 0x22d   :  { %10785 = vst [vmem:[#allocation139_spill] sm:$0xff] %v7455_v44  ;;  %1590 = vrot.lane.b32.xlu1 %v660_v43, %s6382_s25 }
 0x22e   :  { %1588 = vrot.lane.b32.xlu0 %v659_v56, %s6382_s25  ;;  %v666_v56 = vld [vmem:[#allocation2 + $0x219] sm:$0xff] }
 0x22f   :  { %v7459_v35 = vpop.permute.xlu1 %1414 }
 0x230   :  { %10786 = vst [vmem:[#allocation140_spill] sm:$0xff] %v7459_v35  ;;  %v7461_v17 = vpop.permute.xlu0 %1412  ;;  %v665_v35 = vld [vmem:[#allocation2 + $0x211] sm:$0xff] }
 0x231   :  { %10787 = vst [vmem:[#allocation141_spill] sm:$0xff] %v7461_v17  ;;  %1594 = vrot.lane.b32.xlu1 %v662_v31, %s6382_s25 }
 0x232   :  { %1592 = vrot.lane.b32.xlu0 %v661_v23, %s6382_s25  ;;  %v668_v23 = vld [vmem:[#allocation2 + $0x231] sm:$0xff] }
 0x233   :  { %v7465_v48 = vpop.permute.xlu1 %1418 }
 0x234   :  { %10788 = vst [vmem:[#allocation142_spill] sm:$0xff] %v7465_v48  ;;  %v7467_v52 = vpop.permute.xlu0 %1416  ;;  %v667_v48 = vld [vmem:[#allocation2 + $0x229] sm:$0xff] }
 0x235   :  { %10789 = vst [vmem:[#allocation143_spill] sm:$0xff] %v7467_v52  ;;  %1598 = vrot.lane.b32.xlu1 %v664_v15, %s6382_s25 }
 0x236   :  { %1596 = vrot.lane.b32.xlu0 %v663_v53, %s6382_s25  ;;  %v670_v53 = vld [vmem:[#allocation2 + $0x249] sm:$0xff] }
 0x237   :  { %v7471_v43 = vpop.permute.xlu1 %1422 }
 0x238   :  { %10790 = vst [vmem:[#allocation144_spill] sm:$0xff] %v7471_v43  ;;  %v7473_v44 = vpop.permute.xlu0 %1420  ;;  %v669_v43 = vld [vmem:[#allocation2 + $0x241] sm:$0xff] }
 0x239   :  { %10791 = vst [vmem:[#allocation145_spill] sm:$0xff] %v7473_v44  ;;  %1602 = vrot.lane.b32.xlu1 %v666_v56, %s6382_s25 }
 0x23a   :  { %1600 = vrot.lane.b32.xlu0 %v665_v35, %s6382_s25  ;;  %v672_v35 = vld [vmem:[#allocation2 + $0x261] sm:$0xff] }
 0x23b   :  { %v7477_v31 = vpop.permute.xlu1 %1426 }
 0x23c   :  { %10792 = vst [vmem:[#allocation146_spill] sm:$0xff] %v7477_v31  ;;  %v7479_v17 = vpop.permute.xlu0 %1424  ;;  %v671_v31 = vld [vmem:[#allocation2 + $0x259] sm:$0xff] }
 0x23d   :  { %10793 = vst [vmem:[#allocation147_spill] sm:$0xff] %v7479_v17  ;;  %1606 = vrot.lane.b32.xlu1 %v668_v23, %s6382_s25 }
 0x23e   :  { %1604 = vrot.lane.b32.xlu0 %v667_v48, %s6382_s25  ;;  %v674_v48 = vld [vmem:[#allocation2 + $0x279] sm:$0xff] }
 0x23f   :  { %v7483_v15 = vpop.permute.xlu1 %1430 }
 0x240   :  { %10794 = vst [vmem:[#allocation148_spill] sm:$0xff] %v7483_v15  ;;  %v7485_v52 = vpop.permute.xlu0 %1428  ;;  %v673_v15 = vld [vmem:[#allocation2 + $0x271] sm:$0xff] }
 0x241   :  { %10795 = vst [vmem:[#allocation149_spill] sm:$0xff] %v7485_v52  ;;  %1610 = vrot.lane.b32.xlu1 %v670_v53, %s6382_s25 }
 0x242   :  { %1608 = vrot.lane.b32.xlu0 %v669_v43, %s6382_s25  ;;  %v676_v43 = vld [vmem:[#allocation2 + $0x291] sm:$0xff] }
 0x243   :  { %v7489_v56 = vpop.permute.xlu1 %1434 }
 0x244   :  { %10796 = vst [vmem:[#allocation150_spill] sm:$0xff] %v7489_v56  ;;  %v7491_v44 = vpop.permute.xlu0 %1432  ;;  %v675_v56 = vld [vmem:[#allocation2 + $0x289] sm:$0xff] }
 0x245   :  { %10797 = vst [vmem:[#allocation151_spill] sm:$0xff] %v7491_v44  ;;  %1614 = vrot.lane.b32.xlu1 %v672_v35, %s6382_s25 }
 0x246   :  { %1612 = vrot.lane.b32.xlu0 %v671_v31, %s6382_s25  ;;  %v678_v31 = vld [vmem:[#allocation2 + $0x2a9] sm:$0xff] }
 0x247   :  { %v7495_v23 = vpop.permute.xlu1 %1438 }
 0x248   :  { %10798 = vst [vmem:[#allocation152_spill] sm:$0xff] %v7495_v23  ;;  %v7497_v17 = vpop.permute.xlu0 %1436  ;;  %v677_v23 = vld [vmem:[#allocation2 + $0x2a1] sm:$0xff] }
 0x249   :  { %10799 = vst [vmem:[#allocation153_spill] sm:$0xff] %v7497_v17  ;;  %1618 = vrot.lane.b32.xlu1 %v674_v48, %s6382_s25 }
 0x24a   :  { %1616 = vrot.lane.b32.xlu0 %v673_v15, %s6382_s25  ;;  %v680_v15 = vld [vmem:[#allocation2 + $0x2c1] sm:$0xff] }
 0x24b   :  { %v7501_v53 = vpop.permute.xlu1 %1442 }
 0x24c   :  { %10800 = vst [vmem:[#allocation154_spill] sm:$0xff] %v7501_v53  ;;  %v7503_v52 = vpop.permute.xlu0 %1440  ;;  %v679_v53 = vld [vmem:[#allocation2 + $0x2b9] sm:$0xff] }
 0x24d   :  { %10801 = vst [vmem:[#allocation155_spill] sm:$0xff] %v7503_v52  ;;  %1622 = vrot.lane.b32.xlu1 %v676_v43, %s6382_s25 }
 0x24e   :  { %1620 = vrot.lane.b32.xlu0 %v675_v56, %s6382_s25  ;;  %v682_v56 = vld [vmem:[#allocation2 + $0x2d9] sm:$0xff] }
 0x24f   :  { %v7507_v35 = vpop.permute.xlu1 %1446 }
 0x250   :  { %10802 = vst [vmem:[#allocation156_spill] sm:$0xff] %v7507_v35  ;;  %v7509_v44 = vpop.permute.xlu0 %1444  ;;  %v681_v35 = vld [vmem:[#allocation2 + $0x2d1] sm:$0xff] }
 0x251   :  { %10803 = vst [vmem:[#allocation157_spill] sm:$0xff] %v7509_v44  ;;  %1626 = vrot.lane.b32.xlu1 %v678_v31, %s6382_s25 }
 0x252   :  { %1624 = vrot.lane.b32.xlu0 %v677_v23, %s6382_s25  ;;  %v684_v23 = vld [vmem:[#allocation2 + $0x2f1] sm:$0xff] }
 0x253   :  { %v7513_v48 = vpop.permute.xlu1 %1450 }
 0x254   :  { %10804 = vst [vmem:[#allocation158_spill] sm:$0xff] %v7513_v48  ;;  %v7515_v17 = vpop.permute.xlu0 %1448  ;;  %v683_v48 = vld [vmem:[#allocation2 + $0x2e9] sm:$0xff] }
 0x255   :  { %10805 = vst [vmem:[#allocation159_spill] sm:$0xff] %v7515_v17  ;;  %1630 = vrot.lane.b32.xlu1 %v680_v15, %s6382_s25 }
 0x256   :  { %1628 = vrot.lane.b32.xlu0 %v679_v53, %s6382_s25  ;;  %v686_v53 = vld [vmem:[#allocation2 + $0x309] sm:$0xff] }
 0x257   :  { %v7519_v43 = vpop.permute.xlu1 %1454 }
 0x258   :  { %10806 = vst [vmem:[#allocation160_spill] sm:$0xff] %v7519_v43  ;;  %v7521_v52 = vpop.permute.xlu0 %1452  ;;  %v685_v43 = vld [vmem:[#allocation2 + $0x301] sm:$0xff] }
 0x259   :  { %10807 = vst [vmem:[#allocation161_spill] sm:$0xff] %v7521_v52  ;;  %1634 = vrot.lane.b32.xlu1 %v682_v56, %s6382_s25 }
 0x25a   :  { %1632 = vrot.lane.b32.xlu0 %v681_v35, %s6382_s25  ;;  %v688_v35 = vld [vmem:[#allocation2 + $0x321] sm:$0xff] }
 0x25b   :  { %v7525_v31 = vpop.permute.xlu1 %1458 }
 0x25c   :  { %10808 = vst [vmem:[#allocation162_spill] sm:$0xff] %v7525_v31  ;;  %v7527_v44 = vpop.permute.xlu0 %1456  ;;  %v687_v31 = vld [vmem:[#allocation2 + $0x319] sm:$0xff] }
 0x25d   :  { %10809 = vst [vmem:[#allocation163_spill] sm:$0xff] %v7527_v44  ;;  %1638 = vrot.lane.b32.xlu1 %v684_v23, %s6382_s25  ;;  %v689_v44 = vld [vmem:[#allocation2 + $0x331] sm:$0xff] }
 0x25e   :  { %1636 = vrot.lane.b32.xlu0 %v683_v48, %s6382_s25  ;;  %v690_v48 = vld [vmem:[#allocation2 + $0x339] sm:$0xff] }
 0x25f   :  { %v7531_v15 = vpop.permute.xlu1 %1526 }
 0x260   :  { %v7533_v17 = vpop.permute.xlu0 %1524 }
 0x261   :  { %1642 = vrot.lane.b32.xlu1 %v686_v53, %s6382_s25 }
 0x262   :  { %1640 = vrot.lane.b32.xlu0 %v685_v43, %s6382_s25  ;;  %v692_v43 = vld [vmem:[#allocation2 + $0x22] sm:$0xff] }
 0x263   :  { %v7537_v56 = vpop.permute.xlu1 %1530 }
 0x264   :  { %v7539_v52 = vpop.permute.xlu0 %1528 }
 0x265   :  { %1646 = vrot.lane.b32.xlu1 %v688_v35, %s6382_s25 }
 0x266   :  { %1644 = vrot.lane.b32.xlu0 %v687_v31, %s6382_s25  ;;  %v694_v31 = vld [vmem:[#allocation2 + $0x3a] sm:$0xff] }
 0x267   :  { %v7543_v23 = vpop.permute.xlu1 %1534 }
 0x268   :  { %v7545_v46 = vpop.permute.xlu0 %1532 }
 0x269   :  { %1650 = vrot.lane.b32.xlu1 %v690_v48, %s6382_s25 }
 0x26a   :  { %1648 = vrot.lane.b32.xlu0 %v689_v44, %s6382_s25  ;;  %v696_v44 = vld [vmem:[#allocation2 + $0x52] sm:$0xff] }
 0x26b   :  { %v7549_v53 = vpop.permute.xlu1 %1538 }
 0x26c   :  { %10810 = vst [vmem:[#allocation164_spill] sm:$0xff] %v7549_v53  ;;  %v7551_v51 = vpop.permute.xlu0 %1536 }
 0x26d   :  { %10811 = vst [vmem:[#allocation165_spill] sm:$0xff] %v7551_v51  ;;  %1718 = vrot.lane.b32.xlu1 %v692_v43, %s6383_s26 }
 0x26e   :  { %1716 = vrot.lane.b32.xlu0 %v691_v42, %s6383_s26  ;;  %v698_v42 = vld [vmem:[#allocation2 + $0x6a] sm:$0xff] }
 0x26f   :  { %v7555_v35 = vpop.permute.xlu1 %1542 }
 0x270   :  { %10812 = vst [vmem:[#allocation166_spill] sm:$0xff] %v7555_v35  ;;  %v7557_v6 = vpop.permute.xlu0 %1540 }
 0x271   :  { %10813 = vst [vmem:[#allocation167_spill] sm:$0xff] %v7557_v6  ;;  %1722 = vrot.lane.b32.xlu1 %v694_v31, %s6383_s26 }
 0x272   :  { %1720 = vrot.lane.b32.xlu0 %v693_v33, %s6383_s26  ;;  %v700_v33 = vld [vmem:[#allocation2 + $0x82] sm:$0xff] }
 0x273   :  { %v7561_v48 = vpop.permute.xlu1 %1546 }
 0x274   :  { %10814 = vst [vmem:[#allocation168_spill] sm:$0xff] %v7561_v48  ;;  %v7563_v63 = vpop.permute.xlu0 %1544  ;;  %v699_v48 = vld [vmem:[#allocation2 + $0x7a] sm:$0xff] }
 0x275   :  { %10815 = vst [vmem:[#allocation169_spill] sm:$0xff] %v7563_v63  ;;  %1726 = vrot.lane.b32.xlu1 %v696_v44, %s6383_s26 }
 0x276   :  { %1724 = vrot.lane.b32.xlu0 %v695_v40, %s6383_s26  ;;  %v702_v40 = vld [vmem:[#allocation2 + $0x9a] sm:$0xff] }
 0x277   :  { %v7567_v43 = vpop.permute.xlu1 %1550 }
 0x278   :  { %10816 = vst [vmem:[#allocation170_spill] sm:$0xff] %v7567_v43  ;;  %v7569_v58 = vpop.permute.xlu0 %1548  ;;  %v701_v43 = vld [vmem:[#allocation2 + $0x92] sm:$0xff] }
 0x279   :  { %10817 = vst [vmem:[#allocation171_spill] sm:$0xff] %v7569_v58  ;;  %1730 = vrot.lane.b32.xlu1 %v698_v42, %s6383_s26 }
 0x27a   :  { %1728 = vrot.lane.b32.xlu0 %v697_v38, %s6383_s26  ;;  %v704_v38 = vld [vmem:[#allocation2 + $0xb2] sm:$0xff] }
 0x27b   :  { %v7573_v31 = vpop.permute.xlu1 %1554 }
 0x27c   :  { %10818 = vst [vmem:[#allocation172_spill] sm:$0xff] %v7573_v31  ;;  %v7575_v49 = vpop.permute.xlu0 %1552  ;;  %v703_v31 = vld [vmem:[#allocation2 + $0xaa] sm:$0xff] }
 0x27d   :  { %10819 = vst [vmem:[#allocation173_spill] sm:$0xff] %v7575_v49  ;;  %1734 = vrot.lane.b32.xlu1 %v700_v33, %s6383_s26 }
 0x27e   :  { %1732 = vrot.lane.b32.xlu0 %v699_v48, %s6383_s26  ;;  %v706_v48 = vld [vmem:[#allocation2 + $0xca] sm:$0xff] }
 0x27f   :  { %v7579_v44 = vpop.permute.xlu1 %1558 }
 0x280   :  { %10820 = vst [vmem:[#allocation174_spill] sm:$0xff] %v7579_v44  ;;  %v7581_v63 = vpop.permute.xlu0 %1556  ;;  %v705_v44 = vld [vmem:[#allocation2 + $0xc2] sm:$0xff] }
 0x281   :  { %10821 = vst [vmem:[#allocation175_spill] sm:$0xff] %v7581_v63  ;;  %1738 = vrot.lane.b32.xlu1 %v702_v40, %s6383_s26 }
 0x282   :  { %1736 = vrot.lane.b32.xlu0 %v701_v43, %s6383_s26  ;;  %v708_v43 = vld [vmem:[#allocation2 + $0xe2] sm:$0xff] }
 0x283   :  { %v7585_v42 = vpop.permute.xlu1 %1562 }
 0x284   :  { %10822 = vst [vmem:[#allocation176_spill] sm:$0xff] %v7585_v42  ;;  %v7587_v58 = vpop.permute.xlu0 %1560  ;;  %v707_v42 = vld [vmem:[#allocation2 + $0xda] sm:$0xff] }
 0x285   :  { %10823 = vst [vmem:[#allocation177_spill] sm:$0xff] %v7587_v58  ;;  %1742 = vrot.lane.b32.xlu1 %v704_v38, %s6383_s26 }
 0x286   :  { %1740 = vrot.lane.b32.xlu0 %v703_v31, %s6383_s26  ;;  %v710_v31 = vld [vmem:[#allocation2 + $0xfa] sm:$0xff] }
 0x287   :  { %v7591_v33 = vpop.permute.xlu1 %1566 }
 0x288   :  { %10824 = vst [vmem:[#allocation178_spill] sm:$0xff] %v7591_v33  ;;  %v7593_v49 = vpop.permute.xlu0 %1564  ;;  %v709_v33 = vld [vmem:[#allocation2 + $0xf2] sm:$0xff] }
 0x289   :  { %10825 = vst [vmem:[#allocation179_spill] sm:$0xff] %v7593_v49  ;;  %1746 = vrot.lane.b32.xlu1 %v706_v48, %s6383_s26 }
 0x28a   :  { %1744 = vrot.lane.b32.xlu0 %v705_v44, %s6383_s26  ;;  %v712_v44 = vld [vmem:[#allocation2 + $0x112] sm:$0xff] }
 0x28b   :  { %v7597_v40 = vpop.permute.xlu1 %1570 }
 0x28c   :  { %10826 = vst [vmem:[#allocation180_spill] sm:$0xff] %v7597_v40  ;;  %v7599_v63 = vpop.permute.xlu0 %1568  ;;  %v711_v40 = vld [vmem:[#allocation2 + $0x10a] sm:$0xff] }
 0x28d   :  { %10827 = vst [vmem:[#allocation181_spill] sm:$0xff] %v7599_v63  ;;  %1750 = vrot.lane.b32.xlu1 %v708_v43, %s6383_s26 }
 0x28e   :  { %1748 = vrot.lane.b32.xlu0 %v707_v42, %s6383_s26  ;;  %v714_v42 = vld [vmem:[#allocation2 + $0x12a] sm:$0xff] }
 0x28f   :  { %v7603_v38 = vpop.permute.xlu1 %1574 }
 0x290   :  { %10828 = vst [vmem:[#allocation182_spill] sm:$0xff] %v7603_v38  ;;  %v7605_v58 = vpop.permute.xlu0 %1572  ;;  %v713_v38 = vld [vmem:[#allocation2 + $0x122] sm:$0xff] }
 0x291   :  { %10829 = vst [vmem:[#allocation183_spill] sm:$0xff] %v7605_v58  ;;  %1754 = vrot.lane.b32.xlu1 %v710_v31, %s6383_s26 }
 0x292   :  { %1752 = vrot.lane.b32.xlu0 %v709_v33, %s6383_s26  ;;  %v716_v33 = vld [vmem:[#allocation2 + $0x142] sm:$0xff] }
 0x293   :  { %v7609_v48 = vpop.permute.xlu1 %1578 }
 0x294   :  { %10830 = vst [vmem:[#allocation184_spill] sm:$0xff] %v7609_v48  ;;  %v7611_v49 = vpop.permute.xlu0 %1576  ;;  %v715_v48 = vld [vmem:[#allocation2 + $0x13a] sm:$0xff] }
 0x295   :  { %10831 = vst [vmem:[#allocation185_spill] sm:$0xff] %v7611_v49  ;;  %1758 = vrot.lane.b32.xlu1 %v712_v44, %s6383_s26 }
 0x296   :  { %1756 = vrot.lane.b32.xlu0 %v711_v40, %s6383_s26  ;;  %v718_v40 = vld [vmem:[#allocation2 + $0x15a] sm:$0xff] }
 0x297   :  { %v7615_v43 = vpop.permute.xlu1 %1582 }
 0x298   :  { %10832 = vst [vmem:[#allocation186_spill] sm:$0xff] %v7615_v43  ;;  %v7617_v63 = vpop.permute.xlu0 %1580  ;;  %v717_v43 = vld [vmem:[#allocation2 + $0x152] sm:$0xff] }
 0x299   :  { %10833 = vst [vmem:[#allocation187_spill] sm:$0xff] %v7617_v63  ;;  %1762 = vrot.lane.b32.xlu1 %v714_v42, %s6383_s26 }
 0x29a   :  { %1760 = vrot.lane.b32.xlu0 %v713_v38, %s6383_s26  ;;  %v720_v38 = vld [vmem:[#allocation2 + $0x172] sm:$0xff] }
 0x29b   :  { %v7621_v31 = vpop.permute.xlu1 %1586 }
 0x29c   :  { %10834 = vst [vmem:[#allocation188_spill] sm:$0xff] %v7621_v31  ;;  %v7623_v58 = vpop.permute.xlu0 %1584  ;;  %v719_v31 = vld [vmem:[#allocation2 + $0x16a] sm:$0xff] }
 0x29d   :  { %10835 = vst [vmem:[#allocation189_spill] sm:$0xff] %v7623_v58  ;;  %1766 = vrot.lane.b32.xlu1 %v716_v33, %s6383_s26 }
 0x29e   :  { %1764 = vrot.lane.b32.xlu0 %v715_v48, %s6383_s26  ;;  %v722_v48 = vld [vmem:[#allocation2 + $0x18a] sm:$0xff] }
 0x29f   :  { %v7627_v44 = vpop.permute.xlu1 %1590 }
 0x2a0   :  { %10836 = vst [vmem:[#allocation190_spill] sm:$0xff] %v7627_v44  ;;  %v7629_v49 = vpop.permute.xlu0 %1588  ;;  %v721_v44 = vld [vmem:[#allocation2 + $0x182] sm:$0xff] }
 0x2a1   :  { %10837 = vst [vmem:[#allocation191_spill] sm:$0xff] %v7629_v49  ;;  %1770 = vrot.lane.b32.xlu1 %v718_v40, %s6383_s26 }
 0x2a2   :  { %1768 = vrot.lane.b32.xlu0 %v717_v43, %s6383_s26  ;;  %v724_v43 = vld [vmem:[#allocation2 + $0x1d2] sm:$0xff] }
 0x2a3   :  { %v7633_v42 = vpop.permute.xlu1 %1594 }
 0x2a4   :  { %10838 = vst [vmem:[#allocation192_spill] sm:$0xff] %v7633_v42  ;;  %v7635_v63 = vpop.permute.xlu0 %1592  ;;  %v723_v42 = vld [vmem:[#allocation2 + $0x1ca] sm:$0xff] }
 0x2a5   :  { %10839 = vst [vmem:[#allocation193_spill] sm:$0xff] %v7635_v63  ;;  %1774 = vrot.lane.b32.xlu1 %v720_v38, %s6383_s26 }
 0x2a6   :  { %1772 = vrot.lane.b32.xlu0 %v719_v31, %s6383_s26  ;;  %v726_v31 = vld [vmem:[#allocation2 + $0x1ea] sm:$0xff] }
 0x2a7   :  { %v7639_v33 = vpop.permute.xlu1 %1598 }
 0x2a8   :  { %10840 = vst [vmem:[#allocation194_spill] sm:$0xff] %v7639_v33  ;;  %v7641_v58 = vpop.permute.xlu0 %1596  ;;  %v725_v33 = vld [vmem:[#allocation2 + $0x1e2] sm:$0xff] }
 0x2a9   :  { %10841 = vst [vmem:[#allocation195_spill] sm:$0xff] %v7641_v58  ;;  %1778 = vrot.lane.b32.xlu1 %v722_v48, %s6383_s26 }
 0x2aa   :  { %1776 = vrot.lane.b32.xlu0 %v721_v44, %s6383_s26  ;;  %v728_v44 = vld [vmem:[#allocation2 + $0x202] sm:$0xff] }
 0x2ab   :  { %v7645_v40 = vpop.permute.xlu1 %1602 }
 0x2ac   :  { %10842 = vst [vmem:[#allocation196_spill] sm:$0xff] %v7645_v40  ;;  %v7647_v49 = vpop.permute.xlu0 %1600  ;;  %v727_v40 = vld [vmem:[#allocation2 + $0x1fa] sm:$0xff] }
 0x2ad   :  { %10843 = vst [vmem:[#allocation197_spill] sm:$0xff] %v7647_v49  ;;  %1782 = vrot.lane.b32.xlu1 %v724_v43, %s6383_s26 }
 0x2ae   :  { %1780 = vrot.lane.b32.xlu0 %v723_v42, %s6383_s26  ;;  %v730_v42 = vld [vmem:[#allocation2 + $0x21a] sm:$0xff] }
 0x2af   :  { %v7651_v38 = vpop.permute.xlu1 %1606 }
 0x2b0   :  { %10844 = vst [vmem:[#allocation198_spill] sm:$0xff] %v7651_v38  ;;  %v7653_v63 = vpop.permute.xlu0 %1604  ;;  %v729_v38 = vld [vmem:[#allocation2 + $0x212] sm:$0xff] }
 0x2b1   :  { %10845 = vst [vmem:[#allocation199_spill] sm:$0xff] %v7653_v63  ;;  %1786 = vrot.lane.b32.xlu1 %v726_v31, %s6383_s26 }
 0x2b2   :  { %1784 = vrot.lane.b32.xlu0 %v725_v33, %s6383_s26  ;;  %v732_v33 = vld [vmem:[#allocation2 + $0x232] sm:$0xff] }
 0x2b3   :  { %v7657_v48 = vpop.permute.xlu1 %1610 }
 0x2b4   :  { %10846 = vst [vmem:[#allocation200_spill] sm:$0xff] %v7657_v48  ;;  %v7659_v58 = vpop.permute.xlu0 %1608  ;;  %v731_v48 = vld [vmem:[#allocation2 + $0x22a] sm:$0xff] }
 0x2b5   :  { %10847 = vst [vmem:[#allocation201_spill] sm:$0xff] %v7659_v58  ;;  %1790 = vrot.lane.b32.xlu1 %v728_v44, %s6383_s26 }
 0x2b6   :  { %1788 = vrot.lane.b32.xlu0 %v727_v40, %s6383_s26  ;;  %v734_v40 = vld [vmem:[#allocation2 + $0x24a] sm:$0xff] }
 0x2b7   :  { %v7663_v43 = vpop.permute.xlu1 %1614 }
 0x2b8   :  { %10848 = vst [vmem:[#allocation202_spill] sm:$0xff] %v7663_v43  ;;  %v7665_v49 = vpop.permute.xlu0 %1612  ;;  %v733_v43 = vld [vmem:[#allocation2 + $0x242] sm:$0xff] }
 0x2b9   :  { %10849 = vst [vmem:[#allocation203_spill] sm:$0xff] %v7665_v49  ;;  %1794 = vrot.lane.b32.xlu1 %v730_v42, %s6383_s26 }
 0x2ba   :  { %1792 = vrot.lane.b32.xlu0 %v729_v38, %s6383_s26  ;;  %v736_v38 = vld [vmem:[#allocation2 + $0x262] sm:$0xff] }
 0x2bb   :  { %v7669_v31 = vpop.permute.xlu1 %1618 }
 0x2bc   :  { %10850 = vst [vmem:[#allocation204_spill] sm:$0xff] %v7669_v31  ;;  %v7671_v63 = vpop.permute.xlu0 %1616  ;;  %v735_v31 = vld [vmem:[#allocation2 + $0x25a] sm:$0xff] }
 0x2bd   :  { %10851 = vst [vmem:[#allocation205_spill] sm:$0xff] %v7671_v63  ;;  %1798 = vrot.lane.b32.xlu1 %v732_v33, %s6383_s26 }
 0x2be   :  { %1796 = vrot.lane.b32.xlu0 %v731_v48, %s6383_s26  ;;  %v738_v48 = vld [vmem:[#allocation2 + $0x27a] sm:$0xff] }
 0x2bf   :  { %v7675_v44 = vpop.permute.xlu1 %1622 }
 0x2c0   :  { %10852 = vst [vmem:[#allocation206_spill] sm:$0xff] %v7675_v44  ;;  %v7677_v58 = vpop.permute.xlu0 %1620  ;;  %v737_v44 = vld [vmem:[#allocation2 + $0x272] sm:$0xff] }
 0x2c1   :  { %10853 = vst [vmem:[#allocation207_spill] sm:$0xff] %v7677_v58  ;;  %1802 = vrot.lane.b32.xlu1 %v734_v40, %s6383_s26 }
 0x2c2   :  { %1800 = vrot.lane.b32.xlu0 %v733_v43, %s6383_s26  ;;  %v740_v43 = vld [vmem:[#allocation2 + $0x292] sm:$0xff] }
 0x2c3   :  { %v7681_v42 = vpop.permute.xlu1 %1626 }
 0x2c4   :  { %10854 = vst [vmem:[#allocation208_spill] sm:$0xff] %v7681_v42  ;;  %v7683_v49 = vpop.permute.xlu0 %1624  ;;  %v739_v42 = vld [vmem:[#allocation2 + $0x28a] sm:$0xff] }
 0x2c5   :  { %10855 = vst [vmem:[#allocation209_spill] sm:$0xff] %v7683_v49  ;;  %1806 = vrot.lane.b32.xlu1 %v736_v38, %s6383_s26 }
 0x2c6   :  { %1804 = vrot.lane.b32.xlu0 %v735_v31, %s6383_s26  ;;  %v742_v31 = vld [vmem:[#allocation2 + $0x2aa] sm:$0xff] }
 0x2c7   :  { %v7687_v33 = vpop.permute.xlu1 %1630 }
 0x2c8   :  { %10856 = vst [vmem:[#allocation210_spill] sm:$0xff] %v7687_v33  ;;  %v7689_v63 = vpop.permute.xlu0 %1628  ;;  %v741_v33 = vld [vmem:[#allocation2 + $0x2a2] sm:$0xff] }
 0x2c9   :  { %10857 = vst [vmem:[#allocation211_spill] sm:$0xff] %v7689_v63  ;;  %1810 = vrot.lane.b32.xlu1 %v738_v48, %s6383_s26 }
 0x2ca   :  { %1808 = vrot.lane.b32.xlu0 %v737_v44, %s6383_s26  ;;  %v744_v44 = vld [vmem:[#allocation2 + $0x2c2] sm:$0xff] }
 0x2cb   :  { %v7693_v40 = vpop.permute.xlu1 %1634 }
 0x2cc   :  { %10858 = vst [vmem:[#allocation212_spill] sm:$0xff] %v7693_v40  ;;  %v7695_v58 = vpop.permute.xlu0 %1632  ;;  %v743_v40 = vld [vmem:[#allocation2 + $0x2ba] sm:$0xff] }
 0x2cd   :  { %10859 = vst [vmem:[#allocation213_spill] sm:$0xff] %v7695_v58  ;;  %1814 = vrot.lane.b32.xlu1 %v740_v43, %s6383_s26 }
 0x2ce   :  { %1812 = vrot.lane.b32.xlu0 %v739_v42, %s6383_s26  ;;  %v746_v42 = vld [vmem:[#allocation2 + $0x2da] sm:$0xff] }
 0x2cf   :  { %v7699_v38 = vpop.permute.xlu1 %1638 }
 0x2d0   :  { %10860 = vst [vmem:[#allocation214_spill] sm:$0xff] %v7699_v38  ;;  %v7701_v49 = vpop.permute.xlu0 %1636  ;;  %v745_v38 = vld [vmem:[#allocation2 + $0x2d2] sm:$0xff] }
 0x2d1   :  { %10861 = vst [vmem:[#allocation215_spill] sm:$0xff] %v7701_v49  ;;  %1818 = vrot.lane.b32.xlu1 %v742_v31, %s6383_s26 }
 0x2d2   :  { %1816 = vrot.lane.b32.xlu0 %v741_v33, %s6383_s26  ;;  %v748_v33 = vld [vmem:[#allocation2 + $0x2f2] sm:$0xff] }
 0x2d3   :  { %v7705_v48 = vpop.permute.xlu1 %1642 }
 0x2d4   :  { %10862 = vst [vmem:[#allocation216_spill] sm:$0xff] %v7705_v48  ;;  %v7707_v63 = vpop.permute.xlu0 %1640  ;;  %v747_v48 = vld [vmem:[#allocation2 + $0x2ea] sm:$0xff] }
 0x2d5   :  { %10863 = vst [vmem:[#allocation217_spill] sm:$0xff] %v7707_v63  ;;  %1822 = vrot.lane.b32.xlu1 %v744_v44, %s6383_s26 }
 0x2d6   :  { %1820 = vrot.lane.b32.xlu0 %v743_v40, %s6383_s26  ;;  %v750_v40 = vld [vmem:[#allocation2 + $0x30a] sm:$0xff] }
 0x2d7   :  { %v7711_v43 = vpop.permute.xlu1 %1646 }
 0x2d8   :  { %10864 = vst [vmem:[#allocation218_spill] sm:$0xff] %v7711_v43  ;;  %v7713_v58 = vpop.permute.xlu0 %1644  ;;  %v749_v43 = vld [vmem:[#allocation2 + $0x302] sm:$0xff] }
 0x2d9   :  { %10865 = vst [vmem:[#allocation219_spill] sm:$0xff] %v7713_v58  ;;  %1826 = vrot.lane.b32.xlu1 %v746_v42, %s6383_s26 }
 0x2da   :  { %1824 = vrot.lane.b32.xlu0 %v745_v38, %s6383_s26  ;;  %v752_v38 = vld [vmem:[#allocation2 + $0x322] sm:$0xff] }
 0x2db   :  { %v7717_v31 = vpop.permute.xlu1 %1650 }
 0x2dc   :  { %10866 = vst [vmem:[#allocation220_spill] sm:$0xff] %v7717_v31  ;;  %v7719_v49 = vpop.permute.xlu0 %1648  ;;  %v751_v31 = vld [vmem:[#allocation2 + $0x31a] sm:$0xff] }
 0x2dd   :  { %10867 = vst [vmem:[#allocation221_spill] sm:$0xff] %v7719_v49  ;;  %1830 = vrot.lane.b32.xlu1 %v748_v33, %s6383_s26  ;;  %v753_v49 = vld [vmem:[#allocation2 + $0x332] sm:$0xff] }
 0x2de   :  { %1828 = vrot.lane.b32.xlu0 %v747_v48, %s6383_s26  ;;  %v754_v48 = vld [vmem:[#allocation2 + $0x33a] sm:$0xff] }
 0x2df   :  { %v7723_v44 = vpop.permute.xlu1 %1718 }
 0x2e0   :  { %v7725_v63 = vpop.permute.xlu0 %1716 }
 0x2e1   :  { %1834 = vrot.lane.b32.xlu1 %v750_v40, %s6383_s26 }
 0x2e2   :  { %1832 = vrot.lane.b32.xlu0 %v749_v43, %s6383_s26  ;;  %v757_v43 = vld [vmem:[#allocation2 + $0x38] sm:$0xff] }
 0x2e3   :  { %v7729_v42 = vpop.permute.xlu1 %1722 }
 0x2e4   :  { %v7731_v58 = vpop.permute.xlu0 %1720 }
 0x2e5   :  { %1838 = vrot.lane.b32.xlu1 %v752_v38, %s6383_s26 }
 0x2e6   :  { %1836 = vrot.lane.b32.xlu0 %v751_v31, %s6383_s26  ;;  %v759_v31 = vld [vmem:[#allocation2 + $0x50] sm:$0xff] }
 0x2e7   :  { %v7735_v33 = vpop.permute.xlu1 %1726 }
 0x2e8   :  { %v7737_v57 = vpop.permute.xlu0 %1724 }
 0x2e9   :  { %1842 = vrot.lane.b32.xlu1 %v754_v48, %s6383_s26 }
 0x2ea   :  { %1840 = vrot.lane.b32.xlu0 %v753_v49, %s6383_s26  ;;  %v761_v49 = vld [vmem:[#allocation2 + $0x68] sm:$0xff]  ;;  %s6390_s26 = smov 48  }
 0x2eb   :  { %v7741_v40 = vpop.permute.xlu1 %1730 }
 0x2ec   :  { %10868 = vst [vmem:[#allocation222_spill] sm:$0xff] %v7741_v40  ;;  %v7743_v50 = vpop.permute.xlu0 %1728 }
 0x2ed   :  { %10869 = vst [vmem:[#allocation223_spill] sm:$0xff] %v7743_v50  ;;  %1910 = vrot.lane.b32.xlu1 %v757_v43, %s6384_s27 }
 0x2ee   :  { %1908 = vrot.lane.b32.xlu0 %v756_v36, %s6384_s27  ;;  %v763_v36 = vld [vmem:[#allocation2 + $0x80] sm:$0xff] }
 0x2ef   :  { %v7747_v38 = vpop.permute.xlu1 %1734 }
 0x2f0   :  { %10870 = vst [vmem:[#allocation224_spill] sm:$0xff] %v7747_v38  ;;  %v7749_v35 = vpop.permute.xlu0 %1732  ;;  %v762_v38 = vld [vmem:[#allocation2 + $0x78] sm:$0xff] }
 0x2f1   :  { %10871 = vst [vmem:[#allocation225_spill] sm:$0xff] %v7749_v35  ;;  %1914 = vrot.lane.b32.xlu1 %v759_v31, %s6384_s27 }
 0x2f2   :  { %1912 = vrot.lane.b32.xlu0 %v758_v34, %s6384_s27  ;;  %v765_v34 = vld [vmem:[#allocation2 + $0x98] sm:$0xff] }
 0x2f3   :  { %v7753_v48 = vpop.permute.xlu1 %1738 }
 0x2f4   :  { %10872 = vst [vmem:[#allocation226_spill] sm:$0xff] %v7753_v48  ;;  %v7755_v6 = vpop.permute.xlu0 %1736  ;;  %v764_v48 = vld [vmem:[#allocation2 + $0x90] sm:$0xff] }
 0x2f5   :  { %10873 = vst [vmem:[#allocation227_spill] sm:$0xff] %v7755_v6  ;;  %1918 = vrot.lane.b32.xlu1 %v761_v49, %s6384_s27 }
 0x2f6   :  { %1916 = vrot.lane.b32.xlu0 %v760_v3, %s6384_s27  ;;  %v767_v3 = vld [vmem:[#allocation2 + $0xb0] sm:$0xff] }
 0x2f7   :  { %v7759_v43 = vpop.permute.xlu1 %1742 }
 0x2f8   :  { %10874 = vst [vmem:[#allocation228_spill] sm:$0xff] %v7759_v43  ;;  %v7761_v45 = vpop.permute.xlu0 %1740  ;;  %v766_v43 = vld [vmem:[#allocation2 + $0xa8] sm:$0xff] }
 0x2f9   :  { %10875 = vst [vmem:[#allocation229_spill] sm:$0xff] %v7761_v45  ;;  %1922 = vrot.lane.b32.xlu1 %v763_v36, %s6384_s27 }
 0x2fa   :  { %1920 = vrot.lane.b32.xlu0 %v762_v38, %s6384_s27  ;;  %v769_v38 = vld [vmem:[#allocation2 + $0xc8] sm:$0xff] }
 0x2fb   :  { %v7765_v31 = vpop.permute.xlu1 %1746 }
 0x2fc   :  { %10876 = vst [vmem:[#allocation230_spill] sm:$0xff] %v7765_v31  ;;  %v7767_v35 = vpop.permute.xlu0 %1744  ;;  %v768_v31 = vld [vmem:[#allocation2 + $0xc0] sm:$0xff] }
 0x2fd   :  { %10877 = vst [vmem:[#allocation231_spill] sm:$0xff] %v7767_v35  ;;  %1926 = vrot.lane.b32.xlu1 %v765_v34, %s6384_s27 }
 0x2fe   :  { %1924 = vrot.lane.b32.xlu0 %v764_v48, %s6384_s27  ;;  %v771_v48 = vld [vmem:[#allocation2 + $0xe0] sm:$0xff] }
 0x2ff   :  { %v7771_v49 = vpop.permute.xlu1 %1750 }
 0x300   :  { %10878 = vst [vmem:[#allocation232_spill] sm:$0xff] %v7771_v49  ;;  %v7773_v6 = vpop.permute.xlu0 %1748  ;;  %v770_v49 = vld [vmem:[#allocation2 + $0xd8] sm:$0xff] }
 0x301   :  { %10879 = vst [vmem:[#allocation233_spill] sm:$0xff] %v7773_v6  ;;  %1930 = vrot.lane.b32.xlu1 %v767_v3, %s6384_s27 }
 0x302   :  { %1928 = vrot.lane.b32.xlu0 %v766_v43, %s6384_s27  ;;  %v773_v43 = vld [vmem:[#allocation2 + $0xf8] sm:$0xff] }
 0x303   :  { %v7777_v36 = vpop.permute.xlu1 %1754 }
 0x304   :  { %10880 = vst [vmem:[#allocation234_spill] sm:$0xff] %v7777_v36  ;;  %v7779_v45 = vpop.permute.xlu0 %1752  ;;  %v772_v36 = vld [vmem:[#allocation2 + $0xf0] sm:$0xff] }
 0x305   :  { %10881 = vst [vmem:[#allocation235_spill] sm:$0xff] %v7779_v45  ;;  %1934 = vrot.lane.b32.xlu1 %v769_v38, %s6384_s27 }
 0x306   :  { %1932 = vrot.lane.b32.xlu0 %v768_v31, %s6384_s27  ;;  %v775_v31 = vld [vmem:[#allocation2 + $0x110] sm:$0xff] }
 0x307   :  { %v7783_v34 = vpop.permute.xlu1 %1758 }
 0x308   :  { %10882 = vst [vmem:[#allocation236_spill] sm:$0xff] %v7783_v34  ;;  %v7785_v35 = vpop.permute.xlu0 %1756  ;;  %v774_v34 = vld [vmem:[#allocation2 + $0x108] sm:$0xff] }
 0x309   :  { %10883 = vst [vmem:[#allocation237_spill] sm:$0xff] %v7785_v35  ;;  %1938 = vrot.lane.b32.xlu1 %v771_v48, %s6384_s27 }
 0x30a   :  { %1936 = vrot.lane.b32.xlu0 %v770_v49, %s6384_s27  ;;  %v777_v49 = vld [vmem:[#allocation2 + $0x128] sm:$0xff] }
 0x30b   :  { %v7789_v3 = vpop.permute.xlu1 %1762 }
 0x30c   :  { %10884 = vst [vmem:[#allocation238_spill] sm:$0xff] %v7789_v3  ;;  %v7791_v6 = vpop.permute.xlu0 %1760  ;;  %v776_v3 = vld [vmem:[#allocation2 + $0x120] sm:$0xff] }
 0x30d   :  { %10885 = vst [vmem:[#allocation239_spill] sm:$0xff] %v7791_v6  ;;  %1942 = vrot.lane.b32.xlu1 %v773_v43, %s6384_s27 }
 0x30e   :  { %1940 = vrot.lane.b32.xlu0 %v772_v36, %s6384_s27  ;;  %v779_v36 = vld [vmem:[#allocation2 + $0x140] sm:$0xff] }
 0x30f   :  { %v7795_v38 = vpop.permute.xlu1 %1766 }
 0x310   :  { %10886 = vst [vmem:[#allocation240_spill] sm:$0xff] %v7795_v38  ;;  %v7797_v45 = vpop.permute.xlu0 %1764  ;;  %v778_v38 = vld [vmem:[#allocation2 + $0x138] sm:$0xff] }
 0x311   :  { %10887 = vst [vmem:[#allocation241_spill] sm:$0xff] %v7797_v45  ;;  %1946 = vrot.lane.b32.xlu1 %v775_v31, %s6384_s27 }
 0x312   :  { %1944 = vrot.lane.b32.xlu0 %v774_v34, %s6384_s27  ;;  %v781_v34 = vld [vmem:[#allocation2 + $0x158] sm:$0xff] }
 0x313   :  { %v7801_v48 = vpop.permute.xlu1 %1770 }
 0x314   :  { %10888 = vst [vmem:[#allocation242_spill] sm:$0xff] %v7801_v48  ;;  %v7803_v35 = vpop.permute.xlu0 %1768  ;;  %v780_v48 = vld [vmem:[#allocation2 + $0x150] sm:$0xff] }
 0x315   :  { %10889 = vst [vmem:[#allocation243_spill] sm:$0xff] %v7803_v35  ;;  %1950 = vrot.lane.b32.xlu1 %v777_v49, %s6384_s27 }
 0x316   :  { %1948 = vrot.lane.b32.xlu0 %v776_v3, %s6384_s27  ;;  %v783_v3 = vld [vmem:[#allocation2 + $0x170] sm:$0xff] }
 0x317   :  { %v7807_v43 = vpop.permute.xlu1 %1774 }
 0x318   :  { %10890 = vst [vmem:[#allocation244_spill] sm:$0xff] %v7807_v43  ;;  %v7809_v6 = vpop.permute.xlu0 %1772  ;;  %v782_v43 = vld [vmem:[#allocation2 + $0x168] sm:$0xff] }
 0x319   :  { %10891 = vst [vmem:[#allocation245_spill] sm:$0xff] %v7809_v6  ;;  %1954 = vrot.lane.b32.xlu1 %v779_v36, %s6384_s27 }
 0x31a   :  { %1952 = vrot.lane.b32.xlu0 %v778_v38, %s6384_s27  ;;  %v785_v38 = vld [vmem:[#allocation2 + $0x188] sm:$0xff] }
 0x31b   :  { %v7813_v31 = vpop.permute.xlu1 %1778 }
 0x31c   :  { %10892 = vst [vmem:[#allocation246_spill] sm:$0xff] %v7813_v31  ;;  %v7815_v45 = vpop.permute.xlu0 %1776  ;;  %v784_v31 = vld [vmem:[#allocation2 + $0x180] sm:$0xff] }
 0x31d   :  { %10893 = vst [vmem:[#allocation247_spill] sm:$0xff] %v7815_v45  ;;  %1958 = vrot.lane.b32.xlu1 %v781_v34, %s6384_s27  ;;  %v7831_v34 = vld [vmem:[#allocation2] sm:$0xff] }
 0x31e   :  { %1956 = vrot.lane.b32.xlu0 %v780_v48, %s6384_s27  ;;  %v788_v48 = vld [vmem:[#allocation2 + $0x1e0] sm:$0xff] }
 0x31f   :  { %v7819_v49 = vpop.permute.xlu1 %1782 }
 0x320   :  { %10894 = vst [vmem:[#allocation248_spill] sm:$0xff] %v7819_v49  ;;  %v7821_v35 = vpop.permute.xlu0 %1780  ;;  %v7835_v49 = vpack.i.bf16 %v7831_v34, %v7831_v34 }
 0x321   :  { %10895 = vst [vmem:[#allocation249_spill] sm:$0xff] %v7821_v35  ;;  %1962 = vrot.lane.b32.xlu1 %v783_v3, %s6384_s27  ;;  %v792_v35 = vld [vmem:[#allocation2 + $0x210] sm:$0xff] }
 0x322   :  { %1960 = vrot.lane.b32.xlu0 %v782_v43, %s6384_s27 }
 0x323   :  { %v7825_v36 = vpop.permute.xlu1 %1786 }
 0x324   :  { %10896 = vst [vmem:[#allocation250_spill] sm:$0xff] %v7825_v36  ;;  %v7827_v6 = vpop.permute.xlu0 %1784  ;;  %v790_v36 = vld [vmem:[#allocation2 + $0x1f8] sm:$0xff] }
 0x325   :  { %10897 = vst [vmem:[#allocation251_spill] sm:$0xff] %v7827_v6  ;;  %1966 = vrot.lane.b32.xlu1 %v785_v38, %s6384_s27 }
 0x326   :  { %1964 = vrot.lane.b32.xlu0 %v784_v31, %s6384_s27  ;;  %v789_v31 = vld [vmem:[#allocation2 + $0x1e8] sm:$0xff] }
 0x327   :  { %v7837_v3 = vpop.permute.xlu1 %1790 }
 0x328   :  { %10898 = vst [vmem:[#allocation252_spill] sm:$0xff] %v7837_v3  ;;  %v7839_v43 = vpop.permute.xlu0 %1788  ;;  %v791_v3 = vld [vmem:[#allocation2 + $0x200] sm:$0xff] }
 0x329   :  { %10899 = vst [vmem:[#allocation253_spill] sm:$0xff] %v7839_v43  ;;  %1972 = vrot.lane.b32.xlu1 %v788_v48, %s6384_s27  ;;  %v794_v48 = vld [vmem:[#allocation2 + $0x228] sm:$0xff] }
 0x32a   :  { %6061 = vrot.lane.b32.xlu0 %v7835_v49, %s6384_s27 }
 0x32b   :  { %v7844_v38 = vpop.permute.xlu1 %1794 }
 0x32c   :  { %10900 = vst [vmem:[#allocation254_spill] sm:$0xff] %v7844_v38  ;;  %v7846_v6 = vpop.permute.xlu0 %1792  ;;  %v793_v38 = vld [vmem:[#allocation2 + $0x218] sm:$0xff] }
 0x32d   :  { %10901 = vst [vmem:[#allocation255_spill] sm:$0xff] %v7846_v6  ;;  %1976 = vrot.lane.b32.xlu1 %v790_v36, %s6384_s27  ;;  %v796_v36 = vld [vmem:[#allocation2 + $0x240] sm:$0xff] }
 0x32e   :  { %1974 = vrot.lane.b32.xlu0 %v789_v31, %s6384_s27 }
 0x32f   :  { %v7850_v45 = vpop.permute.xlu1 %1798 }
 0x330   :  { %10902 = vst [vmem:[#allocation256_spill] sm:$0xff] %v7850_v45  ;;  %v7852_v43 = vpop.permute.xlu0 %1796  ;;  %v795_v45 = vld [vmem:[#allocation2 + $0x230] sm:$0xff] }
 0x331   :  { %10903 = vst [vmem:[#allocation257_spill] sm:$0xff] %v7852_v43  ;;  %1980 = vrot.lane.b32.xlu1 %v792_v35, %s6384_s27  ;;  %v798_v35 = vld [vmem:[#allocation2 + $0x258] sm:$0xff] }
 0x332   :  { %1978 = vrot.lane.b32.xlu0 %v791_v3, %s6384_s27 }
 0x333   :  { %v7856_v40 = vpop.permute.xlu1 %1802 }
 0x334   :  { %10904 = vst [vmem:[#allocation258_spill] sm:$0xff] %v7856_v40  ;;  %v7858_v1 = vpop.permute.xlu0 %1800  ;;  %v797_v40 = vld [vmem:[#allocation2 + $0x248] sm:$0xff] }
 0x335   :  { %10905 = vst [vmem:[#allocation259_spill] sm:$0xff] %v7858_v1  ;;  %1984 = vrot.lane.b32.xlu1 %v794_v48, %s6384_s27 }
 0x336   :  { %1982 = vrot.lane.b32.xlu0 %v793_v38, %s6384_s27  ;;  %v800_v38 = vld [vmem:[#allocation2 + $0x270] sm:$0xff] }
 0x337   :  { %v7862_v31 = vpop.permute.xlu1 %1806 }
 0x338   :  { %10906 = vst [vmem:[#allocation260_spill] sm:$0xff] %v7862_v31  ;;  %v7864_v6 = vpop.permute.xlu0 %1804  ;;  %v799_v31 = vld [vmem:[#allocation2 + $0x260] sm:$0xff] }
 0x339   :  { %10907 = vst [vmem:[#allocation261_spill] sm:$0xff] %v7864_v6  ;;  %1988 = vrot.lane.b32.xlu1 %v796_v36, %s6384_s27 }
 0x33a   :  { %1986 = vrot.lane.b32.xlu0 %v795_v45, %s6384_s27  ;;  %v802_v45 = vld [vmem:[#allocation2 + $0x288] sm:$0xff] }
 0x33b   :  { %v7868_v3 = vpop.permute.xlu1 %1810 }
 0x33c   :  { %10908 = vst [vmem:[#allocation262_spill] sm:$0xff] %v7868_v3  ;;  %v7870_v43 = vpop.permute.xlu0 %1808  ;;  %v801_v3 = vld [vmem:[#allocation2 + $0x278] sm:$0xff] }
 0x33d   :  { %10909 = vst [vmem:[#allocation263_spill] sm:$0xff] %v7870_v43  ;;  %1992 = vrot.lane.b32.xlu1 %v798_v35, %s6384_s27 }
 0x33e   :  { %1990 = vrot.lane.b32.xlu0 %v797_v40, %s6384_s27  ;;  %v804_v40 = vld [vmem:[#allocation2 + $0x2a0] sm:$0xff] }
 0x33f   :  { %v7874_v48 = vpop.permute.xlu1 %1814 }
 0x340   :  { %10910 = vst [vmem:[#allocation264_spill] sm:$0xff] %v7874_v48  ;;  %v7876_v1 = vpop.permute.xlu0 %1812  ;;  %v803_v48 = vld [vmem:[#allocation2 + $0x290] sm:$0xff] }
 0x341   :  { %10911 = vst [vmem:[#allocation265_spill] sm:$0xff] %v7876_v1  ;;  %1996 = vrot.lane.b32.xlu1 %v800_v38, %s6384_s27 }
 0x342   :  { %1994 = vrot.lane.b32.xlu0 %v799_v31, %s6384_s27  ;;  %v806_v31 = vld [vmem:[#allocation2 + $0x2b8] sm:$0xff] }
 0x343   :  { %v7880_v36 = vpop.permute.xlu1 %1818 }
 0x344   :  { %10912 = vst [vmem:[#allocation266_spill] sm:$0xff] %v7880_v36  ;;  %v7882_v6 = vpop.permute.xlu0 %1816  ;;  %v805_v36 = vld [vmem:[#allocation2 + $0x2a8] sm:$0xff] }
 0x345   :  { %10913 = vst [vmem:[#allocation267_spill] sm:$0xff] %v7882_v6  ;;  %2000 = vrot.lane.b32.xlu1 %v802_v45, %s6384_s27 }
 0x346   :  { %1998 = vrot.lane.b32.xlu0 %v801_v3, %s6384_s27  ;;  %v808_v3 = vld [vmem:[#allocation2 + $0x2d0] sm:$0xff] }
 0x347   :  { %v7886_v35 = vpop.permute.xlu1 %1822 }
 0x348   :  { %10914 = vst [vmem:[#allocation268_spill] sm:$0xff] %v7886_v35  ;;  %v7888_v43 = vpop.permute.xlu0 %1820  ;;  %v807_v35 = vld [vmem:[#allocation2 + $0x2c0] sm:$0xff] }
 0x349   :  { %10915 = vst [vmem:[#allocation269_spill] sm:$0xff] %v7888_v43  ;;  %2004 = vrot.lane.b32.xlu1 %v804_v40, %s6384_s27 }
 0x34a   :  { %2002 = vrot.lane.b32.xlu0 %v803_v48, %s6384_s27  ;;  %v810_v48 = vld [vmem:[#allocation2 + $0x2e8] sm:$0xff] }
 0x34b   :  { %v7892_v38 = vpop.permute.xlu1 %1826 }
 0x34c   :  { %10916 = vst [vmem:[#allocation270_spill] sm:$0xff] %v7892_v38  ;;  %v7894_v1 = vpop.permute.xlu0 %1824  ;;  %v809_v38 = vld [vmem:[#allocation2 + $0x2d8] sm:$0xff] }
 0x34d   :  { %10917 = vst [vmem:[#allocation271_spill] sm:$0xff] %v7894_v1  ;;  %2008 = vrot.lane.b32.xlu1 %v806_v31, %s6384_s27 }
 0x34e   :  { %2006 = vrot.lane.b32.xlu0 %v805_v36, %s6384_s27  ;;  %v812_v36 = vld [vmem:[#allocation2 + $0x300] sm:$0xff] }
 0x34f   :  { %v7898_v45 = vpop.permute.xlu1 %1830 }
 0x350   :  { %10918 = vst [vmem:[#allocation272_spill] sm:$0xff] %v7898_v45  ;;  %v7900_v6 = vpop.permute.xlu0 %1828  ;;  %v811_v45 = vld [vmem:[#allocation2 + $0x2f0] sm:$0xff] }
 0x351   :  { %10919 = vst [vmem:[#allocation273_spill] sm:$0xff] %v7900_v6  ;;  %2012 = vrot.lane.b32.xlu1 %v808_v3, %s6384_s27 }
 0x352   :  { %2010 = vrot.lane.b32.xlu0 %v807_v35, %s6384_s27  ;;  %v814_v35 = vld [vmem:[#allocation2 + $0x318] sm:$0xff] }
 0x353   :  { %v7904_v40 = vpop.permute.xlu1 %1834 }
 0x354   :  { %10920 = vst [vmem:[#allocation274_spill] sm:$0xff] %v7904_v40  ;;  %v7906_v43 = vpop.permute.xlu0 %1832  ;;  %v813_v40 = vld [vmem:[#allocation2 + $0x308] sm:$0xff] }
 0x355   :  { %10921 = vst [vmem:[#allocation275_spill] sm:$0xff] %v7906_v43  ;;  %2016 = vrot.lane.b32.xlu1 %v810_v48, %s6384_s27 }
 0x356   :  { %2014 = vrot.lane.b32.xlu0 %v809_v38, %s6384_s27  ;;  %v816_v38 = vld [vmem:[#allocation2 + $0x330] sm:$0xff] }
 0x357   :  { %v7910_v31 = vpop.permute.xlu1 %1838 }
 0x358   :  { %10922 = vst [vmem:[#allocation276_spill] sm:$0xff] %v7910_v31  ;;  %v7912_v1 = vpop.permute.xlu0 %1836  ;;  %v815_v31 = vld [vmem:[#allocation2 + $0x320] sm:$0xff] }
 0x359   :  { %10923 = vst [vmem:[#allocation277_spill] sm:$0xff] %v7912_v1  ;;  %2020 = vrot.lane.b32.xlu1 %v812_v36, %s6384_s27  ;;  %v817_v36 = vld [vmem:[#allocation2 + $0x338] sm:$0xff] }
 0x35a   :  { %2018 = vrot.lane.b32.xlu0 %v811_v45, %s6384_s27 }
 0x35b   :  { %v7916_v3 = vpop.permute.xlu1 %1842 }
 0x35c   :  { %10924 = vst [vmem:[#allocation278_spill] sm:$0xff] %v7916_v3  ;;  %v7918_v6 = vpop.permute.xlu0 %1840 }
 0x35d   :  { %10925 = vst [vmem:[#allocation279_spill] sm:$0xff] %v7918_v6  ;;  %2024 = vrot.lane.b32.xlu1 %v814_v35, %s6384_s27  ;;  %v820_v6 = vld [vmem:[#allocation2 + $0x31] sm:$0xff] }
 0x35e   :  { %2022 = vrot.lane.b32.xlu0 %v813_v40, %s6384_s27  ;;  %v821_v40 = vld [vmem:[#allocation2 + $0x39] sm:$0xff] }
 0x35f   :  { %v7922_v48 = vpop.permute.xlu1 %1910 }
 0x360   :  { %v7924_v43 = vpop.permute.xlu0 %1908 }
 0x361   :  { %2028 = vrot.lane.b32.xlu1 %v816_v38, %s6384_s27 }
 0x362   :  { %2026 = vrot.lane.b32.xlu0 %v815_v31, %s6384_s27  ;;  %v823_v31 = vld [vmem:[#allocation2 + $0x51] sm:$0xff] }
 0x363   :  { %v7928_v45 = vpop.permute.xlu1 %1914 }
 0x364   :  { %v7930_v3 = vpop.permute.xlu0 %1912 }
 0x365   :  { %6066 = vrot.lane.b32.xlu1 %v7835_v49, %s6384_s27  ;;  %v825_v49 = vld [vmem:[#allocation2 + $0x69] sm:$0xff] }
 0x366   :  { %2030 = vrot.lane.b32.xlu0 %v817_v36, %s6384_s27 }
 0x367   :  { %v7935_v35 = vpop.permute.xlu1 %1918 }
 0x368   :  { %10926 = vst [vmem:[#allocation280_spill] sm:$0xff] %v7935_v35  ;;  %v7937_v1 = vpop.permute.xlu0 %1916 }
 0x369   :  { %10927 = vst [vmem:[#allocation281_spill] sm:$0xff] %v7937_v1  ;;  %2102 = vrot.lane.b32.xlu1 %v821_v40, %s6385_s28 }
 0x36a   :  { %2100 = vrot.lane.b32.xlu0 %v820_v6, %s6385_s28  ;;  %v827_v6 = vld [vmem:[#allocation2 + $0x81] sm:$0xff] }
 0x36b   :  { %v7941_v38 = vpop.permute.xlu1 %1922 }
 0x36c   :  { %10928 = vst [vmem:[#allocation282_spill] sm:$0xff] %v7941_v38  ;;  %v7943_v50 = vpop.permute.xlu0 %1920  ;;  %v826_v38 = vld [vmem:[#allocation2 + $0x79] sm:$0xff] }
 0x36d   :  { %10929 = vst [vmem:[#allocation283_spill] sm:$0xff] %v7943_v50  ;;  %2106 = vrot.lane.b32.xlu1 %v823_v31, %s6385_s28 }
 0x36e   :  { %2104 = vrot.lane.b32.xlu0 %v822_v32, %s6385_s28  ;;  %v829_v32 = vld [vmem:[#allocation2 + $0x99] sm:$0xff] }
 0x36f   :  { %v7947_v36 = vpop.permute.xlu1 %1926 }
 0x370   :  { %10930 = vst [vmem:[#allocation284_spill] sm:$0xff] %v7947_v36  ;;  %v7949_v30 = vpop.permute.xlu0 %1924  ;;  %v828_v36 = vld [vmem:[#allocation2 + $0x91] sm:$0xff] }
 0x371   :  { %10931 = vst [vmem:[#allocation285_spill] sm:$0xff] %v7949_v30  ;;  %2110 = vrot.lane.b32.xlu1 %v825_v49, %s6385_s28 }
 0x372   :  { %2108 = vrot.lane.b32.xlu0 %v824_v55, %s6385_s28  ;;  %v831_v55 = vld [vmem:[#allocation2 + $0xb1] sm:$0xff] }
 0x373   :  { %v7953_v40 = vpop.permute.xlu1 %1930 }
 0x374   :  { %10932 = vst [vmem:[#allocation286_spill] sm:$0xff] %v7953_v40  ;;  %v7955_v35 = vpop.permute.xlu0 %1928  ;;  %v830_v40 = vld [vmem:[#allocation2 + $0xa9] sm:$0xff] }
 0x375   :  { %10933 = vst [vmem:[#allocation287_spill] sm:$0xff] %v7955_v35  ;;  %2114 = vrot.lane.b32.xlu1 %v827_v6, %s6385_s28 }
 0x376   :  { %2112 = vrot.lane.b32.xlu0 %v826_v38, %s6385_s28  ;;  %v833_v38 = vld [vmem:[#allocation2 + $0xc9] sm:$0xff] }
 0x377   :  { %v7959_v31 = vpop.permute.xlu1 %1934 }
 0x378   :  { %10934 = vst [vmem:[#allocation288_spill] sm:$0xff] %v7959_v31  ;;  %v7961_v50 = vpop.permute.xlu0 %1932  ;;  %v832_v31 = vld [vmem:[#allocation2 + $0xc1] sm:$0xff] }
 0x379   :  { %10935 = vst [vmem:[#allocation289_spill] sm:$0xff] %v7961_v50  ;;  %2118 = vrot.lane.b32.xlu1 %v829_v32, %s6385_s28 }
 0x37a   :  { %2116 = vrot.lane.b32.xlu0 %v828_v36, %s6385_s28  ;;  %v835_v36 = vld [vmem:[#allocation2 + $0xe1] sm:$0xff] }
 0x37b   :  { %v7965_v49 = vpop.permute.xlu1 %1938 }
 0x37c   :  { %10936 = vst [vmem:[#allocation290_spill] sm:$0xff] %v7965_v49  ;;  %v7967_v30 = vpop.permute.xlu0 %1936  ;;  %v834_v49 = vld [vmem:[#allocation2 + $0xd9] sm:$0xff] }
 0x37d   :  { %10937 = vst [vmem:[#allocation291_spill] sm:$0xff] %v7967_v30  ;;  %2122 = vrot.lane.b32.xlu1 %v831_v55, %s6385_s28 }
 0x37e   :  { %2120 = vrot.lane.b32.xlu0 %v830_v40, %s6385_s28  ;;  %v837_v40 = vld [vmem:[#allocation2 + $0xf9] sm:$0xff] }
 0x37f   :  { %v7971_v6 = vpop.permute.xlu1 %1942 }
 0x380   :  { %10938 = vst [vmem:[#allocation292_spill] sm:$0xff] %v7971_v6  ;;  %v7973_v35 = vpop.permute.xlu0 %1940  ;;  %v836_v6 = vld [vmem:[#allocation2 + $0xf1] sm:$0xff] }
 0x381   :  { %10939 = vst [vmem:[#allocation293_spill] sm:$0xff] %v7973_v35  ;;  %2126 = vrot.lane.b32.xlu1 %v833_v38, %s6385_s28 }
 0x382   :  { %2124 = vrot.lane.b32.xlu0 %v832_v31, %s6385_s28  ;;  %v839_v31 = vld [vmem:[#allocation2 + $0x111] sm:$0xff] }
 0x383   :  { %v7977_v32 = vpop.permute.xlu1 %1946 }
 0x384   :  { %10940 = vst [vmem:[#allocation294_spill] sm:$0xff] %v7977_v32  ;;  %v7979_v50 = vpop.permute.xlu0 %1944  ;;  %v838_v32 = vld [vmem:[#allocation2 + $0x109] sm:$0xff] }
 0x385   :  { %10941 = vst [vmem:[#allocation295_spill] sm:$0xff] %v7979_v50  ;;  %2130 = vrot.lane.b32.xlu1 %v835_v36, %s6385_s28 }
 0x386   :  { %2128 = vrot.lane.b32.xlu0 %v834_v49, %s6385_s28  ;;  %v841_v49 = vld [vmem:[#allocation2 + $0x129] sm:$0xff] }
 0x387   :  { %v7983_v55 = vpop.permute.xlu1 %1950 }
 0x388   :  { %10942 = vst [vmem:[#allocation296_spill] sm:$0xff] %v7983_v55  ;;  %v7985_v30 = vpop.permute.xlu0 %1948  ;;  %v840_v55 = vld [vmem:[#allocation2 + $0x121] sm:$0xff] }
 0x389   :  { %10943 = vst [vmem:[#allocation297_spill] sm:$0xff] %v7985_v30  ;;  %2134 = vrot.lane.b32.xlu1 %v837_v40, %s6385_s28 }
 0x38a   :  { %2132 = vrot.lane.b32.xlu0 %v836_v6, %s6385_s28  ;;  %v843_v6 = vld [vmem:[#allocation2 + $0x141] sm:$0xff] }
 0x38b   :  { %v7989_v38 = vpop.permute.xlu1 %1954 }
 0x38c   :  { %10944 = vst [vmem:[#allocation298_spill] sm:$0xff] %v7989_v38  ;;  %v7991_v35 = vpop.permute.xlu0 %1952  ;;  %v842_v38 = vld [vmem:[#allocation2 + $0x139] sm:$0xff] }
 0x38d   :  { %10945 = vst [vmem:[#allocation299_spill] sm:$0xff] %v7991_v35  ;;  %2138 = vrot.lane.b32.xlu1 %v839_v31, %s6385_s28 }
 0x38e   :  { %2136 = vrot.lane.b32.xlu0 %v838_v32, %s6385_s28  ;;  %v845_v32 = vld [vmem:[#allocation2 + $0x159] sm:$0xff] }
 0x38f   :  { %v7995_v36 = vpop.permute.xlu1 %1958 }
 0x390   :  { %10946 = vst [vmem:[#allocation300_spill] sm:$0xff] %v7995_v36  ;;  %v7997_v50 = vpop.permute.xlu0 %1956  ;;  %v844_v36 = vld [vmem:[#allocation2 + $0x151] sm:$0xff] }
 0x391   :  { %10947 = vst [vmem:[#allocation301_spill] sm:$0xff] %v7997_v50  ;;  %2142 = vrot.lane.b32.xlu1 %v841_v49, %s6385_s28 }
 0x392   :  { %2140 = vrot.lane.b32.xlu0 %v840_v55, %s6385_s28  ;;  %v847_v55 = vld [vmem:[#allocation2 + $0x171] sm:$0xff] }
 0x393   :  { %v8001_v40 = vpop.permute.xlu1 %1962 }
 0x394   :  { %10948 = vst [vmem:[#allocation302_spill] sm:$0xff] %v8001_v40  ;;  %v8003_v30 = vpop.permute.xlu0 %1960  ;;  %v846_v40 = vld [vmem:[#allocation2 + $0x169] sm:$0xff] }
 0x395   :  { %10949 = vst [vmem:[#allocation303_spill] sm:$0xff] %v8003_v30  ;;  %2146 = vrot.lane.b32.xlu1 %v843_v6, %s6385_s28  ;;  %v850_v30 = vld [vmem:[#allocation2 + $0x199] sm:$0xff] }
 0x396   :  { %2144 = vrot.lane.b32.xlu0 %v842_v38, %s6385_s28  ;;  %v849_v38 = vld [vmem:[#allocation2 + $0x189] sm:$0xff] }
 0x397   :  { %v8007_v31 = vpop.permute.xlu1 %1966 }
 0x398   :  { %10950 = vst [vmem:[#allocation304_spill] sm:$0xff] %v8007_v31  ;;  %v8009_v35 = vpop.permute.xlu0 %1964  ;;  %v848_v31 = vld [vmem:[#allocation2 + $0x181] sm:$0xff] }
 0x399   :  { %10951 = vst [vmem:[#allocation305_spill] sm:$0xff] %v8009_v35  ;;  %2150 = vrot.lane.b32.xlu1 %v845_v32, %s6385_s28  ;;  %v851_v35 = vld [vmem:[#allocation2 + $0x1a1] sm:$0xff] }
 0x39a   :  { %2148 = vrot.lane.b32.xlu0 %v844_v36, %s6385_s28  ;;  %v852_v36 = vld [vmem:[#allocation2 + $0x1e1] sm:$0xff]  ;;  %v6070_v32 = vpack.i.bf16 %v851_v35, %v850_v30 }
 0x39b   :  { %v8013_v49 = vpop.permute.xlu1 %1972  ;;  %v855_v35 = vld [vmem:[#allocation2 + $0x201] sm:$0xff] }
 0x39c   :  { %10952 = vst [vmem:[#allocation306_spill] sm:$0xff] %v8013_v49  ;;  %v8015_v50 = vpop.permute.xlu0 %6061 }
 0x39d   :  { %10953 = vst [vmem:[#allocation307_spill] sm:$0xff] %v8015_v50  ;;  %2154 = vrot.lane.b32.xlu1 %v847_v55, %s6385_s28 }
 0x39e   :  { %2152 = vrot.lane.b32.xlu0 %v846_v40, %s6385_s28  ;;  %v854_v40 = vld [vmem:[#allocation2 + $0x1f9] sm:$0xff] }
 0x39f   :  { %v8019_v6 = vpop.permute.xlu1 %1976 }
 0x3a0   :  { %10954 = vst [vmem:[#allocation308_spill] sm:$0xff] %v8019_v6  ;;  %v8021_v53 = vpop.permute.xlu0 %1974  ;;  %v853_v6 = vld [vmem:[#allocation2 + $0x1e9] sm:$0xff] }
 0x3a1   :  { %10955 = vst [vmem:[#allocation309_spill] sm:$0xff] %v8021_v53  ;;  %2158 = vrot.lane.b32.xlu1 %v849_v38, %s6385_s28  ;;  %v879_v53 = vld [vmem:[#allocation2 + $0x321] sm:$0xff] }
 0x3a2   :  { %2156 = vrot.lane.b32.xlu0 %v848_v31, %s6385_s28  ;;  %v856_v31 = vld [vmem:[#allocation2 + $0x211] sm:$0xff] }
 0x3a3   :  { %v8025_v49 = vpop.permute.xlu1 %1980 }
 0x3a4   :  { %10956 = vst [vmem:[#allocation310_spill] sm:$0xff] %v8025_v49  ;;  %v8027_v50 = vpop.permute.xlu0 %1978 }
 0x3a5   :  { %10957 = vst [vmem:[#allocation311_spill] sm:$0xff] %v8027_v50  ;;  %2164 = vrot.lane.b32.xlu1 %v852_v36, %s6385_s28  ;;  %v858_v36 = vld [vmem:[#allocation2 + $0x229] sm:$0xff] }
 0x3a6   :  { %6071 = vrot.lane.b32.xlu0 %v6070_v32, %s6385_s28 }
 0x3a7   :  { %v8031_v55 = vpop.permute.xlu1 %1984 }
 0x3a8   :  { %10958 = vst [vmem:[#allocation312_spill] sm:$0xff] %v8031_v55  ;;  %v8033_v9 = vpop.permute.xlu0 %1982  ;;  %v857_v55 = vld [vmem:[#allocation2 + $0x219] sm:$0xff] }
 0x3a9   :  { %10959 = vst [vmem:[#allocation313_spill] sm:$0xff] %v8033_v9  ;;  %2168 = vrot.lane.b32.xlu1 %v854_v40, %s6385_s28 }
 0x3aa   :  { %2166 = vrot.lane.b32.xlu0 %v853_v6, %s6385_s28  ;;  %v860_v6 = vld [vmem:[#allocation2 + $0x241] sm:$0xff] }
 0x3ab   :  { %v8037_v30 = vpop.permute.xlu1 %1988 }
 0x3ac   :  { %10960 = vst [vmem:[#allocation314_spill] sm:$0xff] %v8037_v30  ;;  %v8039_v38 = vpop.permute.xlu0 %1986  ;;  %v859_v30 = vld [vmem:[#allocation2 + $0x231] sm:$0xff] }
 0x3ad   :  { %10961 = vst [vmem:[#allocation315_spill] sm:$0xff] %v8039_v38  ;;  %2172 = vrot.lane.b32.xlu1 %v856_v31, %s6385_s28  ;;  %v862_v31 = vld [vmem:[#allocation2 + $0x259] sm:$0xff] }
 0x3ae   :  { %2170 = vrot.lane.b32.xlu0 %v855_v35, %s6385_s28 }
 0x3af   :  { %v8043_v32 = vpop.permute.xlu1 %1992 }
 0x3b0   :  { %10962 = vst [vmem:[#allocation316_spill] sm:$0xff] %v8043_v32  ;;  %v8045_v49 = vpop.permute.xlu0 %1990  ;;  %v861_v32 = vld [vmem:[#allocation2 + $0x249] sm:$0xff] }
 0x3b1   :  { %10963 = vst [vmem:[#allocation317_spill] sm:$0xff] %v8045_v49  ;;  %2176 = vrot.lane.b32.xlu1 %v858_v36, %s6385_s28  ;;  %v2485_v36 = vld [vmem:[%s10639_s1 + $0x8] sm:$0xff]  ;;  %v883_v49 = vld [vmem:[#allocation2 + $0x351] sm:$0xff] }
 0x3b2   :  { %2174 = vrot.lane.b32.xlu0 %v857_v55, %s6385_s28  ;;  %v2484_v55 = vld [vmem:[%s10639_s1] sm:$0xff] }
 0x3b3   :  { %v8049_v40 = vpop.permute.xlu1 %1996 }
 0x3b4   :  { %10964 = vst [vmem:[#allocation318_spill] sm:$0xff] %v8049_v40  ;;  %v8051_v9 = vpop.permute.xlu0 %1994 }
 0x3b5   :  { %10965 = vst [vmem:[#allocation319_spill] sm:$0xff] %v8051_v9  ;;  %2180 = vrot.lane.b32.xlu1 %v860_v6, %s6385_s28  ;;  %v864_v6 = vld [vmem:[#allocation2 + $0x271] sm:$0xff] }
 0x3b6   :  { %2178 = vrot.lane.b32.xlu0 %v859_v30, %s6385_s28  ;;  %v5912_v30 = vpack.c.bf16 %v2485_v36, %v2484_v55 }
 0x3b7   :  { %v8055_v35 = vpop.permute.xlu1 %2000 }
 0x3b8   :  { %10966 = vst [vmem:[#allocation320_spill] sm:$0xff] %v8055_v35  ;;  %v8057_v38 = vpop.permute.xlu0 %1998  ;;  %v863_v35 = vld [vmem:[#allocation2 + $0x261] sm:$0xff]  ;;  %5913 = vmatprep.subr.bf16.mxu0 %v5912_v30 }
 0x3b9   :  { %10967 = vst [vmem:[#allocation321_spill] sm:$0xff] %v8057_v38  ;;  %2184 = vrot.lane.b32.xlu1 %v862_v31, %s6385_s28  ;;  %5915 = vmatpush3.bf16.msra.mxu0 %v5912_v30  ;;  %v2486_v31 = vld [vmem:[%s10639_s1 + $0x10] sm:$0xff]  ;;  %v2487_v38 = vld [vmem:[%s10639_s1 + $0x18] sm:$0xff]  ;;  %v2489_v30 = vld [vmem:[%s10639_s1 + $0x28] sm:$0xff] }
 0x3ba   :  { %2182 = vrot.lane.b32.xlu0 %v861_v32, %s6385_s28  ;;  %v866_v32 = vld [vmem:[#allocation2 + $0x289] sm:$0xff]  ;;  %v5916_v55 = vpack.c.bf16 %v2487_v38, %v2486_v31  ;;  %v868_v38 = vld [vmem:[#allocation2 + $0x2a1] sm:$0xff] }
 0x3bb   :  { %v8067_v40 = vpop.permute.xlu1 %2004 }
 0x3bc   :  { %10968 = vst [vmem:[#allocation322_spill] sm:$0xff] %v8067_v40  ;;  %v8069_v9 = vpop.permute.xlu0 %2002  ;;  %v865_v40 = vld [vmem:[#allocation2 + $0x279] sm:$0xff]  ;;  %5917 = vmatprep.subr.bf16.mxu0 %v5916_v55 }
 0x3bd   :  { %10969 = vst [vmem:[#allocation323_spill] sm:$0xff] %v8069_v9  ;;  %2188 = vrot.lane.b32.xlu1 %v864_v6, %s6385_s28  ;;  %5919 = vmatpush3.bf16.msra.mxu0 %v5916_v55  ;;  %v2488_v6 = vld [vmem:[%s10639_s1 + $0x20] sm:$0xff]  ;;  %v2491_v55 = vld [vmem:[%s10639_s1 + $0x38] sm:$0xff] }
 0x3be   :  { %2186 = vrot.lane.b32.xlu0 %v863_v35, %s6385_s28  ;;  %v5920_v35 = vpack.c.bf16 %v2489_v30, %v2488_v6 }
 0x3bf   :  { %v8079_v36 = vpop.permute.xlu1 %2008 }
 0x3c0   :  { %10970 = vst [vmem:[#allocation324_spill] sm:$0xff] %v8079_v36  ;;  %v8081_v9 = vpop.permute.xlu0 %2006  ;;  %v867_v36 = vld [vmem:[#allocation2 + $0x291] sm:$0xff]  ;;  %5921 = vmatprep.subr.bf16.mxu0 %v5920_v35 }
 0x3c1   :  { %10971 = vst [vmem:[#allocation325_spill] sm:$0xff] %v8081_v9  ;;  %2192 = vrot.lane.b32.xlu1 %v866_v32, %s6385_s28  ;;  %5923 = vmatpush3.bf16.msra.mxu0 %v5920_v35  ;;  %v2490_v32 = vld [vmem:[%s10639_s1 + $0x30] sm:$0xff]  ;;  %v2493_v35 = vld [vmem:[%s10639_s1 + $0x48] sm:$0xff] }
 0x3c2   :  { %2190 = vrot.lane.b32.xlu0 %v865_v40, %s6385_s28  ;;  %v870_v40 = vld [vmem:[#allocation2 + $0x2b9] sm:$0xff]  ;;  %v5924_v6 = vpack.c.bf16 %v2491_v55, %v2490_v32 }
 0x3c3   :  { %v8091_v31 = vpop.permute.xlu1 %2012 }
 0x3c4   :  { %10972 = vst [vmem:[#allocation326_spill] sm:$0xff] %v8091_v31  ;;  %v8093_v9 = vpop.permute.xlu0 %2010  ;;  %v869_v31 = vld [vmem:[#allocation2 + $0x2a9] sm:$0xff]  ;;  %5925 = vmatprep.subr.bf16.mxu0 %v5924_v6 }
 0x3c5   :  { %10973 = vst [vmem:[#allocation327_spill] sm:$0xff] %v8093_v9  ;;  %2196 = vrot.lane.b32.xlu1 %v868_v38, %s6385_s28  ;;  %5927 = vmatpush3.bf16.msra.mxu0 %v5924_v6  ;;  %v2492_v38 = vld [vmem:[%s10639_s1 + $0x40] sm:$0xff]  ;;  %v2495_v6 = vld [vmem:[%s10639_s1 + $0x58] sm:$0xff] }
 0x3c6   :  { %2194 = vrot.lane.b32.xlu0 %v867_v36, %s6385_s28  ;;  %v872_v36 = vld [vmem:[#allocation2 + $0x2d1] sm:$0xff]  ;;  %v5928_v32 = vpack.c.bf16 %v2493_v35, %v2492_v38 }
 0x3c7   :  { %v8103_v30 = vpop.permute.xlu1 %2016 }
 0x3c8   :  { %10974 = vst [vmem:[#allocation328_spill] sm:$0xff] %v8103_v30  ;;  %v8105_v9 = vpop.permute.xlu0 %2014  ;;  %v871_v30 = vld [vmem:[#allocation2 + $0x2c1] sm:$0xff]  ;;  %5929 = vmatprep.subr.bf16.mxu0 %v5928_v32 }
 0x3c9   :  { %10975 = vst [vmem:[#allocation329_spill] sm:$0xff] %v8105_v9  ;;  %2200 = vrot.lane.b32.xlu1 %v870_v40, %s6385_s28  ;;  %5931 = vmatpush3.bf16.msra.mxu0 %v5928_v32  ;;  %v2494_v40 = vld [vmem:[%s10639_s1 + $0x50] sm:$0xff]  ;;  %v2497_v32 = vld [vmem:[%s10639_s1 + $0x68] sm:$0xff] }
 0x3ca   :  { %2198 = vrot.lane.b32.xlu0 %v869_v31, %s6385_s28  ;;  %v874_v31 = vld [vmem:[#allocation2 + $0x2e9] sm:$0xff]  ;;  %v5932_v38 = vpack.c.bf16 %v2495_v6, %v2494_v40 }
 0x3cb   :  { %v8115_v55 = vpop.permute.xlu1 %2020 }
 0x3cc   :  { %10976 = vst [vmem:[#allocation330_spill] sm:$0xff] %v8115_v55  ;;  %v8117_v9 = vpop.permute.xlu0 %2018  ;;  %v873_v55 = vld [vmem:[#allocation2 + $0x2d9] sm:$0xff]  ;;  %5933 = vmatprep.subr.bf16.mxu0 %v5932_v38 }
 0x3cd   :  { %10977 = vst [vmem:[#allocation331_spill] sm:$0xff] %v8117_v9  ;;  %2204 = vrot.lane.b32.xlu1 %v872_v36, %s6385_s28  ;;  %5935 = vmatpush3.bf16.msra.mxu0 %v5932_v38  ;;  %v2496_v36 = vld [vmem:[%s10639_s1 + $0x60] sm:$0xff]  ;;  %v2499_v38 = vld [vmem:[%s10639_s1 + $0x78] sm:$0xff] }
 0x3ce   :  { %2202 = vrot.lane.b32.xlu0 %v871_v30, %s6385_s28  ;;  %v876_v30 = vld [vmem:[#allocation2 + $0x301] sm:$0xff]  ;;  %v5936_v40 = vpack.c.bf16 %v2497_v32, %v2496_v36 }
 0x3cf   :  { %v8127_v35 = vpop.permute.xlu1 %2024 }
 0x3d0   :  { %10978 = vst [vmem:[#allocation332_spill] sm:$0xff] %v8127_v35  ;;  %v8129_v9 = vpop.permute.xlu0 %2022  ;;  %v875_v35 = vld [vmem:[#allocation2 + $0x2f1] sm:$0xff]  ;;  %5937 = vmatprep.subr.bf16.mxu0 %v5936_v40 }
 0x3d1   :  { %10979 = vst [vmem:[#allocation333_spill] sm:$0xff] %v8129_v9  ;;  %2208 = vrot.lane.b32.xlu1 %v874_v31, %s6385_s28  ;;  %5939 = vmatpush3.bf16.msra.mxu0 %v5936_v40  ;;  %v2498_v31 = vld [vmem:[%s10639_s1 + $0x70] sm:$0xff]  ;;  %s6386_s1 = smov 32  }
 0x3d2   :  { %2206 = vrot.lane.b32.xlu0 %v873_v55, %s6385_s28  ;;  %v878_v55 = vld [vmem:[#allocation2 + $0x319] sm:$0xff]  ;;  %v5940_v36 = vpack.c.bf16 %v2499_v38, %v2498_v31  ;;  %v882_v40 = vld [vmem:[#allocation2 + $0x349] sm:$0xff] }
 0x3d3   :  { %v8139_v6 = vpop.permute.xlu1 %2028  ;;  %v6075_v31 = vpack.i.bf16 %v883_v49, %v882_v40 }
 0x3d4   :  { %10980 = vst [vmem:[#allocation334_spill] sm:$0xff] %v8139_v6  ;;  %v8141_v9 = vpop.permute.xlu0 %2026  ;;  %v877_v6 = vld [vmem:[#allocation2 + $0x309] sm:$0xff]  ;;  %5941 = vmatprep.subr.bf16.mxu0 %v5940_v36 }
 0x3d5   :  { %10981 = vst [vmem:[#allocation335_spill] sm:$0xff] %v8141_v9  ;;  %2212 = vrot.lane.b32.xlu1 %v876_v30, %s6385_s28  ;;  %5943 = vmatpush3.bf16.msra.mxu0 %v5940_v36  ;;  %v880_v30 = vld [vmem:[#allocation2 + $0x331] sm:$0xff] }
 0x3d6   :  { %2210 = vrot.lane.b32.xlu0 %v875_v35, %s6385_s28 }
 0x3d7   :  { %v8151_v32 = vpop.permute.xlu1 %6066 }
 0x3d8   :  { %10982 = vst [vmem:[#allocation336_spill] sm:$0xff] %v8151_v32  ;;  %v8153_v9 = vpop.permute.xlu0 %2030  ;;  %v881_v32 = vld [vmem:[#allocation2 + $0x339] sm:$0xff] }
 0x3d9   :  { %10983 = vst [vmem:[#allocation337_spill] sm:$0xff] %v8153_v9  ;;  %2216 = vrot.lane.b32.xlu1 %v878_v55, %s6385_s28  ;;  %v884_v9 = vld [vmem:[#allocation2 + $0x32] sm:$0xff] }
 0x3da   :  { %2214 = vrot.lane.b32.xlu0 %v877_v6, %s6385_s28  ;;  %v885_v6 = vld [vmem:[#allocation2 + $0x3a] sm:$0xff] }
 0x3db   :  { %v8157_v50 = vpop.permute.xlu1 %2102 }
 0x3dc   :  { %v8159_v35 = vpop.permute.xlu0 %2100 }
 0x3dd   :  { %2220 = vrot.lane.b32.xlu1 %v880_v30, %s6385_s28  ;;  %v886_v30 = vld [vmem:[#allocation2 + $0x4a] sm:$0xff] }
 0x3de   :  { %2218 = vrot.lane.b32.xlu0 %v879_v53, %s6385_s28  ;;  %v887_v53 = vld [vmem:[#allocation2 + $0x52] sm:$0xff] }
 0x3df   :  { %v8163_v38 = vpop.permute.xlu1 %2106 }
 0x3e0   :  { %10984 = vst [vmem:[#allocation338_spill] sm:$0xff] %v8163_v38  ;;  %v8165_v55 = vpop.permute.xlu0 %2104 }
 0x3e1   :  { %6076 = vrot.lane.b32.xlu1 %v6075_v31, %s6385_s28 }
 0x3e2   :  { %2222 = vrot.lane.b32.xlu0 %v881_v32, %s6385_s28  ;;  %v889_v32 = vld [vmem:[#allocation2 + $0x6a] sm:$0xff] }
 0x3e3   :  { %v8169_v36 = vpop.permute.xlu1 %2110 }
 0x3e4   :  { %10985 = vst [vmem:[#allocation339_spill] sm:$0xff] %v8169_v36  ;;  %v8171_v1 = vpop.permute.xlu0 %2108  ;;  %v888_v36 = vld [vmem:[#allocation2 + $0x62] sm:$0xff] }
 0x3e5   :  { %10986 = vst [vmem:[#allocation340_spill] sm:$0xff] %v8171_v1  ;;  %2294 = vrot.lane.b32.xlu1 %v885_v6, %s6386_s1 }
 0x3e6   :  { %2292 = vrot.lane.b32.xlu0 %v884_v9, %s6386_s1  ;;  %v891_v9 = vld [vmem:[#allocation2 + $0x82] sm:$0xff] }
 0x3e7   :  { %v8175_v49 = vpop.permute.xlu1 %2114 }
 0x3e8   :  { %10987 = vst [vmem:[#allocation341_spill] sm:$0xff] %v8175_v49  ;;  %v8177_v40 = vpop.permute.xlu0 %2112  ;;  %v890_v49 = vld [vmem:[#allocation2 + $0x7a] sm:$0xff] }
 0x3e9   :  { %10988 = vst [vmem:[#allocation342_spill] sm:$0xff] %v8177_v40  ;;  %2298 = vrot.lane.b32.xlu1 %v887_v53, %s6386_s1  ;;  %v893_v53 = vld [vmem:[#allocation2 + $0x9a] sm:$0xff] }
 0x3ea   :  { %2296 = vrot.lane.b32.xlu0 %v886_v30, %s6386_s1 }
 0x3eb   :  { %v8181_v31 = vpop.permute.xlu1 %2118 }
 0x3ec   :  { %10989 = vst [vmem:[#allocation343_spill] sm:$0xff] %v8181_v31  ;;  %v8183_v1 = vpop.permute.xlu0 %2116  ;;  %v892_v31 = vld [vmem:[#allocation2 + $0x92] sm:$0xff] }
 0x3ed   :  { %10990 = vst [vmem:[#allocation344_spill] sm:$0xff] %v8183_v1  ;;  %2302 = vrot.lane.b32.xlu1 %v889_v32, %s6386_s1 }
 0x3ee   :  { %2300 = vrot.lane.b32.xlu0 %v888_v36, %s6386_s1  ;;  %v895_v36 = vld [vmem:[#allocation2 + $0xb2] sm:$0xff] }
 0x3ef   :  { %v8187_v6 = vpop.permute.xlu1 %2122 }
 0x3f0   :  { %10991 = vst [vmem:[#allocation345_spill] sm:$0xff] %v8187_v6  ;;  %v8189_v51 = vpop.permute.xlu0 %2120  ;;  %v894_v6 = vld [vmem:[#allocation2 + $0xaa] sm:$0xff] }
 0x3f1   :  { %10992 = vst [vmem:[#allocation346_spill] sm:$0xff] %v8189_v51  ;;  %2306 = vrot.lane.b32.xlu1 %v891_v9, %s6386_s1 }
 0x3f2   :  { %2304 = vrot.lane.b32.xlu0 %v890_v49, %s6386_s1  ;;  %v897_v49 = vld [vmem:[#allocation2 + $0xca] sm:$0xff] }
 0x3f3   :  { %v8193_v30 = vpop.permute.xlu1 %2126 }
 0x3f4   :  { %10993 = vst [vmem:[#allocation347_spill] sm:$0xff] %v8193_v30  ;;  %v8195_v40 = vpop.permute.xlu0 %2124  ;;  %v896_v30 = vld [vmem:[#allocation2 + $0xc2] sm:$0xff] }
 0x3f5   :  { %10994 = vst [vmem:[#allocation348_spill] sm:$0xff] %v8195_v40  ;;  %2310 = vrot.lane.b32.xlu1 %v893_v53, %s6386_s1 }
 0x3f6   :  { %2308 = vrot.lane.b32.xlu0 %v892_v31, %s6386_s1  ;;  %v899_v31 = vld [vmem:[#allocation2 + $0xe2] sm:$0xff] }
 0x3f7   :  { %v8199_v32 = vpop.permute.xlu1 %2130 }
 0x3f8   :  { %10995 = vst [vmem:[#allocation349_spill] sm:$0xff] %v8199_v32  ;;  %v8201_v1 = vpop.permute.xlu0 %2128  ;;  %v898_v32 = vld [vmem:[#allocation2 + $0xda] sm:$0xff] }
 0x3f9   :  { %10996 = vst [vmem:[#allocation350_spill] sm:$0xff] %v8201_v1  ;;  %2314 = vrot.lane.b32.xlu1 %v895_v36, %s6386_s1 }
 0x3fa   :  { %2312 = vrot.lane.b32.xlu0 %v894_v6, %s6386_s1  ;;  %v901_v6 = vld [vmem:[#allocation2 + $0xfa] sm:$0xff] }
 0x3fb   :  { %v8205_v9 = vpop.permute.xlu1 %2134 }
 0x3fc   :  { %10997 = vst [vmem:[#allocation351_spill] sm:$0xff] %v8205_v9  ;;  %v8207_v51 = vpop.permute.xlu0 %2132  ;;  %v900_v9 = vld [vmem:[#allocation2 + $0xf2] sm:$0xff] }
 0x3fd   :  { %10998 = vst [vmem:[#allocation352_spill] sm:$0xff] %v8207_v51  ;;  %2318 = vrot.lane.b32.xlu1 %v897_v49, %s6386_s1 }
 0x3fe   :  { %2316 = vrot.lane.b32.xlu0 %v896_v30, %s6386_s1  ;;  %v903_v30 = vld [vmem:[#allocation2 + $0x112] sm:$0xff] }
 0x3ff   :  { %v8211_v53 = vpop.permute.xlu1 %2138 }
 0x400   :  { %10999 = vst [vmem:[#allocation353_spill] sm:$0xff] %v8211_v53  ;;  %v8213_v40 = vpop.permute.xlu0 %2136  ;;  %v902_v53 = vld [vmem:[#allocation2 + $0x10a] sm:$0xff] }
 0x401   :  { %11000 = vst [vmem:[#allocation354_spill] sm:$0xff] %v8213_v40  ;;  %2322 = vrot.lane.b32.xlu1 %v899_v31, %s6386_s1 }
 0x402   :  { %2320 = vrot.lane.b32.xlu0 %v898_v32, %s6386_s1  ;;  %v905_v32 = vld [vmem:[#allocation2 + $0x12a] sm:$0xff] }
 0x403   :  { %v8217_v36 = vpop.permute.xlu1 %2142 }
 0x404   :  { %11001 = vst [vmem:[#allocation355_spill] sm:$0xff] %v8217_v36  ;;  %v8219_v1 = vpop.permute.xlu0 %2140  ;;  %v904_v36 = vld [vmem:[#allocation2 + $0x122] sm:$0xff] }
 0x405   :  { %11002 = vst [vmem:[#allocation356_spill] sm:$0xff] %v8219_v1  ;;  %2326 = vrot.lane.b32.xlu1 %v901_v6, %s6386_s1 }
 0x406   :  { %2324 = vrot.lane.b32.xlu0 %v900_v9, %s6386_s1  ;;  %v907_v9 = vld [vmem:[#allocation2 + $0x142] sm:$0xff] }
 0x407   :  { %v8223_v49 = vpop.permute.xlu1 %2146 }
 0x408   :  { %11003 = vst [vmem:[#allocation357_spill] sm:$0xff] %v8223_v49  ;;  %v8225_v51 = vpop.permute.xlu0 %2144  ;;  %v906_v49 = vld [vmem:[#allocation2 + $0x13a] sm:$0xff] }
 0x409   :  { %11004 = vst [vmem:[#allocation358_spill] sm:$0xff] %v8225_v51  ;;  %2330 = vrot.lane.b32.xlu1 %v903_v30, %s6386_s1 }
 0x40a   :  { %2328 = vrot.lane.b32.xlu0 %v902_v53, %s6386_s1  ;;  %v909_v53 = vld [vmem:[#allocation2 + $0x15a] sm:$0xff] }
 0x40b   :  { %v8229_v31 = vpop.permute.xlu1 %2150 }
 0x40c   :  { %11005 = vst [vmem:[#allocation359_spill] sm:$0xff] %v8229_v31  ;;  %v8231_v40 = vpop.permute.xlu0 %2148  ;;  %v908_v31 = vld [vmem:[#allocation2 + $0x152] sm:$0xff] }
 0x40d   :  { %11006 = vst [vmem:[#allocation360_spill] sm:$0xff] %v8231_v40  ;;  %2334 = vrot.lane.b32.xlu1 %v905_v32, %s6386_s1 }
 0x40e   :  { %2332 = vrot.lane.b32.xlu0 %v904_v36, %s6386_s1  ;;  %v911_v36 = vld [vmem:[#allocation2 + $0x172] sm:$0xff] }
 0x40f   :  { %v8235_v6 = vpop.permute.xlu1 %2154 }
 0x410   :  { %11007 = vst [vmem:[#allocation361_spill] sm:$0xff] %v8235_v6  ;;  %v8237_v1 = vpop.permute.xlu0 %2152  ;;  %v910_v6 = vld [vmem:[#allocation2 + $0x16a] sm:$0xff] }
 0x411   :  { %11008 = vst [vmem:[#allocation362_spill] sm:$0xff] %v8237_v1  ;;  %2338 = vrot.lane.b32.xlu1 %v907_v9, %s6386_s1  ;;  %v914_v1 = vld [vmem:[#allocation2 + $0x19a] sm:$0xff] }
 0x412   :  { %2336 = vrot.lane.b32.xlu0 %v906_v49, %s6386_s1  ;;  %v913_v49 = vld [vmem:[#allocation2 + $0x18a] sm:$0xff] }
 0x413   :  { %v8241_v30 = vpop.permute.xlu1 %2158 }
 0x414   :  { %11009 = vst [vmem:[#allocation363_spill] sm:$0xff] %v8241_v30  ;;  %v8243_v51 = vpop.permute.xlu0 %2156  ;;  %v912_v30 = vld [vmem:[#allocation2 + $0x182] sm:$0xff] }
 0x415   :  { %11010 = vst [vmem:[#allocation364_spill] sm:$0xff] %v8243_v51  ;;  %2342 = vrot.lane.b32.xlu1 %v909_v53, %s6386_s1  ;;  %v915_v51 = vld [vmem:[#allocation2 + $0x1a2] sm:$0xff] }
 0x416   :  { %2340 = vrot.lane.b32.xlu0 %v908_v31, %s6386_s1  ;;  %v916_v31 = vld [vmem:[#allocation2 + $0x1e2] sm:$0xff]  ;;  %v6080_v53 = vpack.i.bf16 %v915_v51, %v914_v1 }
 0x417   :  { %v8247_v32 = vpop.permute.xlu1 %2164  ;;  %v919_v1 = vld [vmem:[#allocation2 + $0x202] sm:$0xff] }
 0x418   :  { %11011 = vst [vmem:[#allocation365_spill] sm:$0xff] %v8247_v32  ;;  %v8249_v40 = vpop.permute.xlu0 %6071 }
 0x419   :  { %11012 = vst [vmem:[#allocation366_spill] sm:$0xff] %v8249_v40  ;;  %2346 = vrot.lane.b32.xlu1 %v911_v36, %s6386_s1 }
 0x41a   :  { %2344 = vrot.lane.b32.xlu0 %v910_v6, %s6386_s1  ;;  %v918_v6 = vld [vmem:[#allocation2 + $0x1fa] sm:$0xff] }
 0x41b   :  { %v8253_v9 = vpop.permute.xlu1 %2168 }
 0x41c   :  { %11013 = vst [vmem:[#allocation367_spill] sm:$0xff] %v8253_v9  ;;  %v8255_v59 = vpop.permute.xlu0 %2166  ;;  %v917_v9 = vld [vmem:[#allocation2 + $0x1ea] sm:$0xff] }
 0x41d   :  { %11014 = vst [vmem:[#allocation368_spill] sm:$0xff] %v8255_v59  ;;  %2350 = vrot.lane.b32.xlu1 %v913_v49, %s6386_s1  ;;  %v939_v59 = vld [vmem:[#allocation2 + $0x2f2] sm:$0xff] }
 0x41e   :  { %2348 = vrot.lane.b32.xlu0 %v912_v30, %s6386_s1  ;;  %v920_v30 = vld [vmem:[#allocation2 + $0x212] sm:$0xff] }
 0x41f   :  { %v8259_v32 = vpop.permute.xlu1 %2172 }
 0x420   :  { %11015 = vst [vmem:[#allocation369_spill] sm:$0xff] %v8259_v32  ;;  %v8261_v40 = vpop.permute.xlu0 %2170 }
 0x421   :  { %11016 = vst [vmem:[#allocation370_spill] sm:$0xff] %v8261_v40  ;;  %2356 = vrot.lane.b32.xlu1 %v916_v31, %s6386_s1  ;;  %v922_v31 = vld [vmem:[#allocation2 + $0x22a] sm:$0xff] }
 0x422   :  { %6081 = vrot.lane.b32.xlu0 %v6080_v53, %s6386_s1 }
 0x423   :  { %v8265_v36 = vpop.permute.xlu1 %2176 }
 0x424   :  { %11017 = vst [vmem:[#allocation371_spill] sm:$0xff] %v8265_v36  ;;  %v8267_v38 = vpop.permute.xlu0 %2174  ;;  %v921_v36 = vld [vmem:[#allocation2 + $0x21a] sm:$0xff] }
 0x425   :  { %11018 = vst [vmem:[#allocation372_spill] sm:$0xff] %v8267_v38  ;;  %2360 = vrot.lane.b32.xlu1 %v918_v6, %s6386_s1 }
 0x426   :  { %2358 = vrot.lane.b32.xlu0 %v917_v9, %s6386_s1  ;;  %v924_v9 = vld [vmem:[#allocation2 + $0x242] sm:$0xff] }
 0x427   :  { %v8271_v51 = vpop.permute.xlu1 %2180 }
 0x428   :  { %11019 = vst [vmem:[#allocation373_spill] sm:$0xff] %v8271_v51  ;;  %v8273_v49 = vpop.permute.xlu0 %2178  ;;  %v923_v51 = vld [vmem:[#allocation2 + $0x232] sm:$0xff] }
 0x429   :  { %11020 = vst [vmem:[#allocation374_spill] sm:$0xff] %v8273_v49  ;;  %2364 = vrot.lane.b32.xlu1 %v920_v30, %s6386_s1  ;;  %v926_v30 = vld [vmem:[#allocation2 + $0x25a] sm:$0xff] }
 0x42a   :  { %2362 = vrot.lane.b32.xlu0 %v919_v1, %s6386_s1 }
 0x42b   :  { %v8277_v53 = vpop.permute.xlu1 %2184 }
 0x42c   :  { %11021 = vst [vmem:[#allocation375_spill] sm:$0xff] %v8277_v53  ;;  %v8279_v32 = vpop.permute.xlu0 %2182  ;;  %v925_v53 = vld [vmem:[#allocation2 + $0x24a] sm:$0xff] }
 0x42d   :  { %11022 = vst [vmem:[#allocation376_spill] sm:$0xff] %v8279_v32  ;;  %2368 = vrot.lane.b32.xlu1 %v922_v31, %s6386_s1 }
 0x42e   :  { %2366 = vrot.lane.b32.xlu0 %v921_v36, %s6386_s1  ;;  %v928_v36 = vld [vmem:[#allocation2 + $0x272] sm:$0xff] }
 0x42f   :  { %v8283_v6 = vpop.permute.xlu1 %2188 }
 0x430   :  { %11023 = vst [vmem:[#allocation377_spill] sm:$0xff] %v8283_v6  ;;  %v8285_v38 = vpop.permute.xlu0 %2186  ;;  %v927_v6 = vld [vmem:[#allocation2 + $0x262] sm:$0xff] }
 0x431   :  { %11024 = vst [vmem:[#allocation378_spill] sm:$0xff] %v8285_v38  ;;  %2372 = vrot.lane.b32.xlu1 %v924_v9, %s6386_s1 }
 0x432   :  { %2370 = vrot.lane.b32.xlu0 %v923_v51, %s6386_s1  ;;  %v930_v51 = vld [vmem:[#allocation2 + $0x28a] sm:$0xff] }
 0x433   :  { %v8289_v1 = vpop.permute.xlu1 %2192 }
 0x434   :  { %11025 = vst [vmem:[#allocation379_spill] sm:$0xff] %v8289_v1  ;;  %v8291_v49 = vpop.permute.xlu0 %2190  ;;  %v929_v1 = vld [vmem:[#allocation2 + $0x27a] sm:$0xff] }
 0x435   :  { %11026 = vst [vmem:[#allocation380_spill] sm:$0xff] %v8291_v49  ;;  %2376 = vrot.lane.b32.xlu1 %v926_v30, %s6386_s1 }
 0x436   :  { %2374 = vrot.lane.b32.xlu0 %v925_v53, %s6386_s1  ;;  %v932_v53 = vld [vmem:[#allocation2 + $0x2a2] sm:$0xff] }
 0x437   :  { %v8295_v31 = vpop.permute.xlu1 %2196 }
 0x438   :  { %11027 = vst [vmem:[#allocation381_spill] sm:$0xff] %v8295_v31  ;;  %v8297_v32 = vpop.permute.xlu0 %2194  ;;  %v931_v31 = vld [vmem:[#allocation2 + $0x292] sm:$0xff] }
 0x439   :  { %11028 = vst [vmem:[#allocation382_spill] sm:$0xff] %v8297_v32  ;;  %2380 = vrot.lane.b32.xlu1 %v928_v36, %s6386_s1 }
 0x43a   :  { %2378 = vrot.lane.b32.xlu0 %v927_v6, %s6386_s1  ;;  %v934_v6 = vld [vmem:[#allocation2 + $0x2ba] sm:$0xff] }
 0x43b   :  { %v8301_v9 = vpop.permute.xlu1 %2200 }
 0x43c   :  { %11029 = vst [vmem:[#allocation383_spill] sm:$0xff] %v8301_v9  ;;  %v8303_v38 = vpop.permute.xlu0 %2198  ;;  %v933_v9 = vld [vmem:[#allocation2 + $0x2aa] sm:$0xff] }
 0x43d   :  { %11030 = vst [vmem:[#allocation384_spill] sm:$0xff] %v8303_v38  ;;  %2384 = vrot.lane.b32.xlu1 %v930_v51, %s6386_s1 }
 0x43e   :  { %2382 = vrot.lane.b32.xlu0 %v929_v1, %s6386_s1  ;;  %v936_v1 = vld [vmem:[#allocation2 + $0x2d2] sm:$0xff] }
 0x43f   :  { %v8307_v30 = vpop.permute.xlu1 %2204 }
 0x440   :  { %11031 = vst [vmem:[#allocation385_spill] sm:$0xff] %v8307_v30  ;;  %v8309_v49 = vpop.permute.xlu0 %2202  ;;  %v935_v30 = vld [vmem:[#allocation2 + $0x2c2] sm:$0xff] }
 0x441   :  { %11032 = vst [vmem:[#allocation386_spill] sm:$0xff] %v8309_v49  ;;  %2388 = vrot.lane.b32.xlu1 %v932_v53, %s6386_s1  ;;  %v6318_v53 = vadd.low.f32.bf16 %v7831_v34, %v6949_v62 }
 0x442   :  { %2386 = vrot.lane.b32.xlu0 %v931_v31, %s6386_s1  ;;  %v938_v31 = vld [vmem:[#allocation2 + $0x2ea] sm:$0xff] }
 0x443   :  { %v8313_v36 = vpop.permute.xlu1 %2208 }
 0x444   :  { %11033 = vst [vmem:[#allocation387_spill] sm:$0xff] %v8313_v36  ;;  %v8315_v32 = vpop.permute.xlu0 %2206 }
 0x445   :  { %11034 = vst [vmem:[#allocation388_spill] sm:$0xff] %v8315_v32  ;;  %2392 = vrot.lane.b32.xlu1 %v934_v6, %s6386_s1  ;;  %v937_v32 = vld [vmem:[#allocation2 + $0x2da] sm:$0xff] }
 0x446   :  { %2390 = vrot.lane.b32.xlu0 %v933_v9, %s6386_s1  ;;  %v6319_v9 = vadd.high.f32.bf16 %v7831_v34, %v6949_v62  ;;  %v6132_v62 = vld [vmem:[#allocation2 + $0x20] sm:$0xff] }
 0x447   :  { %v8319_v51 = vpop.permute.xlu1 %2212  ;;  %v1079_v34 = vadd.f32 %v6132_v62, %v6947_v60  ;;  %v6136_v60 = vld [vmem:[#allocation2 + $0x60] sm:$0xff]  ;;  %v6137_v62 = vld [vmem:[#allocation2 + $0x50] sm:$0xff] }
 0x448   :  { %11035 = vst [vmem:[#allocation389_spill] sm:$0xff] %v8319_v51  ;;  %v8321_v38 = vpop.permute.xlu0 %2210  ;;  %v6320_v51 = vadd.low.f32.bf16 %v6318_v53, %v7151_v2 }
 0x449   :  { %11036 = vst [vmem:[#allocation390_spill] sm:$0xff] %v8321_v38  ;;  %2396 = vrot.lane.b32.xlu1 %v936_v1, %s6386_s1  ;;  %v6321_v1 = vadd.high.f32.bf16 %v6319_v9, %v7151_v2  ;;  %v6131_v38 = vld [vmem:[#allocation2 + $0x18] sm:$0xff] }
 0x44a   :  { %2394 = vrot.lane.b32.xlu0 %v935_v30, %s6386_s1  ;;  %v940_v30 = vld [vmem:[#allocation2 + $0x302] sm:$0xff]  ;;  %v1078_v49 = vadd.f32 %v6131_v38, %v6955_v4  ;;  %v6135_v38 = vld [vmem:[#allocation2 + $0x38] sm:$0xff] }
 0x44b   :  { %v8327_v36 = vpop.permute.xlu1 %2216  ;;  %v1461_v53 = vadd.f32 %v6321_v1, %v7338_v11  ;;  %v8352_v11 = vadd.f32 %v6136_v60, %v6965_v10  ;;  %v1271_v1 = vadd.f32 %v7157_v29, %v1079_v34  ;;  %v6139_v29 = vld [vmem:[#allocation2 + $0x68] sm:$0xff] }
 0x44c   :  { %11037 = vst [vmem:[#allocation391_spill] sm:$0xff] %v8327_v36  ;;  %v8331_v6 = vpop.permute.xlu0 %2214  ;;  %v1460_v36 = vadd.f32 %v6320_v51, %v7340_v39  ;;  %v1270_v4 = vadd.f32 %v7149_v37, %v1078_v49  ;;  %v1081_v51 = vadd.f32 %v6135_v38, %v6961_v8  ;;  %v1083_v37 = vadd.f32 %v6137_v62, %v6967_v12 }
 0x44d   :  { %11038 = vst [vmem:[#allocation392_spill] sm:$0xff] %v8331_v6  ;;  %2400 = vrot.lane.b32.xlu1 %v938_v31, %s6386_s1  ;;  %v6133_v31 = vld [vmem:[#allocation2 + $0x30] sm:$0xff]  ;;  %v1463_v12 = vadd.f32 %v7344_v27, %v1271_v1 }
 0x44e   :  { %2398 = vrot.lane.b32.xlu0 %v937_v32, %s6386_s1  ;;  %v1080_v2 = vadd.f32 %v6133_v31, %v6953_v0  ;;  %v6134_v32 = vld [vmem:[#allocation2 + $0x48] sm:$0xff]  ;;  %v1652_v39 = vadd.f32 %v7533_v17, %v1460_v36  ;;  %v1653_v0 = vadd.f32 %v7531_v15, %v1461_v53  ;;  %v6138_v17 = vld [vmem:[#allocation2 + $0x78] sm:$0xff]  ;;  %v1462_v8 = vadd.f32 %v7346_v61, %v1270_v4  ;;  %v6141_v61 = vld [vmem:[#allocation2 + $0x80] sm:$0xff] }
 0x44f   :  { %v8339_v40 = vpop.permute.xlu1 %2220  ;;  %v1082_v9 = vadd.f32 %v6134_v32, %v6959_v7  ;;  %v942_v7 = vld [vmem:[#allocation2 + $0x31a] sm:$0xff]  ;;  %v8359_v49 = vadd.f32 %v6138_v17, %v6971_v14  ;;  %v8366_v15 = vadd.f32 %v6139_v29, %v6973_v16  ;;  %v1273_v27 = vadd.f32 %v7163_v21, %v1081_v51  ;;  %v943_v51 = vld [vmem:[#allocation2 + $0x322] sm:$0xff] }
 0x450   :  { %v8343_v6 = vpop.permute.xlu0 %2218  ;;  %v1844_v36 = vadd.f32 %v7725_v63, %v1652_v39  ;;  %v1845_v14 = vadd.f32 %v7723_v44, %v1653_v0  ;;  %v8376_v63 = vadd.f32 %v6141_v61, %v6979_v20  ;;  %v1272_v31 = vadd.f32 %v7155_v41, %v1080_v2  ;;  %v944_v20 = vld [vmem:[#allocation2 + $0x332] sm:$0xff]  ;;  %v946_v41 = vld [vmem:[#allocation2 + $0x34a] sm:$0xff] }
 0x451   :  { %2404 = vrot.lane.b32.xlu1 %v940_v30, %s6386_s1  ;;  %v941_v30 = vld [vmem:[#allocation2 + $0x30a] sm:$0xff]  ;;  %v1654_v32 = vadd.f32 %v7539_v52, %v1462_v8  ;;  %v1655_v44 = vadd.f32 %v7537_v56, %v1463_v12  ;;  %v947_v2 = vld [vmem:[#allocation2 + $0x352] sm:$0xff]  ;;  %v1274_v56 = vadd.f32 %v7161_v13, %v1082_v9 }
 0x452   :  { %2402 = vrot.lane.b32.xlu0 %v939_v59, %s6386_s1  ;;  %v6140_v59 = vld [vmem:[#allocation2 + $0x90] sm:$0xff]  ;;  %v2036_v16 = vadd.f32 %v7924_v43, %v1844_v36  ;;  %v2037_v39 = vadd.f32 %v7922_v48, %v1845_v14  ;;  %v6143_v52 = vld [vmem:[#allocation2 + $0x98] sm:$0xff]  ;;  %v1464_v38 = vadd.f32 %v7352_v47, %v1272_v31  ;;  %v1465_v48 = vadd.f32 %v7350_v5, %v1273_v27 }
 0x453   :  { %v8363_v10 = vpop.permute.xlu1 %6076  ;;  %v8369_v34 = vadd.f32 %v6140_v59, %v6977_v18  ;;  %v6142_v18 = vld [vmem:[#allocation2 + $0xa8] sm:$0xff]  ;;  %v8390_v43 = vadd.f32 %v6143_v52, %v6985_v24  ;;  %v1847_v1 = vadd.f32 %v7729_v42, %v1655_v44  ;;  %v6085_v47 = vpack.i.bf16 %v947_v2, %v946_v41  ;;  %v6144_v42 = vld [vmem:[#allocation2 + $0xc0] sm:$0xff]  ;;  %v11041_v59 = vld [vmem:[#allocation165_spill] sm:$0xff] }
 0x454   :  { %v8373_v53 = vpop.permute.xlu0 %2222  ;;  %v8383_v4 = vadd.f32 %v6142_v18, %v6983_v22  ;;  %v1846_v22 = vadd.f32 %v7731_v58, %v1654_v32  ;;  %v2228_v60 = vadd.f32 %v8159_v35, %v2036_v16  ;;  %v2229_v0 = vadd.f32 %v8157_v50, %v2037_v39  ;;  %v11042_v12 = vld [vmem:[#allocation281_spill] sm:$0xff]  ;;  %v6146_v27 = vld [vmem:[#allocation2 + $0xd8] sm:$0xff]  ;;  %v11046_v44 = vld [vmem:[#allocation7_spill] sm:$0xff] }
 0x455   :  { %2408 = vrot.lane.b32.xlu1 %v942_v7, %s6386_s1  ;;  %v1656_v24 = vadd.f32 %v7545_v46, %v1464_v38  ;;  %v1275_v35 = vadd.f32 %v7169_v25, %v1083_v37  ;;  %v1657_v17 = vadd.f32 %v7543_v23, %v1465_v48  ;;  %v2039_v13 = vadd.f32 %v7928_v45, %v1847_v1  ;;  %v945_v25 = vld [vmem:[#allocation2 + $0x33a] sm:$0xff]  ;;  %v6145_v37 = vld [vmem:[#allocation2 + $0xb0] sm:$0xff]  ;;  %v11049_v52 = vld [vmem:[#allocation340_spill] sm:$0xff] }
 0x456   :  { %2406 = vrot.lane.b32.xlu0 %v941_v30, %s6386_s1  ;;  %v2038_v62 = vadd.f32 %v7930_v3, %v1846_v22  ;;  %v8407_v50 = vadd.f32 %v6144_v42, %v6989_v26  ;;  %v1466_v46 = vadd.f32 %v7358_v54, %v1274_v56  ;;  %v8413_v23 = vadd.f32 %v6145_v37, %v6991_v28  ;;  %v11039_v30 = vld [vmem:[#allocation338_spill] sm:$0xff]  ;;  %v11040_v54 = vld [vmem:[#allocation53_spill] sm:$0xff]  ;;  %v11043_v28 = vld [vmem:[#allocation55_spill] sm:$0xff] }
 0x457   :  { %v2295_v21 = vpop.permute.xlu1 %2294  ;;  %v1848_v3 = vadd.f32 %v7737_v57, %v1656_v24  ;;  %v1467_v45 = vadd.f32 %v7356_v19, %v1275_v35  ;;  %v1849_v36 = vadd.f32 %v7735_v33, %v1657_v17  ;;  %v2231_v26 = vadd.f32 %v11039_v30, %v2039_v13  ;;  %v11044_v19 = vld [vmem:[#allocation164_spill] sm:$0xff]  ;;  %v11047_v39 = vld [vmem:[#allocation109_spill] sm:$0xff]  ;;  %v11048_v41 = vld [vmem:[#allocation223_spill] sm:$0xff] }
 0x458   :  { %v2293_v7 = vpop.permute.xlu0 %2292  ;;  %v2421_v5 = vadd.f32 %v2295_v21, %v2229_v0  ;;  %v2230_v9 = vadd.f32 %v8165_v55, %v2038_v62  ;;  %v1276_v57 = vadd.f32 %v11040_v54, %v8352_v11  ;;  %v1658_v55 = vadd.f32 %v11041_v59, %v1466_v46  ;;  %v11045_v33 = vld [vmem:[#allocation280_spill] sm:$0xff]  ;;  %v11052_v48 = vld [vmem:[#allocation222_spill] sm:$0xff]  ;;  %v11053_v0 = vld [vmem:[#allocation339_spill] sm:$0xff] }
 0x459   :  { %2412 = vrot.lane.b32.xlu1 %v944_v20, %s6386_s1  ;;  %v2420_v58 = vadd.f32 %v2293_v7, %v2228_v60  ;;  %v2040_v14 = vadd.f32 %v11042_v12, %v1848_v3  ;;  %v1277_v31 = vadd.f32 %v11043_v28, %v8366_v15  ;;  %v1659_v32 = vadd.f32 %v11044_v19, %v1467_v45  ;;  %v6147_v15 = vld [vmem:[#allocation2 + $0xc8] sm:$0xff]  ;;  %v11054_v62 = vld [vmem:[#allocation54_spill] sm:$0xff]  ;;  %v11056_v17 = vld [vmem:[#allocation283_spill] sm:$0xff] }
 0x45a   :  { %2410 = vrot.lane.b32.xlu0 %v943_v51, %s6386_s1  ;;  %v2041_v16 = vadd.f32 %v11045_v33, %v1849_v36  ;;  %v8429_v11 = vadd.f32 %v6146_v27, %v11046_v44  ;;  %v1468_v20 = vadd.f32 %v11047_v39, %v1276_v57  ;;  %v1850_v2 = vadd.f32 %v11048_v41, %v1658_v55  ;;  %v11050_v60 = vld [vmem:[#allocation8_spill] sm:$0xff]  ;;  %v11057_v42 = vld [vmem:[#allocation57_spill] sm:$0xff]  ;;  %v11058_v3 = vld [vmem:[#allocation166_spill] sm:$0xff] }
 0x45b   :  { %v2299_v8 = vpop.permute.xlu1 %2298  ;;  %5816 = vmatprep.mubr.f32.mxu0 %v2420_v58  ;;  %v2232_v38 = vadd.f32 %v11049_v52, %v2040_v14  ;;  %v8435_v21 = vadd.f32 %v6147_v15, %v11050_v60  ;;  %v11051_v51 = vld [vmem:[#allocation108_spill] sm:$0xff]  ;;  %v1851_v1 = vadd.f32 %v11052_v48, %v1659_v32  ;;  %v1278_v58 = vadd.f32 %v11054_v62, %v8359_v49  ;;  %v6148_v45 = vld [vmem:[#allocation2 + $0xf0] sm:$0xff]  ;;  %v11063_v57 = vld [vmem:[#allocation342_spill] sm:$0xff] }
 0x45c   :  { %v2297_v29 = vpop.permute.xlu0 %2296  ;;  %5817 = vmatmul.mubr.f32.vlgmr.msra.gmra.mrb[0].mxu0 %v2421_v5  ;;  %v2423_v18 = vadd.f32 %v2299_v8, %v2231_v26  ;;  %v1469_v56 = vadd.f32 %v11051_v51, %v1277_v31  ;;  %v2233_v7 = vadd.f32 %v11053_v0, %v2041_v16  ;;  %v2042_v13 = vadd.f32 %v11056_v17, %v1850_v2  ;;  %v11059_v8 = vld [vmem:[#allocation282_spill] sm:$0xff]  ;;  %v11060_v36 = vld [vmem:[#allocation9_spill] sm:$0xff]  ;;  %v11061_v26 = vld [vmem:[#allocation111_spill] sm:$0xff] }
 0x45d   :  { %v2422_v61 = vadd.f32 %v2297_v29, %v2230_v9  ;;  %6086 = vrot.lane.b32.xlu1 %v6085_v47, %s6386_s1  ;;  %v11055_v47 = vld [vmem:[#allocation167_spill] sm:$0xff]  ;;  %v1279_v46 = vadd.f32 %v11057_v42, %v8376_v63  ;;  %v8449_v30 = vadd.f32 %v6148_v45, %v11060_v36  ;;  %v1470_v29 = vadd.f32 %v11061_v26, %v1278_v58  ;;  %v11062_v49 = vld [vmem:[#allocation225_spill] sm:$0xff]  ;;  %v11064_v14 = vld [vmem:[#allocation10_spill] sm:$0xff] }
 0x45e   :  { %2414 = vrot.lane.b32.xlu0 %v945_v25, %s6386_s1  ;;  %v1660_v35 = vadd.f32 %v11055_v47, %v1468_v20  ;;  %v1661_v9 = vadd.f32 %v11058_v3, %v1469_v56  ;;  %v2043_v25 = vadd.f32 %v11059_v8, %v1851_v1  ;;  %v2234_v59 = vadd.f32 %v11063_v57, %v2042_v13  ;;  %v6149_v12 = vld [vmem:[#allocation2 + $0xe0] sm:$0xff]  ;;  %v11066_v31 = vld [vmem:[#allocation224_spill] sm:$0xff]  ;;  %v11067_v32 = vld [vmem:[#allocation341_spill] sm:$0xff] }
 0x45f   :  { %v2303_v22 = vpop.permute.xlu1 %2302  ;;  %5819 = vmatprep.mubr.f32.mxu0 %v2422_v61  ;;  %v8455_v63 = vadd.f32 %v6149_v12, %v11064_v14  ;;  %v11065_v61 = vld [vmem:[#allocation110_spill] sm:$0xff]  ;;  %v11069_v44 = vld [vmem:[#allocation169_spill] sm:$0xff]  ;;  %v11071_v52 = vld [vmem:[#allocation59_spill] sm:$0xff] }
 0x460   :  { %v2301_v24 = vpop.permute.xlu0 %2300  ;;  %5820 = vmatmul.mubr.f32.gmra.mrb[2].mxu0 %v2423_v18  ;;  %v2425_v37 = vadd.f32 %v2303_v22, %v2233_v7  ;;  %v1852_v54 = vadd.f32 %v11062_v49, %v1660_v35  ;;  %v1471_v28 = vadd.f32 %v11065_v61, %v1279_v46  ;;  %v1853_v19 = vadd.f32 %v11066_v31, %v1661_v9  ;;  %v11068_v18 = vld [vmem:[#allocation56_spill] sm:$0xff]  ;;  %v11070_v20 = vld [vmem:[#allocation285_spill] sm:$0xff]  ;;  %v11074_v1 = vld [vmem:[#allocation11_spill] sm:$0xff] }
 0x461   :  { %v2424_v5 = vadd.f32 %v2301_v24, %v2232_v38  ;;  %v2235_v33 = vadd.f32 %v11067_v32, %v2043_v25  ;;  %v1280_v27 = vadd.f32 %v11068_v18, %v8369_v34  ;;  %v1662_v39 = vadd.f32 %v11069_v44, %v1470_v29  ;;  %v11072_v22 = vld [vmem:[#allocation168_spill] sm:$0xff]  ;;  %v11075_v7 = vld [vmem:[#allocation113_spill] sm:$0xff]  ;;  %v11076_v34 = vld [vmem:[#allocation227_spill] sm:$0xff] }
 0x462   :  { %v2044_v41 = vadd.f32 %v11070_v20, %v1852_v54  ;;  %v1281_v38 = vadd.f32 %v11071_v52, %v8390_v43  ;;  %v1663_v15 = vadd.f32 %v11072_v22, %v1471_v28  ;;  %v11073_v60 = vld [vmem:[#allocation284_spill] sm:$0xff]  ;;  %v6151_v17 = vld [vmem:[#allocation2 + $0xf8] sm:$0xff]  ;;  %v11081_v9 = vld [vmem:[#allocation343_spill] sm:$0xff] }
 0x463   :  { %v2307_v55 = vpop.permute.xlu1 %2306  ;;  %5822 = vmatprep.mubr.f32.mxu0 %v2424_v5  ;;  %v2045_v51 = vadd.f32 %v11073_v60, %v1853_v19  ;;  %v6150_v48 = vld [vmem:[#allocation2 + $0x108] sm:$0xff]  ;;  %v1472_v24 = vadd.f32 %v11075_v7, %v1280_v27  ;;  %v1854_v62 = vadd.f32 %v11076_v34, %v1662_v39  ;;  %v11080_v46 = vld [vmem:[#allocation226_spill] sm:$0xff]  ;;  %v11083_v36 = vld [vmem:[#allocation171_spill] sm:$0xff] }
 0x464   :  { %v2305_v16 = vpop.permute.xlu0 %2304  ;;  %5823 = vmatmul.mubr.f32.gmra.mrb[4].mxu0 %v2425_v37  ;;  %v2427_v56 = vadd.f32 %v2307_v55, %v2235_v33  ;;  %v8469_v0 = vadd.f32 %v6150_v48, %v11074_v1  ;;  %v11077_v58 = vld [vmem:[#allocation344_spill] sm:$0xff]  ;;  %v1855_v3 = vadd.f32 %v11080_v46, %v1663_v15  ;;  %v11082_v37 = vld [vmem:[#allocation58_spill] sm:$0xff]  ;;  %v11084_v29 = vld [vmem:[#allocation287_spill] sm:$0xff] }
 0x465   :  { %v2426_v2 = vadd.f32 %v2305_v16, %v2234_v59  ;;  %v2236_v47 = vadd.f32 %v11077_v58, %v2044_v41  ;;  %v11078_v13 = vld [vmem:[#allocation12_spill] sm:$0xff]  ;;  %v2237_v8 = vadd.f32 %v11081_v9, %v2045_v51  ;;  %v1282_v45 = vadd.f32 %v11082_v37, %v8383_v4  ;;  %v11085_v57 = vld [vmem:[#allocation61_spill] sm:$0xff]  ;;  %v11086_v55 = vld [vmem:[#allocation170_spill] sm:$0xff] }
 0x466   :  { %v8475_v43 = vadd.f32 %v6151_v17, %v11078_v13  ;;  %v11079_v5 = vld [vmem:[#allocation112_spill] sm:$0xff]  ;;  %v1664_v26 = vadd.f32 %v11083_v36, %v1472_v24  ;;  %v2046_v49 = vadd.f32 %v11084_v29, %v1854_v62  ;;  %v1283_v59 = vadd.f32 %v11085_v57, %v8413_v23  ;;  %v11087_v14 = vld [vmem:[#allocation286_spill] sm:$0xff]  ;;  %v6152_v31 = vld [vmem:[#allocation2 + $0x120] sm:$0xff] }
 0x467   :  { %v2311_v35 = vpop.permute.xlu1 %2310  ;;  %5825 = vmatprep.mubr.f32.mxu0 %v2426_v2  ;;  %v1473_v42 = vadd.f32 %v11079_v5, %v1281_v38  ;;  %v2047_v61 = vadd.f32 %v11087_v14, %v1855_v3  ;;  %v11088_v19 = vld [vmem:[#allocation13_spill] sm:$0xff]  ;;  %v11089_v33 = vld [vmem:[#allocation115_spill] sm:$0xff]  ;;  %v11091_v27 = vld [vmem:[#allocation346_spill] sm:$0xff] }
 0x468   :  { %v2309_v25 = vpop.permute.xlu0 %2308  ;;  %5826 = vmatmul.mubr.f32.gmra.mrb[6].mxu0 %v2427_v56  ;;  %v2429_v28 = vadd.f32 %v2311_v35, %v2237_v8  ;;  %v8489_v32 = vadd.f32 %v6152_v31, %v11088_v19  ;;  %v1474_v16 = vadd.f32 %v11089_v33, %v1282_v45  ;;  %v11090_v4 = vld [vmem:[#allocation229_spill] sm:$0xff]  ;;  %v2238_v44 = vadd.f32 %v11091_v27, %v2046_v49  ;;  %v11092_v41 = vld [vmem:[#allocation14_spill] sm:$0xff]  ;;  %v11094_v38 = vld [vmem:[#allocation228_spill] sm:$0xff] }
 0x469   :  { %v2428_v54 = vadd.f32 %v2309_v25, %v2236_v47  ;;  %v1665_v12 = vadd.f32 %v11086_v55, %v1473_v42  ;;  %v1856_v18 = vadd.f32 %v11090_v4, %v1664_v26  ;;  %v6153_v20 = vld [vmem:[#allocation2 + $0x110] sm:$0xff]  ;;  %v11093_v2 = vld [vmem:[#allocation114_spill] sm:$0xff]  ;;  %v11096_v56 = vld [vmem:[#allocation60_spill] sm:$0xff] }
 0x46a   :  { %v8495_v23 = vadd.f32 %v6153_v20, %v11092_v41  ;;  %v1475_v52 = vadd.f32 %v11093_v2, %v1283_v59  ;;  %v11095_v15 = vld [vmem:[#allocation345_spill] sm:$0xff]  ;;  %v1284_v48 = vadd.f32 %v11096_v56, %v8407_v50  ;;  %v11099_v58 = vld [vmem:[#allocation63_spill] sm:$0xff]  ;;  %v11100_v35 = vld [vmem:[#allocation172_spill] sm:$0xff] }
 0x46b   :  { %v2315_v39 = vpop.permute.xlu1 %2314  ;;  %5828 = vmatprep.mubr.f32.mxu0 %v2428_v54  ;;  %v1857_v22 = vadd.f32 %v11094_v38, %v1665_v12  ;;  %v2239_v60 = vadd.f32 %v11095_v15, %v2047_v61  ;;  %v11097_v1 = vld [vmem:[#allocation173_spill] sm:$0xff]  ;;  %v1285_v47 = vadd.f32 %v11099_v58, %v8435_v21  ;;  %v11101_v13 = vld [vmem:[#allocation288_spill] sm:$0xff]  ;;  %v6154_v46 = vld [vmem:[#allocation2 + $0x138] sm:$0xff] }
 0x46c   :  { %v2313_v51 = vpop.permute.xlu0 %2312  ;;  %5829 = vmatmul.mubr.f32.gmra.mrb[8].mxu0 %v2429_v28  ;;  %v1666_v7 = vadd.f32 %v11097_v1, %v1474_v16  ;;  %v11098_v24 = vld [vmem:[#allocation289_spill] sm:$0xff]  ;;  %v1667_v17 = vadd.f32 %v11100_v35, %v1475_v52  ;;  %v11102_v3 = vld [vmem:[#allocation15_spill] sm:$0xff]  ;;  %v11105_v45 = vld [vmem:[#allocation348_spill] sm:$0xff] }
 0x46d   :  { %v2048_v34 = vadd.f32 %v11098_v24, %v1856_v18  ;;  %v2430_v62 = vadd.f32 %v2313_v51, %v2238_v44  ;;  %v2049_v5 = vadd.f32 %v11101_v13, %v1857_v22  ;;  %v2431_v42 = vadd.f32 %v2315_v39, %v2239_v60  ;;  %v11103_v8 = vld [vmem:[#allocation117_spill] sm:$0xff]  ;;  %v11104_v50 = vld [vmem:[#allocation231_spill] sm:$0xff]  ;;  %v6155_v29 = vld [vmem:[#allocation2 + $0x128] sm:$0xff] }
 0x46e   :  { %v8509_v9 = vadd.f32 %v6154_v46, %v11102_v3  ;;  %v1476_v25 = vadd.f32 %v11103_v8, %v1284_v48  ;;  %v1858_v37 = vadd.f32 %v11104_v50, %v1666_v7  ;;  %v11106_v49 = vld [vmem:[#allocation16_spill] sm:$0xff]  ;;  %v11108_v59 = vld [vmem:[#allocation230_spill] sm:$0xff]  ;;  %v11109_v12 = vld [vmem:[#allocation347_spill] sm:$0xff] }
 0x46f   :  { %v2240_v36 = vadd.f32 %v11105_v45, %v2048_v34  ;;  %v2319_v26 = vpop.permute.xlu1 %2318  ;;  %5831 = vmatprep.mubr.f32.mxu0 %v2430_v62  ;;  %v8515_v21 = vadd.f32 %v6155_v29, %v11106_v49  ;;  %v11107_v54 = vld [vmem:[#allocation116_spill] sm:$0xff]  ;;  %v1859_v55 = vadd.f32 %v11108_v59, %v1667_v17  ;;  %v2241_v14 = vadd.f32 %v11109_v12, %v2049_v5  ;;  %v11110_v28 = vld [vmem:[#allocation62_spill] sm:$0xff]  ;;  %v11111_v19 = vld [vmem:[#allocation175_spill] sm:$0xff] }
 0x470   :  { %v1477_v57 = vadd.f32 %v11107_v54, %v1285_v47  ;;  %v2317_v61 = vpop.permute.xlu0 %2316  ;;  %5832 = vmatmul.mubr.f32.gmra.mrb[10].mxu0 %v2431_v42  ;;  %v1286_v31 = vadd.f32 %v11110_v28, %v8429_v11  ;;  %v1668_v33 = vadd.f32 %v11111_v19, %v1476_v25  ;;  %v11112_v16 = vld [vmem:[#allocation291_spill] sm:$0xff]  ;;  %v11113_v27 = vld [vmem:[#allocation65_spill] sm:$0xff]  ;;  %v11114_v39 = vld [vmem:[#allocation174_spill] sm:$0xff] }
 0x471   :  { %v2050_v4 = vadd.f32 %v11112_v16, %v1858_v37  ;;  %v2432_v18 = vadd.f32 %v2317_v61, %v2240_v36  ;;  %v1287_v44 = vadd.f32 %v11113_v27, %v8455_v63  ;;  %v11115_v41 = vld [vmem:[#allocation290_spill] sm:$0xff]  ;;  %v2433_v52 = vadd.f32 %v2319_v26, %v2241_v14  ;;  %v6156_v38 = vld [vmem:[#allocation2 + $0x150] sm:$0xff]  ;;  %v11117_v60 = vld [vmem:[#allocation119_spill] sm:$0xff] }
 0x472   :  { %v1669_v20 = vadd.f32 %v11114_v39, %v1477_v57  ;;  %v2051_v2 = vadd.f32 %v11115_v41, %v1859_v55  ;;  %v11116_v22 = vld [vmem:[#allocation17_spill] sm:$0xff]  ;;  %v1478_v51 = vadd.f32 %v11117_v60, %v1286_v31  ;;  %v11119_v48 = vld [vmem:[#allocation350_spill] sm:$0xff]  ;;  %v6157_v24 = vld [vmem:[#allocation2 + $0x140] sm:$0xff] }
 0x473   :  { %v8529_v15 = vadd.f32 %v6156_v38, %v11116_v22  ;;  %v11118_v11 = vld [vmem:[#allocation233_spill] sm:$0xff]  ;;  %v2242_v1 = vadd.f32 %v11119_v48, %v2050_v4  ;;  %v2323_v7 = vpop.permute.xlu1 %2322  ;;  %5834 = vmatprep.mubr.f32.mxu0 %v2432_v18  ;;  %v11120_v34 = vld [vmem:[#allocation18_spill] sm:$0xff]  ;;  %v11122_v47 = vld [vmem:[#allocation232_spill] sm:$0xff] }
 0x474   :  { %v1860_v56 = vadd.f32 %v11118_v11, %v1668_v33  ;;  %v8535_v63 = vadd.f32 %v6157_v24, %v11120_v34  ;;  %v11121_v62 = vld [vmem:[#allocation118_spill] sm:$0xff]  ;;  %v1861_v35 = vadd.f32 %v11122_v47, %v1669_v20  ;;  %v11123_v17 = vld [vmem:[#allocation349_spill] sm:$0xff]  ;;  %v2321_v5 = vpop.permute.xlu0 %2320  ;;  %5835 = vmatmul.mubr.f32.gmra.mrb[12].mxu0 %v2433_v52  ;;  %v11124_v42 = vld [vmem:[#allocation64_spill] sm:$0xff] }
 0x475   :  { %v1479_v58 = vadd.f32 %v11121_v62, %v1287_v44  ;;  %v2243_v13 = vadd.f32 %v11123_v17, %v2051_v2  ;;  %v1288_v46 = vadd.f32 %v11124_v42, %v8449_v30  ;;  %v11125_v3 = vld [vmem:[#allocation177_spill] sm:$0xff]  ;;  %v2434_v37 = vadd.f32 %v2321_v5, %v2242_v1  ;;  %v11127_v45 = vld [vmem:[#allocation67_spill] sm:$0xff]  ;;  %v11128_v26 = vld [vmem:[#allocation176_spill] sm:$0xff] }
 0x476   :  { %v1670_v8 = vadd.f32 %v11125_v3, %v1478_v51  ;;  %v11126_v25 = vld [vmem:[#allocation293_spill] sm:$0xff]  ;;  %v1289_v36 = vadd.f32 %v11127_v45, %v8475_v43  ;;  %v11129_v49 = vld [vmem:[#allocation292_spill] sm:$0xff]  ;;  %v11130_v55 = vld [vmem:[#allocation19_spill] sm:$0xff] }
 0x477   :  { %v2052_v50 = vadd.f32 %v11126_v25, %v1860_v56  ;;  %v1671_v29 = vadd.f32 %v11128_v26, %v1479_v58  ;;  %v2053_v54 = vadd.f32 %v11129_v49, %v1861_v35  ;;  %v2435_v57 = vadd.f32 %v2323_v7, %v2243_v13  ;;  %v6158_v59 = vld [vmem:[#allocation2 + $0x168] sm:$0xff]  ;;  %v11131_v14 = vld [vmem:[#allocation121_spill] sm:$0xff]  ;;  %v11132_v30 = vld [vmem:[#allocation235_spill] sm:$0xff]  ;;  %v2327_v33 = vpop.permute.xlu1 %2326  ;;  %5837 = vmatprep.mubr.f32.mxu0 %v2434_v37 }
 0x478   :  { %v8549_v12 = vadd.f32 %v6158_v59, %v11130_v55  ;;  %v1480_v61 = vadd.f32 %v11131_v14, %v1288_v46  ;;  %v1862_v28 = vadd.f32 %v11132_v30, %v1670_v8  ;;  %v11133_v31 = vld [vmem:[#allocation352_spill] sm:$0xff]  ;;  %v6159_v16 = vld [vmem:[#allocation2 + $0x158] sm:$0xff]  ;;  %v11137_v20 = vld [vmem:[#allocation351_spill] sm:$0xff]  ;;  %v2325_v2 = vpop.permute.xlu0 %2324 }
 0x479   :  { %v2244_v19 = vadd.f32 %v11133_v31, %v2052_v50  ;;  %v11134_v4 = vld [vmem:[#allocation20_spill] sm:$0xff]  ;;  %v11136_v44 = vld [vmem:[#allocation234_spill] sm:$0xff]  ;;  %v2245_v41 = vadd.f32 %v11137_v20, %v2053_v54  ;;  %5838 = vmatmul.mubr.f32.gmra.mrb[14].mxu0 %v2435_v57  ;;  %v11139_v22 = vld [vmem:[#allocation179_spill] sm:$0xff] }
 0x47a   :  { %v8555_v43 = vadd.f32 %v6159_v16, %v11134_v4  ;;  %v11135_v18 = vld [vmem:[#allocation120_spill] sm:$0xff]  ;;  %v1863_v39 = vadd.f32 %v11136_v44, %v1671_v29  ;;  %v11138_v52 = vld [vmem:[#allocation66_spill] sm:$0xff]  ;;  %v1672_v60 = vadd.f32 %v11139_v22, %v1480_v61  ;;  %v11140_v51 = vld [vmem:[#allocation295_spill] sm:$0xff] }
 0x47b   :  { %v1481_v27 = vadd.f32 %v11135_v18, %v1289_v36  ;;  %v1290_v38 = vadd.f32 %v11138_v52, %v8469_v0  ;;  %v2054_v11 = vadd.f32 %v11140_v51, %v1862_v28  ;;  %v2436_v56 = vadd.f32 %v2325_v2, %v2244_v19  ;;  %v11141_v48 = vld [vmem:[#allocation69_spill] sm:$0xff]  ;;  %v11142_v7 = vld [vmem:[#allocation178_spill] sm:$0xff]  ;;  %v11144_v47 = vld [vmem:[#allocation123_spill] sm:$0xff]  ;;  %v2331_v0 = vpop.permute.xlu1 %2330 }
 0x47c   :  { %v1291_v1 = vadd.f32 %v11141_v48, %v8495_v23  ;;  %v11143_v34 = vld [vmem:[#allocation294_spill] sm:$0xff]  ;;  %v2437_v58 = vadd.f32 %v2327_v33, %v2245_v41  ;;  %v11145_v17 = vld [vmem:[#allocation237_spill] sm:$0xff]  ;;  %v11148_v8 = vld [vmem:[#allocation236_spill] sm:$0xff]  ;;  %v2329_v23 = vpop.permute.xlu0 %2328 }
 0x47d   :  { %v1673_v24 = vadd.f32 %v11142_v7, %v1481_v27  ;;  %v2055_v62 = vadd.f32 %v11143_v34, %v1863_v39  ;;  %v1482_v35 = vadd.f32 %v11144_v47, %v1290_v38  ;;  %v1864_v13 = vadd.f32 %v11145_v17, %v1672_v60  ;;  %v11146_v5 = vld [vmem:[#allocation354_spill] sm:$0xff]  ;;  %5840 = vmatprep.mubr.f32.mxu0 %v2436_v56  ;;  %v11149_v50 = vld [vmem:[#allocation353_spill] sm:$0xff]  ;;  %v11150_v45 = vld [vmem:[#allocation68_spill] sm:$0xff] }
 0x47e   :  { %v2246_v42 = vadd.f32 %v11146_v5, %v2054_v11  ;;  %v11147_v46 = vld [vmem:[#allocation122_spill] sm:$0xff]  ;;  %5841 = vmatmul.mubr.f32.gmra.mrb[16].mxu0 %v2437_v58  ;;  %v1292_v36 = vadd.f32 %v11150_v45, %v8489_v32  ;;  %v11151_v26 = vld [vmem:[#allocation181_spill] sm:$0xff]  ;;  %v11153_v59 = vld [vmem:[#allocation71_spill] sm:$0xff] }
 0x47f   :  { %v1483_v3 = vadd.f32 %v11147_v46, %v1291_v1  ;;  %v1865_v25 = vadd.f32 %v11148_v8, %v1673_v24  ;;  %v2247_v37 = vadd.f32 %v11149_v50, %v2055_v62  ;;  %v1674_v29 = vadd.f32 %v11151_v26, %v1482_v35  ;;  %v11152_v49 = vld [vmem:[#allocation297_spill] sm:$0xff]  ;;  %v11154_v14 = vld [vmem:[#allocation180_spill] sm:$0xff]  ;;  %v11156_v33 = vld [vmem:[#allocation22_spill] sm:$0xff]  ;;  %v2335_v20 = vpop.permute.xlu1 %2334 }
 0x480   :  { %v2056_v54 = vadd.f32 %v11152_v49, %v1864_v13  ;;  %v2438_v57 = vadd.f32 %v2329_v23, %v2246_v42  ;;  %v1293_v55 = vadd.f32 %v11153_v59, %v8515_v21  ;;  %v11155_v30 = vld [vmem:[#allocation296_spill] sm:$0xff]  ;;  %v6160_v19 = vld [vmem:[#allocation2 + $0x170] sm:$0xff]  ;;  %v11158_v27 = vld [vmem:[#allocation239_spill] sm:$0xff]  ;;  %v2333_v56 = vpop.permute.xlu0 %2332 }
 0x481   :  { %v1675_v61 = vadd.f32 %v11154_v14, %v1483_v3  ;;  %v2057_v28 = vadd.f32 %v11155_v30, %v1865_v25  ;;  %v2439_v31 = vadd.f32 %v2331_v0, %v2247_v37  ;;  %v1107_v16 = vadd.f32 %v6160_v19, %v11156_v33  ;;  %v11157_v4 = vld [vmem:[#allocation125_spill] sm:$0xff]  ;;  %v11159_v44 = vld [vmem:[#allocation356_spill] sm:$0xff]  ;;  %v8586_v41 = vld [vmem:[#allocation2] sm:$0xff] }
 0x482   :  { %v1484_v18 = vadd.f32 %v11157_v4, %v1292_v36  ;;  %v1866_v32 = vadd.f32 %v11158_v27, %v1674_v29  ;;  %v2248_v39 = vadd.f32 %v11159_v44, %v2056_v54  ;;  %5843 = vmatprep.mubr.f32.mxu0 %v2438_v57  ;;  %v11160_v2 = vld [vmem:[#allocation21_spill] sm:$0xff]  ;;  %v11161_v52 = vld [vmem:[#allocation124_spill] sm:$0xff]  ;;  %v11162_v22 = vld [vmem:[#allocation238_spill] sm:$0xff] }
 0x483   :  { %v6322_v21 = vadd.high.f32.bf16 %v8586_v41, %v11160_v2  ;;  %v1485_v38 = vadd.f32 %v11161_v52, %v1293_v55  ;;  %v1867_v60 = vadd.f32 %v11162_v22, %v1675_v61  ;;  %v11163_v51 = vld [vmem:[#allocation355_spill] sm:$0xff]  ;;  %5844 = vmatmul.mubr.f32.gmra.mrb[18].mxu0 %v2439_v31  ;;  %v11164_v48 = vld [vmem:[#allocation70_spill] sm:$0xff]  ;;  %v11167_v47 = vld [vmem:[#allocation73_spill] sm:$0xff]  ;;  %v6323_v46 = vadd.low.f32.bf16 %v8586_v41, %v11160_v2  ;;  %v2339_v23 = vpop.permute.xlu1 %2338 }
 0x484   :  { %v2249_v11 = vadd.f32 %v11163_v51, %v2057_v28  ;;  %v1294_v1 = vadd.f32 %v11164_v48, %v8509_v9  ;;  %v11165_v7 = vld [vmem:[#allocation183_spill] sm:$0xff]  ;;  %v2440_v58 = vadd.f32 %v2333_v56, %v2248_v39  ;;  %v1295_v35 = vadd.f32 %v11167_v47, %v8535_v63  ;;  %v11168_v17 = vld [vmem:[#allocation182_spill] sm:$0xff]  ;;  %v11171_v25 = vld [vmem:[#allocation241_spill] sm:$0xff]  ;;  %v2337_v55 = vpop.permute.xlu0 %2336 }
 0x485   :  { %v1676_v24 = vadd.f32 %v11165_v7, %v1484_v18  ;;  %v11166_v34 = vld [vmem:[#allocation299_spill] sm:$0xff]  ;;  %v1677_v13 = vadd.f32 %v11168_v17, %v1485_v38  ;;  %v11169_v5 = vld [vmem:[#allocation298_spill] sm:$0xff]  ;;  %v6162_v45 = vld [vmem:[#allocation2 + $0x1d0] sm:$0xff] }
 0x486   :  { %v2058_v62 = vadd.f32 %v11166_v34, %v1866_v32  ;;  %v2059_v42 = vadd.f32 %v11169_v5, %v1867_v60  ;;  %v2441_v0 = vadd.f32 %v2335_v20, %v2249_v11  ;;  %v11170_v3 = vld [vmem:[#allocation127_spill] sm:$0xff]  ;;  %v11172_v50 = vld [vmem:[#allocation358_spill] sm:$0xff]  ;;  %5846 = vmatprep.mubr.f32.mxu0 %v2440_v58  ;;  %v11175_v49 = vld [vmem:[#allocation240_spill] sm:$0xff] }
 0x487   :  { %v1486_v8 = vadd.f32 %v11170_v3, %v1294_v1  ;;  %v1868_v9 = vadd.f32 %v11171_v25, %v1676_v24  ;;  %v11173_v36 = vld [vmem:[#allocation23_spill] sm:$0xff]  ;;  %v11174_v63 = vld [vmem:[#allocation126_spill] sm:$0xff]  ;;  %v1869_v54 = vadd.f32 %v11175_v49, %v1677_v13  ;;  %v11176_v57 = vld [vmem:[#allocation357_spill] sm:$0xff]  ;;  %v2343_v1 = vpop.permute.xlu1 %2342 }
 0x488   :  { %v2250_v37 = vadd.f32 %v11172_v50, %v2058_v62  ;;  %v8607_v26 = vadd.f32 %v6162_v45, %v11173_v36  ;;  %v1487_v29 = vadd.f32 %v11174_v63, %v1295_v35  ;;  %v2251_v59 = vadd.f32 %v11176_v57, %v2059_v42  ;;  %5847 = vmatmul.mubr.f32.gmra.mrb[20].mxu0 %v2441_v0  ;;  %v11177_v14 = vld [vmem:[#allocation72_spill] sm:$0xff]  ;;  %v11178_v30 = vld [vmem:[#allocation185_spill] sm:$0xff]  ;;  %v11180_v4 = vld [vmem:[#allocation75_spill] sm:$0xff]  ;;  %v2341_v47 = vpop.permute.xlu0 %2340 }
 0x489   :  { %v1296_v61 = vadd.f32 %v11177_v14, %v8529_v15  ;;  %v1678_v28 = vadd.f32 %v11178_v30, %v1486_v8  ;;  %v11179_v31 = vld [vmem:[#allocation301_spill] sm:$0xff]  ;;  %v1297_v18 = vadd.f32 %v11180_v4, %v8555_v43  ;;  %v11181_v27 = vld [vmem:[#allocation184_spill] sm:$0xff]  ;;  %v11185_v11 = vld [vmem:[#allocation243_spill] sm:$0xff] }
 0x48a   :  { %v2060_v19 = vadd.f32 %v11179_v31, %v1868_v9  ;;  %v2442_v33 = vadd.f32 %v2337_v55, %v2250_v37  ;;  %v1679_v32 = vadd.f32 %v11181_v27, %v1487_v29  ;;  %v11182_v44 = vld [vmem:[#allocation300_spill] sm:$0xff]  ;;  %v2443_v20 = vadd.f32 %v2339_v23, %v2251_v59  ;;  %v11184_v60 = vld [vmem:[#allocation129_spill] sm:$0xff]  ;;  %v11188_v34 = vld [vmem:[#allocation242_spill] sm:$0xff] }
 0x48b   :  { %v2061_v39 = vadd.f32 %v11182_v44, %v1869_v54  ;;  %v6163_v52 = vld [vmem:[#allocation2 + $0x1c8] sm:$0xff]  ;;  %v1488_v51 = vadd.f32 %v11184_v60, %v1296_v61  ;;  %v1870_v15 = vadd.f32 %v11185_v11, %v1678_v28  ;;  %v11189_v62 = vld [vmem:[#allocation359_spill] sm:$0xff]  ;;  %v11192_v0 = vld [vmem:[#allocation77_spill] sm:$0xff]  ;;  %v2347_v55 = vpop.permute.xlu1 %2346 }
 0x48c   :  { %v11183_v38 = vld [vmem:[#allocation24_spill] sm:$0xff]  ;;  %5849 = vmatprep.mubr.f32.mxu0 %v2442_v33  ;;  %v1871_v43 = vadd.f32 %v11188_v34, %v1679_v32  ;;  %v11190_v35 = vld [vmem:[#allocation187_spill] sm:$0xff]  ;;  %v1299_v3 = vadd.f32 %v11192_v0, %v1107_v16  ;;  %v11193_v8 = vld [vmem:[#allocation186_spill] sm:$0xff]  ;;  %v2345_v4 = vpop.permute.xlu0 %2344 }
 0x48d   :  { %v1110_v22 = vadd.f32 %v6163_v52, %v11183_v38  ;;  %v11186_v56 = vld [vmem:[#allocation360_spill] sm:$0xff]  ;;  %v2253_v58 = vadd.f32 %v11189_v62, %v2061_v39  ;;  %5850 = vmatmul.mubr.f32.gmra.mrb[22].mxu0 %v2443_v20  ;;  %v1680_v17 = vadd.f32 %v11190_v35, %v1488_v51  ;;  %v11191_v13 = vld [vmem:[#allocation303_spill] sm:$0xff]  ;;  %v11194_v9 = vld [vmem:[#allocation302_spill] sm:$0xff] }
 0x48e   :  { %v2252_v48 = vadd.f32 %v11186_v56, %v2060_v19  ;;  %v11187_v7 = vld [vmem:[#allocation128_spill] sm:$0xff]  ;;  %v2062_v5 = vadd.f32 %v11191_v13, %v1870_v15  ;;  %v2063_v50 = vadd.f32 %v11194_v9, %v1871_v43  ;;  %v6164_v23 = vld [vmem:[#allocation2 + $0x1e0] sm:$0xff]  ;;  %v11195_v45 = vld [vmem:[#allocation26_spill] sm:$0xff] }
 0x48f   :  { %v1489_v24 = vadd.f32 %v11187_v7, %v1297_v18  ;;  %v2445_v37 = vadd.f32 %v2343_v1, %v2253_v58  ;;  %v1112_v36 = vadd.f32 %v6164_v23, %v11195_v45  ;;  %v11196_v63 = vld [vmem:[#allocation74_spill] sm:$0xff]  ;;  %v11197_v49 = vld [vmem:[#allocation245_spill] sm:$0xff]  ;;  %v11200_v16 = vld [vmem:[#allocation76_spill] sm:$0xff]  ;;  %v2351_v7 = vpop.permute.xlu1 %2350 }
 0x490   :  { %v2444_v42 = vadd.f32 %v2341_v47, %v2252_v48  ;;  %v1298_v29 = vadd.f32 %v11196_v63, %v8549_v12  ;;  %v1872_v54 = vadd.f32 %v11197_v49, %v1680_v17  ;;  %v11198_v57 = vld [vmem:[#allocation362_spill] sm:$0xff]  ;;  %v6324_v30 = vadd.low.f32.bf16 %v6323_v46, %v11200_v16  ;;  %v11201_v28 = vld [vmem:[#allocation244_spill] sm:$0xff]  ;;  %v11202_v19 = vld [vmem:[#allocation361_spill] sm:$0xff]  ;;  %v2349_v47 = vpop.permute.xlu0 %2348 }
 0x491   :  { %v1681_v25 = vadd.f32 %v11193_v8, %v1489_v24  ;;  %v2254_v59 = vadd.f32 %v11198_v57, %v2062_v5  ;;  %v11199_v14 = vld [vmem:[#allocation130_spill] sm:$0xff]  ;;  %v2255_v33 = vadd.f32 %v11202_v19, %v2063_v50  ;;  %v11203_v18 = vld [vmem:[#allocation131_spill] sm:$0xff]  ;;  %v6325_v12 = vadd.high.f32.bf16 %v6322_v21, %v11200_v16  ;;  %v11204_v32 = vld [vmem:[#allocation305_spill] sm:$0xff] }
 0x492   :  { %5852 = vmatprep.mubr.f32.mxu0 %v2444_v42  ;;  %v1491_v61 = vadd.f32 %v11199_v14, %v1299_v3  ;;  %v1490_v27 = vadd.f32 %v11203_v18, %v1298_v29  ;;  %v2064_v44 = vadd.f32 %v11204_v32, %v1872_v54  ;;  %v11205_v20 = vld [vmem:[#allocation133_spill] sm:$0xff]  ;;  %v11206_v38 = vld [vmem:[#allocation188_spill] sm:$0xff]  ;;  %v11210_v24 = vld [vmem:[#allocation79_spill] sm:$0xff] }
 0x493   :  { %v1873_v31 = vadd.f32 %v11201_v28, %v1681_v25  ;;  %5853 = vmatmul.mubr.f32.gmra.mrb[24].mxu0 %v2445_v37  ;;  %v2446_v39 = vadd.f32 %v2345_v4, %v2254_v59  ;;  %v1492_v52 = vadd.f32 %v6324_v30, %v11205_v20  ;;  %v11207_v60 = vld [vmem:[#allocation304_spill] sm:$0xff]  ;;  %v2447_v11 = vadd.f32 %v2347_v55, %v2255_v33  ;;  %v11208_v15 = vld [vmem:[#allocation189_spill] sm:$0xff]  ;;  %v11211_v41 = vld [vmem:[#allocation191_spill] sm:$0xff]  ;;  %v2357_v54 = vpop.permute.xlu1 %2356 }
 0x494   :  { %v1683_v46 = vadd.f32 %v11206_v38, %v1491_v61  ;;  %v1682_v56 = vadd.f32 %v11208_v15, %v1490_v27  ;;  %v11209_v48 = vld [vmem:[#allocation364_spill] sm:$0xff]  ;;  %v1302_v34 = vadd.f32 %v11210_v24, %v1110_v22  ;;  %v11212_v21 = vld [vmem:[#allocation246_spill] sm:$0xff]  ;;  %v11213_v62 = vld [vmem:[#allocation363_spill] sm:$0xff] }
 0x495   :  { %v2065_v51 = vadd.f32 %v11207_v60, %v1873_v31  ;;  %v2256_v1 = vadd.f32 %v11209_v48, %v2064_v44  ;;  %5855 = vmatprep.mubr.f32.mxu0 %v2446_v39  ;;  %v1684_v2 = vadd.f32 %v11211_v41, %v1492_v52  ;;  %v11214_v35 = vld [vmem:[#allocation247_spill] sm:$0xff]  ;;  %v11215_v5 = vld [vmem:[#allocation132_spill] sm:$0xff]  ;;  %v11217_v8 = vld [vmem:[#allocation249_spill] sm:$0xff]  ;;  %v6082_v31 = vpop.permute.xlu0 %6081 }
 0x496   :  { %v1875_v43 = vadd.f32 %v11212_v21, %v1683_v46  ;;  %v1874_v17 = vadd.f32 %v11214_v35, %v1682_v56  ;;  %v1493_v42 = vadd.f32 %v6325_v12, %v11215_v5  ;;  %v11216_v0 = vld [vmem:[#allocation135_spill] sm:$0xff]  ;;  %v6165_v50 = vld [vmem:[#allocation2 + $0x1e8] sm:$0xff]  ;;  %v11218_v22 = vld [vmem:[#allocation25_spill] sm:$0xff] }
 0x497   :  { %v2257_v58 = vadd.f32 %v11213_v62, %v2065_v51  ;;  %5856 = vmatmul.mubr.f32.gmra.mrb[26].mxu0 %v2447_v11  ;;  %v2448_v13 = vadd.f32 %v2349_v47, %v2256_v1  ;;  %v1494_v3 = vadd.f32 %v11216_v0, %v1302_v34  ;;  %v1876_v25 = vadd.f32 %v11217_v8, %v1684_v2  ;;  %v11219_v23 = vld [vmem:[#allocation78_spill] sm:$0xff]  ;;  %v11220_v63 = vld [vmem:[#allocation307_spill] sm:$0xff]  ;;  %v11221_v57 = vld [vmem:[#allocation81_spill] sm:$0xff]  ;;  %v2361_v51 = vpop.permute.xlu1 %2360 }
 0x498   :  { %v1113_v37 = vadd.f32 %v6165_v50, %v11218_v22  ;;  %v1303_v45 = vadd.f32 %v11219_v23, %v8607_v26  ;;  %v6326_v29 = vadd.high.f32.bf16 %v1875_v43, %v11220_v63  ;;  %v6327_v49 = vadd.low.f32.bf16 %v1874_v17, %v11220_v63  ;;  %v11222_v55 = vld [vmem:[#allocation190_spill] sm:$0xff]  ;;  %v11223_v61 = vld [vmem:[#allocation193_spill] sm:$0xff]  ;;  %v11226_v18 = vld [vmem:[#allocation28_spill] sm:$0xff] }
 0x499   :  { %v2449_v9 = vadd.f32 %v2351_v7, %v2257_v58  ;;  %5858 = vmatprep.mubr.f32.mxu0 %v2448_v13  ;;  %v1304_v59 = vadd.f32 %v11221_v57, %v1112_v36  ;;  %v1685_v14 = vadd.f32 %v11222_v55, %v1493_v42  ;;  %v1686_v16 = vadd.f32 %v11223_v61, %v1494_v3  ;;  %v11224_v30 = vld [vmem:[#allocation306_spill] sm:$0xff]  ;;  %v11228_v44 = vld [vmem:[#allocation137_spill] sm:$0xff]  ;;  %v11229_v36 = vld [vmem:[#allocation248_spill] sm:$0xff]  ;;  %v2359_v43 = vpop.permute.xlu0 %2358 }
 0x49a   :  { %v2068_v28 = vadd.f32 %v11224_v30, %v1876_v25  ;;  %v11225_v19 = vld [vmem:[#allocation366_spill] sm:$0xff]  ;;  %v11230_v52 = vld [vmem:[#allocation251_spill] sm:$0xff]  ;;  %v11231_v46 = vld [vmem:[#allocation365_spill] sm:$0xff] }
 0x49b   :  { %5859 = vmatmul.mubr.f32.gmra.mrb[28].mxu0 %v2449_v9  ;;  %v6328_v33 = vadd.low.f32.bf16 %v6327_v49, %v11225_v19  ;;  %v6329_v26 = vadd.high.f32.bf16 %v6326_v29, %v11225_v19  ;;  %v6166_v4 = vld [vmem:[#allocation2 + $0x1f8] sm:$0xff]  ;;  %v1496_v39 = vadd.f32 %v11228_v44, %v1304_v59  ;;  %v1877_v20 = vadd.f32 %v11229_v36, %v1685_v14  ;;  %v6167_v56 = vld [vmem:[#allocation2 + $0x200] sm:$0xff]  ;;  %v11233_v7 = vld [vmem:[#allocation80_spill] sm:$0xff]  ;;  %v2365_v14 = vpop.permute.xlu1 %2364 }
 0x49c   :  { %v1114_v27 = vadd.f32 %v6166_v4, %v11226_v18  ;;  %v11227_v12 = vld [vmem:[#allocation134_spill] sm:$0xff]  ;;  %v1878_v38 = vadd.f32 %v11230_v52, %v1686_v16  ;;  %v2260_v60 = vadd.f32 %v11231_v46, %v2068_v28  ;;  %v11232_v48 = vld [vmem:[#allocation27_spill] sm:$0xff]  ;;  %v1305_v24 = vadd.f32 %v11233_v7, %v1113_v37  ;;  %v11234_v34 = vld [vmem:[#allocation192_spill] sm:$0xff] }
 0x49d   :  { %v1495_v32 = vadd.f32 %v11227_v12, %v1303_v45  ;;  %v6330_v11 = vadd.low.f32.bf16 %v6328_v33, %v6082_v31  ;;  %v6331_v15 = vadd.high.f32.bf16 %v6329_v26, %v6082_v31  ;;  %v1115_v1 = vadd.f32 %v6167_v56, %v11232_v48  ;;  %v11235_v2 = vld [vmem:[#allocation309_spill] sm:$0xff]  ;;  %v11236_v62 = vld [vmem:[#allocation83_spill] sm:$0xff]  ;;  %v11238_v17 = vld [vmem:[#allocation308_spill] sm:$0xff]  ;;  %v2363_v26 = vpop.permute.xlu0 %2362 }
 0x49e   :  { %v2069_v21 = vadd.f32 %v11235_v2, %v1877_v20  ;;  %v1306_v58 = vadd.f32 %v11236_v62, %v1114_v27  ;;  %v11237_v47 = vld [vmem:[#allocation195_spill] sm:$0xff]  ;;  %v2070_v13 = vadd.f32 %v11238_v17, %v1878_v38  ;;  %v2452_v5 = vadd.f32 %v2357_v54, %v2260_v60  ;;  %v6168_v42 = vld [vmem:[#allocation2 + $0x218] sm:$0xff]  ;;  %v11239_v0 = vld [vmem:[#allocation29_spill] sm:$0xff] }
 0x49f   :  { %v1687_v41 = vadd.f32 %v11234_v34, %v1495_v32  ;;  %v1688_v35 = vadd.f32 %v11237_v47, %v1496_v39  ;;  %5861 = vmatprep.mubr.f32.mxu0 %v6330_v11  ;;  %v1117_v3 = vadd.f32 %v6168_v42, %v11239_v0  ;;  %v11240_v8 = vld [vmem:[#allocation136_spill] sm:$0xff]  ;;  %v11241_v9 = vld [vmem:[#allocation250_spill] sm:$0xff]  ;;  %v6169_v23 = vld [vmem:[#allocation2 + $0x210] sm:$0xff] }
 0x4a0   :  { %v1497_v25 = vadd.f32 %v11240_v8, %v1305_v24  ;;  %v11242_v22 = vld [vmem:[#allocation368_spill] sm:$0xff]  ;;  %5862 = vmatmul.mubr.f32.gmra.mrb[30].mxu0 %v6331_v15  ;;  %v11243_v45 = vld [vmem:[#allocation30_spill] sm:$0xff]  ;;  %v11244_v29 = vld [vmem:[#allocation139_spill] sm:$0xff] }
 0x4a1   :  { %v1879_v50 = vadd.f32 %v11241_v9, %v1687_v41  ;;  %v2261_v37 = vadd.f32 %v11242_v22, %v2069_v21  ;;  %v1116_v63 = vadd.f32 %v6169_v23, %v11243_v45  ;;  %v1498_v49 = vadd.f32 %v11244_v29, %v1306_v58  ;;  %v11245_v57 = vld [vmem:[#allocation253_spill] sm:$0xff]  ;;  %v11246_v55 = vld [vmem:[#allocation367_spill] sm:$0xff]  ;;  %5864 = vmatprep.mubr.f32.mxu0 %v2452_v5  ;;  %v11247_v61 = vld [vmem:[#allocation82_spill] sm:$0xff]  ;;  %v2367_v42 = vpop.permute.xlu0 %2366 }
 0x4a2   :  { %v1880_v59 = vadd.f32 %v11245_v57, %v1688_v35  ;;  %v2262_v54 = vadd.f32 %v11246_v55, %v2070_v13  ;;  %v1307_v16 = vadd.f32 %v11247_v61, %v1115_v1  ;;  %v11248_v30 = vld [vmem:[#allocation194_spill] sm:$0xff]  ;;  %v11249_v31 = vld [vmem:[#allocation311_spill] sm:$0xff]  ;;  %v11250_v4 = vld [vmem:[#allocation85_spill] sm:$0xff] }
 0x4a3   :  { %v1689_v28 = vadd.f32 %v11248_v30, %v1497_v25  ;;  %v2071_v19 = vadd.f32 %v11249_v31, %v1879_v50  ;;  %v2453_v33 = vadd.f32 %v2359_v43, %v2261_v37  ;;  %v1308_v18 = vadd.f32 %v11250_v4, %v1116_v63  ;;  %v11251_v27 = vld [vmem:[#allocation197_spill] sm:$0xff]  ;;  %v11252_v32 = vld [vmem:[#allocation310_spill] sm:$0xff]  ;;  %v11253_v20 = vld [vmem:[#allocation31_spill] sm:$0xff] }
 0x4a4   :  { %v1690_v12 = vadd.f32 %v11251_v27, %v1498_v49  ;;  %v2072_v44 = vadd.f32 %v11252_v32, %v1880_v59  ;;  %v2454_v39 = vadd.f32 %v2361_v51, %v2262_v54  ;;  %v6170_v36 = vld [vmem:[#allocation2 + $0x230] sm:$0xff]  ;;  %v11254_v38 = vld [vmem:[#allocation138_spill] sm:$0xff]  ;;  %v11255_v60 = vld [vmem:[#allocation252_spill] sm:$0xff]  ;;  %v2369_v51 = vpop.permute.xlu1 %2368 }
 0x4a5   :  { %v1119_v52 = vadd.f32 %v6170_v36, %v11253_v20  ;;  %v1499_v46 = vadd.f32 %v11254_v38, %v1307_v16  ;;  %v1881_v11 = vadd.f32 %v11255_v60, %v1689_v28  ;;  %v11256_v15 = vld [vmem:[#allocation370_spill] sm:$0xff]  ;;  %5865 = vmatmul.mubr.f32.gmra.mrb[32].mxu0 %v2453_v33  ;;  %v6171_v48 = vld [vmem:[#allocation2 + $0x228] sm:$0xff]  ;;  %v11258_v24 = vld [vmem:[#allocation141_spill] sm:$0xff]  ;;  %v2371_v36 = vpop.permute.xlu0 %2370 }
 0x4a6   :  { %v2263_v56 = vadd.f32 %v11256_v15, %v2071_v19  ;;  %v11257_v1 = vld [vmem:[#allocation32_spill] sm:$0xff]  ;;  %v1500_v34 = vadd.f32 %v11258_v24, %v1308_v18  ;;  %v11259_v41 = vld [vmem:[#allocation255_spill] sm:$0xff]  ;;  %v11260_v21 = vld [vmem:[#allocation369_spill] sm:$0xff]  ;;  %5867 = vmatprep.mubr.f32.mxu0 %v2454_v39 }
 0x4a7   :  { %v1118_v7 = vadd.f32 %v6171_v48, %v11257_v1  ;;  %v1882_v2 = vadd.f32 %v11259_v41, %v1690_v12  ;;  %v2264_v43 = vadd.f32 %v11260_v21, %v2072_v44  ;;  %v11261_v62 = vld [vmem:[#allocation84_spill] sm:$0xff]  ;;  %v11263_v17 = vld [vmem:[#allocation313_spill] sm:$0xff]  ;;  %v11264_v0 = vld [vmem:[#allocation87_spill] sm:$0xff] }
 0x4a8   :  { %v1309_v58 = vadd.f32 %v11261_v62, %v1117_v3  ;;  %v11262_v47 = vld [vmem:[#allocation196_spill] sm:$0xff]  ;;  %v2073_v13 = vadd.f32 %v11263_v17, %v1881_v11  ;;  %v2455_v5 = vadd.f32 %v2363_v26, %v2263_v56  ;;  %v11265_v25 = vld [vmem:[#allocation199_spill] sm:$0xff]  ;;  %v11267_v45 = vld [vmem:[#allocation33_spill] sm:$0xff] }
 0x4a9   :  { %v1691_v35 = vadd.f32 %v11262_v47, %v1499_v46  ;;  %v1310_v8 = vadd.f32 %v11264_v0, %v1118_v7  ;;  %v1692_v9 = vadd.f32 %v11265_v25, %v1500_v34  ;;  %v11266_v50 = vld [vmem:[#allocation312_spill] sm:$0xff]  ;;  %v2456_v37 = vadd.f32 %v2365_v14, %v2264_v43  ;;  %v11269_v57 = vld [vmem:[#allocation254_spill] sm:$0xff]  ;;  %v6173_v54 = vld [vmem:[#allocation2 + $0x240] sm:$0xff]  ;;  %v2373_v14 = vpop.permute.xlu1 %2372 }
 0x4aa   :  { %v2074_v22 = vadd.f32 %v11266_v50, %v1882_v2  ;;  %v6172_v23 = vld [vmem:[#allocation2 + $0x248] sm:$0xff]  ;;  %5868 = vmatmul.mubr.f32.gmra.mrb[34].mxu0 %v2455_v5  ;;  %v11271_v61 = vld [vmem:[#allocation34_spill] sm:$0xff]  ;;  %v11272_v30 = vld [vmem:[#allocation143_spill] sm:$0xff] }
 0x4ab   :  { %v1121_v63 = vadd.f32 %v6172_v23, %v11267_v45  ;;  %v11268_v29 = vld [vmem:[#allocation140_spill] sm:$0xff]  ;;  %v1883_v3 = vadd.f32 %v11269_v57, %v1691_v35  ;;  %v1120_v16 = vadd.f32 %v6173_v54, %v11271_v61  ;;  %v1502_v28 = vadd.f32 %v11272_v30, %v1310_v8  ;;  %v11273_v31 = vld [vmem:[#allocation257_spill] sm:$0xff]  ;;  %v11274_v33 = vld [vmem:[#allocation371_spill] sm:$0xff]  ;;  %5870 = vmatprep.mubr.f32.mxu0 %v2456_v37  ;;  %v2375_v23 = vpop.permute.xlu0 %2374 }
 0x4ac   :  { %v1501_v49 = vadd.f32 %v11268_v29, %v1309_v58  ;;  %v11270_v59 = vld [vmem:[#allocation372_spill] sm:$0xff]  ;;  %v1884_v19 = vadd.f32 %v11273_v31, %v1692_v9  ;;  %v2266_v26 = vadd.f32 %v11274_v33, %v2074_v22  ;;  %v11275_v4 = vld [vmem:[#allocation86_spill] sm:$0xff]  ;;  %v11277_v32 = vld [vmem:[#allocation315_spill] sm:$0xff] }
 0x4ad   :  { %v2265_v55 = vadd.f32 %v11270_v59, %v2073_v13  ;;  %v1311_v18 = vadd.f32 %v11275_v4, %v1119_v52  ;;  %v11276_v27 = vld [vmem:[#allocation198_spill] sm:$0xff]  ;;  %v2075_v44 = vadd.f32 %v11277_v32, %v1883_v3  ;;  %v11278_v20 = vld [vmem:[#allocation89_spill] sm:$0xff]  ;;  %v6174_v48 = vld [vmem:[#allocation2 + $0x260] sm:$0xff] }
 0x4ae   :  { %v1693_v12 = vadd.f32 %v11276_v27, %v1501_v49  ;;  %v1312_v38 = vadd.f32 %v11278_v20, %v1120_v16  ;;  %v11279_v46 = vld [vmem:[#allocation201_spill] sm:$0xff]  ;;  %v11280_v11 = vld [vmem:[#allocation314_spill] sm:$0xff]  ;;  %v2458_v56 = vadd.f32 %v2369_v51, %v2266_v26  ;;  %v11281_v1 = vld [vmem:[#allocation35_spill] sm:$0xff]  ;;  %v2377_v51 = vpop.permute.xlu1 %2376 }
 0x4af   :  { %v2457_v39 = vadd.f32 %v2367_v42, %v2265_v55  ;;  %v1694_v60 = vadd.f32 %v11279_v46, %v1502_v28  ;;  %v2076_v15 = vadd.f32 %v11280_v11, %v1884_v19  ;;  %v1123_v7 = vadd.f32 %v6174_v48, %v11281_v1  ;;  %v11282_v24 = vld [vmem:[#allocation142_spill] sm:$0xff]  ;;  %v11283_v41 = vld [vmem:[#allocation256_spill] sm:$0xff]  ;;  %v11286_v47 = vld [vmem:[#allocation145_spill] sm:$0xff]  ;;  %v2379_v48 = vpop.permute.xlu0 %2378 }
 0x4b0   :  { %v1503_v34 = vadd.f32 %v11282_v24, %v1311_v18  ;;  %v1885_v52 = vadd.f32 %v11283_v41, %v1693_v12  ;;  %v11284_v2 = vld [vmem:[#allocation374_spill] sm:$0xff]  ;;  %v11285_v62 = vld [vmem:[#allocation36_spill] sm:$0xff]  ;;  %v1504_v35 = vadd.f32 %v11286_v47, %v1312_v38  ;;  %v11287_v17 = vld [vmem:[#allocation259_spill] sm:$0xff] }
 0x4b1   :  { %v2267_v21 = vadd.f32 %v11284_v2, %v2075_v44  ;;  %5871 = vmatmul.mubr.f32.gmra.mrb[36].mxu0 %v2457_v39  ;;  %v6175_v43 = vld [vmem:[#allocation2 + $0x258] sm:$0xff]  ;;  %v1886_v13 = vadd.f32 %v11287_v17, %v1694_v60  ;;  %v11288_v5 = vld [vmem:[#allocation373_spill] sm:$0xff]  ;;  %v11289_v0 = vld [vmem:[#allocation88_spill] sm:$0xff] }
 0x4b2   :  { %v1122_v58 = vadd.f32 %v6175_v43, %v11285_v62  ;;  %v2268_v42 = vadd.f32 %v11288_v5, %v2076_v15  ;;  %5873 = vmatprep.mubr.f32.mxu0 %v2458_v56  ;;  %v1313_v8 = vadd.f32 %v11289_v0, %v1121_v63  ;;  %v11290_v25 = vld [vmem:[#allocation200_spill] sm:$0xff]  ;;  %v11291_v50 = vld [vmem:[#allocation317_spill] sm:$0xff]  ;;  %v11292_v45 = vld [vmem:[#allocation91_spill] sm:$0xff] }
 0x4b3   :  { %v1695_v9 = vadd.f32 %v11290_v25, %v1503_v34  ;;  %v2077_v22 = vadd.f32 %v11291_v50, %v1885_v52  ;;  %v2459_v37 = vadd.f32 %v2371_v36, %v2267_v21  ;;  %v11293_v49 = vld [vmem:[#allocation203_spill] sm:$0xff]  ;;  %v11294_v3 = vld [vmem:[#allocation316_spill] sm:$0xff]  ;;  %v6176_v54 = vld [vmem:[#allocation2 + $0x278] sm:$0xff] }
 0x4b4   :  { %v1314_v29 = vadd.f32 %v11292_v45, %v1122_v58  ;;  %v1696_v57 = vadd.f32 %v11293_v49, %v1504_v35  ;;  %v2078_v59 = vadd.f32 %v11294_v3, %v1886_v13  ;;  %v2460_v55 = vadd.f32 %v2373_v14, %v2268_v42  ;;  %v11295_v61 = vld [vmem:[#allocation37_spill] sm:$0xff]  ;;  %v11296_v30 = vld [vmem:[#allocation144_spill] sm:$0xff]  ;;  %v11297_v31 = vld [vmem:[#allocation258_spill] sm:$0xff]  ;;  %v2381_v14 = vpop.permute.xlu1 %2380 }
 0x4b5   :  { %v1125_v16 = vadd.f32 %v6176_v54, %v11295_v61  ;;  %v1505_v28 = vadd.f32 %v11296_v30, %v1313_v8  ;;  %v1887_v63 = vadd.f32 %v11297_v31, %v1695_v9  ;;  %v11298_v19 = vld [vmem:[#allocation376_spill] sm:$0xff]  ;;  %5874 = vmatmul.mubr.f32.gmra.mrb[38].mxu0 %v2459_v37  ;;  %v6177_v26 = vld [vmem:[#allocation2 + $0x270] sm:$0xff]  ;;  %v11299_v4 = vld [vmem:[#allocation38_spill] sm:$0xff]  ;;  %v2383_v54 = vpop.permute.xlu0 %2382 }
 0x4b6   :  { %v2269_v33 = vadd.f32 %v11298_v19, %v2077_v22  ;;  %v1124_v18 = vadd.f32 %v6177_v26, %v11299_v4  ;;  %v11300_v27 = vld [vmem:[#allocation147_spill] sm:$0xff]  ;;  %v11301_v32 = vld [vmem:[#allocation261_spill] sm:$0xff]  ;;  %5876 = vmatprep.mubr.f32.mxu0 %v2460_v55  ;;  %v11303_v20 = vld [vmem:[#allocation90_spill] sm:$0xff] }
 0x4b7   :  { %v1506_v12 = vadd.f32 %v11300_v27, %v1314_v29  ;;  %v1888_v44 = vadd.f32 %v11301_v32, %v1696_v57  ;;  %v11302_v39 = vld [vmem:[#allocation375_spill] sm:$0xff]  ;;  %v1315_v38 = vadd.f32 %v11303_v20, %v1123_v7  ;;  %v11304_v46 = vld [vmem:[#allocation202_spill] sm:$0xff]  ;;  %v11306_v1 = vld [vmem:[#allocation93_spill] sm:$0xff] }
 0x4b8   :  { %v2270_v36 = vadd.f32 %v11302_v39, %v2078_v59  ;;  %v1697_v60 = vadd.f32 %v11304_v46, %v1505_v28  ;;  %v11305_v11 = vld [vmem:[#allocation319_spill] sm:$0xff]  ;;  %v2461_v56 = vadd.f32 %v2375_v23, %v2269_v33  ;;  %v1316_v24 = vadd.f32 %v11306_v1, %v1124_v18  ;;  %v11307_v34 = vld [vmem:[#allocation205_spill] sm:$0xff]  ;;  %v11308_v52 = vld [vmem:[#allocation318_spill] sm:$0xff] }
 0x4b9   :  { %v2079_v15 = vadd.f32 %v11305_v11, %v1887_v63  ;;  %v1698_v41 = vadd.f32 %v11307_v34, %v1506_v12  ;;  %v2080_v2 = vadd.f32 %v11308_v52, %v1888_v44  ;;  %v3085_v43 = vld [vmem:[#allocation3 + $0x1] sm:$0xff]  ;;  %v3086_v62 = vld [vmem:[#allocation3 + $0x9] sm:$0xff]  ;;  %v11309_v58 = vld [vmem:[#allocation146_spill] sm:$0xff] }
 0x4ba   :  { %v2462_v21 = vadd.f32 %v2377_v51, %v2270_v36  ;;  %v1507_v47 = vadd.f32 %v11309_v58, %v1315_v38  ;;  %v11310_v35 = vld [vmem:[#allocation260_spill] sm:$0xff]  ;;  %v11311_v7 = vld [vmem:[#allocation378_spill] sm:$0xff]  ;;  %5877 = vmatmul.mubr.f32.gmra.mrb[40].mxu0 %v2461_v56  ;;  %v6090_v5 = vpack.i.bf16 %v3086_v62, %v3085_v43  ;;  %v11313_v25 = vld [vmem:[#allocation149_spill] sm:$0xff]  ;;  %v2385_v51 = vpop.permute.xlu1 %2384  ;;  %v2387_v43 = vpop.permute.xlu0 %2386 }
 0x4bb   :  { %v1889_v17 = vadd.f32 %v11310_v35, %v1697_v60  ;;  %v2271_v13 = vadd.f32 %v11311_v7, %v2079_v15  ;;  %v6178_v42 = vld [vmem:[#allocation2 + $0x288] sm:$0xff]  ;;  %v1508_v9 = vadd.f32 %v11313_v25, %v1316_v24  ;;  %v11314_v50 = vld [vmem:[#allocation263_spill] sm:$0xff]  ;;  %v11315_v37 = vld [vmem:[#allocation377_spill] sm:$0xff] }
 0x4bc   :  { %v11312_v0 = vld [vmem:[#allocation40_spill] sm:$0xff]  ;;  %v1890_v22 = vadd.f32 %v11314_v50, %v1698_v41  ;;  %v2272_v23 = vadd.f32 %v11315_v37, %v2080_v2  ;;  %5879 = vmatprep.mubr.f32.mxu0 %v2462_v21  ;;  %v11318_v3 = vld [vmem:[#allocation321_spill] sm:$0xff]  ;;  %6091 = vrot.lane.b32.xlu0 %v6090_v5, %s6380_s16  ;;  %v11319_v61 = vld [vmem:[#allocation95_spill] sm:$0xff] }
 0x4bd   :  { %v1126_v8 = vadd.f32 %v6178_v42, %v11312_v0  ;;  %v11316_v45 = vld [vmem:[#allocation92_spill] sm:$0xff]  ;;  %v2081_v59 = vadd.f32 %v11318_v3, %v1889_v17  ;;  %v2463_v55 = vadd.f32 %v2379_v48, %v2271_v13  ;;  %v11320_v28 = vld [vmem:[#allocation207_spill] sm:$0xff]  ;;  %v6179_v26 = vld [vmem:[#allocation2 + $0x290] sm:$0xff] }
 0x4be   :  { %v1317_v29 = vadd.f32 %v11316_v45, %v1125_v16  ;;  %v11317_v49 = vld [vmem:[#allocation204_spill] sm:$0xff]  ;;  %v1700_v31 = vadd.f32 %v11320_v28, %v1508_v9  ;;  %v2464_v33 = vadd.f32 %v2381_v14, %v2272_v23  ;;  %v11322_v4 = vld [vmem:[#allocation39_spill] sm:$0xff]  ;;  %v11324_v12 = vld [vmem:[#allocation262_spill] sm:$0xff]  ;;  %v2389_v14 = vpop.permute.xlu1 %2388 }
 0x4bf   :  { %v1699_v57 = vadd.f32 %v11317_v49, %v1507_v47  ;;  %v1318_v30 = vadd.f32 %v11319_v61, %v1126_v8  ;;  %v11321_v63 = vld [vmem:[#allocation320_spill] sm:$0xff]  ;;  %v1127_v18 = vadd.f32 %v6179_v26, %v11322_v4  ;;  %5880 = vmatmul.mubr.f32.gmra.mrb[42].mxu0 %v2463_v55  ;;  %v6180_v36 = vld [vmem:[#allocation2 + $0x2a0] sm:$0xff]  ;;  %v11326_v20 = vld [vmem:[#allocation42_spill] sm:$0xff]  ;;  %v2391_v26 = vpop.permute.xlu0 %2390 }
 0x4c0   :  { %v2082_v19 = vadd.f32 %v11321_v63, %v1890_v22  ;;  %v11323_v27 = vld [vmem:[#allocation148_spill] sm:$0xff]  ;;  %v1128_v38 = vadd.f32 %v6180_v36, %v11326_v20  ;;  %v11327_v46 = vld [vmem:[#allocation151_spill] sm:$0xff]  ;;  %v11328_v11 = vld [vmem:[#allocation265_spill] sm:$0xff]  ;;  %5882 = vmatprep.mubr.f32.mxu0 %v2464_v33 }
 0x4c1   :  { %v1509_v16 = vadd.f32 %v11323_v27, %v1317_v29  ;;  %v1891_v32 = vadd.f32 %v11324_v12, %v1699_v57  ;;  %v11325_v44 = vld [vmem:[#allocation380_spill] sm:$0xff]  ;;  %v1510_v60 = vadd.f32 %v11327_v46, %v1318_v30  ;;  %v1892_v15 = vadd.f32 %v11328_v11, %v1700_v31  ;;  %v11329_v56 = vld [vmem:[#allocation379_spill] sm:$0xff]  ;;  %v11330_v1 = vld [vmem:[#allocation94_spill] sm:$0xff] }
 0x4c2   :  { %v2273_v39 = vadd.f32 %v11325_v44, %v2081_v59  ;;  %v2274_v48 = vadd.f32 %v11329_v56, %v2082_v19  ;;  %v1319_v24 = vadd.f32 %v11330_v1, %v1127_v18  ;;  %v11331_v34 = vld [vmem:[#allocation206_spill] sm:$0xff]  ;;  %v11332_v52 = vld [vmem:[#allocation323_spill] sm:$0xff]  ;;  %v11333_v62 = vld [vmem:[#allocation97_spill] sm:$0xff] }
 0x4c3   :  { %v1701_v41 = vadd.f32 %v11331_v34, %v1509_v16  ;;  %v2083_v2 = vadd.f32 %v11332_v52, %v1891_v32  ;;  %v1320_v58 = vadd.f32 %v11333_v62, %v1128_v38  ;;  %v11334_v47 = vld [vmem:[#allocation209_spill] sm:$0xff]  ;;  %v11335_v17 = vld [vmem:[#allocation322_spill] sm:$0xff]  ;;  %v6181_v5 = vld [vmem:[#allocation2 + $0x2a8] sm:$0xff] }
 0x4c4   :  { %v2465_v21 = vadd.f32 %v2383_v54, %v2273_v39  ;;  %v1702_v35 = vadd.f32 %v11334_v47, %v1510_v60  ;;  %v2084_v7 = vadd.f32 %v11335_v17, %v1892_v15  ;;  %v2466_v13 = vadd.f32 %v2385_v51, %v2274_v48  ;;  %v11336_v42 = vld [vmem:[#allocation41_spill] sm:$0xff]  ;;  %v11337_v8 = vld [vmem:[#allocation150_spill] sm:$0xff]  ;;  %v11338_v9 = vld [vmem:[#allocation264_spill] sm:$0xff]  ;;  %v2393_v51 = vpop.permute.xlu1 %2392 }
 0x4c5   :  { %v1129_v0 = vadd.f32 %v6181_v5, %v11336_v42  ;;  %v1511_v25 = vadd.f32 %v11337_v8, %v1319_v24  ;;  %v1893_v50 = vadd.f32 %v11338_v9, %v1701_v41  ;;  %v11339_v22 = vld [vmem:[#allocation382_spill] sm:$0xff]  ;;  %v11340_v45 = vld [vmem:[#allocation44_spill] sm:$0xff]  ;;  %v11341_v49 = vld [vmem:[#allocation153_spill] sm:$0xff]  ;;  %v2395_v5 = vpop.permute.xlu0 %2394 }
 0x4c6   :  { %v2275_v37 = vadd.f32 %v11339_v22, %v2083_v2  ;;  %5883 = vmatmul.mubr.f32.gmra.mrb[44].mxu0 %v2465_v21  ;;  %v6182_v23 = vld [vmem:[#allocation2 + $0x2b8] sm:$0xff]  ;;  %v1512_v57 = vadd.f32 %v11341_v49, %v1320_v58  ;;  %v11342_v3 = vld [vmem:[#allocation267_spill] sm:$0xff]  ;;  %v11343_v55 = vld [vmem:[#allocation381_spill] sm:$0xff] }
 0x4c7   :  { %v1130_v29 = vadd.f32 %v6182_v23, %v11340_v45  ;;  %v1894_v59 = vadd.f32 %v11342_v3, %v1702_v35  ;;  %v2276_v54 = vadd.f32 %v11343_v55, %v2084_v7  ;;  %5885 = vmatprep.mubr.f32.mxu0 %v2466_v13  ;;  %v11344_v61 = vld [vmem:[#allocation96_spill] sm:$0xff]  ;;  %v11346_v63 = vld [vmem:[#allocation325_spill] sm:$0xff]  ;;  %v11347_v4 = vld [vmem:[#allocation99_spill] sm:$0xff] }
 0x4c8   :  { %v1321_v30 = vadd.f32 %v11344_v61, %v1129_v0  ;;  %v11345_v28 = vld [vmem:[#allocation208_spill] sm:$0xff]  ;;  %v2085_v19 = vadd.f32 %v11346_v63, %v1893_v50  ;;  %v2467_v33 = vadd.f32 %v2387_v43, %v2275_v37  ;;  %v11348_v27 = vld [vmem:[#allocation211_spill] sm:$0xff]  ;;  %v11352_v60 = vld [vmem:[#allocation266_spill] sm:$0xff] }
 0x4c9   :  { %v1703_v31 = vadd.f32 %v11345_v28, %v1511_v25  ;;  %v1322_v18 = vadd.f32 %v11347_v4, %v1130_v29  ;;  %v1704_v16 = vadd.f32 %v11348_v27, %v1512_v57  ;;  %v11349_v12 = vld [vmem:[#allocation324_spill] sm:$0xff]  ;;  %v2468_v44 = vadd.f32 %v2389_v14, %v2276_v54  ;;  %v6183_v39 = vld [vmem:[#allocation2 + $0x2c0] sm:$0xff]  ;;  %v6184_v48 = vld [vmem:[#allocation2 + $0x2d0] sm:$0xff]  ;;  %v2397_v14 = vpop.permute.xlu1 %2396 }
 0x4ca   :  { %v2086_v32 = vadd.f32 %v11349_v12, %v1894_v59  ;;  %v11350_v36 = vld [vmem:[#allocation43_spill] sm:$0xff]  ;;  %v11351_v38 = vld [vmem:[#allocation152_spill] sm:$0xff]  ;;  %5886 = vmatmul.mubr.f32.gmra.mrb[46].mxu0 %v2467_v33  ;;  %v11354_v1 = vld [vmem:[#allocation46_spill] sm:$0xff] }
 0x4cb   :  { %v1131_v20 = vadd.f32 %v6183_v39, %v11350_v36  ;;  %v1513_v46 = vadd.f32 %v11351_v38, %v1321_v30  ;;  %v1895_v11 = vadd.f32 %v11352_v60, %v1703_v31  ;;  %v11353_v15 = vld [vmem:[#allocation384_spill] sm:$0xff]  ;;  %v1132_v24 = vadd.f32 %v6184_v48, %v11354_v1  ;;  %v11355_v34 = vld [vmem:[#allocation155_spill] sm:$0xff]  ;;  %v11356_v52 = vld [vmem:[#allocation269_spill] sm:$0xff]  ;;  %5888 = vmatprep.mubr.f32.mxu0 %v2468_v44  ;;  %v2399_v39 = vpop.permute.xlu0 %2398 }
 0x4cc   :  { %v2277_v56 = vadd.f32 %v11353_v15, %v2085_v19  ;;  %v1514_v41 = vadd.f32 %v11355_v34, %v1322_v18  ;;  %v1896_v2 = vadd.f32 %v11356_v52, %v1704_v16  ;;  %v11357_v21 = vld [vmem:[#allocation383_spill] sm:$0xff]  ;;  %v11358_v62 = vld [vmem:[#allocation98_spill] sm:$0xff]  ;;  %v11361_v42 = vld [vmem:[#allocation101_spill] sm:$0xff] }
 0x4cd   :  { %v2278_v43 = vadd.f32 %v11357_v21, %v2086_v32  ;;  %v1323_v58 = vadd.f32 %v11358_v62, %v1131_v20  ;;  %v11359_v47 = vld [vmem:[#allocation210_spill] sm:$0xff]  ;;  %v11360_v17 = vld [vmem:[#allocation327_spill] sm:$0xff]  ;;  %v1324_v0 = vadd.f32 %v11361_v42, %v1132_v24  ;;  %v11362_v8 = vld [vmem:[#allocation213_spill] sm:$0xff] }
 0x4ce   :  { %v1705_v35 = vadd.f32 %v11359_v47, %v1513_v46  ;;  %v2087_v7 = vadd.f32 %v11360_v17, %v1895_v11  ;;  %v2469_v13 = vadd.f32 %v2391_v26, %v2277_v56  ;;  %v1706_v25 = vadd.f32 %v11362_v8, %v1514_v41  ;;  %v11363_v9 = vld [vmem:[#allocation326_spill] sm:$0xff]  ;;  %v11364_v23 = vld [vmem:[#allocation45_spill] sm:$0xff]  ;;  %v11366_v57 = vld [vmem:[#allocation268_spill] sm:$0xff] }
 0x4cf   :  { %v2088_v50 = vadd.f32 %v11363_v9, %v1896_v2  ;;  %v2470_v22 = vadd.f32 %v2393_v51, %v2278_v43  ;;  %v6185_v37 = vld [vmem:[#allocation2 + $0x2d8] sm:$0xff]  ;;  %v6186_v54 = vld [vmem:[#allocation2 + $0x2e8] sm:$0xff]  ;;  %v11369_v28 = vld [vmem:[#allocation157_spill] sm:$0xff]  ;;  %v2401_v51 = vpop.permute.xlu1 %2400 }
 0x4d0   :  { %v1133_v45 = vadd.f32 %v6185_v37, %v11364_v23  ;;  %v11365_v29 = vld [vmem:[#allocation154_spill] sm:$0xff]  ;;  %v1897_v3 = vadd.f32 %v11366_v57, %v1705_v35  ;;  %5889 = vmatmul.mubr.f32.gmra.mrb[48].mxu0 %v2469_v13  ;;  %v11368_v61 = vld [vmem:[#allocation48_spill] sm:$0xff]  ;;  %v1516_v31 = vadd.f32 %v11369_v28, %v1324_v0  ;;  %v11370_v63 = vld [vmem:[#allocation271_spill] sm:$0xff]  ;;  %v2403_v37 = vpop.permute.xlu0 %2402 }
 0x4d1   :  { %v1515_v49 = vadd.f32 %v11365_v29, %v1323_v58  ;;  %v11367_v59 = vld [vmem:[#allocation386_spill] sm:$0xff]  ;;  %v1134_v30 = vadd.f32 %v6186_v54, %v11368_v61  ;;  %v1898_v19 = vadd.f32 %v11370_v63, %v1706_v25  ;;  %v11371_v33 = vld [vmem:[#allocation385_spill] sm:$0xff]  ;;  %5891 = vmatprep.mubr.f32.mxu0 %v2470_v22  ;;  %v11372_v4 = vld [vmem:[#allocation100_spill] sm:$0xff] }
 0x4d2   :  { %v2279_v55 = vadd.f32 %v11367_v59, %v2087_v7  ;;  %v2280_v26 = vadd.f32 %v11371_v33, %v2088_v50  ;;  %v1325_v18 = vadd.f32 %v11372_v4, %v1133_v45  ;;  %v11373_v27 = vld [vmem:[#allocation212_spill] sm:$0xff]  ;;  %v11374_v12 = vld [vmem:[#allocation329_spill] sm:$0xff]  ;;  %v11375_v36 = vld [vmem:[#allocation103_spill] sm:$0xff] }
 0x4d3   :  { %v1707_v16 = vadd.f32 %v11373_v27, %v1515_v49  ;;  %v2089_v32 = vadd.f32 %v11374_v12, %v1897_v3  ;;  %v1326_v20 = vadd.f32 %v11375_v36, %v1134_v30  ;;  %v11376_v38 = vld [vmem:[#allocation215_spill] sm:$0xff]  ;;  %v11377_v60 = vld [vmem:[#allocation328_spill] sm:$0xff]  ;;  %v6187_v56 = vld [vmem:[#allocation2 + $0x2f0] sm:$0xff] }
 0x4d4   :  { %v2471_v44 = vadd.f32 %v2395_v5, %v2279_v55  ;;  %v1708_v46 = vadd.f32 %v11376_v38, %v1516_v31  ;;  %v2090_v11 = vadd.f32 %v11377_v60, %v1898_v19  ;;  %v2472_v15 = vadd.f32 %v2397_v14, %v2280_v26  ;;  %v11378_v48 = vld [vmem:[#allocation47_spill] sm:$0xff]  ;;  %v11379_v24 = vld [vmem:[#allocation156_spill] sm:$0xff]  ;;  %v11380_v41 = vld [vmem:[#allocation270_spill] sm:$0xff]  ;;  %v2405_v14 = vpop.permute.xlu1 %2404 }
 0x4d5   :  { %v1135_v1 = vadd.f32 %v6187_v56, %v11378_v48  ;;  %v1517_v34 = vadd.f32 %v11379_v24, %v1325_v18  ;;  %v1899_v52 = vadd.f32 %v11380_v41, %v1707_v16  ;;  %v11381_v2 = vld [vmem:[#allocation388_spill] sm:$0xff]  ;;  %v6188_v43 = vld [vmem:[#allocation2 + $0x300] sm:$0xff]  ;;  %v11382_v62 = vld [vmem:[#allocation50_spill] sm:$0xff]  ;;  %v2407_v56 = vpop.permute.xlu0 %2406 }
 0x4d6   :  { %v2281_v21 = vadd.f32 %v11381_v2, %v2089_v32  ;;  %5892 = vmatmul.mubr.f32.gmra.mrb[50].mxu0 %v2471_v44  ;;  %v1136_v58 = vadd.f32 %v6188_v43, %v11382_v62  ;;  %v11383_v47 = vld [vmem:[#allocation159_spill] sm:$0xff]  ;;  %v11384_v17 = vld [vmem:[#allocation273_spill] sm:$0xff]  ;;  %v11386_v42 = vld [vmem:[#allocation102_spill] sm:$0xff] }
 0x4d7   :  { %v1518_v35 = vadd.f32 %v11383_v47, %v1326_v20  ;;  %v1900_v7 = vadd.f32 %v11384_v17, %v1708_v46  ;;  %v11385_v13 = vld [vmem:[#allocation387_spill] sm:$0xff]  ;;  %5894 = vmatprep.mubr.f32.mxu0 %v2472_v15  ;;  %v1327_v0 = vadd.f32 %v11386_v42, %v1135_v1  ;;  %v11387_v8 = vld [vmem:[#allocation214_spill] sm:$0xff]  ;;  %v11389_v23 = vld [vmem:[#allocation105_spill] sm:$0xff] }
 0x4d8   :  { %v2282_v5 = vadd.f32 %v11385_v13, %v2090_v11  ;;  %v1709_v25 = vadd.f32 %v11387_v8, %v1517_v34  ;;  %v11388_v9 = vld [vmem:[#allocation331_spill] sm:$0xff]  ;;  %v2473_v22 = vadd.f32 %v2399_v39, %v2281_v21  ;;  %v1328_v45 = vadd.f32 %v11389_v23, %v1136_v58  ;;  %v11390_v29 = vld [vmem:[#allocation217_spill] sm:$0xff]  ;;  %v11391_v57 = vld [vmem:[#allocation330_spill] sm:$0xff] }
 0x4d9   :  { %v2091_v50 = vadd.f32 %v11388_v9, %v1899_v52  ;;  %v1710_v49 = vadd.f32 %v11390_v29, %v1518_v35  ;;  %v2092_v3 = vadd.f32 %v11391_v57, %v1900_v7  ;;  %v6189_v55 = vld [vmem:[#allocation2 + $0x308] sm:$0xff]  ;;  %v11392_v54 = vld [vmem:[#allocation49_spill] sm:$0xff]  ;;  %v11393_v30 = vld [vmem:[#allocation158_spill] sm:$0xff]  ;;  %v2411_v57 = vpop.permute.xlu0 %2410 }
 0x4da   :  { %v2474_v59 = vadd.f32 %v2401_v51, %v2282_v5  ;;  %v1137_v61 = vadd.f32 %v6189_v55, %v11392_v54  ;;  %v1519_v28 = vadd.f32 %v11393_v30, %v1327_v0  ;;  %v11394_v31 = vld [vmem:[#allocation272_spill] sm:$0xff]  ;;  %v11395_v19 = vld [vmem:[#allocation390_spill] sm:$0xff]  ;;  %5895 = vmatmul.mubr.f32.gmra.mrb[52].mxu0 %v2473_v22  ;;  %v11397_v27 = vld [vmem:[#allocation161_spill] sm:$0xff]  ;;  %v2409_v51 = vpop.permute.xlu1 %2408 }
 0x4db   :  { %v1901_v63 = vadd.f32 %v11394_v31, %v1709_v25  ;;  %v2283_v33 = vadd.f32 %v11395_v19, %v2091_v50  ;;  %v6190_v26 = vld [vmem:[#allocation2 + $0x318] sm:$0xff]  ;;  %v11396_v4 = vld [vmem:[#allocation52_spill] sm:$0xff]  ;;  %v1520_v16 = vadd.f32 %v11397_v27, %v1328_v45  ;;  %v11398_v12 = vld [vmem:[#allocation275_spill] sm:$0xff] }
 0x4dc   :  { %v1138_v18 = vadd.f32 %v6190_v26, %v11396_v4  ;;  %v1902_v32 = vadd.f32 %v11398_v12, %v1710_v49  ;;  %v11399_v44 = vld [vmem:[#allocation389_spill] sm:$0xff]  ;;  %5897 = vmatprep.mubr.f32.mxu0 %v2474_v59  ;;  %v11400_v36 = vld [vmem:[#allocation104_spill] sm:$0xff]  ;;  %v11403_v48 = vld [vmem:[#allocation107_spill] sm:$0xff] }
 0x4dd   :  { %v2284_v39 = vadd.f32 %v11399_v44, %v2092_v3  ;;  %v1329_v20 = vadd.f32 %v11400_v36, %v1137_v61  ;;  %v11401_v38 = vld [vmem:[#allocation216_spill] sm:$0xff]  ;;  %v11402_v60 = vld [vmem:[#allocation333_spill] sm:$0xff]  ;;  %v2475_v15 = vadd.f32 %v2403_v37, %v2283_v33  ;;  %v11404_v24 = vld [vmem:[#allocation219_spill] sm:$0xff] }
 0x4de   :  { %v1711_v46 = vadd.f32 %v11401_v38, %v1519_v28  ;;  %v2093_v11 = vadd.f32 %v11402_v60, %v1901_v63  ;;  %v1330_v1 = vadd.f32 %v11403_v48, %v1138_v18  ;;  %v1712_v34 = vadd.f32 %v11404_v24, %v1520_v16  ;;  %v11405_v41 = vld [vmem:[#allocation332_spill] sm:$0xff]  ;;  %v6191_v21 = vld [vmem:[#allocation2 + $0x320] sm:$0xff]  ;;  %v11408_v35 = vld [vmem:[#allocation274_spill] sm:$0xff]  ;;  %v2413_v50 = vpop.permute.xlu1 %2412 }
 0x4df   :  { %v2094_v52 = vadd.f32 %v11405_v41, %v1902_v32  ;;  %v2476_v2 = vadd.f32 %v2405_v14, %v2284_v39  ;;  %v11406_v43 = vld [vmem:[#allocation51_spill] sm:$0xff]  ;;  %v11407_v58 = vld [vmem:[#allocation160_spill] sm:$0xff]  ;;  %5898 = vmatmul.mubr.f32.gmra.mrb[54].mxu0 %v2475_v15  ;;  %v11411_v0 = vld [vmem:[#allocation277_spill] sm:$0xff] }
 0x4e0   :  { %v1139_v62 = vadd.f32 %v6191_v21, %v11406_v43  ;;  %v1521_v47 = vadd.f32 %v11407_v58, %v1329_v20  ;;  %v1903_v17 = vadd.f32 %v11408_v35, %v1711_v46  ;;  %v11409_v7 = vld [vmem:[#allocation392_spill] sm:$0xff]  ;;  %v11410_v5 = vld [vmem:[#allocation163_spill] sm:$0xff]  ;;  %v1904_v8 = vadd.f32 %v11411_v0, %v1712_v34  ;;  %v11413_v22 = vld [vmem:[#allocation106_spill] sm:$0xff]  ;;  %v2415_v20 = vpop.permute.xlu0 %2414 }
 0x4e1   :  { %v2285_v13 = vadd.f32 %v11409_v7, %v2093_v11  ;;  %v1522_v42 = vadd.f32 %v11410_v5, %v1330_v1  ;;  %v11412_v25 = vld [vmem:[#allocation391_spill] sm:$0xff]  ;;  %5900 = vmatprep.mubr.f32.mxu0 %v2476_v2  ;;  %v11414_v37 = vld [vmem:[#allocation218_spill] sm:$0xff]  ;;  %v11416_v3 = vld [vmem:[#allocation221_spill] sm:$0xff] }
 0x4e2   :  { %v2286_v9 = vadd.f32 %v11412_v25, %v2094_v52  ;;  %v1331_v14 = vadd.f32 %v11413_v22, %v1139_v62  ;;  %v1713_v23 = vadd.f32 %v11414_v37, %v1521_v47  ;;  %v11415_v45 = vld [vmem:[#allocation335_spill] sm:$0xff]  ;;  %v11417_v55 = vld [vmem:[#allocation334_spill] sm:$0xff]  ;;  %v11419_v31 = vld [vmem:[#allocation276_spill] sm:$0xff]  ;;  %v6087_v18 = vpop.permute.xlu1 %6086 }
 0x4e3   :  { %v2095_v29 = vadd.f32 %v11415_v45, %v1903_v17  ;;  %v2477_v49 = vadd.f32 %v2407_v56, %v2285_v13  ;;  %v1714_v59 = vadd.f32 %v11416_v3, %v1522_v42  ;;  %v2096_v54 = vadd.f32 %v11417_v55, %v1904_v8  ;;  %v11418_v30 = vld [vmem:[#allocation162_spill] sm:$0xff]  ;;  %v11420_v33 = vld [vmem:[#allocation279_spill] sm:$0xff]  ;;  %v11421_v27 = vld [vmem:[#allocation220_spill] sm:$0xff] }
 0x4e4   :  { %v2478_v61 = vadd.f32 %v2409_v51, %v2286_v9  ;;  %v1523_v28 = vadd.f32 %v11418_v30, %v1331_v14  ;;  %v1905_v63 = vadd.f32 %v11419_v31, %v1713_v23  ;;  %v11422_v12 = vld [vmem:[#allocation337_spill] sm:$0xff]  ;;  %v11423_v39 = vld [vmem:[#allocation336_spill] sm:$0xff]  ;;  %v11424_v38 = vld [vmem:[#allocation278_spill] sm:$0xff] }
 0x4e5   :  { %v2287_v19 = vadd.f32 %v8343_v6, %v2095_v29  ;;  %5901 = vmatmul.mubr.f32.gmra.mrb[56].mxu0 %v2477_v49  ;;  %v1906_v26 = vadd.f32 %v11420_v33, %v1714_v59  ;;  %v2288_v4 = vadd.f32 %v8339_v40, %v2096_v54  ;;  %v6192_v1 = vld [vmem:[#allocation2 + $0x19] sm:$0xff] }
 0x4e6   :  { %5903 = vmatprep.mubr.f32.mxu0 %v2478_v61  ;;  %v1715_v16 = vadd.f32 %v11421_v27, %v1523_v28  ;;  %v2097_v32 = vadd.f32 %v11422_v12, %v1905_v63 }
 0x4e7   :  { %v2479_v44 = vadd.f32 %v2411_v57, %v2287_v19  ;;  %v6332_v51 = vadd.low.f32.bf16 %v1906_v26, %v11423_v39  ;;  %v2480_v36 = vadd.f32 %v2413_v50, %v2288_v4 }
 0x4e8   :  { %v1907_v46 = vadd.f32 %v11424_v38, %v1715_v16  ;;  %v2289_v6 = vadd.f32 %v8373_v53, %v2097_v32  ;;  %v8880_v53 = vld [vmem:[%s10640_s2] ss:$0 sm:$0xff] }
 0x4e9   :  { %5904 = vmatmul.mubr.f32.gmra.mrb[58].mxu0 %v2479_v44  ;;  %v6333_v60 = vadd.low.f32.bf16 %v6332_v51, %v8363_v10 }
 0x4ea   :  { %5906 = vmatprep.mubr.f32.mxu0 %v2480_v36  ;;  %v6334_v40 = vadd.high.f32.bf16 %v1907_v46, %v11423_v39  ;;  %v2481_v11 = vadd.f32 %v2415_v20, %v2289_v6 }
 0x4eb   :  { %v6335_v15 = vadd.low.f32.bf16 %v6333_v60, %v6087_v18 }
 0x4ec   :  { %v6336_v56 = vadd.high.f32.bf16 %v6334_v40, %v8363_v10 }
 0x4ed   :  { %5907 = vmatmul.mubr.f32.gmra.mrb[60].mxu0 %v2481_v11 }
 0x4ee   :  { %5909 = vmatprep.mubr.f32.mxu0 %v6335_v15  ;;  %v6337_v48 = vadd.high.f32.bf16 %v6336_v56, %v6087_v18 }
 0x4f1   :  { %5910 = vmatmul.mubr.f32.gmra.mrb[62].mxu0 %v6337_v48 }
 0x4f2   :  { %5237 = vmatprep.mubr.f32.mxu0 %v6192_v1 }
 0x52f   :  { %v5818_v24 = vpop.f32.mrb[0].mxu0 }
 0x530   :  { %v2579_v34 = vadd.f32 %v5818_v24, %v8880_v53  ;;  %v2573_v41 = vpop.f32.mrb[1].mxu0 }
 0x531   :  { %v2574_v52 = vadd.f32 %v8880_v53, %v2573_v41 }
 0x532   :  { %v2893_v2 = vmax.f32 %v2579_v34, 0.0 }
 0x533   :  { %v2892_v21 = vmax.f32 %v2574_v52, 0.0  ;;  %v5821_v10 = vpop.f32.mrb[2].mxu0 }
 0x534   :  { %2958 = vst [vmem:[#allocation3 + $0x21] sm:$0xff] %v2893_v2  ;;  %v2589_v43 = vadd.f32 %v5821_v10, %v8880_v53  ;;  %v2583_v62 = vpop.f32.mrb[3].mxu0  ;;  %3604 = vrot.lane.b32.xlu0 %v2893_v2, %s6380_s16 }
 0x535   :  { %2957 = vst [vmem:[#allocation3 + $0x19] sm:$0xff] %v2892_v21  ;;  %v2584_v58 = vadd.f32 %v8880_v53, %v2583_v62  ;;  %3602 = vrot.lane.b32.xlu1 %v2892_v21, %s6380_s16 }
 0x536   :  { %v2895_v47 = vmax.f32 %v2589_v43, 0.0 }
 0x537   :  { %v2894_v35 = vmax.f32 %v2584_v58, 0.0  ;;  %v5824_v17 = vpop.f32.mrb[4].mxu0 }
 0x538   :  { %2960 = vst [vmem:[#allocation3 + $0x39] sm:$0xff] %v2895_v47  ;;  %v2599_v7 = vadd.f32 %v5824_v17, %v8880_v53  ;;  %v2593_v13 = vpop.f32.mrb[5].mxu0  ;;  %3608 = vrot.lane.b32.xlu0 %v2895_v47, %s6380_s16 }
 0x539   :  { %2959 = vst [vmem:[#allocation3 + $0x31] sm:$0xff] %v2894_v35  ;;  %v2594_v5 = vadd.f32 %v8880_v53, %v2593_v13  ;;  %3606 = vrot.lane.b32.xlu1 %v2894_v35, %s6380_s16 }
 0x53a   :  { %v2897_v42 = vmax.f32 %v2599_v7, 0.0 }
 0x53b   :  { %v2896_v0 = vmax.f32 %v2594_v5, 0.0  ;;  %v5827_v8 = vpop.f32.mrb[6].mxu0 }
 0x53c   :  { %2962 = vst [vmem:[#allocation3 + $0x51] sm:$0xff] %v2897_v42  ;;  %v2609_v25 = vadd.f32 %v5827_v8, %v8880_v53  ;;  %v2603_v9 = vpop.f32.mrb[7].mxu0  ;;  %3612 = vrot.lane.b32.xlu0 %v2897_v42, %s6380_s16 }
 0x53d   :  { %2961 = vst [vmem:[#allocation3 + $0x49] sm:$0xff] %v2896_v0  ;;  %v2604_v50 = vadd.f32 %v8880_v53, %v2603_v9  ;;  %3610 = vrot.lane.b32.xlu1 %v2896_v0, %s6380_s16 }
 0x53e   :  { %v2899_v22 = vmax.f32 %v2609_v25, 0.0 }
 0x53f   :  { %v2898_v14 = vmax.f32 %v2604_v50, 0.0  ;;  %v5830_v37 = vpop.f32.mrb[8].mxu0 }
 0x540   :  { %2964 = vst [vmem:[#allocation3 + $0x69] sm:$0xff] %v2899_v22  ;;  %v2619_v23 = vadd.f32 %v5830_v37, %v8880_v53  ;;  %v2613_v45 = vpop.f32.mrb[9].mxu0  ;;  %3616 = vrot.lane.b32.xlu0 %v2899_v22, %s6380_s16 }
 0x541   :  { %2963 = vst [vmem:[#allocation3 + $0x61] sm:$0xff] %v2898_v14  ;;  %v2614_v29 = vadd.f32 %v8880_v53, %v2613_v45  ;;  %3614 = vrot.lane.b32.xlu1 %v2898_v14, %s6380_s16  ;;  %v3117_v45 = vld [vmem:[#allocation3 + $0x1b1] sm:$0xff] }
 0x542   :  { %v2901_v49 = vmax.f32 %v2619_v23, 0.0 }
 0x543   :  { %v2900_v57 = vmax.f32 %v2614_v29, 0.0  ;;  %v5833_v3 = vpop.f32.mrb[10].mxu0  ;;  %v3118_v29 = vld [vmem:[#allocation3 + $0x1b9] sm:$0xff] }
 0x544   :  { %2966 = vst [vmem:[#allocation3 + $0x81] sm:$0xff] %v2901_v49  ;;  %v2629_v59 = vadd.f32 %v5833_v3, %v8880_v53  ;;  %v2623_v55 = vpop.f32.mrb[11].mxu0  ;;  %3620 = vrot.lane.b32.xlu0 %v2901_v49, %s6380_s16  ;;  %v6095_v3 = vpack.i.bf16 %v3118_v29, %v3117_v45 }
 0x545   :  { %2965 = vst [vmem:[#allocation3 + $0x79] sm:$0xff] %v2900_v57  ;;  %v2624_v54 = vadd.f32 %v8880_v53, %v2623_v55  ;;  %3618 = vrot.lane.b32.xlu1 %v2900_v57, %s6380_s16 }
 0x546   :  { %v2903_v61 = vmax.f32 %v2629_v59, 0.0 }
 0x547   :  { %v2902_v30 = vmax.f32 %v2624_v54, 0.0  ;;  %v5836_v28 = vpop.f32.mrb[12].mxu0 }
 0x548   :  { %2968 = vst [vmem:[#allocation3 + $0x99] sm:$0xff] %v2903_v61  ;;  %v2639_v31 = vadd.f32 %v5836_v28, %v8880_v53  ;;  %v2633_v63 = vpop.f32.mrb[13].mxu0  ;;  %3624 = vrot.lane.b32.xlu0 %v2903_v61, %s6380_s16 }
 0x549   :  { %2967 = vst [vmem:[#allocation3 + $0x91] sm:$0xff] %v2902_v30  ;;  %v2634_v19 = vadd.f32 %v8880_v53, %v2633_v63  ;;  %3622 = vrot.lane.b32.xlu1 %v2902_v30, %s6380_s16 }
 0x54a   :  { %v2905_v33 = vmax.f32 %v2639_v31, 0.0 }
 0x54b   :  { %v2904_v26 = vmax.f32 %v2634_v19, 0.0 }
 0x54c   :  { %v5839_v4 = vpop.f32.mrb[14].mxu0  ;;  %2970 = vst [vmem:[#allocation3 + $0xb1] sm:$0xff] %v2905_v33  ;;  %3628 = vrot.lane.b32.xlu0 %v2905_v33, %s6380_s16 }
 0x54d   :  { %v2649_v18 = vadd.f32 %v5839_v4, %v8880_v53  ;;  %v2643_v27 = vpop.f32.mrb[15].mxu0  ;;  %2969 = vst [vmem:[#allocation3 + $0xa9] sm:$0xff] %v2904_v26  ;;  %3626 = vrot.lane.b32.xlu1 %v2904_v26, %s6380_s16 }
 0x54e   :  { %v2644_v16 = vadd.f32 %v8880_v53, %v2643_v27 }
 0x54f   :  { %v2907_v12 = vmax.f32 %v2649_v18, 0.0 }
 0x550   :  { %v2906_v32 = vmax.f32 %v2644_v16, 0.0 }
 0x551   :  { %v5842_v44 = vpop.f32.mrb[16].mxu0  ;;  %2972 = vst [vmem:[#allocation3 + $0xc9] sm:$0xff] %v2907_v12  ;;  %3632 = vrot.lane.b32.xlu0 %v2907_v12, %s6380_s16 }
 0x552   :  { %v2659_v39 = vadd.f32 %v5842_v44, %v8880_v53  ;;  %v2653_v51 = vpop.f32.mrb[17].mxu0  ;;  %2971 = vst [vmem:[#allocation3 + $0xc1] sm:$0xff] %v2906_v32  ;;  %3630 = vrot.lane.b32.xlu1 %v2906_v32, %s6380_s16 }
 0x553   :  { %v2654_v36 = vadd.f32 %v8880_v53, %v2653_v51 }
 0x554   :  { %v2909_v20 = vmax.f32 %v2659_v39, 0.0 }
 0x555   :  { %v2908_v38 = vmax.f32 %v2654_v36, 0.0 }
 0x556   :  { %v5845_v46 = vpop.f32.mrb[18].mxu0  ;;  %2974 = vst [vmem:[#allocation3 + $0xe1] sm:$0xff] %v2909_v20  ;;  %3636 = vrot.lane.b32.xlu0 %v2909_v20, %s6380_s16 }
 0x557   :  { %v2669_v6 = vadd.f32 %v5845_v46, %v8880_v53  ;;  %v2663_v60 = vpop.f32.mrb[19].mxu0  ;;  %2973 = vst [vmem:[#allocation3 + $0xd9] sm:$0xff] %v2908_v38  ;;  %3634 = vrot.lane.b32.xlu1 %v2908_v38, %s6380_s16 }
 0x558   :  { %v2664_v40 = vadd.f32 %v8880_v53, %v2663_v60 }
 0x559   :  { %v2911_v11 = vmax.f32 %v2669_v6, 0.0 }
 0x55a   :  { %v2910_v15 = vmax.f32 %v2664_v40, 0.0 }
 0x55b   :  { %v5848_v56 = vpop.f32.mrb[20].mxu0  ;;  %2976 = vst [vmem:[#allocation3 + $0xf9] sm:$0xff] %v2911_v11  ;;  %3640 = vrot.lane.b32.xlu0 %v2911_v11, %s6380_s16 }
 0x55c   :  { %v2679_v48 = vadd.f32 %v5848_v56, %v8880_v53  ;;  %v2673_v1 = vpop.f32.mrb[21].mxu0  ;;  %2975 = vst [vmem:[#allocation3 + $0xf1] sm:$0xff] %v2910_v15  ;;  %3638 = vrot.lane.b32.xlu1 %v2910_v15, %s6380_s16 }
 0x55d   :  { %v2674_v24 = vadd.f32 %v8880_v53, %v2673_v1 }
 0x55e   :  { %v2913_v34 = vmax.f32 %v2679_v48, 0.0 }
 0x55f   :  { %v2912_v41 = vmax.f32 %v2674_v24, 0.0 }
 0x560   :  { %v5851_v52 = vpop.f32.mrb[22].mxu0  ;;  %2978 = vst [vmem:[#allocation3 + $0x111] sm:$0xff] %v2913_v34  ;;  %3644 = vrot.lane.b32.xlu0 %v2913_v34, %s6380_s16 }
 0x561   :  { %v2689_v2 = vadd.f32 %v5851_v52, %v8880_v53  ;;  %v2683_v21 = vpop.f32.mrb[23].mxu0  ;;  %2977 = vst [vmem:[#allocation3 + $0x109] sm:$0xff] %v2912_v41  ;;  %3642 = vrot.lane.b32.xlu1 %v2912_v41, %s6380_s16 }
 0x562   :  { %v2684_v10 = vadd.f32 %v8880_v53, %v2683_v21 }
 0x563   :  { %v2915_v43 = vmax.f32 %v2689_v2, 0.0 }
 0x564   :  { %v2914_v62 = vmax.f32 %v2684_v10, 0.0 }
 0x565   :  { %2980 = vst [vmem:[#allocation3 + $0x129] sm:$0xff] %v2915_v43  ;;  %3648 = vrot.lane.b32.xlu0 %v2915_v43, %s6380_s16 }
 0x566   :  { %v5854_v58 = vpop.f32.mrb[24].mxu0  ;;  %2979 = vst [vmem:[#allocation3 + $0x121] sm:$0xff] %v2914_v62  ;;  %3646 = vrot.lane.b32.xlu1 %v2914_v62, %s6380_s16 }
 0x567   :  { %v2699_v47 = vadd.f32 %v5854_v58, %v8880_v53  ;;  %v2693_v35 = vpop.f32.mrb[25].mxu0 }
 0x568   :  { %v2694_v17 = vadd.f32 %v8880_v53, %v2693_v35 }
 0x569   :  { %v2917_v7 = vmax.f32 %v2699_v47, 0.0 }
 0x56a   :  { %v2916_v13 = vmax.f32 %v2694_v17, 0.0  ;;  %v5857_v5 = vpop.f32.mrb[26].mxu0 }
 0x56b   :  { %2982 = vst [vmem:[#allocation3 + $0x141] sm:$0xff] %v2917_v7  ;;  %v2709_v42 = vadd.f32 %v5857_v5, %v8880_v53  ;;  %v2703_v0 = vpop.f32.mrb[27].mxu0  ;;  %3652 = vrot.lane.b32.xlu0 %v2917_v7, %s6380_s16 }
 0x56c   :  { %2981 = vst [vmem:[#allocation3 + $0x139] sm:$0xff] %v2916_v13  ;;  %v2704_v8 = vadd.f32 %v8880_v53, %v2703_v0  ;;  %3650 = vrot.lane.b32.xlu1 %v2916_v13, %s6380_s16 }
 0x56d   :  { %v2919_v25 = vmax.f32 %v2709_v42, 0.0 }
 0x56e   :  { %v2918_v9 = vmax.f32 %v2704_v8, 0.0  ;;  %v5860_v50 = vpop.f32.mrb[28].mxu0 }
 0x56f   :  { %2984 = vst [vmem:[#allocation3 + $0x159] sm:$0xff] %v2919_v25  ;;  %v2719_v22 = vadd.f32 %v5860_v50, %v8880_v53  ;;  %v2713_v14 = vpop.f32.mrb[29].mxu0  ;;  %3656 = vrot.lane.b32.xlu0 %v2919_v25, %s6380_s16 }
 0x570   :  { %2983 = vst [vmem:[#allocation3 + $0x151] sm:$0xff] %v2918_v9  ;;  %v2714_v37 = vadd.f32 %v8880_v53, %v2713_v14  ;;  %3654 = vrot.lane.b32.xlu1 %v2918_v9, %s6380_s16 }
 0x571   :  { %v2921_v23 = vmax.f32 %v2719_v22, 0.0 }
 0x572   :  { %v2920_v49 = vmax.f32 %v2714_v37, 0.0 }
 0x573   :  { %2986 = vst [vmem:[#allocation3 + $0x171] sm:$0xff] %v2921_v23  ;;  %3660 = vrot.lane.b32.xlu0 %v2921_v23, %s6380_s16  ;;  %v5863_v57 = vpop.f32.mrb[30].mxu0 }
 0x574   :  { %2985 = vst [vmem:[#allocation3 + $0x169] sm:$0xff] %v2920_v49  ;;  %3658 = vrot.lane.b32.xlu1 %v2920_v49, %s6380_s16  ;;  %v2729_v59 = vadd.f32 %v5863_v57, %v8880_v53  ;;  %v2723_v55 = vpop.f32.mrb[31].mxu0 }
 0x575   :  { %v2724_v54 = vadd.f32 %v8880_v53, %v2723_v55 }
 0x576   :  { %v2923_v61 = vmax.f32 %v2729_v59, 0.0 }
 0x577   :  { %v2922_v30 = vmax.f32 %v2724_v54, 0.0 }
 0x578   :  { %v5866_v28 = vpop.f32.mrb[32].mxu0  ;;  %6096 = vrot.lane.b32.xlu1 %v6095_v3, %s6380_s16  ;;  %2988 = vst [vmem:[#allocation3 + $0x189] sm:$0xff] %v2923_v61 }
 0x579   :  { %v2739_v31 = vadd.f32 %v5866_v28, %v8880_v53  ;;  %v2733_v63 = vpop.f32.mrb[33].mxu0  ;;  %2987 = vst [vmem:[#allocation3 + $0x181] sm:$0xff] %v2922_v30 }
 0x57a   :  { %v2734_v19 = vadd.f32 %v8880_v53, %v2733_v63 }
 0x57b   :  { %v2925_v33 = vmax.f32 %v2739_v31, 0.0 }
 0x57c   :  { %v2924_v26 = vmax.f32 %v2734_v19, 0.0 }
 0x57d   :  { %v5869_v4 = vpop.f32.mrb[34].mxu0  ;;  %2990 = vst [vmem:[#allocation3 + $0x1d1] sm:$0xff] %v2925_v33  ;;  %3668 = vrot.lane.b32.xlu1 %v2925_v33, %s6380_s16 }
 0x57e   :  { %v2749_v18 = vadd.f32 %v5869_v4, %v8880_v53  ;;  %v2743_v27 = vpop.f32.mrb[35].mxu0  ;;  %2989 = vst [vmem:[#allocation3 + $0x1c9] sm:$0xff] %v2924_v26  ;;  %3666 = vrot.lane.b32.xlu0 %v2924_v26, %s6380_s16 }
 0x57f   :  { %v2744_v16 = vadd.f32 %v8880_v53, %v2743_v27  ;;  %v8991_v27 = vpop.permute.xlu0 %6091 }
 0x580   :  { %v2927_v12 = vmax.f32 %v2749_v18, 0.0  ;;  %11425 = vst [vmem:[#allocation338_spill] sm:$0xff] %v8991_v27 }
 0x581   :  { %v2926_v32 = vmax.f32 %v2744_v16, 0.0 }
 0x582   :  { %2992 = vst [vmem:[#allocation3 + $0x1e9] sm:$0xff] %v2927_v12  ;;  %3672 = vrot.lane.b32.xlu1 %v2927_v12, %s6380_s16 }
 0x583   :  { %2991 = vst [vmem:[#allocation3 + $0x1e1] sm:$0xff] %v2926_v32  ;;  %3670 = vrot.lane.b32.xlu0 %v2926_v32, %s6380_s16 }
 0x584   :  { %v5872_v44 = vpop.f32.mrb[36].mxu0 }
 0x585   :  { %v2759_v39 = vadd.f32 %v5872_v44, %v8880_v53  ;;  %v2753_v51 = vpop.f32.mrb[37].mxu0 }
 0x586   :  { %v2754_v36 = vadd.f32 %v8880_v53, %v2753_v51 }
 0x587   :  { %v2929_v20 = vmax.f32 %v2759_v39, 0.0 }
 0x588   :  { %v2928_v38 = vmax.f32 %v2754_v36, 0.0  ;;  %v5875_v46 = vpop.f32.mrb[38].mxu0 }
 0x589   :  { %2994 = vst [vmem:[#allocation3 + $0x201] sm:$0xff] %v2929_v20  ;;  %v2769_v6 = vadd.f32 %v5875_v46, %v8880_v53  ;;  %v2763_v60 = vpop.f32.mrb[39].mxu0  ;;  %3676 = vrot.lane.b32.xlu1 %v2929_v20, %s6380_s16 }
 0x58a   :  { %2993 = vst [vmem:[#allocation3 + $0x1f9] sm:$0xff] %v2928_v38  ;;  %v2764_v40 = vadd.f32 %v8880_v53, %v2763_v60  ;;  %3674 = vrot.lane.b32.xlu0 %v2928_v38, %s6380_s16 }
 0x58b   :  { %v2931_v11 = vmax.f32 %v2769_v6, 0.0 }
 0x58c   :  { %v2930_v15 = vmax.f32 %v2764_v40, 0.0 }
 0x58d   :  { %v5878_v56 = vpop.f32.mrb[40].mxu0  ;;  %2996 = vst [vmem:[#allocation3 + $0x219] sm:$0xff] %v2931_v11  ;;  %3680 = vrot.lane.b32.xlu1 %v2931_v11, %s6380_s16 }
 0x58e   :  { %v2779_v48 = vadd.f32 %v5878_v56, %v8880_v53  ;;  %v2773_v1 = vpop.f32.mrb[41].mxu0  ;;  %2995 = vst [vmem:[#allocation3 + $0x211] sm:$0xff] %v2930_v15  ;;  %3678 = vrot.lane.b32.xlu0 %v2930_v15, %s6380_s16 }
 0x58f   :  { %v2774_v24 = vadd.f32 %v8880_v53, %v2773_v1 }
 0x590   :  { %v2933_v34 = vmax.f32 %v2779_v48, 0.0 }
 0x591   :  { %v2932_v41 = vmax.f32 %v2774_v24, 0.0 }
 0x592   :  { %v5881_v52 = vpop.f32.mrb[42].mxu0  ;;  %2998 = vst [vmem:[#allocation3 + $0x231] sm:$0xff] %v2933_v34  ;;  %3684 = vrot.lane.b32.xlu1 %v2933_v34, %s6380_s16 }
 0x593   :  { %v2789_v2 = vadd.f32 %v5881_v52, %v8880_v53  ;;  %v2783_v21 = vpop.f32.mrb[43].mxu0  ;;  %2997 = vst [vmem:[#allocation3 + $0x229] sm:$0xff] %v2932_v41  ;;  %3682 = vrot.lane.b32.xlu0 %v2932_v41, %s6380_s16 }
 0x594   :  { %v2784_v10 = vadd.f32 %v8880_v53, %v2783_v21  ;;  %v3150_v21 = vld [vmem:[#allocation3 + $0xa] sm:$0xff] }
 0x595   :  { %v2935_v43 = vmax.f32 %v2789_v2, 0.0  ;;  %v3149_v2 = vld [vmem:[#allocation3 + $0x2] sm:$0xff] }
 0x596   :  { %v2934_v62 = vmax.f32 %v2784_v10, 0.0 }
 0x597   :  { %3000 = vst [vmem:[#allocation3 + $0x249] sm:$0xff] %v2935_v43  ;;  %3688 = vrot.lane.b32.xlu1 %v2935_v43, %s6380_s16 }
 0x598   :  { %2999 = vst [vmem:[#allocation3 + $0x241] sm:$0xff] %v2934_v62  ;;  %3686 = vrot.lane.b32.xlu0 %v2934_v62, %s6380_s16 }
 0x599   :  { %v5884_v58 = vpop.f32.mrb[44].mxu0 }
 0x59a   :  { %v2799_v47 = vadd.f32 %v5884_v58, %v8880_v53  ;;  %v2793_v35 = vpop.f32.mrb[45].mxu0 }
 0x59b   :  { %v2794_v17 = vadd.f32 %v8880_v53, %v2793_v35 }
 0x59c   :  { %v2937_v7 = vmax.f32 %v2799_v47, 0.0 }
 0x59d   :  { %v2936_v13 = vmax.f32 %v2794_v17, 0.0  ;;  %v5887_v5 = vpop.f32.mrb[46].mxu0 }
 0x59e   :  { %3002 = vst [vmem:[#allocation3 + $0x261] sm:$0xff] %v2937_v7  ;;  %v2809_v42 = vadd.f32 %v5887_v5, %v8880_v53  ;;  %v2803_v0 = vpop.f32.mrb[47].mxu0  ;;  %3692 = vrot.lane.b32.xlu1 %v2937_v7, %s6380_s16  ;;  %v6100_v7 = vpack.i.bf16 %v3150_v21, %v3149_v2  ;;  %v3174_v2 = vld [vmem:[#allocation3 + $0x12a] sm:$0xff] }
 0x59f   :  { %3001 = vst [vmem:[#allocation3 + $0x259] sm:$0xff] %v2936_v13  ;;  %v2804_v8 = vadd.f32 %v8880_v53, %v2803_v0  ;;  %3690 = vrot.lane.b32.xlu0 %v2936_v13, %s6380_s16 }
 0x5a0   :  { %v2939_v25 = vmax.f32 %v2809_v42, 0.0  ;;  %v3151_v42 = vld [vmem:[#allocation3 + $0x1a] sm:$0xff] }
 0x5a1   :  { %v2938_v9 = vmax.f32 %v2804_v8, 0.0 }
 0x5a2   :  { %3004 = vst [vmem:[#allocation3 + $0x279] sm:$0xff] %v2939_v25  ;;  %3696 = vrot.lane.b32.xlu1 %v2939_v25, %s6380_s16  ;;  %v3153_v25 = vld [vmem:[#allocation3 + $0x32] sm:$0xff] }
 0x5a3   :  { %v5890_v50 = vpop.f32.mrb[48].mxu0  ;;  %3003 = vst [vmem:[#allocation3 + $0x271] sm:$0xff] %v2938_v9  ;;  %3694 = vrot.lane.b32.xlu0 %v2938_v9, %s6380_s16  ;;  %v3152_v9 = vld [vmem:[#allocation3 + $0x22] sm:$0xff] }
 0x5a4   :  { %v2819_v22 = vadd.f32 %v5890_v50, %v8880_v53  ;;  %v2813_v14 = vpop.f32.mrb[49].mxu0 }
 0x5a5   :  { %v2814_v37 = vadd.f32 %v8880_v53, %v2813_v14 }
 0x5a6   :  { %v2941_v23 = vmax.f32 %v2819_v22, 0.0  ;;  %v8998_v6 = vpop.permute.xlu0 %3604  ;;  %v3155_v22 = vld [vmem:[#allocation3 + $0x4a] sm:$0xff] }
 0x5a7   :  { %v2940_v45 = vmax.f32 %v2814_v37, 0.0  ;;  %11426 = vst [vmem:[#allocation53_spill] sm:$0xff] %v8998_v6  ;;  %v9003_v40 = vpop.permute.xlu1 %3602  ;;  %v3154_v37 = vld [vmem:[#allocation3 + $0x3a] sm:$0xff]  ;;  %v3063_v6 = vld [vmem:[#allocation3 + $0x228] sm:$0xff] }
 0x5a8   :  { %3006 = vst [vmem:[#allocation3 + $0x291] sm:$0xff] %v2941_v23  ;;  %3700 = vrot.lane.b32.xlu1 %v2941_v23, %s6380_s16  ;;  %11427 = vst [vmem:[#allocation165_spill] sm:$0xff] %v9003_v40 }
 0x5a9   :  { %v5893_v29 = vpop.f32.mrb[50].mxu0  ;;  %3005 = vst [vmem:[#allocation3 + $0x289] sm:$0xff] %v2940_v45  ;;  %3698 = vrot.lane.b32.xlu0 %v2940_v45, %s6380_s16  ;;  %v3157_v45 = vld [vmem:[#allocation3 + $0x62] sm:$0xff] }
 0x5aa   :  { %v2829_v49 = vadd.f32 %v5893_v29, %v8880_v53  ;;  %v2823_v57 = vpop.f32.mrb[51].mxu0  ;;  %v9006_v24 = vpop.permute.xlu0 %3608 }
 0x5ab   :  { %v2824_v3 = vadd.f32 %v8880_v53, %v2823_v57  ;;  %11428 = vst [vmem:[#allocation281_spill] sm:$0xff] %v9006_v24  ;;  %v9011_v41 = vpop.permute.xlu1 %3606  ;;  %v3057_v24 = vld [vmem:[#allocation3 + $0x1e0] sm:$0xff] }
 0x5ac   :  { %v2943_v59 = vmax.f32 %v2829_v49, 0.0  ;;  %11429 = vst [vmem:[#allocation55_spill] sm:$0xff] %v9011_v41  ;;  %v3156_v49 = vld [vmem:[#allocation3 + $0x52] sm:$0xff] }
 0x5ad   :  { %v2942_v55 = vmax.f32 %v2824_v3, 0.0  ;;  %v5896_v54 = vpop.f32.mrb[52].mxu0  ;;  %v3159_v3 = vld [vmem:[#allocation3 + $0x7a] sm:$0xff]  ;;  %v3061_v41 = vld [vmem:[#allocation3 + $0x210] sm:$0xff] }
 0x5ae   :  { %3008 = vst [vmem:[#allocation3 + $0x2a9] sm:$0xff] %v2943_v59  ;;  %v2839_v61 = vadd.f32 %v5896_v54, %v8880_v53  ;;  %v2833_v30 = vpop.f32.mrb[53].mxu0  ;;  %3704 = vrot.lane.b32.xlu1 %v2943_v59, %s6380_s16  ;;  %v9014_v47 = vpop.permute.xlu0 %3612 }
 0x5af   :  { %3007 = vst [vmem:[#allocation3 + $0x2a1] sm:$0xff] %v2942_v55  ;;  %v2834_v28 = vadd.f32 %v8880_v53, %v2833_v30  ;;  %3702 = vrot.lane.b32.xlu0 %v2942_v55, %s6380_s16  ;;  %11430 = vst [vmem:[#allocation164_spill] sm:$0xff] %v9014_v47  ;;  %v9019_v17 = vpop.permute.xlu1 %3610  ;;  %v3158_v55 = vld [vmem:[#allocation3 + $0x6a] sm:$0xff] }
 0x5b0   :  { %v2945_v31 = vmax.f32 %v2839_v61, 0.0  ;;  %11431 = vst [vmem:[#allocation280_spill] sm:$0xff] %v9019_v17  ;;  %v3161_v61 = vld [vmem:[#allocation3 + $0x92] sm:$0xff]  ;;  %v3051_v47 = vld [vmem:[#allocation3 + $0x168] sm:$0xff] }
 0x5b1   :  { %v2944_v63 = vmax.f32 %v2834_v28, 0.0  ;;  %v3160_v28 = vld [vmem:[#allocation3 + $0x82] sm:$0xff] }
 0x5b2   :  { %v5899_v19 = vpop.f32.mrb[54].mxu0  ;;  %3010 = vst [vmem:[#allocation3 + $0x2c1] sm:$0xff] %v2945_v31  ;;  %3708 = vrot.lane.b32.xlu1 %v2945_v31, %s6380_s16  ;;  %v9021_v0 = vpop.permute.xlu0 %3616  ;;  %v3055_v17 = vld [vmem:[#allocation3 + $0x1c8] sm:$0xff] }
 0x5b3   :  { %v2849_v33 = vadd.f32 %v5899_v19, %v8880_v53  ;;  %v2843_v26 = vpop.f32.mrb[55].mxu0  ;;  %3009 = vst [vmem:[#allocation3 + $0x2b9] sm:$0xff] %v2944_v63  ;;  %3706 = vrot.lane.b32.xlu0 %v2944_v63, %s6380_s16  ;;  %11432 = vst [vmem:[#allocation7_spill] sm:$0xff] %v9021_v0  ;;  %v9025_v8 = vpop.permute.xlu1 %3614  ;;  %v3163_v63 = vld [vmem:[#allocation3 + $0xaa] sm:$0xff]  ;;  %v3045_v0 = vld [vmem:[#allocation3 + $0x120] sm:$0xff] }
 0x5b4   :  { %v2844_v4 = vadd.f32 %v8880_v53, %v2843_v26  ;;  %11433 = vst [vmem:[#allocation109_spill] sm:$0xff] %v9025_v8  ;;  %v3049_v8 = vld [vmem:[#allocation3 + $0x150] sm:$0xff] }
 0x5b5   :  { %v2947_v18 = vmax.f32 %v2849_v33, 0.0  ;;  %v3162_v33 = vld [vmem:[#allocation3 + $0x9a] sm:$0xff] }
 0x5b6   :  { %v2946_v16 = vmax.f32 %v2844_v4, 0.0  ;;  %v3165_v4 = vld [vmem:[#allocation3 + $0xc2] sm:$0xff] }
 0x5b7   :  { %3012 = vst [vmem:[#allocation3 + $0x2d9] sm:$0xff] %v2947_v18  ;;  %3712 = vrot.lane.b32.xlu1 %v2947_v18, %s6380_s16  ;;  %v9031_v50 = vpop.permute.xlu1 %3618 }
 0x5b8   :  { %v5902_v12 = vpop.f32.mrb[56].mxu0  ;;  %3011 = vst [vmem:[#allocation3 + $0x2d1] sm:$0xff] %v2946_v16  ;;  %3710 = vrot.lane.b32.xlu0 %v2946_v16, %s6380_s16  ;;  %11435 = vst [vmem:[#allocation340_spill] sm:$0xff] %v9031_v50  ;;  %v3164_v16 = vld [vmem:[#allocation3 + $0xb2] sm:$0xff]  ;;  %v3043_v50 = vld [vmem:[#allocation3 + $0x108] sm:$0xff] }
 0x5b9   :  { %v2859_v32 = vadd.f32 %v5902_v12, %v8880_v53  ;;  %v2853_v44 = vpop.f32.mrb[57].mxu0 }
 0x5ba   :  { %v2854_v39 = vadd.f32 %v8880_v53, %v2853_v44  ;;  %v3166_v44 = vld [vmem:[#allocation3 + $0xca] sm:$0xff] }
 0x5bb   :  { %v2949_v51 = vmax.f32 %v2859_v32, 0.0  ;;  %v9037_v23 = vpop.permute.xlu1 %3622  ;;  %v3167_v32 = vld [vmem:[#allocation3 + $0xda] sm:$0xff] }
 0x5bc   :  { %v2948_v36 = vmax.f32 %v2854_v39, 0.0  ;;  %v5905_v20 = vpop.f32.mrb[58].mxu0  ;;  %11437 = vst [vmem:[#allocation108_spill] sm:$0xff] %v9037_v23  ;;  %v3029_v23 = vld [vmem:[#allocation3 + $0x60] sm:$0xff] }
 0x5bd   :  { %3014 = vst [vmem:[#allocation3 + $0x2f1] sm:$0xff] %v2949_v51  ;;  %v2869_v38 = vadd.f32 %v5905_v20, %v8880_v53  ;;  %v2863_v46 = vpop.f32.mrb[59].mxu0  ;;  %3716 = vrot.lane.b32.xlu1 %v2949_v51, %s6380_s16  ;;  %v3168_v20 = vld [vmem:[#allocation3 + $0xe2] sm:$0xff] }
 0x5be   :  { %3013 = vst [vmem:[#allocation3 + $0x2e9] sm:$0xff] %v2948_v36  ;;  %v2864_v60 = vadd.f32 %v8880_v53, %v2863_v46  ;;  %3714 = vrot.lane.b32.xlu0 %v2948_v36, %s6380_s16  ;;  %v3169_v36 = vld [vmem:[#allocation3 + $0xf2] sm:$0xff] }
 0x5bf   :  { %v2951_v11 = vmax.f32 %v2869_v38, 0.0  ;;  %v9043_v57 = vpop.permute.xlu1 %3626 }
 0x5c0   :  { %v2950_v15 = vmax.f32 %v2864_v60, 0.0  ;;  %v5908_v56 = vpop.f32.mrb[60].mxu0  ;;  %11439 = vst [vmem:[#allocation339_spill] sm:$0xff] %v9043_v57  ;;  %v3171_v60 = vld [vmem:[#allocation3 + $0x10a] sm:$0xff] }
 0x5c1   :  { %3016 = vst [vmem:[#allocation3 + $0x309] sm:$0xff] %v2951_v11  ;;  %v2879_v48 = vadd.f32 %v5908_v56, %v8880_v53  ;;  %v2873_v1 = vpop.f32.mrb[61].mxu0  ;;  %3720 = vrot.lane.b32.xlu1 %v2951_v11, %s6380_s16  ;;  %v3170_v11 = vld [vmem:[#allocation3 + $0xfa] sm:$0xff]  ;;  %v3173_v56 = vld [vmem:[#allocation3 + $0x122] sm:$0xff]  ;;  %v3025_v57 = vld [vmem:[#allocation3 + $0x30] sm:$0xff] }
 0x5c2   :  { %3015 = vst [vmem:[#allocation3 + $0x301] sm:$0xff] %v2950_v15  ;;  %v2874_v34 = vadd.f32 %v8880_v53, %v2873_v1  ;;  %3718 = vrot.lane.b32.xlu0 %v2950_v15, %s6380_s16 }
 0x5c3   :  { %v2953_v52 = vmax.f32 %v2879_v48, 0.0  ;;  %v3172_v48 = vld [vmem:[#allocation3 + $0x112] sm:$0xff] }
 0x5c4   :  { %v2952_v10 = vmax.f32 %v2874_v34, 0.0  ;;  %v5911_v43 = vpop.f32.mrb[62].mxu0  ;;  %v9049_v54 = vpop.permute.xlu1 %3630 }
 0x5c5   :  { %3018 = vst [vmem:[#allocation3 + $0x321] sm:$0xff] %v2953_v52  ;;  %v2889_v62 = vadd.f32 %v5911_v43, %v8880_v53  ;;  %v2883_v58 = vpop.f32.mrb[63].mxu0  ;;  %3724 = vrot.lane.b32.xlu1 %v2953_v52, %s6380_s16  ;;  %11441 = vst [vmem:[#allocation167_spill] sm:$0xff] %v9049_v54  ;;  %v3175_v52 = vld [vmem:[#allocation3 + $0x13a] sm:$0xff]  ;;  %v3177_v43 = vld [vmem:[#allocation3 + $0x152] sm:$0xff] }
 0x5c6   :  { %3017 = vst [vmem:[#allocation3 + $0x319] sm:$0xff] %v2952_v10  ;;  %v2884_v35 = vadd.f32 %v8880_v53, %v2883_v58  ;;  %3722 = vrot.lane.b32.xlu0 %v2952_v10, %s6380_s16  ;;  %v9027_v53 = vpop.permute.xlu0 %3620  ;;  %v3181_v58 = vld [vmem:[#allocation3 + $0x1b2] sm:$0xff]  ;;  %v3024_v54 = vld [vmem:[#allocation3 + $0x20] sm:$0xff] }
 0x5c7   :  { %v2955_v13 = vmax.f32 %v2889_v62, 0.0  ;;  %11434 = vst [vmem:[#allocation223_spill] sm:$0xff] %v9027_v53  ;;  %v3176_v62 = vld [vmem:[#allocation3 + $0x142] sm:$0xff] }
 0x5c8   :  { %v2954_v5 = vmax.f32 %v2884_v35, 0.0  ;;  %v3182_v35 = vld [vmem:[#allocation3 + $0x1ba] sm:$0xff] }
 0x5c9   :  { %3020 = vst [vmem:[#allocation3 + $0x339] sm:$0xff] %v2955_v13  ;;  %3794 = vrot.lane.b32.xlu1 %v3151_v42, %s6382_s25  ;;  %v9055_v31 = vpop.permute.xlu1 %3634  ;;  %v3178_v42 = vld [vmem:[#allocation3 + $0x15a] sm:$0xff] }
 0x5ca   :  { %3019 = vst [vmem:[#allocation3 + $0x331] sm:$0xff] %v2954_v5  ;;  %6101 = vrot.lane.b32.xlu0 %v6100_v7, %s6382_s25  ;;  %v9033_v14 = vpop.permute.xlu0 %3624  ;;  %11443 = vst [vmem:[#allocation57_spill] sm:$0xff] %v9055_v31  ;;  %v3179_v5 = vld [vmem:[#allocation3 + $0x16a] sm:$0xff] }
 0x5cb   :  { %11436 = vst [vmem:[#allocation8_spill] sm:$0xff] %v9033_v14 }
 0x5cd   :  { %3798 = vrot.lane.b32.xlu1 %v3153_v25, %s6382_s25  ;;  %v6105_v25 = vpack.i.bf16 %v3182_v35, %v3181_v58  ;;  %v3194_v58 = vld [vmem:[#allocation3 + $0x24a] sm:$0xff]  ;;  %v3193_v35 = vld [vmem:[#allocation3 + $0x242] sm:$0xff] }
 0x5ce   :  { %3796 = vrot.lane.b32.xlu0 %v3152_v9, %s6382_s25  ;;  %v9039_v29 = vpop.permute.xlu0 %3628  ;;  %v9061_v26 = vpop.permute.xlu1 %3638 }
 0x5cf   :  { %11438 = vst [vmem:[#allocation222_spill] sm:$0xff] %v9039_v29 }
 0x5d1   :  { %3802 = vrot.lane.b32.xlu1 %v3155_v22, %s6382_s25 }
 0x5d2   :  { %3800 = vrot.lane.b32.xlu0 %v3154_v37, %s6382_s25  ;;  %v9045_v59 = vpop.permute.xlu0 %3632  ;;  %v3180_v37 = vld [vmem:[#allocation3 + $0x172] sm:$0xff] }
 0x5d3   :  { %11440 = vst [vmem:[#allocation54_spill] sm:$0xff] %v9045_v59  ;;  %v9067_v12 = vpop.permute.xlu1 %3642  ;;  %v3208_v59 = vld [vmem:[#allocation3 + $0x2f2] sm:$0xff] }
 0x5d5   :  { %3806 = vrot.lane.b32.xlu1 %v3157_v45, %s6382_s25 }
 0x5d6   :  { %3804 = vrot.lane.b32.xlu0 %v3156_v49, %s6382_s25  ;;  %v9051_v30 = vpop.permute.xlu0 %3636 }
 0x5d7   :  { %11442 = vst [vmem:[#allocation283_spill] sm:$0xff] %v9051_v30  ;;  %v3206_v30 = vld [vmem:[#allocation3 + $0x2da] sm:$0xff] }
 0x5d8   :  { %v9073_v51 = vpop.permute.xlu1 %3646 }
 0x5d9   :  { %3810 = vrot.lane.b32.xlu1 %v3159_v3, %s6382_s25  ;;  %v3184_v3 = vld [vmem:[#allocation3 + $0x1d2] sm:$0xff] }
 0x5da   :  { %3808 = vrot.lane.b32.xlu0 %v3158_v55, %s6382_s25  ;;  %v9057_v19 = vpop.permute.xlu0 %3640  ;;  %v3183_v55 = vld [vmem:[#allocation3 + $0x1ca] sm:$0xff] }
 0x5dd   :  { %3814 = vrot.lane.b32.xlu1 %v3161_v61, %s6382_s25 }
 0x5de   :  { %3812 = vrot.lane.b32.xlu0 %v3160_v28, %s6382_s25  ;;  %v9063_v18 = vpop.permute.xlu0 %3644  ;;  %v9077_v38 = vpop.permute.xlu1 %3650 }
 0x5e1   :  { %3818 = vrot.lane.b32.xlu1 %v3163_v63, %s6382_s25  ;;  %v3186_v63 = vld [vmem:[#allocation3 + $0x1ea] sm:$0xff] }
 0x5e2   :  { %3816 = vrot.lane.b32.xlu0 %v3162_v33, %s6382_s25  ;;  %v9070_v39 = vpop.permute.xlu0 %3648  ;;  %v9083_v15 = vpop.permute.xlu1 %3654  ;;  %v3185_v33 = vld [vmem:[#allocation3 + $0x1e2] sm:$0xff] }
 0x5e5   :  { %3822 = vrot.lane.b32.xlu1 %v3165_v4, %s6382_s25 }
 0x5e6   :  { %3820 = vrot.lane.b32.xlu0 %v3164_v16, %s6382_s25  ;;  %v9079_v46 = vpop.permute.xlu0 %3652  ;;  %v9089_v34 = vpop.permute.xlu1 %3658 }
 0x5e7   :  { %11445 = vst [vmem:[#allocation282_spill] sm:$0xff] %v9089_v34 }
 0x5e9   :  { %3826 = vrot.lane.b32.xlu1 %v3167_v32, %s6382_s25  ;;  %v3188_v32 = vld [vmem:[#allocation3 + $0x202] sm:$0xff] }
 0x5ea   :  { %3824 = vrot.lane.b32.xlu0 %v3166_v44, %s6382_s25  ;;  %v9086_v1 = vpop.permute.xlu0 %3656  ;;  %v9093_v21 = vpop.permute.xlu1 %6096  ;;  %v3187_v44 = vld [vmem:[#allocation3 + $0x1fa] sm:$0xff] }
 0x5eb   :  { %11444 = vst [vmem:[#allocation166_spill] sm:$0xff] %v9086_v1  ;;  %11446 = vst [vmem:[#allocation9_spill] sm:$0xff] %v9093_v21  ;;  %v9843_v1 = vld [vmem:[#allocation3 + $0x172] sm:$0xff] }
 0x5ed   :  { %3830 = vrot.lane.b32.xlu1 %v3169_v36, %s6382_s25 }
 0x5ee   :  { %3828 = vrot.lane.b32.xlu0 %v3168_v20, %s6382_s25  ;;  %v9095_v10 = vpop.permute.xlu0 %3660 }
 0x5ef   :  { %11447 = vst [vmem:[#allocation111_spill] sm:$0xff] %v9095_v10  ;;  %v9099_v7 = vpop.permute.xlu1 %3668  ;;  %v3366_v10 = vld [vmem:[#allocation3 + $0x142] sm:$0xff] }
 0x5f0   :  { %11448 = vst [vmem:[#allocation225_spill] sm:$0xff] %v9099_v7  ;;  %v3318_v7 = vld [vmem:[#allocation3 + $0x231] sm:$0xff] }
 0x5f1   :  { %3834 = vrot.lane.b32.xlu1 %v3171_v60, %s6382_s25  ;;  %v3190_v60 = vld [vmem:[#allocation3 + $0x21a] sm:$0xff] }
 0x5f2   :  { %3832 = vrot.lane.b32.xlu0 %v3170_v11, %s6382_s25  ;;  %v9101_v13 = vpop.permute.xlu0 %3666  ;;  %v3189_v11 = vld [vmem:[#allocation3 + $0x212] sm:$0xff] }
 0x5f3   :  { %11449 = vst [vmem:[#allocation342_spill] sm:$0xff] %v9101_v13 }
 0x5f4   :  { %v9105_v9 = vpop.permute.xlu1 %3672 }
 0x5f5   :  { %3838 = vrot.lane.b32.xlu1 %v3173_v56, %s6382_s25  ;;  %11450 = vst [vmem:[#allocation10_spill] sm:$0xff] %v9105_v9 }
 0x5f6   :  { %3836 = vrot.lane.b32.xlu0 %v3172_v48, %s6382_s25  ;;  %v9107_v22 = vpop.permute.xlu0 %3670 }
 0x5f7   :  { %11451 = vst [vmem:[#allocation110_spill] sm:$0xff] %v9107_v22  ;;  %v9533_v22 = vld [vmem:[#allocation3 + $0x1e1] sm:$0xff] }
 0x5f9   :  { %3842 = vrot.lane.b32.xlu1 %v3175_v52, %s6382_s25  ;;  %v3192_v52 = vld [vmem:[#allocation3 + $0x232] sm:$0xff] }
 0x5fa   :  { %3840 = vrot.lane.b32.xlu0 %v3174_v2, %s6382_s25  ;;  %v3191_v2 = vld [vmem:[#allocation3 + $0x22a] sm:$0xff] }
 0x5fb   :  { %v9111_v45 = vpop.permute.xlu1 %3676 }
 0x5fc   :  { %11452 = vst [vmem:[#allocation224_spill] sm:$0xff] %v9111_v45  ;;  %v9113_v49 = vpop.permute.xlu0 %3674  ;;  %v9515_v45 = vld [vmem:[#allocation3 + $0x181] sm:$0xff] }
 0x5fd   :  { %3846 = vrot.lane.b32.xlu1 %v3177_v43, %s6382_s25  ;;  %11453 = vst [vmem:[#allocation341_spill] sm:$0xff] %v9113_v49 }
 0x5fe   :  { %3844 = vrot.lane.b32.xlu0 %v3176_v62, %s6382_s25 }
 0x5ff   :  { %v9117_v61 = vpop.permute.xlu1 %3680 }
 0x600   :  { %11454 = vst [vmem:[#allocation56_spill] sm:$0xff] %v9117_v61  ;;  %v9119_v28 = vpop.permute.xlu0 %3678  ;;  %v9503_v61 = vld [vmem:[#allocation3 + $0x169] sm:$0xff] }
 0x601   :  { %3850 = vrot.lane.b32.xlu1 %v3179_v5, %s6382_s25  ;;  %11455 = vst [vmem:[#allocation169_spill] sm:$0xff] %v9119_v28 }
 0x602   :  { %3848 = vrot.lane.b32.xlu0 %v3178_v42, %s6382_s25 }
 0x604   :  { %v9123_v4 = vpop.permute.xlu1 %3684 }
 0x605   :  { %6106 = vrot.lane.b32.xlu1 %v6105_v25, %s6382_s25  ;;  %11456 = vst [vmem:[#allocation285_spill] sm:$0xff] %v9123_v4  ;;  %v9125_v16 = vpop.permute.xlu0 %3682  ;;  %v3196_v25 = vld [vmem:[#allocation3 + $0x262] sm:$0xff]  ;;  %v9491_v4 = vld [vmem:[#allocation3 + $0x151] sm:$0xff] }
 0x606   :  { %3852 = vrot.lane.b32.xlu0 %v3180_v37, %s6382_s25  ;;  %11457 = vst [vmem:[#allocation59_spill] sm:$0xff] %v9125_v16  ;;  %v3195_v37 = vld [vmem:[#allocation3 + $0x25a] sm:$0xff] }
 0x609   :  { %3860 = vrot.lane.b32.xlu1 %v3184_v3, %s6382_s25  ;;  %v9129_v36 = vpop.permute.xlu1 %3688 }
 0x60a   :  { %3858 = vrot.lane.b32.xlu0 %v3183_v55, %s6382_s25  ;;  %11458 = vst [vmem:[#allocation168_spill] sm:$0xff] %v9129_v36  ;;  %v9131_v20 = vpop.permute.xlu0 %3686  ;;  %v3298_v36 = vld [vmem:[#allocation3 + $0x111] sm:$0xff] }
 0x60b   :  { %11459 = vst [vmem:[#allocation284_spill] sm:$0xff] %v9131_v20  ;;  %v9463_v20 = vld [vmem:[#allocation3 + $0x129] sm:$0xff] }
 0x60d   :  { %3864 = vrot.lane.b32.xlu1 %v3186_v63, %s6382_s25  ;;  %v3198_v63 = vld [vmem:[#allocation3 + $0x27a] sm:$0xff] }
 0x60e   :  { %3862 = vrot.lane.b32.xlu0 %v3185_v33, %s6382_s25  ;;  %v3197_v33 = vld [vmem:[#allocation3 + $0x272] sm:$0xff] }
 0x610   :  { %v9135_v56 = vpop.permute.xlu1 %3692 }
 0x611   :  { %3868 = vrot.lane.b32.xlu1 %v3188_v32, %s6382_s25  ;;  %11460 = vst [vmem:[#allocation11_spill] sm:$0xff] %v9135_v56  ;;  %v9137_v48 = vpop.permute.xlu0 %3690 }
 0x612   :  { %3866 = vrot.lane.b32.xlu0 %v3187_v44, %s6382_s25  ;;  %11461 = vst [vmem:[#allocation113_spill] sm:$0xff] %v9137_v48  ;;  %v3065_v48 = vld [vmem:[#allocation3 + $0x240] sm:$0xff] }
 0x614   :  { %v9141_v43 = vpop.permute.xlu1 %3696 }
 0x615   :  { %3872 = vrot.lane.b32.xlu1 %v3190_v60, %s6382_s25  ;;  %11462 = vst [vmem:[#allocation227_spill] sm:$0xff] %v9141_v43  ;;  %v9143_v62 = vpop.permute.xlu0 %3694  ;;  %v3200_v60 = vld [vmem:[#allocation3 + $0x292] sm:$0xff] }
 0x616   :  { %3870 = vrot.lane.b32.xlu0 %v3189_v11, %s6382_s25  ;;  %11463 = vst [vmem:[#allocation344_spill] sm:$0xff] %v9143_v62  ;;  %v3199_v11 = vld [vmem:[#allocation3 + $0x28a] sm:$0xff]  ;;  %v3059_v62 = vld [vmem:[#allocation3 + $0x1f8] sm:$0xff] }
 0x619   :  { %3876 = vrot.lane.b32.xlu1 %v3192_v52, %s6382_s25 }
 0x61a   :  { %3874 = vrot.lane.b32.xlu0 %v3191_v2, %s6382_s25  ;;  %v9147_v5 = vpop.permute.xlu1 %3700 }
 0x61b   :  { %11464 = vst [vmem:[#allocation12_spill] sm:$0xff] %v9147_v5  ;;  %v9149_v42 = vpop.permute.xlu0 %3698  ;;  %v3244_v5 = vld [vmem:[#allocation3 + $0x188] sm:$0xff] }
 0x61c   :  { %11465 = vst [vmem:[#allocation112_spill] sm:$0xff] %v9149_v42  ;;  %v3056_v42 = vld [vmem:[#allocation3 + $0x1d0] sm:$0xff] }
 0x61d   :  { %3880 = vrot.lane.b32.xlu1 %v3194_v58, %s6382_s25  ;;  %v3202_v58 = vld [vmem:[#allocation3 + $0x2aa] sm:$0xff] }
 0x61e   :  { %3878 = vrot.lane.b32.xlu0 %v3193_v35, %s6382_s25  ;;  %v3201_v35 = vld [vmem:[#allocation3 + $0x2a2] sm:$0xff] }
 0x620   :  { %v9153_v3 = vpop.permute.xlu1 %3704 }
 0x621   :  { %3884 = vrot.lane.b32.xlu1 %v3196_v25, %s6382_s25  ;;  %11466 = vst [vmem:[#allocation226_spill] sm:$0xff] %v9153_v3  ;;  %v9155_v55 = vpop.permute.xlu0 %3702 }
 0x622   :  { %3882 = vrot.lane.b32.xlu0 %v3195_v37, %s6382_s25  ;;  %11467 = vst [vmem:[#allocation343_spill] sm:$0xff] %v9155_v55  ;;  %v3047_v55 = vld [vmem:[#allocation3 + $0x138] sm:$0xff] }
 0x624   :  { %v9159_v32 = vpop.permute.xlu1 %3708 }
 0x625   :  { %3888 = vrot.lane.b32.xlu1 %v3198_v63, %s6382_s25  ;;  %11468 = vst [vmem:[#allocation58_spill] sm:$0xff] %v9159_v32  ;;  %v9161_v44 = vpop.permute.xlu0 %3706  ;;  %v3204_v63 = vld [vmem:[#allocation3 + $0x2c2] sm:$0xff]  ;;  %v3031_v32 = vld [vmem:[#allocation3 + $0x78] sm:$0xff] }
 0x626   :  { %3886 = vrot.lane.b32.xlu0 %v3197_v33, %s6382_s25  ;;  %11469 = vst [vmem:[#allocation171_spill] sm:$0xff] %v9161_v44  ;;  %v3203_v33 = vld [vmem:[#allocation3 + $0x2ba] sm:$0xff] }
 0x629   :  { %3892 = vrot.lane.b32.xlu1 %v3200_v60, %s6382_s25  ;;  %v9165_v52 = vpop.permute.xlu1 %3712 }
 0x62a   :  { %3890 = vrot.lane.b32.xlu0 %v3199_v11, %s6382_s25  ;;  %11470 = vst [vmem:[#allocation287_spill] sm:$0xff] %v9165_v52  ;;  %v9167_v2 = vpop.permute.xlu0 %3710  ;;  %v3027_v52 = vld [vmem:[#allocation3 + $0x48] sm:$0xff] }
 0x62b   :  { %11471 = vst [vmem:[#allocation61_spill] sm:$0xff] %v9167_v2 }
 0x62d   :  { %3896 = vrot.lane.b32.xlu1 %v3202_v58, %s6382_s25  ;;  %v3205_v58 = vld [vmem:[#allocation3 + $0x2d2] sm:$0xff] }
 0x62e   :  { %3894 = vrot.lane.b32.xlu0 %v3201_v35, %s6382_s25 }
 0x62f   :  { %v9171_v25 = vpop.permute.xlu1 %3716 }
 0x630   :  { %11472 = vst [vmem:[#allocation170_spill] sm:$0xff] %v9171_v25  ;;  %v9173_v37 = vpop.permute.xlu0 %3714  ;;  %v3023_v25 = vld [vmem:[#allocation3 + $0x18] sm:$0xff] }
 0x631   :  { %11473 = vst [vmem:[#allocation286_spill] sm:$0xff] %v9173_v37  ;;  %3900 = vrot.lane.b32.xlu1 %v3204_v63, %s6382_s25  ;;  %v3207_v63 = vld [vmem:[#allocation3 + $0x2ea] sm:$0xff] }
 0x632   :  { %3898 = vrot.lane.b32.xlu0 %v3203_v33, %s6382_s25 }
 0x633   :  { %v9177_v60 = vpop.permute.xlu1 %3720 }
 0x634   :  { %11474 = vst [vmem:[#allocation13_spill] sm:$0xff] %v9177_v60  ;;  %v9179_v11 = vpop.permute.xlu0 %3718 }
 0x635   :  { %11475 = vst [vmem:[#allocation115_spill] sm:$0xff] %v9179_v11  ;;  %3904 = vrot.lane.b32.xlu1 %v3206_v30, %s6382_s25  ;;  %v3210_v11 = vld [vmem:[#allocation3 + $0x30a] sm:$0xff]  ;;  %v3209_v30 = vld [vmem:[#allocation3 + $0x302] sm:$0xff] }
 0x636   :  { %3902 = vrot.lane.b32.xlu0 %v3205_v58, %s6382_s25 }
 0x637   :  { %v9183_v35 = vpop.permute.xlu1 %3724 }
 0x638   :  { %11476 = vst [vmem:[#allocation229_spill] sm:$0xff] %v9183_v35  ;;  %v9185_v31 = vpop.permute.xlu0 %3722 }
 0x639   :  { %11477 = vst [vmem:[#allocation346_spill] sm:$0xff] %v9185_v31  ;;  %3908 = vrot.lane.b32.xlu1 %v3208_v59, %s6382_s25  ;;  %v3212_v31 = vld [vmem:[#allocation3 + $0x322] sm:$0xff]  ;;  %v3211_v59 = vld [vmem:[#allocation3 + $0x31a] sm:$0xff] }
 0x63a   :  { %3906 = vrot.lane.b32.xlu0 %v3207_v63, %s6382_s25 }
 0x63b   :  { %v9189_v33 = vpop.permute.xlu1 %3794 }
 0x63c   :  { %11478 = vst [vmem:[#allocation14_spill] sm:$0xff] %v9189_v33  ;;  %v9191_v60 = vpop.permute.xlu0 %6101  ;;  %v3276_v33 = vld [vmem:[#allocation3 + $0x338] sm:$0xff] }
 0x63d   :  { %11479 = vst [vmem:[#allocation114_spill] sm:$0xff] %v9191_v60  ;;  %3912 = vrot.lane.b32.xlu1 %v3210_v11, %s6382_s25 }
 0x63e   :  { %3910 = vrot.lane.b32.xlu0 %v3209_v30, %s6382_s25  ;;  %v3026_v30 = vld [vmem:[#allocation3 + $0x38] sm:$0xff] }
 0x63f   :  { %v9195_v58 = vpop.permute.xlu1 %3798 }
 0x640   :  { %11480 = vst [vmem:[#allocation228_spill] sm:$0xff] %v9195_v58  ;;  %v9197_v35 = vpop.permute.xlu0 %3796 }
 0x641   :  { %11481 = vst [vmem:[#allocation345_spill] sm:$0xff] %v9197_v35  ;;  %3916 = vrot.lane.b32.xlu1 %v3212_v31, %s6382_s25 }
 0x642   :  { %3914 = vrot.lane.b32.xlu0 %v3211_v59, %s6382_s25  ;;  %v3028_v59 = vld [vmem:[#allocation3 + $0x50] sm:$0xff] }
 0x643   :  { %v9201_v63 = vpop.permute.xlu1 %3802 }
 0x644   :  { %11482 = vst [vmem:[#allocation60_spill] sm:$0xff] %v9201_v63  ;;  %v9203_v29 = vpop.permute.xlu0 %3800 }
 0x645   :  { %11483 = vst [vmem:[#allocation173_spill] sm:$0xff] %v9203_v29  ;;  %3984 = vrot.lane.b32.xlu1 %v3024_v54, %s6384_s27 }
 0x646   :  { %3982 = vrot.lane.b32.xlu0 %v3023_v25, %s6384_s27  ;;  %v3030_v25 = vld [vmem:[#allocation3 + $0x68] sm:$0xff] }
 0x647   :  { %v9207_v11 = vpop.permute.xlu1 %3806 }
 0x648   :  { %11484 = vst [vmem:[#allocation289_spill] sm:$0xff] %v9207_v11  ;;  %v9209_v37 = vpop.permute.xlu0 %3804 }
 0x649   :  { %11485 = vst [vmem:[#allocation63_spill] sm:$0xff] %v9209_v37  ;;  %3988 = vrot.lane.b32.xlu1 %v3026_v30, %s6384_s27  ;;  %v3032_v30 = vld [vmem:[#allocation3 + $0x80] sm:$0xff] }
 0x64a   :  { %3986 = vrot.lane.b32.xlu0 %v3025_v57, %s6384_s27 }
 0x64b   :  { %v9213_v31 = vpop.permute.xlu1 %3810 }
 0x64c   :  { %11486 = vst [vmem:[#allocation172_spill] sm:$0xff] %v9213_v31  ;;  %v9215_v14 = vpop.permute.xlu0 %3808 }
 0x64d   :  { %11487 = vst [vmem:[#allocation288_spill] sm:$0xff] %v9215_v14  ;;  %3992 = vrot.lane.b32.xlu1 %v3028_v59, %s6384_s27  ;;  %v3034_v59 = vld [vmem:[#allocation3 + $0x98] sm:$0xff] }
 0x64e   :  { %3990 = vrot.lane.b32.xlu0 %v3027_v52, %s6384_s27 }
 0x64f   :  { %v9219_v54 = vpop.permute.xlu1 %3814 }
 0x650   :  { %11488 = vst [vmem:[#allocation15_spill] sm:$0xff] %v9219_v54  ;;  %v9221_v2 = vpop.permute.xlu0 %3812 }
 0x651   :  { %11489 = vst [vmem:[#allocation117_spill] sm:$0xff] %v9221_v2  ;;  %3996 = vrot.lane.b32.xlu1 %v3030_v25, %s6384_s27  ;;  %v3033_v2 = vld [vmem:[#allocation3 + $0x90] sm:$0xff] }
 0x652   :  { %3994 = vrot.lane.b32.xlu0 %v3029_v23, %s6384_s27  ;;  %v3036_v25 = vld [vmem:[#allocation3 + $0xb0] sm:$0xff] }
 0x653   :  { %v9225_v57 = vpop.permute.xlu1 %3818 }
 0x654   :  { %11490 = vst [vmem:[#allocation231_spill] sm:$0xff] %v9225_v57  ;;  %v9227_v53 = vpop.permute.xlu0 %3816 }
 0x655   :  { %11491 = vst [vmem:[#allocation348_spill] sm:$0xff] %v9227_v53  ;;  %4000 = vrot.lane.b32.xlu1 %v3032_v30, %s6384_s27  ;;  %v3035_v53 = vld [vmem:[#allocation3 + $0xa8] sm:$0xff] }
 0x656   :  { %3998 = vrot.lane.b32.xlu0 %v3031_v32, %s6384_s27  ;;  %v3038_v30 = vld [vmem:[#allocation3 + $0xc8] sm:$0xff] }
 0x657   :  { %v9231_v52 = vpop.permute.xlu1 %3822 }
 0x658   :  { %11492 = vst [vmem:[#allocation16_spill] sm:$0xff] %v9231_v52  ;;  %v9233_v54 = vpop.permute.xlu0 %3820 }
 0x659   :  { %11493 = vst [vmem:[#allocation116_spill] sm:$0xff] %v9233_v54  ;;  %4004 = vrot.lane.b32.xlu1 %v3034_v59, %s6384_s27  ;;  %v3037_v54 = vld [vmem:[#allocation3 + $0xc0] sm:$0xff] }
 0x65a   :  { %4002 = vrot.lane.b32.xlu0 %v3033_v2, %s6384_s27  ;;  %v3040_v59 = vld [vmem:[#allocation3 + $0xe0] sm:$0xff] }
 0x65b   :  { %v9237_v23 = vpop.permute.xlu1 %3826 }
 0x65c   :  { %11494 = vst [vmem:[#allocation230_spill] sm:$0xff] %v9237_v23  ;;  %v9239_v57 = vpop.permute.xlu0 %3824 }
 0x65d   :  { %11495 = vst [vmem:[#allocation347_spill] sm:$0xff] %v9239_v57  ;;  %4008 = vrot.lane.b32.xlu1 %v3036_v25, %s6384_s27  ;;  %v3039_v57 = vld [vmem:[#allocation3 + $0xd8] sm:$0xff] }
 0x65e   :  { %4006 = vrot.lane.b32.xlu0 %v3035_v53, %s6384_s27  ;;  %v3042_v25 = vld [vmem:[#allocation3 + $0xf8] sm:$0xff] }
 0x65f   :  { %v9243_v32 = vpop.permute.xlu1 %3830 }
 0x660   :  { %v9245_v52 = vpop.permute.xlu0 %3828 }
 0x661   :  { %11496 = vst [vmem:[#allocation62_spill] sm:$0xff] %v9245_v52  ;;  %4012 = vrot.lane.b32.xlu1 %v3038_v30, %s6384_s27  ;;  %v3041_v52 = vld [vmem:[#allocation3 + $0xf0] sm:$0xff] }
 0x662   :  { %4010 = vrot.lane.b32.xlu0 %v3037_v54, %s6384_s27  ;;  %v3044_v30 = vld [vmem:[#allocation3 + $0x110] sm:$0xff] }
 0x663   :  { %v9249_v2 = vpop.permute.xlu1 %3834 }
 0x664   :  { %v9251_v23 = vpop.permute.xlu0 %3832 }
 0x665   :  { %4016 = vrot.lane.b32.xlu1 %v3040_v59, %s6384_s27  ;;  %v3046_v59 = vld [vmem:[#allocation3 + $0x128] sm:$0xff] }
 0x666   :  { %4014 = vrot.lane.b32.xlu0 %v3039_v57, %s6384_s27 }
 0x667   :  { %v9255_v53 = vpop.permute.xlu1 %3838 }
 0x668   :  { %v9257_v44 = vpop.permute.xlu0 %3836 }
 0x669   :  { %4020 = vrot.lane.b32.xlu1 %v3042_v25, %s6384_s27  ;;  %v3048_v25 = vld [vmem:[#allocation3 + $0x140] sm:$0xff] }
 0x66a   :  { %4018 = vrot.lane.b32.xlu0 %v3041_v52, %s6384_s27 }
 0x66b   :  { %v9261_v54 = vpop.permute.xlu1 %3842 }
 0x66c   :  { %v9263_v31 = vpop.permute.xlu0 %3840 }
 0x66d   :  { %4024 = vrot.lane.b32.xlu1 %v3044_v30, %s6384_s27  ;;  %v3050_v30 = vld [vmem:[#allocation3 + $0x158] sm:$0xff] }
 0x66e   :  { %4022 = vrot.lane.b32.xlu0 %v3043_v50, %s6384_s27 }
 0x66f   :  { %v9267_v57 = vpop.permute.xlu1 %3846 }
 0x670   :  { %v9269_v14 = vpop.permute.xlu0 %3844 }
 0x671   :  { %4028 = vrot.lane.b32.xlu1 %v3046_v59, %s6384_s27  ;;  %v3052_v59 = vld [vmem:[#allocation3 + $0x170] sm:$0xff] }
 0x672   :  { %4026 = vrot.lane.b32.xlu0 %v3045_v0, %s6384_s27 }
 0x673   :  { %v9273_v52 = vpop.permute.xlu1 %3850 }
 0x674   :  { %11497 = vst [vmem:[#allocation175_spill] sm:$0xff] %v9273_v52  ;;  %v9275_v3 = vpop.permute.xlu0 %3848 }
 0x675   :  { %11498 = vst [vmem:[#allocation291_spill] sm:$0xff] %v9275_v3  ;;  %4032 = vrot.lane.b32.xlu1 %v3048_v25, %s6384_s27 }
 0x676   :  { %4030 = vrot.lane.b32.xlu0 %v3047_v55, %s6384_s27 }
 0x677   :  { %v9279_v50 = vpop.permute.xlu1 %6106 }
 0x678   :  { %11499 = vst [vmem:[#allocation65_spill] sm:$0xff] %v9279_v50  ;;  %v9281_v11 = vpop.permute.xlu0 %3852 }
 0x679   :  { %11500 = vst [vmem:[#allocation174_spill] sm:$0xff] %v9281_v11  ;;  %4036 = vrot.lane.b32.xlu1 %v3050_v30, %s6384_s27  ;;  %v3243_v30 = vld [vmem:[#allocation3 + $0x180] sm:$0xff] }
 0x67a   :  { %4034 = vrot.lane.b32.xlu0 %v3049_v8, %s6384_s27 }
 0x67b   :  { %v9285_v0 = vpop.permute.xlu1 %3860 }
 0x67c   :  { %11501 = vst [vmem:[#allocation290_spill] sm:$0xff] %v9285_v0  ;;  %v9287_v37 = vpop.permute.xlu0 %3858 }
 0x67d   :  { %11502 = vst [vmem:[#allocation17_spill] sm:$0xff] %v9287_v37  ;;  %4040 = vrot.lane.b32.xlu1 %v3052_v59, %s6384_s27  ;;  %v3058_v59 = vld [vmem:[#allocation3 + $0x1e8] sm:$0xff] }
 0x67e   :  { %4038 = vrot.lane.b32.xlu0 %v3051_v47, %s6384_s27 }
 0x67f   :  { %v9291_v55 = vpop.permute.xlu1 %3864 }
 0x680   :  { %11503 = vst [vmem:[#allocation119_spill] sm:$0xff] %v9291_v55  ;;  %v9293_v25 = vpop.permute.xlu0 %3862  ;;  %v3310_v55 = vld [vmem:[#allocation3 + $0x1d1] sm:$0xff] }
 0x681   :  { %11504 = vst [vmem:[#allocation233_spill] sm:$0xff] %v9293_v25  ;;  %4044 = vrot.lane.b32.xlu1 %v3244_v5, %s6384_s27  ;;  %v9529_v25 = vld [vmem:[#allocation3 + $0x1e9] sm:$0xff] }
 0x682   :  { %4042 = vrot.lane.b32.xlu0 %v3243_v30, %s6384_s27  ;;  %v3060_v30 = vld [vmem:[#allocation3 + $0x200] sm:$0xff] }
 0x683   :  { %v9297_v8 = vpop.permute.xlu1 %3868 }
 0x684   :  { %11505 = vst [vmem:[#allocation350_spill] sm:$0xff] %v9297_v8  ;;  %v9299_v63 = vpop.permute.xlu0 %3866  ;;  %v9511_v8 = vld [vmem:[#allocation3 + $0x189] sm:$0xff] }
 0x685   :  { %11506 = vst [vmem:[#allocation18_spill] sm:$0xff] %v9299_v63  ;;  %4048 = vrot.lane.b32.xlu1 %v3056_v42, %s6384_s27  ;;  %v3062_v42 = vld [vmem:[#allocation3 + $0x218] sm:$0xff] }
 0x686   :  { %4046 = vrot.lane.b32.xlu0 %v3055_v17, %s6384_s27 }
 0x687   :  { %v9303_v47 = vpop.permute.xlu1 %3872 }
 0x688   :  { %11507 = vst [vmem:[#allocation118_spill] sm:$0xff] %v9303_v47  ;;  %v9305_v29 = vpop.permute.xlu0 %3870  ;;  %v9499_v47 = vld [vmem:[#allocation3 + $0x171] sm:$0xff] }
 0x689   :  { %11508 = vst [vmem:[#allocation232_spill] sm:$0xff] %v9305_v29  ;;  %4052 = vrot.lane.b32.xlu1 %v3058_v59, %s6384_s27  ;;  %v3064_v59 = vld [vmem:[#allocation3 + $0x230] sm:$0xff] }
 0x68a   :  { %4050 = vrot.lane.b32.xlu0 %v3057_v24, %s6384_s27 }
 0x68b   :  { %v9309_v5 = vpop.permute.xlu1 %3876 }
 0x68c   :  { %11509 = vst [vmem:[#allocation349_spill] sm:$0xff] %v9309_v5  ;;  %v9311_v43 = vpop.permute.xlu0 %3874  ;;  %v9487_v5 = vld [vmem:[#allocation3 + $0x159] sm:$0xff] }
 0x68d   :  { %11510 = vst [vmem:[#allocation64_spill] sm:$0xff] %v9311_v43  ;;  %4056 = vrot.lane.b32.xlu1 %v3060_v30, %s6384_s27  ;;  %v3066_v30 = vld [vmem:[#allocation3 + $0x248] sm:$0xff] }
 0x68e   :  { %4054 = vrot.lane.b32.xlu0 %v3059_v62, %s6384_s27 }
 0x68f   :  { %v9315_v17 = vpop.permute.xlu1 %3880 }
 0x690   :  { %11511 = vst [vmem:[#allocation177_spill] sm:$0xff] %v9315_v17  ;;  %v9317_v58 = vpop.permute.xlu0 %3878 }
 0x691   :  { %11512 = vst [vmem:[#allocation293_spill] sm:$0xff] %v9317_v58  ;;  %4060 = vrot.lane.b32.xlu1 %v3062_v42, %s6384_s27  ;;  %v3068_v42 = vld [vmem:[#allocation3 + $0x260] sm:$0xff] }
 0x692   :  { %4058 = vrot.lane.b32.xlu0 %v3061_v41, %s6384_s27 }
 0x693   :  { %v9321_v24 = vpop.permute.xlu1 %3884 }
 0x694   :  { %11513 = vst [vmem:[#allocation67_spill] sm:$0xff] %v9321_v24  ;;  %v9323_v35 = vpop.permute.xlu0 %3882 }
 0x695   :  { %11514 = vst [vmem:[#allocation176_spill] sm:$0xff] %v9323_v35  ;;  %4064 = vrot.lane.b32.xlu1 %v3064_v59, %s6384_s27  ;;  %v3067_v35 = vld [vmem:[#allocation3 + $0x258] sm:$0xff] }
 0x696   :  { %4062 = vrot.lane.b32.xlu0 %v3063_v6, %s6384_s27  ;;  %v3070_v59 = vld [vmem:[#allocation3 + $0x278] sm:$0xff] }
 0x697   :  { %v9327_v62 = vpop.permute.xlu1 %3888 }
 0x698   :  { %11515 = vst [vmem:[#allocation292_spill] sm:$0xff] %v9327_v62  ;;  %v9329_v56 = vpop.permute.xlu0 %3886 }
 0x699   :  { %11516 = vst [vmem:[#allocation19_spill] sm:$0xff] %v9329_v56  ;;  %4068 = vrot.lane.b32.xlu1 %v3066_v30, %s6384_s27  ;;  %v3069_v56 = vld [vmem:[#allocation3 + $0x270] sm:$0xff] }
 0x69a   :  { %4066 = vrot.lane.b32.xlu0 %v3065_v48, %s6384_s27  ;;  %v3072_v30 = vld [vmem:[#allocation3 + $0x290] sm:$0xff] }
 0x69b   :  { %v9333_v41 = vpop.permute.xlu1 %3892 }
 0x69c   :  { %11517 = vst [vmem:[#allocation121_spill] sm:$0xff] %v9333_v41  ;;  %v9335_v24 = vpop.permute.xlu0 %3890 }
 0x69d   :  { %11518 = vst [vmem:[#allocation235_spill] sm:$0xff] %v9335_v24  ;;  %4072 = vrot.lane.b32.xlu1 %v3068_v42, %s6384_s27  ;;  %v3071_v24 = vld [vmem:[#allocation3 + $0x288] sm:$0xff] }
 0x69e   :  { %4070 = vrot.lane.b32.xlu0 %v3067_v35, %s6384_s27  ;;  %v3074_v42 = vld [vmem:[#allocation3 + $0x2a8] sm:$0xff] }
 0x69f   :  { %v9339_v6 = vpop.permute.xlu1 %3896 }
 0x6a0   :  { %11519 = vst [vmem:[#allocation352_spill] sm:$0xff] %v9339_v6  ;;  %v9341_v62 = vpop.permute.xlu0 %3894 }
 0x6a1   :  { %11520 = vst [vmem:[#allocation20_spill] sm:$0xff] %v9341_v62  ;;  %4076 = vrot.lane.b32.xlu1 %v3070_v59, %s6384_s27  ;;  %v3073_v62 = vld [vmem:[#allocation3 + $0x2a0] sm:$0xff] }
 0x6a2   :  { %4074 = vrot.lane.b32.xlu0 %v3069_v56, %s6384_s27  ;;  %v3076_v59 = vld [vmem:[#allocation3 + $0x2c0] sm:$0xff] }
 0x6a3   :  { %v9345_v48 = vpop.permute.xlu1 %3900 }
 0x6a4   :  { %11521 = vst [vmem:[#allocation120_spill] sm:$0xff] %v9345_v48  ;;  %v9347_v41 = vpop.permute.xlu0 %3898 }
 0x6a5   :  { %11522 = vst [vmem:[#allocation234_spill] sm:$0xff] %v9347_v41  ;;  %4080 = vrot.lane.b32.xlu1 %v3072_v30, %s6384_s27  ;;  %v3075_v41 = vld [vmem:[#allocation3 + $0x2b8] sm:$0xff] }
 0x6a6   :  { %4078 = vrot.lane.b32.xlu0 %v3071_v24, %s6384_s27  ;;  %v3078_v30 = vld [vmem:[#allocation3 + $0x2d8] sm:$0xff] }
 0x6a7   :  { %v9351_v35 = vpop.permute.xlu1 %3904 }
 0x6a8   :  { %11523 = vst [vmem:[#allocation351_spill] sm:$0xff] %v9351_v35  ;;  %v9353_v6 = vpop.permute.xlu0 %3902 }
 0x6a9   :  { %11524 = vst [vmem:[#allocation66_spill] sm:$0xff] %v9353_v6  ;;  %4084 = vrot.lane.b32.xlu1 %v3074_v42, %s6384_s27  ;;  %v3077_v6 = vld [vmem:[#allocation3 + $0x2d0] sm:$0xff] }
 0x6aa   :  { %4082 = vrot.lane.b32.xlu0 %v3073_v62, %s6384_s27  ;;  %v3080_v42 = vld [vmem:[#allocation3 + $0x2f0] sm:$0xff] }
 0x6ab   :  { %v9357_v56 = vpop.permute.xlu1 %3908 }
 0x6ac   :  { %11525 = vst [vmem:[#allocation179_spill] sm:$0xff] %v9357_v56  ;;  %v9359_v48 = vpop.permute.xlu0 %3906 }
 0x6ad   :  { %11526 = vst [vmem:[#allocation295_spill] sm:$0xff] %v9359_v48  ;;  %4088 = vrot.lane.b32.xlu1 %v3076_v59, %s6384_s27  ;;  %v3079_v48 = vld [vmem:[#allocation3 + $0x2e8] sm:$0xff] }
 0x6ae   :  { %4086 = vrot.lane.b32.xlu0 %v3075_v41, %s6384_s27  ;;  %v3082_v59 = vld [vmem:[#allocation3 + $0x308] sm:$0xff] }
 0x6af   :  { %v9363_v24 = vpop.permute.xlu1 %3912 }
 0x6b0   :  { %11527 = vst [vmem:[#allocation69_spill] sm:$0xff] %v9363_v24  ;;  %v9365_v35 = vpop.permute.xlu0 %3910 }
 0x6b1   :  { %11528 = vst [vmem:[#allocation178_spill] sm:$0xff] %v9365_v35  ;;  %4092 = vrot.lane.b32.xlu1 %v3078_v30, %s6384_s27  ;;  %v3081_v35 = vld [vmem:[#allocation3 + $0x300] sm:$0xff] }
 0x6b2   :  { %4090 = vrot.lane.b32.xlu0 %v3077_v6, %s6384_s27  ;;  %v3084_v30 = vld [vmem:[#allocation3 + $0x320] sm:$0xff] }
 0x6b3   :  { %v9369_v62 = vpop.permute.xlu1 %3916 }
 0x6b4   :  { %11529 = vst [vmem:[#allocation294_spill] sm:$0xff] %v9369_v62  ;;  %v9371_v56 = vpop.permute.xlu0 %3914 }
 0x6b5   :  { %11530 = vst [vmem:[#allocation123_spill] sm:$0xff] %v9371_v56  ;;  %4096 = vrot.lane.b32.xlu1 %v3080_v42, %s6384_s27  ;;  %v3083_v56 = vld [vmem:[#allocation3 + $0x318] sm:$0xff] }
 0x6b6   :  { %4094 = vrot.lane.b32.xlu0 %v3079_v48, %s6384_s27 }
 0x6b7   :  { %v9375_v41 = vpop.permute.xlu1 %3984 }
 0x6b8   :  { %11531 = vst [vmem:[#allocation237_spill] sm:$0xff] %v9375_v41  ;;  %v9377_v24 = vpop.permute.xlu0 %3982  ;;  %v3296_v41 = vld [vmem:[#allocation3 + $0xf9] sm:$0xff] }
 0x6b9   :  { %11532 = vst [vmem:[#allocation354_spill] sm:$0xff] %v9377_v24  ;;  %4100 = vrot.lane.b32.xlu1 %v3082_v59, %s6384_s27  ;;  %v3275_v59 = vld [vmem:[#allocation3 + $0x330] sm:$0xff]  ;;  %v9475_v24 = vld [vmem:[#allocation3 + $0x141] sm:$0xff] }
 0x6ba   :  { %4098 = vrot.lane.b32.xlu0 %v3081_v35, %s6384_s27 }
 0x6bb   :  { %v9381_v6 = vpop.permute.xlu1 %3988 }
 0x6bc   :  { %11533 = vst [vmem:[#allocation122_spill] sm:$0xff] %v9381_v6  ;;  %v9383_v62 = vpop.permute.xlu0 %3986 }
 0x6bd   :  { %11534 = vst [vmem:[#allocation236_spill] sm:$0xff] %v9383_v62  ;;  %4104 = vrot.lane.b32.xlu1 %v3084_v30, %s6384_s27  ;;  %v3278_v62 = vld [vmem:[#allocation3 + $0x21] sm:$0xff]  ;;  %v3277_v30 = vld [vmem:[#allocation3 + $0x19] sm:$0xff] }
 0x6be   :  { %4102 = vrot.lane.b32.xlu0 %v3083_v56, %s6384_s27 }
 0x6bf   :  { %v9387_v48 = vpop.permute.xlu1 %3992 }
 0x6c0   :  { %11535 = vst [vmem:[#allocation353_spill] sm:$0xff] %v9387_v48  ;;  %v9389_v42 = vpop.permute.xlu0 %3990 }
 0x6c1   :  { %11536 = vst [vmem:[#allocation68_spill] sm:$0xff] %v9389_v42  ;;  %4108 = vrot.lane.b32.xlu1 %v3276_v33, %s6384_s27  ;;  %v3280_v42 = vld [vmem:[#allocation3 + $0x39] sm:$0xff]  ;;  %v3279_v33 = vld [vmem:[#allocation3 + $0x31] sm:$0xff] }
 0x6c2   :  { %4106 = vrot.lane.b32.xlu0 %v3275_v59, %s6384_s27 }
 0x6c3   :  { %v9393_v35 = vpop.permute.xlu1 %3996 }
 0x6c4   :  { %11537 = vst [vmem:[#allocation181_spill] sm:$0xff] %v9393_v35  ;;  %v9395_v6 = vpop.permute.xlu0 %3994 }
 0x6c5   :  { %11538 = vst [vmem:[#allocation297_spill] sm:$0xff] %v9395_v6  ;;  %4176 = vrot.lane.b32.xlu1 %v3278_v62, %s6386_s1  ;;  %v3282_v6 = vld [vmem:[#allocation3 + $0x51] sm:$0xff]  ;;  %v3281_v62 = vld [vmem:[#allocation3 + $0x49] sm:$0xff] }
 0x6c6   :  { %4174 = vrot.lane.b32.xlu0 %v3277_v30, %s6386_s1 }
 0x6c7   :  { %v9399_v56 = vpop.permute.xlu1 %4000 }
 0x6c8   :  { %11539 = vst [vmem:[#allocation71_spill] sm:$0xff] %v9399_v56  ;;  %v9401_v48 = vpop.permute.xlu0 %3998 }
 0x6c9   :  { %11540 = vst [vmem:[#allocation180_spill] sm:$0xff] %v9401_v48  ;;  %4180 = vrot.lane.b32.xlu1 %v3280_v42, %s6386_s1  ;;  %v3284_v48 = vld [vmem:[#allocation3 + $0x69] sm:$0xff]  ;;  %v3283_v42 = vld [vmem:[#allocation3 + $0x61] sm:$0xff] }
 0x6ca   :  { %4178 = vrot.lane.b32.xlu0 %v3279_v33, %s6386_s1 }
 0x6cb   :  { %v9405_v59 = vpop.permute.xlu1 %4004 }
 0x6cc   :  { %11541 = vst [vmem:[#allocation296_spill] sm:$0xff] %v9405_v59  ;;  %v9407_v35 = vpop.permute.xlu0 %4002 }
 0x6cd   :  { %11542 = vst [vmem:[#allocation22_spill] sm:$0xff] %v9407_v35  ;;  %4184 = vrot.lane.b32.xlu1 %v3282_v6, %s6386_s1  ;;  %v3286_v35 = vld [vmem:[#allocation3 + $0x81] sm:$0xff]  ;;  %v3285_v6 = vld [vmem:[#allocation3 + $0x79] sm:$0xff] }
 0x6ce   :  { %4182 = vrot.lane.b32.xlu0 %v3281_v62, %s6386_s1 }
 0x6cf   :  { %v9411_v30 = vpop.permute.xlu1 %4008 }
 0x6d0   :  { %11543 = vst [vmem:[#allocation125_spill] sm:$0xff] %v9411_v30  ;;  %v9413_v56 = vpop.permute.xlu0 %4006 }
 0x6d1   :  { %11544 = vst [vmem:[#allocation239_spill] sm:$0xff] %v9413_v56  ;;  %4188 = vrot.lane.b32.xlu1 %v3284_v48, %s6386_s1  ;;  %v3288_v56 = vld [vmem:[#allocation3 + $0x99] sm:$0xff]  ;;  %v3287_v48 = vld [vmem:[#allocation3 + $0x91] sm:$0xff] }
 0x6d2   :  { %4186 = vrot.lane.b32.xlu0 %v3283_v42, %s6386_s1 }
 0x6d3   :  { %v9417_v33 = vpop.permute.xlu1 %4012 }
 0x6d4   :  { %11545 = vst [vmem:[#allocation356_spill] sm:$0xff] %v9417_v33  ;;  %v9419_v59 = vpop.permute.xlu0 %4010 }
 0x6d5   :  { %11546 = vst [vmem:[#allocation21_spill] sm:$0xff] %v9419_v59  ;;  %4192 = vrot.lane.b32.xlu1 %v3286_v35, %s6386_s1  ;;  %v3290_v59 = vld [vmem:[#allocation3 + $0xb1] sm:$0xff]  ;;  %v3289_v35 = vld [vmem:[#allocation3 + $0xa9] sm:$0xff] }
 0x6d6   :  { %4190 = vrot.lane.b32.xlu0 %v3285_v6, %s6386_s1 }
 0x6d7   :  { %v9423_v62 = vpop.permute.xlu1 %4016 }
 0x6d8   :  { %11547 = vst [vmem:[#allocation124_spill] sm:$0xff] %v9423_v62  ;;  %v9425_v30 = vpop.permute.xlu0 %4014 }
 0x6d9   :  { %11548 = vst [vmem:[#allocation238_spill] sm:$0xff] %v9425_v30  ;;  %4196 = vrot.lane.b32.xlu1 %v3288_v56, %s6386_s1  ;;  %v3292_v30 = vld [vmem:[#allocation3 + $0xc9] sm:$0xff]  ;;  %v3291_v56 = vld [vmem:[#allocation3 + $0xc1] sm:$0xff] }
 0x6da   :  { %4194 = vrot.lane.b32.xlu0 %v3287_v48, %s6386_s1 }
 0x6db   :  { %v9429_v42 = vpop.permute.xlu1 %4020 }
 0x6dc   :  { %11549 = vst [vmem:[#allocation355_spill] sm:$0xff] %v9429_v42  ;;  %v9431_v33 = vpop.permute.xlu0 %4018 }
 0x6dd   :  { %11550 = vst [vmem:[#allocation70_spill] sm:$0xff] %v9431_v33  ;;  %4200 = vrot.lane.b32.xlu1 %v3290_v59, %s6386_s1  ;;  %v3294_v33 = vld [vmem:[#allocation3 + $0xe1] sm:$0xff]  ;;  %v3293_v59 = vld [vmem:[#allocation3 + $0xd9] sm:$0xff] }
 0x6de   :  { %4198 = vrot.lane.b32.xlu0 %v3289_v35, %s6386_s1 }
 0x6df   :  { %v9435_v6 = vpop.permute.xlu1 %4024 }
 0x6e0   :  { %v9437_v62 = vpop.permute.xlu0 %4022 }
 0x6e1   :  { %4204 = vrot.lane.b32.xlu1 %v3292_v30, %s6386_s1  ;;  %v3295_v30 = vld [vmem:[#allocation3 + $0xf1] sm:$0xff] }
 0x6e2   :  { %4202 = vrot.lane.b32.xlu0 %v3291_v56, %s6386_s1 }
 0x6e3   :  { %v9441_v48 = vpop.permute.xlu1 %4028 }
 0x6e4   :  { %v9443_v42 = vpop.permute.xlu0 %4026 }
 0x6e5   :  { %4208 = vrot.lane.b32.xlu1 %v3294_v33, %s6386_s1  ;;  %v3297_v33 = vld [vmem:[#allocation3 + $0x109] sm:$0xff] }
 0x6e6   :  { %4206 = vrot.lane.b32.xlu0 %v3293_v59, %s6386_s1 }
 0x6e7   :  { %v9447_v35 = vpop.permute.xlu1 %4032 }
 0x6e8   :  { %v9449_v40 = vpop.permute.xlu0 %4030 }
 0x6e9   :  { %4212 = vrot.lane.b32.xlu1 %v3296_v41, %s6386_s1  ;;  %v9467_v41 = vld [vmem:[#allocation3 + $0x121] sm:$0xff] }
 0x6ea   :  { %4210 = vrot.lane.b32.xlu0 %v3295_v30, %s6386_s1 }
 0x6eb   :  { %v9453_v56 = vpop.permute.xlu1 %4036 }
 0x6ec   :  { %v9455_v17 = vpop.permute.xlu0 %4034 }
 0x6ed   :  { %4216 = vrot.lane.b32.xlu1 %v3298_v36, %s6386_s1 }
 0x6ee   :  { %4214 = vrot.lane.b32.xlu0 %v3297_v33, %s6386_s1  ;;  %v9479_v33 = vld [vmem:[#allocation3 + $0x139] sm:$0xff] }
 0x6ef   :  { %v9459_v59 = vpop.permute.xlu1 %4040 }
 0x6f0   :  { %11551 = vst [vmem:[#allocation183_spill] sm:$0xff] %v9459_v59  ;;  %v9461_v58 = vpop.permute.xlu0 %4038 }
 0x6f1   :  { %4220 = vrot.lane.b32.xlu1 %v9463_v20, %s6386_s1 }
 0x6f2   :  { %4218 = vrot.lane.b32.xlu0 %v9467_v41, %s6386_s1 }
 0x6f3   :  { %v9471_v30 = vpop.permute.xlu1 %4044 }
 0x6f4   :  { %11552 = vst [vmem:[#allocation299_spill] sm:$0xff] %v9471_v30  ;;  %v9473_v36 = vpop.permute.xlu0 %4042 }
 0x6f5   :  { %11553 = vst [vmem:[#allocation73_spill] sm:$0xff] %v9473_v36  ;;  %4224 = vrot.lane.b32.xlu1 %v9475_v24, %s6386_s1 }
 0x6f6   :  { %4222 = vrot.lane.b32.xlu0 %v9479_v33, %s6386_s1 }
 0x6f7   :  { %v9483_v60 = vpop.permute.xlu1 %4048 }
 0x6f8   :  { %11554 = vst [vmem:[#allocation182_spill] sm:$0xff] %v9483_v60  ;;  %v9485_v27 = vpop.permute.xlu0 %4046 }
 0x6f9   :  { %11555 = vst [vmem:[#allocation298_spill] sm:$0xff] %v9485_v27  ;;  %4228 = vrot.lane.b32.xlu1 %v9487_v5, %s6386_s1 }
 0x6fa   :  { %4226 = vrot.lane.b32.xlu0 %v9491_v4, %s6386_s1 }
 0x6fb   :  { %v9495_v43 = vpop.permute.xlu1 %4052 }
 0x6fc   :  { %11556 = vst [vmem:[#allocation127_spill] sm:$0xff] %v9495_v43  ;;  %v9497_v16 = vpop.permute.xlu0 %4050  ;;  %v3316_v43 = vld [vmem:[#allocation3 + $0x219] sm:$0xff] }
 0x6fd   :  { %11557 = vst [vmem:[#allocation241_spill] sm:$0xff] %v9497_v16  ;;  %4232 = vrot.lane.b32.xlu1 %v9499_v47, %s6386_s1  ;;  %v3317_v16 = vld [vmem:[#allocation3 + $0x229] sm:$0xff] }
 0x6fe   :  { %4230 = vrot.lane.b32.xlu0 %v9503_v61, %s6386_s1 }
 0x6ff   :  { %v9507_v29 = vpop.permute.xlu1 %4056 }
 0x700   :  { %11558 = vst [vmem:[#allocation358_spill] sm:$0xff] %v9507_v29  ;;  %v9509_v28 = vpop.permute.xlu0 %4054  ;;  %v3309_v29 = vld [vmem:[#allocation3 + $0x1c9] sm:$0xff] }
 0x701   :  { %11559 = vst [vmem:[#allocation23_spill] sm:$0xff] %v9509_v28  ;;  %4236 = vrot.lane.b32.xlu1 %v9511_v8, %s6386_s1 }
 0x702   :  { %4234 = vrot.lane.b32.xlu0 %v9515_v45, %s6386_s1 }
 0x703   :  { %v9519_v63 = vpop.permute.xlu1 %4060 }
 0x704   :  { %11560 = vst [vmem:[#allocation126_spill] sm:$0xff] %v9519_v63  ;;  %v9521_v49 = vpop.permute.xlu0 %4058 }
 0x705   :  { %11561 = vst [vmem:[#allocation240_spill] sm:$0xff] %v9521_v49  ;;  %4240 = vrot.lane.b32.xlu1 %v3310_v55, %s6386_s1  ;;  %v9541_v49 = vld [vmem:[#allocation3 + $0x201] sm:$0xff] }
 0x706   :  { %4238 = vrot.lane.b32.xlu0 %v3309_v29, %s6386_s1  ;;  %v9545_v29 = vld [vmem:[#allocation3 + $0x1f9] sm:$0xff] }
 0x707   :  { %v9525_v9 = vpop.permute.xlu1 %4064 }
 0x708   :  { %11562 = vst [vmem:[#allocation357_spill] sm:$0xff] %v9525_v9  ;;  %v9527_v28 = vpop.permute.xlu0 %4062 }
 0x709   :  { %11563 = vst [vmem:[#allocation72_spill] sm:$0xff] %v9527_v28  ;;  %4244 = vrot.lane.b32.xlu1 %v9529_v25, %s6386_s1 }
 0x70a   :  { %4242 = vrot.lane.b32.xlu0 %v9533_v22, %s6386_s1 }
 0x70b   :  { %v9537_v63 = vpop.permute.xlu1 %4068 }
 0x70c   :  { %11564 = vst [vmem:[#allocation185_spill] sm:$0xff] %v9537_v63  ;;  %v9539_v55 = vpop.permute.xlu0 %4066  ;;  %v3315_v63 = vld [vmem:[#allocation3 + $0x211] sm:$0xff] }
 0x70d   :  { %11565 = vst [vmem:[#allocation301_spill] sm:$0xff] %v9539_v55  ;;  %4248 = vrot.lane.b32.xlu1 %v9541_v49, %s6386_s1 }
 0x70e   :  { %4246 = vrot.lane.b32.xlu0 %v9545_v29, %s6386_s1 }
 0x70f   :  { %v9549_v9 = vpop.permute.xlu1 %4072 }
 0x710   :  { %11566 = vst [vmem:[#allocation75_spill] sm:$0xff] %v9549_v9  ;;  %v9551_v28 = vpop.permute.xlu0 %4070 }
 0x711   :  { %11567 = vst [vmem:[#allocation184_spill] sm:$0xff] %v9551_v28  ;;  %4252 = vrot.lane.b32.xlu1 %v3316_v43, %s6386_s1  ;;  %v3320_v28 = vld [vmem:[#allocation3 + $0x249] sm:$0xff]  ;;  %v3319_v43 = vld [vmem:[#allocation3 + $0x241] sm:$0xff] }
 0x712   :  { %4250 = vrot.lane.b32.xlu0 %v3315_v63, %s6386_s1 }
 0x713   :  { %v9555_v55 = vpop.permute.xlu1 %4076 }
 0x714   :  { %11568 = vst [vmem:[#allocation300_spill] sm:$0xff] %v9555_v55  ;;  %v9557_v0 = vpop.permute.xlu0 %4074 }
 0x715   :  { %11569 = vst [vmem:[#allocation24_spill] sm:$0xff] %v9557_v0  ;;  %4256 = vrot.lane.b32.xlu1 %v3318_v7, %s6386_s1  ;;  %v3322_v0 = vld [vmem:[#allocation3 + $0x261] sm:$0xff]  ;;  %v3321_v7 = vld [vmem:[#allocation3 + $0x259] sm:$0xff] }
 0x716   :  { %4254 = vrot.lane.b32.xlu0 %v3317_v16, %s6386_s1 }
 0x717   :  { %v9561_v37 = vpop.permute.xlu1 %4080 }
 0x718   :  { %11570 = vst [vmem:[#allocation129_spill] sm:$0xff] %v9561_v37  ;;  %v9563_v9 = vpop.permute.xlu0 %4078 }
 0x719   :  { %11571 = vst [vmem:[#allocation243_spill] sm:$0xff] %v9563_v9  ;;  %4260 = vrot.lane.b32.xlu1 %v3320_v28, %s6386_s1  ;;  %v3324_v9 = vld [vmem:[#allocation3 + $0x279] sm:$0xff]  ;;  %v3323_v28 = vld [vmem:[#allocation3 + $0x271] sm:$0xff] }
 0x71a   :  { %4258 = vrot.lane.b32.xlu0 %v3319_v43, %s6386_s1 }
 0x71b   :  { %v9567_v63 = vpop.permute.xlu1 %4084 }
 0x71c   :  { %11572 = vst [vmem:[#allocation360_spill] sm:$0xff] %v9567_v63  ;;  %v9569_v55 = vpop.permute.xlu0 %4082 }
 0x71d   :  { %11573 = vst [vmem:[#allocation128_spill] sm:$0xff] %v9569_v55  ;;  %4264 = vrot.lane.b32.xlu1 %v3322_v0, %s6386_s1  ;;  %v3326_v55 = vld [vmem:[#allocation3 + $0x291] sm:$0xff]  ;;  %v3325_v0 = vld [vmem:[#allocation3 + $0x289] sm:$0xff] }
 0x71e   :  { %4262 = vrot.lane.b32.xlu0 %v3321_v7, %s6386_s1 }
 0x71f   :  { %v9573_v16 = vpop.permute.xlu1 %4088 }
 0x720   :  { %11574 = vst [vmem:[#allocation242_spill] sm:$0xff] %v9573_v16  ;;  %v9575_v37 = vpop.permute.xlu0 %4086 }
 0x721   :  { %11575 = vst [vmem:[#allocation359_spill] sm:$0xff] %v9575_v37  ;;  %4268 = vrot.lane.b32.xlu1 %v3324_v9, %s6386_s1  ;;  %v3328_v37 = vld [vmem:[#allocation3 + $0x2a9] sm:$0xff]  ;;  %v3327_v9 = vld [vmem:[#allocation3 + $0x2a1] sm:$0xff] }
 0x722   :  { %4266 = vrot.lane.b32.xlu0 %v3323_v28, %s6386_s1 }
 0x723   :  { %v9579_v43 = vpop.permute.xlu1 %4092 }
 0x724   :  { %11576 = vst [vmem:[#allocation187_spill] sm:$0xff] %v9579_v43  ;;  %v9581_v63 = vpop.permute.xlu0 %4090 }
 0x725   :  { %11577 = vst [vmem:[#allocation303_spill] sm:$0xff] %v9581_v63  ;;  %4272 = vrot.lane.b32.xlu1 %v3326_v55, %s6386_s1  ;;  %v3330_v63 = vld [vmem:[#allocation3 + $0x2c1] sm:$0xff]  ;;  %v3329_v55 = vld [vmem:[#allocation3 + $0x2b9] sm:$0xff] }
 0x726   :  { %4270 = vrot.lane.b32.xlu0 %v3325_v0, %s6386_s1 }
 0x727   :  { %v9585_v7 = vpop.permute.xlu1 %4096 }
 0x728   :  { %11578 = vst [vmem:[#allocation77_spill] sm:$0xff] %v9585_v7  ;;  %v9587_v16 = vpop.permute.xlu0 %4094 }
 0x729   :  { %11579 = vst [vmem:[#allocation186_spill] sm:$0xff] %v9587_v16  ;;  %4276 = vrot.lane.b32.xlu1 %v3328_v37, %s6386_s1  ;;  %v3332_v16 = vld [vmem:[#allocation3 + $0x2d9] sm:$0xff]  ;;  %v3331_v37 = vld [vmem:[#allocation3 + $0x2d1] sm:$0xff] }
 0x72a   :  { %4274 = vrot.lane.b32.xlu0 %v3327_v9, %s6386_s1 }
 0x72b   :  { %v9591_v28 = vpop.permute.xlu1 %4100 }
 0x72c   :  { %11580 = vst [vmem:[#allocation302_spill] sm:$0xff] %v9591_v28  ;;  %v9593_v43 = vpop.permute.xlu0 %4098 }
 0x72d   :  { %11581 = vst [vmem:[#allocation26_spill] sm:$0xff] %v9593_v43  ;;  %4280 = vrot.lane.b32.xlu1 %v3330_v63, %s6386_s1  ;;  %v3334_v43 = vld [vmem:[#allocation3 + $0x2f1] sm:$0xff]  ;;  %v3333_v63 = vld [vmem:[#allocation3 + $0x2e9] sm:$0xff] }
 0x72e   :  { %4278 = vrot.lane.b32.xlu0 %v3329_v55, %s6386_s1 }
 0x72f   :  { %v9597_v0 = vpop.permute.xlu1 %4104 }
 0x730   :  { %11582 = vst [vmem:[#allocation74_spill] sm:$0xff] %v9597_v0  ;;  %v9599_v7 = vpop.permute.xlu0 %4102 }
 0x731   :  { %11583 = vst [vmem:[#allocation245_spill] sm:$0xff] %v9599_v7  ;;  %4284 = vrot.lane.b32.xlu1 %v3332_v16, %s6386_s1  ;;  %v3336_v7 = vld [vmem:[#allocation3 + $0x309] sm:$0xff]  ;;  %v3335_v16 = vld [vmem:[#allocation3 + $0x301] sm:$0xff] }
 0x732   :  { %4282 = vrot.lane.b32.xlu0 %v3331_v37, %s6386_s1 }
 0x733   :  { %v9603_v9 = vpop.permute.xlu1 %4108 }
 0x734   :  { %11584 = vst [vmem:[#allocation362_spill] sm:$0xff] %v9603_v9  ;;  %v9605_v28 = vpop.permute.xlu0 %4106  ;;  %v6387_v9 = vmov 0.0|0.0  }
 0x735   :  { %11585 = vst [vmem:[#allocation130_spill] sm:$0xff] %v9605_v28  ;;  %4288 = vrot.lane.b32.xlu1 %v3334_v43, %s6386_s1  ;;  %5992 = vmatprep.subr.bf16.mxu1 %v6387_v9  ;;  %v5134_v43 = vld [vmem:[%s10641_s3] sm:$0xff] }
 0x736   :  { %4286 = vrot.lane.b32.xlu0 %v3333_v63, %s6386_s1  ;;  %v5135_v63 = vld [vmem:[%s10641_s3 + $0x8] sm:$0xff]  ;;  %5944 = vmatprep.subr.bf16.mxu0 %v6387_v9 }
 0x737   :  { %v9609_v55 = vpop.permute.xlu1 %4176 }
 0x738   :  { %11586 = vst [vmem:[#allocation76_spill] sm:$0xff] %v9609_v55  ;;  %v9611_v0 = vpop.permute.xlu0 %4174  ;;  %v5945_v55 = vpack.c.bf16 %v5135_v63, %v5134_v43  ;;  %v3340_v63 = vld [vmem:[#allocation3 + $0x339] sm:$0xff] }
 0x739   :  { %11587 = vst [vmem:[#allocation244_spill] sm:$0xff] %v9611_v0  ;;  %4292 = vrot.lane.b32.xlu1 %v3336_v7, %s6386_s1  ;;  %v3338_v7 = vld [vmem:[#allocation3 + $0x321] sm:$0xff]  ;;  %v5136_v0 = vld [vmem:[%s10641_s3 + $0x10] sm:$0xff] }
 0x73a   :  { %4290 = vrot.lane.b32.xlu0 %v3335_v16, %s6386_s1  ;;  %v3337_v16 = vld [vmem:[#allocation3 + $0x319] sm:$0xff]  ;;  %6008 = vmatpush1.bf16.msra.mxu1 %v5945_v55 }
 0x73b   :  { %v9615_v37 = vpop.permute.xlu1 %4180  ;;  %5993 = vmatprep.subr.bf16.mxu1 %v6387_v9  ;;  %5946 = vmatpush1.bf16.msra.mxu0 %v5945_v55  ;;  %v5138_v55 = vld [vmem:[%s10641_s3 + $0x20] sm:$0xff] }
 0x73c   :  { %11588 = vst [vmem:[#allocation361_spill] sm:$0xff] %v9615_v37  ;;  %v9625_v28 = vpop.permute.xlu0 %4178  ;;  %5947 = vmatprep.subr.bf16.mxu0 %v6387_v9 }
 0x73d   :  { %11589 = vst [vmem:[#allocation131_spill] sm:$0xff] %v9625_v28  ;;  %4296 = vrot.lane.b32.xlu1 %v3338_v7, %s6386_s1  ;;  %v5137_v28 = vld [vmem:[%s10641_s3 + $0x18] sm:$0xff] }
 0x73e   :  { %4294 = vrot.lane.b32.xlu0 %v3337_v16, %s6386_s1  ;;  %v5948_v7 = vpack.c.bf16 %v5137_v28, %v5136_v0  ;;  %v3339_v16 = vld [vmem:[#allocation3 + $0x331] sm:$0xff]  ;;  %v5139_v28 = vld [vmem:[%s10641_s3 + $0x28] sm:$0xff] }
 0x73f   :  { %v9629_v37 = vpop.permute.xlu1 %4184 }
 0x740   :  { %11590 = vst [vmem:[#allocation305_spill] sm:$0xff] %v9629_v37  ;;  %v9638_v43 = vpop.permute.xlu0 %4182  ;;  %6009 = vmatpush1.bf16.msra.mxu1 %v5948_v7  ;;  %5949 = vmatpush1.bf16.msra.mxu0 %v5948_v7  ;;  %v5140_v7 = vld [vmem:[%s10641_s3 + $0x30] sm:$0xff] }
 0x741   :  { %11591 = vst [vmem:[#allocation133_spill] sm:$0xff] %v9638_v43  ;;  %4300 = vrot.lane.b32.xlu1 %v3340_v63, %s6386_s1  ;;  %5994 = vmatprep.subr.bf16.mxu1 %v6387_v9  ;;  %v3342_v63 = vld [vmem:[#allocation3 + $0x22] sm:$0xff]  ;;  %v5951_v43 = vpack.c.bf16 %v5139_v28, %v5138_v55  ;;  %v5141_v55 = vld [vmem:[%s10641_s3 + $0x38] sm:$0xff] }
 0x742   :  { %4298 = vrot.lane.b32.xlu0 %v3339_v16, %s6386_s1  ;;  %5950 = vmatprep.subr.bf16.mxu0 %v6387_v9  ;;  %v3341_v16 = vld [vmem:[#allocation3 + $0x1a] sm:$0xff] }
 0x743   :  { %v9643_v37 = vpop.permute.xlu1 %4188 }
 0x744   :  { %11592 = vst [vmem:[#allocation188_spill] sm:$0xff] %v9643_v37  ;;  %v9652_v0 = vpop.permute.xlu0 %4186  ;;  %6010 = vmatpush1.bf16.msra.mxu1 %v5951_v43  ;;  %5952 = vmatpush1.bf16.msra.mxu0 %v5951_v43  ;;  %v5142_v43 = vld [vmem:[%s10641_s3 + $0x40] sm:$0xff] }
 0x745   :  { %11593 = vst [vmem:[#allocation304_spill] sm:$0xff] %v9652_v0  ;;  %4368 = vrot.lane.b32.xlu1 %v3342_v63, %s6388_s0  ;;  %5995 = vmatprep.subr.bf16.mxu1 %v6387_v9  ;;  %v3344_v63 = vld [vmem:[#allocation3 + $0x3a] sm:$0xff]  ;;  %v5954_v0 = vpack.c.bf16 %v5141_v55, %v5140_v7  ;;  %v5143_v7 = vld [vmem:[%s10641_s3 + $0x48] sm:$0xff] }
 0x746   :  { %4366 = vrot.lane.b32.xlu0 %v3341_v16, %s6388_s0  ;;  %5953 = vmatprep.subr.bf16.mxu0 %v6387_v9  ;;  %v3343_v16 = vld [vmem:[#allocation3 + $0x32] sm:$0xff] }
 0x747   :  { %v9657_v37 = vpop.permute.xlu1 %4192 }
 0x748   :  { %11594 = vst [vmem:[#allocation189_spill] sm:$0xff] %v9657_v37  ;;  %v9666_v28 = vpop.permute.xlu0 %4190  ;;  %6011 = vmatpush1.bf16.msra.mxu1 %v5954_v0  ;;  %5955 = vmatpush1.bf16.msra.mxu0 %v5954_v0  ;;  %v5144_v0 = vld [vmem:[%s10641_s3 + $0x50] sm:$0xff] }
 0x749   :  { %11595 = vst [vmem:[#allocation364_spill] sm:$0xff] %v9666_v28  ;;  %4372 = vrot.lane.b32.xlu1 %v3344_v63, %s6388_s0  ;;  %5996 = vmatprep.subr.bf16.mxu1 %v6387_v9  ;;  %v3346_v63 = vld [vmem:[#allocation3 + $0x52] sm:$0xff]  ;;  %v5957_v28 = vpack.c.bf16 %v5143_v7, %v5142_v43 }
 0x74a   :  { %4370 = vrot.lane.b32.xlu0 %v3343_v16, %s6388_s0  ;;  %5956 = vmatprep.subr.bf16.mxu0 %v6387_v9  ;;  %v3345_v16 = vld [vmem:[#allocation3 + $0x4a] sm:$0xff]  ;;  %v5145_v43 = vld [vmem:[%s10641_s3 + $0x58] sm:$0xff] }
 0x74b   :  { %v9671_v37 = vpop.permute.xlu1 %4196 }
 0x74c   :  { %11596 = vst [vmem:[#allocation79_spill] sm:$0xff] %v9671_v37  ;;  %v9680_v55 = vpop.permute.xlu0 %4194  ;;  %6012 = vmatpush1.bf16.msra.mxu1 %v5957_v28  ;;  %5958 = vmatpush1.bf16.msra.mxu0 %v5957_v28  ;;  %v5146_v28 = vld [vmem:[%s10641_s3 + $0x60] sm:$0xff] }
 0x74d   :  { %11597 = vst [vmem:[#allocation191_spill] sm:$0xff] %v9680_v55  ;;  %4376 = vrot.lane.b32.xlu1 %v3346_v63, %s6388_s0  ;;  %5997 = vmatprep.subr.bf16.mxu1 %v6387_v9  ;;  %v3348_v63 = vld [vmem:[#allocation3 + $0x6a] sm:$0xff]  ;;  %v5960_v55 = vpack.c.bf16 %v5145_v43, %v5144_v0 }
 0x74e   :  { %4374 = vrot.lane.b32.xlu0 %v3345_v16, %s6388_s0  ;;  %5959 = vmatprep.subr.bf16.mxu0 %v6387_v9  ;;  %v3347_v16 = vld [vmem:[#allocation3 + $0x62] sm:$0xff] }
 0x74f   :  { %v9685_v37 = vpop.permute.xlu1 %4200  ;;  %v5147_v0 = vld [vmem:[%s10641_s3 + $0x68] sm:$0xff] }
 0x750   :  { %11598 = vst [vmem:[#allocation246_spill] sm:$0xff] %v9685_v37  ;;  %v9694_v7 = vpop.permute.xlu0 %4198  ;;  %6013 = vmatpush1.bf16.msra.mxu1 %v5960_v55  ;;  %5961 = vmatpush1.bf16.msra.mxu0 %v5960_v55  ;;  %v5148_v55 = vld [vmem:[%s10641_s3 + $0x70] sm:$0xff] }
 0x751   :  { %11599 = vst [vmem:[#allocation363_spill] sm:$0xff] %v9694_v7  ;;  %4380 = vrot.lane.b32.xlu1 %v3348_v63, %s6388_s0  ;;  %5998 = vmatprep.subr.bf16.mxu1 %v6387_v9  ;;  %v3350_v63 = vld [vmem:[#allocation3 + $0x82] sm:$0xff]  ;;  %v5963_v7 = vpack.c.bf16 %v5147_v0, %v5146_v28  ;;  %v5149_v28 = vld [vmem:[%s10641_s3 + $0x78] sm:$0xff] }
 0x752   :  { %4378 = vrot.lane.b32.xlu0 %v3347_v16, %s6388_s0  ;;  %5962 = vmatprep.subr.bf16.mxu0 %v6387_v9  ;;  %v3349_v16 = vld [vmem:[#allocation3 + $0x7a] sm:$0xff] }
 0x753   :  { %v9699_v37 = vpop.permute.xlu1 %4204 }
 0x754   :  { %11600 = vst [vmem:[#allocation247_spill] sm:$0xff] %v9699_v37  ;;  %v9708_v43 = vpop.permute.xlu0 %4202  ;;  %6014 = vmatpush1.bf16.msra.mxu1 %v5963_v7  ;;  %5964 = vmatpush1.bf16.msra.mxu0 %v5963_v7  ;;  %v5150_v7 = vld [vmem:[%s10641_s3 + $0x80] sm:$0xff] }
 0x755   :  { %11601 = vst [vmem:[#allocation132_spill] sm:$0xff] %v9708_v43  ;;  %4384 = vrot.lane.b32.xlu1 %v3350_v63, %s6388_s0  ;;  %5999 = vmatprep.subr.bf16.mxu1 %v6387_v9  ;;  %v3352_v63 = vld [vmem:[#allocation3 + $0x9a] sm:$0xff]  ;;  %v5966_v43 = vpack.c.bf16 %v5149_v28, %v5148_v55  ;;  %v5151_v55 = vld [vmem:[%s10641_s3 + $0x88] sm:$0xff] }
 0x756   :  { %4382 = vrot.lane.b32.xlu0 %v3349_v16, %s6388_s0  ;;  %5965 = vmatprep.subr.bf16.mxu0 %v6387_v9  ;;  %v3351_v16 = vld [vmem:[#allocation3 + $0x92] sm:$0xff] }
 0x757   :  { %v9713_v37 = vpop.permute.xlu1 %4208 }
 0x758   :  { %11602 = vst [vmem:[#allocation135_spill] sm:$0xff] %v9713_v37  ;;  %v9722_v0 = vpop.permute.xlu0 %4206  ;;  %6015 = vmatpush1.bf16.msra.mxu1 %v5966_v43  ;;  %5967 = vmatpush1.bf16.msra.mxu0 %v5966_v43  ;;  %v5152_v43 = vld [vmem:[%s10641_s3 + $0x90] sm:$0xff] }
 0x759   :  { %11603 = vst [vmem:[#allocation249_spill] sm:$0xff] %v9722_v0  ;;  %4388 = vrot.lane.b32.xlu1 %v3352_v63, %s6388_s0  ;;  %6000 = vmatprep.subr.bf16.mxu1 %v6387_v9  ;;  %v3354_v63 = vld [vmem:[#allocation3 + $0xb2] sm:$0xff]  ;;  %v5969_v0 = vpack.c.bf16 %v5151_v55, %v5150_v7 }
 0x75a   :  { %4386 = vrot.lane.b32.xlu0 %v3351_v16, %s6388_s0  ;;  %5968 = vmatprep.subr.bf16.mxu0 %v6387_v9  ;;  %v3353_v16 = vld [vmem:[#allocation3 + $0xaa] sm:$0xff]  ;;  %v5153_v7 = vld [vmem:[%s10641_s3 + $0x98] sm:$0xff] }
 0x75b   :  { %v9727_v37 = vpop.permute.xlu1 %4212 }
 0x75c   :  { %11604 = vst [vmem:[#allocation25_spill] sm:$0xff] %v9727_v37  ;;  %v9736_v28 = vpop.permute.xlu0 %4210  ;;  %6016 = vmatpush1.bf16.msra.mxu1 %v5969_v0  ;;  %5970 = vmatpush1.bf16.msra.mxu0 %v5969_v0  ;;  %v5154_v0 = vld [vmem:[%s10641_s3 + $0xa0] sm:$0xff] }
 0x75d   :  { %11605 = vst [vmem:[#allocation78_spill] sm:$0xff] %v9736_v28  ;;  %4392 = vrot.lane.b32.xlu1 %v3354_v63, %s6388_s0  ;;  %6001 = vmatprep.subr.bf16.mxu1 %v6387_v9  ;;  %v3356_v63 = vld [vmem:[#allocation3 + $0xca] sm:$0xff]  ;;  %v5972_v28 = vpack.c.bf16 %v5153_v7, %v5152_v43 }
 0x75e   :  { %4390 = vrot.lane.b32.xlu0 %v3353_v16, %s6388_s0  ;;  %5971 = vmatprep.subr.bf16.mxu0 %v6387_v9  ;;  %v3355_v16 = vld [vmem:[#allocation3 + $0xc2] sm:$0xff] }
 0x75f   :  { %v9741_v37 = vpop.permute.xlu1 %4216  ;;  %v5155_v43 = vld [vmem:[%s10641_s3 + $0xa8] sm:$0xff] }
 0x760   :  { %v9750_v55 = vpop.permute.xlu0 %4214  ;;  %6017 = vmatpush1.bf16.msra.mxu1 %v5972_v28  ;;  %5973 = vmatpush1.bf16.msra.mxu0 %v5972_v28  ;;  %v5975_v60 = vpack.c.bf16 %v5155_v43, %v5154_v0  ;;  %v5156_v28 = vld [vmem:[%s10641_s3 + $0xb0] sm:$0xff]  ;;  %v5157_v0 = vld [vmem:[%s10641_s3 + $0xb8] sm:$0xff] }
 0x761   :  { %4396 = vrot.lane.b32.xlu1 %v3356_v63, %s6388_s0  ;;  %6002 = vmatprep.subr.bf16.mxu1 %v6387_v9  ;;  %v3358_v63 = vld [vmem:[#allocation3 + $0xe2] sm:$0xff]  ;;  %v5978_v50 = vpack.c.bf16 %v5157_v0, %v5156_v28 }
 0x762   :  { %4394 = vrot.lane.b32.xlu0 %v3355_v16, %s6388_s0  ;;  %5974 = vmatprep.subr.bf16.mxu0 %v6387_v9  ;;  %v3357_v16 = vld [vmem:[#allocation3 + $0xda] sm:$0xff]  ;;  %v5159_v28 = vld [vmem:[%s10641_s3 + $0xc8] sm:$0xff] }
 0x763   :  { %v9755_v13 = vpop.permute.xlu1 %4220 }
 0x764   :  { %v9764_v7 = vpop.permute.xlu0 %4218  ;;  %6018 = vmatpush1.bf16.msra.mxu1 %v5975_v60  ;;  %5976 = vmatpush1.bf16.msra.mxu0 %v5975_v60  ;;  %v5158_v60 = vld [vmem:[%s10641_s3 + $0xc0] sm:$0xff] }
 0x765   :  { %4400 = vrot.lane.b32.xlu1 %v3358_v63, %s6388_s0  ;;  %6003 = vmatprep.subr.bf16.mxu1 %v6387_v9  ;;  %v3360_v63 = vld [vmem:[#allocation3 + $0xfa] sm:$0xff]  ;;  %v5981_v30 = vpack.c.bf16 %v5159_v28, %v5158_v60 }
 0x766   :  { %4398 = vrot.lane.b32.xlu0 %v3357_v16, %s6388_s0  ;;  %5977 = vmatprep.subr.bf16.mxu0 %v6387_v9  ;;  %v3359_v16 = vld [vmem:[#allocation3 + $0xf2] sm:$0xff] }
 0x767   :  { %v9769_v27 = vpop.permute.xlu1 %4224  ;;  %v5161_v60 = vld [vmem:[%s10641_s3 + $0xd8] sm:$0xff] }
 0x768   :  { %v9778_v43 = vpop.permute.xlu0 %4222  ;;  %6019 = vmatpush1.bf16.msra.mxu1 %v5978_v50  ;;  %5979 = vmatpush1.bf16.msra.mxu0 %v5978_v50  ;;  %v5160_v50 = vld [vmem:[%s10641_s3 + $0xd0] sm:$0xff] }
 0x769   :  { %4404 = vrot.lane.b32.xlu1 %v3360_v63, %s6388_s0  ;;  %6004 = vmatprep.subr.bf16.mxu1 %v6387_v9  ;;  %v3362_v63 = vld [vmem:[#allocation3 + $0x112] sm:$0xff]  ;;  %v5984_v11 = vpack.c.bf16 %v5161_v60, %v5160_v50  ;;  %v5163_v50 = vld [vmem:[%s10641_s3 + $0xe8] sm:$0xff] }
 0x76a   :  { %4402 = vrot.lane.b32.xlu0 %v3359_v16, %s6388_s0  ;;  %5980 = vmatprep.subr.bf16.mxu0 %v6387_v9  ;;  %v3361_v16 = vld [vmem:[#allocation3 + $0x10a] sm:$0xff] }
 0x76b   :  { %v9783_v21 = vpop.permute.xlu1 %4228 }
 0x76c   :  { %v9792_v0 = vpop.permute.xlu0 %4226  ;;  %6020 = vmatpush1.bf16.msra.mxu1 %v5981_v30  ;;  %5982 = vmatpush1.bf16.msra.mxu0 %v5981_v30  ;;  %v5162_v30 = vld [vmem:[%s10641_s3 + $0xe0] sm:$0xff] }
 0x76d   :  { %4408 = vrot.lane.b32.xlu1 %v3362_v63, %s6388_s0  ;;  %6005 = vmatprep.subr.bf16.mxu1 %v6387_v9  ;;  %v3364_v63 = vld [vmem:[#allocation3 + $0x12a] sm:$0xff]  ;;  %v5987_v34 = vpack.c.bf16 %v5163_v50, %v5162_v30  ;;  %v5165_v30 = vld [vmem:[%s10641_s3 + $0xf8] sm:$0xff] }
 0x76e   :  { %4406 = vrot.lane.b32.xlu0 %v3361_v16, %s6388_s0  ;;  %5983 = vmatprep.subr.bf16.mxu0 %v6387_v9  ;;  %v3363_v16 = vld [vmem:[#allocation3 + $0x122] sm:$0xff] }
 0x76f   :  { %v9797_v36 = vpop.permute.xlu1 %4232 }
 0x770   :  { %11606 = vst [vmem:[#allocation307_spill] sm:$0xff] %v9797_v36  ;;  %v9806_v28 = vpop.permute.xlu0 %4230  ;;  %6021 = vmatpush1.bf16.msra.mxu1 %v5984_v11  ;;  %5985 = vmatpush1.bf16.msra.mxu0 %v5984_v11  ;;  %v5164_v11 = vld [vmem:[%s10641_s3 + $0xf0] sm:$0xff]  ;;  %s6389_s3 = smov 56  }
 0x771   :  { %11607 = vst [vmem:[#allocation81_spill] sm:$0xff] %v9806_v28  ;;  %4412 = vrot.lane.b32.xlu1 %v3364_v63, %s6388_s0  ;;  %6006 = vmatprep.subr.bf16.mxu1 %v6387_v9  ;;  %v5990_v59 = vpack.c.bf16 %v5165_v30, %v5164_v11  ;;  %v3426_v30 = vld [vmem:[#allocation3 + $0x120] sm:$0xff] }
 0x772   :  { %4410 = vrot.lane.b32.xlu0 %v3363_v16, %s6388_s0  ;;  %5986 = vmatprep.subr.bf16.mxu0 %v6387_v9 }
 0x773   :  { %v9811_v52 = vpop.permute.xlu1 %4236 }
 0x774   :  { %11608 = vst [vmem:[#allocation190_spill] sm:$0xff] %v9811_v52  ;;  %v9820_v60 = vpop.permute.xlu0 %4234  ;;  %v3365_v52 = vld [vmem:[#allocation3 + $0x13a] sm:$0xff]  ;;  %6022 = vmatpush1.bf16.msra.mxu1 %v5987_v34  ;;  %5988 = vmatpush1.bf16.msra.mxu0 %v5987_v34  ;;  %v3369_v34 = vld [vmem:[#allocation3 + $0x16a] sm:$0xff] }
 0x775   :  { %11609 = vst [vmem:[#allocation193_spill] sm:$0xff] %v9820_v60  ;;  %4416 = vrot.lane.b32.xlu1 %v3366_v10, %s6388_s0  ;;  %6007 = vmatprep.subr.bf16.mxu1 %v6387_v9  ;;  %v3368_v60 = vld [vmem:[#allocation3 + $0x15a] sm:$0xff] }
 0x776   :  { %4414 = vrot.lane.b32.xlu0 %v3365_v52, %s6388_s0  ;;  %5989 = vmatprep.subr.bf16.mxu0 %v6387_v9 }
 0x777   :  { %v9825_v36 = vpop.permute.xlu1 %4240 }
 0x778   :  { %11610 = vst [vmem:[#allocation306_spill] sm:$0xff] %v9825_v36  ;;  %v9834_v50 = vpop.permute.xlu0 %4238  ;;  %v3367_v36 = vld [vmem:[#allocation3 + $0x152] sm:$0xff]  ;;  %6023 = vmatpush1.bf16.msra.mxu1 %v5990_v59  ;;  %5991 = vmatpush1.bf16.msra.mxu0 %v5990_v59 }
 0x779   :  { %11611 = vst [vmem:[#allocation366_spill] sm:$0xff] %v9834_v50  ;;  %4420 = vrot.lane.b32.xlu1 %v3368_v60, %s6388_s0  ;;  %v3428_v50 = vld [vmem:[#allocation3 + $0x138] sm:$0xff] }
 0x77a   :  { %4418 = vrot.lane.b32.xlu0 %v3367_v36, %s6388_s0 }
 0x77b   :  { %v9839_v3 = vpop.permute.xlu1 %4244 }
 0x77c   :  { %11612 = vst [vmem:[#allocation28_spill] sm:$0xff] %v9839_v3  ;;  %v9841_v28 = vpop.permute.xlu0 %4242 }
 0x77d   :  { %11613 = vst [vmem:[#allocation134_spill] sm:$0xff] %v9841_v28  ;;  %4424 = vrot.lane.b32.xlu1 %v9843_v1, %s6388_s0  ;;  %v3427_v28 = vld [vmem:[#allocation3 + $0x128] sm:$0xff] }
 0x77e   :  { %4422 = vrot.lane.b32.xlu0 %v3369_v34, %s6388_s0 }
 0x77f   :  { %v9848_v9 = vpop.permute.xlu1 %4248 }
 0x780   :  { %11614 = vst [vmem:[#allocation137_spill] sm:$0xff] %v9848_v9  ;;  %v9850_v11 = vpop.permute.xlu0 %4246 }
 0x781   :  { %11615 = vst [vmem:[#allocation248_spill] sm:$0xff] %v9850_v11  ;;  %4790 = vrot.lane.b32.xlu1 %v9467_v41, %s6389_s3 }
 0x782   :  { %4598 = vrot.lane.b32.xlu0 %v3426_v30, %s6390_s26 }
 0x783   :  { %v9855_v59 = vpop.permute.xlu1 %4252 }
 0x784   :  { %v9857_v3 = vpop.permute.xlu0 %4250 }
 0x785   :  { %4982 = vrot.lane.b32.xlu1 %v3363_v16, %s6391_s29 }
 0x786   :  { %4600 = vrot.lane.b32.xlu0 %v3427_v28, %s6390_s26 }
 0x787   :  { %v9861_v9 = vpop.permute.xlu1 %4256 }
 0x788   :  { %11616 = vst [vmem:[#allocation251_spill] sm:$0xff] %v9861_v9  ;;  %v9863_v11 = vpop.permute.xlu0 %4254  ;;  %v3429_v9 = vld [vmem:[#allocation3 + $0x140] sm:$0xff] }
 0x789   :  { %4602 = vrot.lane.b32.xlu1 %v3428_v50, %s6390_s26 }
 0x78a   :  { %4792 = vrot.lane.b32.xlu0 %v9463_v20, %s6389_s3 }
 0x78b   :  { %v9868_v41 = vpop.permute.xlu1 %4260 }
 0x78c   :  { %11617 = vst [vmem:[#allocation365_spill] sm:$0xff] %v9868_v41  ;;  %v9870_v30 = vpop.permute.xlu0 %4258  ;;  %v3430_v41 = vld [vmem:[#allocation3 + $0x150] sm:$0xff] }
 0x78d   :  { %4794 = vrot.lane.b32.xlu1 %v9479_v33, %s6389_s3 }
 0x78e   :  { %4984 = vrot.lane.b32.xlu0 %v3364_v63, %s6391_s29 }
 0x78f   :  { %v9875_v28 = vpop.permute.xlu1 %4264 }
 0x790   :  { %v9877_v16 = vpop.permute.xlu0 %4262 }
 0x791   :  { %4986 = vrot.lane.b32.xlu1 %v3365_v52, %s6391_s29 }
 0x792   :  { %4604 = vrot.lane.b32.xlu0 %v3429_v9, %s6390_s26 }
 0x793   :  { %v9881_v50 = vpop.permute.xlu1 %4268 }
 0x794   :  { %11618 = vst [vmem:[#allocation27_spill] sm:$0xff] %v9881_v50  ;;  %v9883_v20 = vpop.permute.xlu0 %4266  ;;  %v3431_v50 = vld [vmem:[#allocation3 + $0x158] sm:$0xff] }
 0x795   :  { %11619 = vst [vmem:[#allocation80_spill] sm:$0xff] %v9883_v20  ;;  %4606 = vrot.lane.b32.xlu1 %v3430_v41, %s6390_s26  ;;  %v3507_v20 = vld [vmem:[#allocation3 + $0x219] sm:$0xff] }
 0x796   :  { %4796 = vrot.lane.b32.xlu0 %v9475_v24, %s6389_s3 }
 0x797   :  { %v9888_v33 = vpop.permute.xlu1 %4272 }
 0x798   :  { %11620 = vst [vmem:[#allocation192_spill] sm:$0xff] %v9888_v33  ;;  %v9890_v63 = vpop.permute.xlu0 %4270  ;;  %v3432_v33 = vld [vmem:[#allocation3 + $0x168] sm:$0xff] }
 0x799   :  { %11621 = vst [vmem:[#allocation309_spill] sm:$0xff] %v9890_v63  ;;  %4798 = vrot.lane.b32.xlu1 %v9491_v4, %s6389_s3  ;;  %v3373_v63 = vld [vmem:[#allocation3 + $0x1ca] sm:$0xff] }
 0x79a   :  { %4988 = vrot.lane.b32.xlu0 %v3366_v10, %s6391_s29 }
 0x79b   :  { %v9895_v52 = vpop.permute.xlu1 %4276 }
 0x79c   :  { %11622 = vst [vmem:[#allocation83_spill] sm:$0xff] %v9895_v52  ;;  %v9897_v9 = vpop.permute.xlu0 %4274 }
 0x79d   :  { %11623 = vst [vmem:[#allocation195_spill] sm:$0xff] %v9897_v9  ;;  %4990 = vrot.lane.b32.xlu1 %v3367_v36, %s6391_s29 }
 0x79e   :  { %4608 = vrot.lane.b32.xlu0 %v3431_v50, %s6390_s26 }
 0x79f   :  { %v9901_v41 = vpop.permute.xlu1 %4280 }
 0x7a0   :  { %11624 = vst [vmem:[#allocation308_spill] sm:$0xff] %v9901_v41  ;;  %v9903_v24 = vpop.permute.xlu0 %4278  ;;  %v3433_v41 = vld [vmem:[#allocation3 + $0x170] sm:$0xff] }
 0x7a1   :  { %11625 = vst [vmem:[#allocation29_spill] sm:$0xff] %v9903_v24  ;;  %4610 = vrot.lane.b32.xlu1 %v3432_v33, %s6390_s26 }
 0x7a2   :  { %4800 = vrot.lane.b32.xlu0 %v9487_v5, %s6389_s3 }
 0x7a3   :  { %v9908_v10 = vpop.permute.xlu1 %4284 }
 0x7a4   :  { %11626 = vst [vmem:[#allocation136_spill] sm:$0xff] %v9908_v10  ;;  %v9910_v4 = vpop.permute.xlu0 %4282  ;;  %v3434_v10 = vld [vmem:[#allocation3 + $0x180] sm:$0xff] }
 0x7a5   :  { %11627 = vst [vmem:[#allocation250_spill] sm:$0xff] %v9910_v4  ;;  %4802 = vrot.lane.b32.xlu1 %v9503_v61, %s6389_s3 }
 0x7a6   :  { %4992 = vrot.lane.b32.xlu0 %v3368_v60, %s6391_s29 }
 0x7a7   :  { %v9915_v36 = vpop.permute.xlu1 %4288 }
 0x7a8   :  { %11628 = vst [vmem:[#allocation368_spill] sm:$0xff] %v9915_v36  ;;  %v9917_v50 = vpop.permute.xlu0 %4286 }
 0x7a9   :  { %11629 = vst [vmem:[#allocation30_spill] sm:$0xff] %v9917_v50  ;;  %4994 = vrot.lane.b32.xlu1 %v3369_v34, %s6391_s29  ;;  %v3565_v50 = vld [vmem:[#allocation3 + $0x1a2] sm:$0xff] }
 0x7aa   :  { %4612 = vrot.lane.b32.xlu0 %v3433_v41, %s6390_s26 }
 0x7ab   :  { %v9921_v33 = vpop.permute.xlu1 %4292 }
 0x7ac   :  { %11630 = vst [vmem:[#allocation139_spill] sm:$0xff] %v9921_v33  ;;  %v9923_v5 = vpop.permute.xlu0 %4290  ;;  %v3562_v33 = vld [vmem:[#allocation3 + $0x182] sm:$0xff] }
 0x7ad   :  { %11631 = vst [vmem:[#allocation253_spill] sm:$0xff] %v9923_v5  ;;  %4614 = vrot.lane.b32.xlu1 %v3434_v10, %s6390_s26  ;;  %v3435_v10 = vld [vmem:[#allocation3 + $0x188] sm:$0xff] }
 0x7ae   :  { %4804 = vrot.lane.b32.xlu0 %v9499_v47, %s6389_s3 }
 0x7af   :  { %v9928_v61 = vpop.permute.xlu1 %4296 }
 0x7b0   :  { %11632 = vst [vmem:[#allocation367_spill] sm:$0xff] %v9928_v61  ;;  %v9930_v60 = vpop.permute.xlu0 %4294 }
 0x7b1   :  { %11633 = vst [vmem:[#allocation82_spill] sm:$0xff] %v9930_v60  ;;  %4806 = vrot.lane.b32.xlu1 %v9515_v45, %s6389_s3 }
 0x7b2   :  { %4996 = vrot.lane.b32.xlu0 %v9843_v1, %s6391_s29  ;;  %v9949_v1 = vld [vmem:[#allocation2] sm:$0xff] }
 0x7b3   :  { %v9936_v34 = vpop.permute.xlu1 %4300  ;;  %v6110_v45 = vpack.i.bf16 %v9949_v1, %v9949_v1 }
 0x7b4   :  { %11634 = vst [vmem:[#allocation194_spill] sm:$0xff] %v9936_v34  ;;  %v9938_v41 = vpop.permute.xlu0 %4298  ;;  %v3500_v34 = vld [vmem:[#allocation3 + $0x199] sm:$0xff] }
 0x7b5   :  { %11635 = vst [vmem:[#allocation311_spill] sm:$0xff] %v9938_v41  ;;  %4998 = vrot.lane.b32.xlu1 %v3562_v33, %s6391_s29  ;;  %v3501_v41 = vld [vmem:[#allocation3 + $0x1a1] sm:$0xff] }
 0x7b6   :  { %4616 = vrot.lane.b32.xlu0 %v3435_v10, %s6390_s26  ;;  %v3563_v10 = vld [vmem:[#allocation3 + $0x18a] sm:$0xff]  ;;  %v6115_v36 = vpack.i.bf16 %v3501_v41, %v3500_v34 }
 0x7b7   :  { %v9942_v47 = vpop.permute.xlu1 %4368 }
 0x7b8   :  { %11636 = vst [vmem:[#allocation85_spill] sm:$0xff] %v9942_v47  ;;  %v9944_v61 = vpop.permute.xlu0 %4366 }
 0x7b9   :  { %4808 = vrot.lane.b32.xlu1 %v9511_v8, %s6389_s3 }
 0x7ba   :  { %4426 = vrot.lane.b32.xlu0 %v3562_v33, %s6388_s0  ;;  %v3564_v33 = vld [vmem:[#allocation3 + $0x19a] sm:$0xff] }
 0x7bb   :  { %v9953_v60 = vpop.permute.xlu1 %4372  ;;  %v6120_v24 = vpack.i.bf16 %v3565_v50, %v3564_v33  ;;  %v3439_v33 = vld [vmem:[#allocation3 + $0x1e8] sm:$0xff] }
 0x7bc   :  { %11637 = vst [vmem:[#allocation197_spill] sm:$0xff] %v9953_v60  ;;  %v9955_v5 = vpop.permute.xlu0 %4370 }
 0x7bd   :  { %11638 = vst [vmem:[#allocation310_spill] sm:$0xff] %v9955_v5  ;;  %5000 = vrot.lane.b32.xlu1 %v3563_v10, %s6391_s29  ;;  %v6196_v5 = vld [vmem:[#allocation3 + $0x108] sm:$0xff] }
 0x7be   :  { %6111 = vrot.lane.b32.xlu0 %v6110_v45, %s6390_s26  ;;  %v3374_v45 = vld [vmem:[#allocation3 + $0x1d2] sm:$0xff] }
 0x7bf   :  { %v9959_v8 = vpop.permute.xlu1 %4376 }
 0x7c0   :  { %11639 = vst [vmem:[#allocation31_spill] sm:$0xff] %v9959_v8  ;;  %v9961_v4 = vpop.permute.xlu0 %4374 }
 0x7c1   :  { %11640 = vst [vmem:[#allocation138_spill] sm:$0xff] %v9961_v4  ;;  %6116 = vrot.lane.b32.xlu1 %v6115_v36, %s6389_s3  ;;  %v3438_v36 = vld [vmem:[#allocation3 + $0x1e0] sm:$0xff]  ;;  %v3379_v4 = vld [vmem:[#allocation3 + $0x212] sm:$0xff] }
 0x7c2   :  { %4428 = vrot.lane.b32.xlu0 %v3563_v10, %s6388_s0 }
 0x7c3   :  { %v9965_v52 = vpop.permute.xlu1 %4380 }
 0x7c4   :  { %11641 = vst [vmem:[#allocation252_spill] sm:$0xff] %v9965_v52  ;;  %v9967_v9 = vpop.permute.xlu0 %4378 }
 0x7c5   :  { %11642 = vst [vmem:[#allocation370_spill] sm:$0xff] %v9967_v9  ;;  %4430 = vrot.lane.b32.xlu1 %v3373_v63, %s6388_s0 }
 0x7c6   :  { %6121 = vrot.lane.b32.xlu0 %v6120_v24, %s6391_s29 }
 0x7c7   :  { %v9971_v34 = vpop.permute.xlu1 %4384 }
 0x7c8   :  { %11643 = vst [vmem:[#allocation32_spill] sm:$0xff] %v9971_v34  ;;  %v9973_v41 = vpop.permute.xlu0 %4382  ;;  %v3375_v34 = vld [vmem:[#allocation3 + $0x1e2] sm:$0xff] }
 0x7c9   :  { %11644 = vst [vmem:[#allocation141_spill] sm:$0xff] %v9973_v41  ;;  %4432 = vrot.lane.b32.xlu1 %v3374_v45, %s6388_s0 }
 0x7ca   :  { %4622 = vrot.lane.b32.xlu0 %v3438_v36, %s6390_s26 }
 0x7cb   :  { %v9977_v50 = vpop.permute.xlu1 %4388 }
 0x7cc   :  { %11645 = vst [vmem:[#allocation255_spill] sm:$0xff] %v9977_v50  ;;  %v9979_v10 = vpop.permute.xlu0 %4386  ;;  %v3440_v50 = vld [vmem:[#allocation3 + $0x1f8] sm:$0xff] }
 0x7cd   :  { %11646 = vst [vmem:[#allocation369_spill] sm:$0xff] %v9979_v10  ;;  %4624 = vrot.lane.b32.xlu1 %v3439_v33, %s6390_s26 }
 0x7ce   :  { %4814 = vrot.lane.b32.xlu0 %v9533_v22, %s6389_s3 }
 0x7cf   :  { %v9984_v63 = vpop.permute.xlu1 %4392 }
 0x7d0   :  { %11647 = vst [vmem:[#allocation84_spill] sm:$0xff] %v9984_v63  ;;  %v9986_v24 = vpop.permute.xlu0 %4390  ;;  %v3376_v63 = vld [vmem:[#allocation3 + $0x1ea] sm:$0xff] }
 0x7d1   :  { %11648 = vst [vmem:[#allocation196_spill] sm:$0xff] %v9986_v24  ;;  %4434 = vrot.lane.b32.xlu1 %v3375_v34, %s6388_s0  ;;  %v3442_v24 = vld [vmem:[#allocation3 + $0x210] sm:$0xff] }
 0x7d2   :  { %5006 = vrot.lane.b32.xlu0 %v3375_v34, %s6391_s29 }
 0x7d3   :  { %v9990_v45 = vpop.permute.xlu1 %4396 }
 0x7d4   :  { %11649 = vst [vmem:[#allocation313_spill] sm:$0xff] %v9990_v45  ;;  %v9992_v36 = vpop.permute.xlu0 %4394 }
 0x7d5   :  { %11650 = vst [vmem:[#allocation87_spill] sm:$0xff] %v9992_v36  ;;  %4626 = vrot.lane.b32.xlu1 %v3440_v50, %s6390_s26  ;;  %v3441_v36 = vld [vmem:[#allocation3 + $0x200] sm:$0xff] }
 0x7d6   :  { %4816 = vrot.lane.b32.xlu0 %v9529_v25, %s6389_s3 }
 0x7d7   :  { %v9997_v22 = vpop.permute.xlu1 %4400 }
 0x7d8   :  { %11651 = vst [vmem:[#allocation199_spill] sm:$0xff] %v9997_v22  ;;  %v9999_v33 = vpop.permute.xlu0 %4398  ;;  %v3377_v22 = vld [vmem:[#allocation3 + $0x1fa] sm:$0xff] }
 0x7d9   :  { %11652 = vst [vmem:[#allocation312_spill] sm:$0xff] %v9999_v33  ;;  %4436 = vrot.lane.b32.xlu1 %v3376_v63, %s6388_s0 }
 0x7da   :  { %5008 = vrot.lane.b32.xlu0 %v3376_v63, %s6391_s29 }
 0x7db   :  { %v10003_v34 = vpop.permute.xlu1 %4404 }
 0x7dc   :  { %11653 = vst [vmem:[#allocation33_spill] sm:$0xff] %v10003_v34  ;;  %v10005_v45 = vpop.permute.xlu0 %4402 }
 0x7dd   :  { %11654 = vst [vmem:[#allocation140_spill] sm:$0xff] %v10005_v45  ;;  %4628 = vrot.lane.b32.xlu1 %v3441_v36, %s6390_s26  ;;  %v6194_v45 = vld [vmem:[#allocation3 + $0xf0] sm:$0xff] }
 0x7de   :  { %4818 = vrot.lane.b32.xlu0 %v9545_v29, %s6389_s3  ;;  %v3378_v29 = vld [vmem:[#allocation3 + $0x202] sm:$0xff] }
 0x7df   :  { %v4409_v25 = vpop.permute.xlu1 %4408 }
 0x7e0   :  { %v4407_v50 = vpop.permute.xlu0 %4406 }
 0x7e1   :  { %4438 = vrot.lane.b32.xlu1 %v3377_v22, %s6388_s0 }
 0x7e2   :  { %5010 = vrot.lane.b32.xlu0 %v3377_v22, %s6391_s29  ;;  %v3746_v22 = vadd.f32 %v6194_v45, %v9061_v26  ;;  %v6195_v45 = vld [vmem:[#allocation3 + $0xf8] sm:$0xff] }
 0x7e3   :  { %v10012_v33 = vpop.permute.xlu1 %4412 }
 0x7e4   :  { %v4411_v63 = vpop.permute.xlu0 %4410  ;;  %v3938_v52 = vadd.f32 %v9243_v32, %v3746_v22  ;;  %v3747_v32 = vadd.f32 %v6195_v45, %v9057_v19 }
 0x7e5   :  { %4630 = vrot.lane.b32.xlu1 %v3442_v24, %s6390_s26  ;;  %v3443_v24 = vld [vmem:[#allocation3 + $0x218] sm:$0xff] }
 0x7e6   :  { %4820 = vrot.lane.b32.xlu0 %v9541_v49, %s6389_s3  ;;  %v3506_v49 = vld [vmem:[#allocation3 + $0x211] sm:$0xff]  ;;  %v4130_v9 = vadd.f32 %v9437_v62, %v3938_v52  ;;  %v3939_v62 = vadd.f32 %v9251_v23, %v3747_v32 }
 0x7e7   :  { %v10017_v36 = vpop.permute.xlu1 %4416  ;;  %v3445_v32 = vld [vmem:[#allocation3 + $0x230] sm:$0xff] }
 0x7e8   :  { %v10019_v34 = vpop.permute.xlu0 %4414  ;;  %v4322_v26 = vadd.f32 %v9750_v55, %v4130_v9  ;;  %v3748_v55 = vadd.f32 %v6196_v5, %v9067_v12  ;;  %v4131_v9 = vadd.f32 %v9435_v6, %v3939_v62 }
 0x7e9   :  { %4440 = vrot.lane.b32.xlu1 %v3378_v29, %s6388_s0 }
 0x7ea   :  { %5012 = vrot.lane.b32.xlu0 %v3378_v29, %s6391_s29  ;;  %v4514_v22 = vadd.f32 %v4407_v50, %v4322_v26  ;;  %v3940_v19 = vadd.f32 %v9249_v2, %v3748_v55  ;;  %v3380_v26 = vld [vmem:[#allocation3 + $0x21a] sm:$0xff]  ;;  %v4323_v45 = vadd.f32 %v9741_v37, %v4131_v9  ;;  %v3508_v37 = vld [vmem:[#allocation3 + $0x229] sm:$0xff] }
 0x7eb   :  { %v10024_v10 = vpop.permute.xlu1 %4420  ;;  %v3381_v55 = vld [vmem:[#allocation3 + $0x22a] sm:$0xff] }
 0x7ec   :  { %v10026_v41 = vpop.permute.xlu0 %4418  ;;  %v4515_v12 = vadd.f32 %v4409_v25, %v4323_v45 }
 0x7ed   :  { %4632 = vrot.lane.b32.xlu1 %v3443_v24, %s6390_s26 }
 0x7ee   :  { %4822 = vrot.lane.b32.xlu0 %v3506_v49, %s6389_s3  ;;  %v3444_v49 = vld [vmem:[#allocation3 + $0x228] sm:$0xff] }
 0x7ef   :  { %v10032_v8 = vpop.permute.xlu1 %4424 }
 0x7f0   :  { %v10034_v29 = vpop.permute.xlu0 %4422 }
 0x7f1   :  { %4442 = vrot.lane.b32.xlu1 %v3379_v4, %s6388_s0 }
 0x7f2   :  { %5014 = vrot.lane.b32.xlu0 %v3379_v4, %s6391_s29 }
 0x7f3   :  { %v4791_v24 = vpop.permute.xlu1 %4790 }
 0x7f4   :  { %v4599_v60 = vpop.permute.xlu0 %4598 }
 0x7f5   :  { %v4706_v52 = vadd.f32 %v4599_v60, %v4514_v22  ;;  %4634 = vrot.lane.b32.xlu1 %v3444_v49, %s6390_s26  ;;  %v4132_v60 = vadd.f32 %v9443_v42, %v3940_v19  ;;  %v6197_v22 = vld [vmem:[#allocation2 + $0x111] sm:$0xff] }
 0x7f6   :  { %4824 = vrot.lane.b32.xlu0 %v3507_v20, %s6389_s3 }
 0x7f7   :  { %v4898_v4 = vadd.f32 %v4791_v24, %v4706_v52  ;;  %v4983_v47 = vpop.permute.xlu1 %4982  ;;  %v4324_v6 = vadd.f32 %v9764_v7, %v4132_v60  ;;  %v6198_v24 = vld [vmem:[#allocation3 + $0x110] sm:$0xff]  ;;  %v3446_v60 = vld [vmem:[#allocation3 + $0x240] sm:$0xff] }
 0x7f8   :  { %v4601_v50 = vpop.permute.xlu0 %4600  ;;  %v3749_v42 = vadd.f32 %v6198_v24, %v9063_v18 }
 0x7f9   :  { %v5090_v23 = vadd.f32 %v4983_v47, %v4898_v4  ;;  %4444 = vrot.lane.b32.xlu1 %v3380_v26, %s6388_s0  ;;  %v4707_v2 = vadd.f32 %v4601_v50, %v4515_v12  ;;  %v4516_v47 = vadd.f32 %v4411_v63, %v4324_v6  ;;  %v6199_v4 = vld [vmem:[#allocation3 + $0x120] sm:$0xff] }
 0x7fa   :  { %5016 = vrot.lane.b32.xlu0 %v3380_v26, %s6391_s29  ;;  %v3941_v7 = vadd.f32 %v9257_v44, %v3749_v42  ;;  %v3750_v19 = vadd.f32 %v6199_v4, %v9073_v51  ;;  %v6200_v12 = vld [vmem:[#allocation2 + $0x121] sm:$0xff] }
 0x7fb   :  { %5338 = vmatmul.mubr.f32.vlgmr.msra.gmra.mrb[0].mxu1 %v5090_v23  ;;  %v4603_v20 = vpop.permute.xlu1 %4602 }
 0x7fc   :  { %v4793_v5 = vpop.permute.xlu0 %4792  ;;  %5342 = vmatprep.mubr.f32.mxu1 %v6197_v22  ;;  %v4708_v62 = vadd.f32 %v4603_v20, %v4516_v47  ;;  %v4133_v63 = vadd.f32 %v9441_v48, %v3941_v7  ;;  %v3942_v26 = vadd.f32 %v9255_v53, %v3750_v19  ;;  %v3509_v20 = vld [vmem:[#allocation3 + $0x231] sm:$0xff]  ;;  %v6201_v22 = vld [vmem:[#allocation2 + $0x129] sm:$0xff] }
 0x7fd   :  { %4636 = vrot.lane.b32.xlu1 %v3445_v32, %s6390_s26  ;;  %v4899_v49 = vadd.f32 %v4793_v5, %v4707_v2  ;;  %v3382_v32 = vld [vmem:[#allocation3 + $0x232] sm:$0xff] }
 0x7fe   :  { %4826 = vrot.lane.b32.xlu0 %v3508_v37, %s6389_s3  ;;  %v4325_v44 = vadd.f32 %v9755_v13, %v4133_v63  ;;  %v4134_v51 = vadd.f32 %v9449_v40, %v3942_v26  ;;  %v6202_v40 = vld [vmem:[#allocation3 + $0x128] sm:$0xff] }
 0x7ff   :  { %v4795_v25 = vpop.permute.xlu1 %4794  ;;  %v3751_v37 = vadd.f32 %v6202_v40, %v9070_v39 }
 0x800   :  { %v4985_v52 = vpop.permute.xlu0 %4984  ;;  %v4900_v50 = vadd.f32 %v4795_v25, %v4708_v62  ;;  %v4517_v48 = vadd.f32 %v10012_v33, %v4325_v44  ;;  %v4326_v53 = vadd.f32 %v9778_v43, %v4134_v51  ;;  %v3510_v62 = vld [vmem:[#allocation3 + $0x241] sm:$0xff] }
 0x801   :  { %v5091_v9 = vadd.f32 %v4985_v52, %v4899_v49  ;;  %4446 = vrot.lane.b32.xlu1 %v3381_v55, %s6388_s0  ;;  %v3447_v49 = vld [vmem:[#allocation3 + $0x248] sm:$0xff]  ;;  %v3943_v43 = vadd.f32 %v9263_v31, %v3751_v37  ;;  %v6203_v52 = vld [vmem:[#allocation3 + $0x138] sm:$0xff]  ;;  %v3449_v37 = vld [vmem:[#allocation3 + $0x260] sm:$0xff] }
 0x802   :  { %5018 = vrot.lane.b32.xlu0 %v3381_v55, %s6391_s29  ;;  %v4518_v13 = vadd.f32 %v10019_v34, %v4326_v53  ;;  %v3752_v55 = vadd.f32 %v6203_v52, %v9077_v38  ;;  %v6204_v31 = vld [vmem:[#allocation2 + $0x139] sm:$0xff] }
 0x803   :  { %5343 = vmatmul.mubr.f32.gmra.mrb[2].mxu1 %v5091_v9  ;;  %v4987_v18 = vpop.permute.xlu1 %4986  ;;  %v4135_v7 = vadd.f32 %v9447_v35, %v3943_v43  ;;  %v11656_v43 = vld [vmem:[#allocation81_spill] sm:$0xff]  ;;  %v3385_v52 = vld [vmem:[#allocation3 + $0x25a] sm:$0xff] }
 0x804   :  { %v5092_v45 = vadd.f32 %v4987_v18, %v4900_v50  ;;  %v4605_v23 = vpop.permute.xlu0 %4604  ;;  %5347 = vmatprep.mubr.f32.mxu1 %v6200_v12  ;;  %v3944_v9 = vadd.f32 %v9261_v54, %v3752_v55  ;;  %v3383_v50 = vld [vmem:[#allocation3 + $0x242] sm:$0xff]  ;;  %v6210_v55 = vld [vmem:[#allocation2 + $0x159] sm:$0xff] }
 0x805   :  { %4638 = vrot.lane.b32.xlu1 %v3446_v60, %s6390_s26  ;;  %v4709_v2 = vadd.f32 %v4605_v23, %v4517_v48  ;;  %v4327_v63 = vadd.f32 %v9769_v27, %v4135_v7  ;;  %v6205_v23 = vld [vmem:[#allocation2 + $0x141] sm:$0xff]  ;;  %v3511_v27 = vld [vmem:[#allocation3 + $0x249] sm:$0xff] }
 0x806   :  { %4828 = vrot.lane.b32.xlu0 %v3509_v20, %s6389_s3  ;;  %v4136_v38 = vadd.f32 %v9455_v17, %v3944_v9  ;;  %v6206_v17 = vld [vmem:[#allocation3 + $0x140] sm:$0xff] }
 0x807   :  { %5348 = vmatmul.mubr.f32.gmra.mrb[4].mxu1 %v5092_v45  ;;  %v4607_v6 = vpop.permute.xlu1 %4606  ;;  %v4519_v18 = vadd.f32 %v10017_v36, %v4327_v63  ;;  %v3448_v45 = vld [vmem:[#allocation3 + $0x258] sm:$0xff]  ;;  %v3753_v44 = vadd.f32 %v6206_v17, %v9079_v46  ;;  %v11658_v9 = vld [vmem:[#allocation183_spill] sm:$0xff] }
 0x808   :  { %v4797_v5 = vpop.permute.xlu0 %4796  ;;  %5352 = vmatprep.mubr.f32.mxu1 %v6201_v22  ;;  %v4710_v24 = vadd.f32 %v4607_v6, %v4518_v13  ;;  %v4328_v26 = vadd.f32 %v9792_v0, %v4136_v38  ;;  %v3384_v0 = vld [vmem:[#allocation3 + $0x24a] sm:$0xff]  ;;  %v3513_v38 = vld [vmem:[#allocation3 + $0x261] sm:$0xff] }
 0x809   :  { %4448 = vrot.lane.b32.xlu1 %v3382_v32, %s6388_s0  ;;  %v4901_v47 = vadd.f32 %v4797_v5, %v4709_v2  ;;  %v3945_v6 = vadd.f32 %v9269_v14, %v3753_v44  ;;  %v6207_v5 = vld [vmem:[#allocation3 + $0x150] sm:$0xff]  ;;  %v6212_v44 = vld [vmem:[#allocation3 + $0x168] sm:$0xff] }
 0x80a   :  { %5020 = vrot.lane.b32.xlu0 %v3382_v32, %s6391_s29  ;;  %v4520_v12 = vadd.f32 %v10026_v41, %v4328_v26  ;;  %v3754_v32 = vadd.f32 %v6207_v5, %v9083_v15 }
 0x80b   :  { %v4799_v33 = vpop.permute.xlu1 %4798  ;;  %v4137_v41 = vadd.f32 %v9453_v56, %v3945_v6  ;;  %v6213_v6 = vld [vmem:[#allocation2 + $0x171] sm:$0xff] }
 0x80c   :  { %v4989_v42 = vpop.permute.xlu0 %4988  ;;  %v4902_v34 = vadd.f32 %v4799_v33, %v4710_v24  ;;  %v3946_v2 = vadd.f32 %v9267_v57, %v3754_v32  ;;  %v3512_v33 = vld [vmem:[#allocation3 + $0x259] sm:$0xff] }
 0x80d   :  { %v5093_v25 = vadd.f32 %v4989_v42, %v4901_v47  ;;  %4640 = vrot.lane.b32.xlu1 %v3447_v49, %s6390_s26  ;;  %v6208_v47 = vld [vmem:[#allocation2 + $0x151] sm:$0xff]  ;;  %v4329_v14 = vadd.f32 %v9783_v21, %v4137_v41  ;;  %v11662_v32 = vld [vmem:[#allocation175_spill] sm:$0xff] }
 0x80e   :  { %4830 = vrot.lane.b32.xlu0 %v3510_v62, %s6389_s3  ;;  %v4138_v15 = vadd.f32 %v9461_v58, %v3946_v2  ;;  %v6209_v42 = vld [vmem:[#allocation3 + $0x158] sm:$0xff] }
 0x80f   :  { %5353 = vmatmul.mubr.f32.gmra.mrb[6].mxu1 %v5093_v25  ;;  %v4991_v39 = vpop.permute.xlu1 %4990  ;;  %v4521_v56 = vadd.f32 %v10024_v10, %v4329_v14  ;;  %v11655_v57 = vld [vmem:[#allocation166_spill] sm:$0xff] }
 0x810   :  { %v5094_v4 = vadd.f32 %v4991_v39, %v4902_v34  ;;  %v4609_v19 = vpop.permute.xlu0 %4608  ;;  %5357 = vmatprep.mubr.f32.mxu1 %v6204_v31  ;;  %v3755_v49 = vadd.f32 %v6209_v42, %v11655_v57  ;;  %v4330_v25 = vadd.f32 %v11656_v43, %v4138_v15  ;;  %v11657_v34 = vld [vmem:[#allocation291_spill] sm:$0xff]  ;;  %v3406_v31 = vld [vmem:[#allocation3 + $0x30] sm:$0xff] }
 0x811   :  { %4450 = vrot.lane.b32.xlu1 %v3383_v50, %s6388_s0  ;;  %v4711_v60 = vadd.f32 %v4609_v19, %v4519_v18  ;;  %v11659_v18 = vld [vmem:[#allocation307_spill] sm:$0xff]  ;;  %v3514_v57 = vld [vmem:[#allocation3 + $0x271] sm:$0xff] }
 0x812   :  { %5022 = vrot.lane.b32.xlu0 %v3383_v50, %s6391_s29  ;;  %v3947_v58 = vadd.f32 %v11657_v34, %v3755_v49  ;;  %v4522_v7 = vadd.f32 %v10034_v29, %v4330_v25  ;;  %v11665_v15 = vld [vmem:[#allocation299_spill] sm:$0xff]  ;;  %v11667_v49 = vld [vmem:[#allocation190_spill] sm:$0xff] }
 0x813   :  { %5358 = vmatmul.mubr.f32.gmra.mrb[8].mxu1 %v5094_v4  ;;  %v4611_v35 = vpop.permute.xlu1 %4610 }
 0x814   :  { %v4801_v54 = vpop.permute.xlu0 %4800  ;;  %5362 = vmatprep.mubr.f32.mxu1 %v6205_v23  ;;  %v4712_v51 = vadd.f32 %v4611_v35, %v4520_v12  ;;  %v4139_v4 = vadd.f32 %v11658_v9, %v3947_v58  ;;  %v3450_v12 = vld [vmem:[#allocation3 + $0x270] sm:$0xff] }
 0x815   :  { %4642 = vrot.lane.b32.xlu1 %v3448_v45, %s6390_s26  ;;  %v4903_v36 = vadd.f32 %v4801_v54, %v4711_v60  ;;  %v3577_v60 = vld [vmem:[#allocation3 + $0x262] sm:$0xff] }
 0x816   :  { %4832 = vrot.lane.b32.xlu0 %v3511_v27, %s6389_s3  ;;  %v4331_v35 = vadd.f32 %v11659_v18, %v4139_v4  ;;  %v6211_v27 = vld [vmem:[#allocation2 + $0x169] sm:$0xff]  ;;  %v11670_v18 = vld [vmem:[#allocation298_spill] sm:$0xff] }
 0x817   :  { %v4803_v20 = vpop.permute.xlu1 %4802 }
 0x818   :  { %v4993_v48 = vpop.permute.xlu0 %4992  ;;  %v4904_v22 = vadd.f32 %v4803_v20, %v4712_v51  ;;  %v4523_v54 = vadd.f32 %v10032_v8, %v4331_v35  ;;  %v6214_v8 = vld [vmem:[#allocation3 + $0x170] sm:$0xff] }
 0x819   :  { %v5095_v53 = vadd.f32 %v4993_v48, %v4903_v36  ;;  %4452 = vrot.lane.b32.xlu1 %v3384_v0, %s6388_s0  ;;  %v11660_v36 = vld [vmem:[#allocation282_spill] sm:$0xff] }
 0x81a   :  { %5024 = vrot.lane.b32.xlu0 %v3384_v0, %s6391_s29  ;;  %v3756_v20 = vadd.f32 %v6212_v44, %v11660_v36  ;;  %v3470_v0 = vld [vmem:[#allocation3 + $0x31] sm:$0xff] }
 0x81b   :  { %5363 = vmatmul.mubr.f32.gmra.mrb[10].mxu1 %v5095_v53  ;;  %v4995_v46 = vpop.permute.xlu1 %4994  ;;  %v11661_v53 = vld [vmem:[#allocation111_spill] sm:$0xff] }
 0x81c   :  { %v5096_v13 = vadd.f32 %v4995_v46, %v4904_v22  ;;  %v4613_v40 = vpop.permute.xlu0 %4612  ;;  %5367 = vmatprep.mubr.f32.mxu1 %v6208_v47  ;;  %v3757_v5 = vadd.f32 %v6214_v8, %v11661_v53  ;;  %v3948_v22 = vadd.f32 %v11662_v32, %v3756_v20  ;;  %v11663_v46 = vld [vmem:[#allocation174_spill] sm:$0xff]  ;;  %v3408_v53 = vld [vmem:[#allocation3 + $0x48] sm:$0xff] }
 0x81d   :  { %4644 = vrot.lane.b32.xlu1 %v3449_v37, %s6390_s26  ;;  %v4713_v21 = vadd.f32 %v4613_v40, %v4521_v56  ;;  %v11672_v32 = vld [vmem:[#allocation182_spill] sm:$0xff] }
 0x81e   :  { %4834 = vrot.lane.b32.xlu0 %v3512_v33, %s6389_s3  ;;  %v3949_v2 = vadd.f32 %v11663_v46, %v3757_v5  ;;  %v3407_v33 = vld [vmem:[#allocation3 + $0x38] sm:$0xff]  ;;  %v6217_v5 = vld [vmem:[#allocation2 + $0x1c9] sm:$0xff] }
 0x81f   :  { %5368 = vmatmul.mubr.f32.gmra.mrb[12].mxu1 %v5096_v13  ;;  %v4615_v24 = vpop.permute.xlu1 %4614  ;;  %v11664_v13 = vld [vmem:[#allocation73_spill] sm:$0xff] }
 0x820   :  { %v4805_v62 = vpop.permute.xlu0 %4804  ;;  %5372 = vmatprep.mubr.f32.mxu1 %v6210_v55  ;;  %v4714_v19 = vadd.f32 %v4615_v24, %v4522_v7  ;;  %v4140_v40 = vadd.f32 %v11664_v13, %v3948_v22  ;;  %v4141_v56 = vadd.f32 %v11665_v15, %v3949_v2  ;;  %v11666_v24 = vld [vmem:[#allocation193_spill] sm:$0xff]  ;;  %v3451_v7 = vld [vmem:[#allocation3 + $0x278] sm:$0xff] }
 0x821   :  { %4454 = vrot.lane.b32.xlu1 %v3385_v52, %s6388_s0  ;;  %v4905_v10 = vadd.f32 %v4805_v62, %v4713_v21  ;;  %v3534_v21 = vld [vmem:[#allocation3 + $0x32] sm:$0xff]  ;;  %v3579_v2 = vld [vmem:[#allocation3 + $0x27a] sm:$0xff] }
 0x822   :  { %5026 = vrot.lane.b32.xlu0 %v3385_v52, %s6391_s29  ;;  %v4332_v42 = vadd.f32 %v11666_v24, %v4140_v40  ;;  %v4333_v43 = vadd.f32 %v11667_v49, %v4141_v56  ;;  %v6215_v52 = vld [vmem:[#allocation2 + $0x181] sm:$0xff]  ;;  %v11673_v13 = vld [vmem:[#allocation306_spill] sm:$0xff] }
 0x823   :  { %v4807_v39 = vpop.permute.xlu1 %4806  ;;  %v6219_v49 = vld [vmem:[#allocation2 + $0x1d1] sm:$0xff] }
 0x824   :  { %v4997_v50 = vpop.permute.xlu0 %4996  ;;  %v4906_v26 = vadd.f32 %v4807_v39, %v4714_v19 }
 0x825   :  { %v5097_v63 = vadd.f32 %v4997_v50, %v4905_v10  ;;  %4558 = vrot.lane.b32.xlu1 %v3406_v31, %s6390_s26  ;;  %v11668_v10 = vld [vmem:[#allocation9_spill] sm:$0xff] }
 0x826   :  { %4836 = vrot.lane.b32.xlu0 %v3513_v38, %s6389_s3  ;;  %v6339_v39 = vadd.low.f32.bf16 %v9949_v1, %v11668_v10  ;;  %v3387_v50 = vld [vmem:[#allocation3 + $0x272] sm:$0xff]  ;;  %v6345_v44 = vadd.high.f32.bf16 %v9949_v1, %v11668_v10 }
 0x827   :  { %5373 = vmatmul.mubr.f32.gmra.mrb[14].mxu1 %v5097_v63  ;;  %v4999_v29 = vpop.permute.xlu1 %4998  ;;  %v11669_v31 = vld [vmem:[#allocation65_spill] sm:$0xff]  ;;  %v11677_v10 = vld [vmem:[#allocation134_spill] sm:$0xff] }
 0x828   :  { %v5098_v45 = vadd.f32 %v4999_v29, %v4906_v26  ;;  %v4617_v23 = vpop.permute.xlu0 %4616  ;;  %5377 = vmatprep.mubr.f32.mxu1 %v6211_v27  ;;  %v6341_v63 = vadd.low.f32.bf16 %v6339_v39, %v11669_v31 }
 0x829   :  { %5028 = vrot.lane.b32.xlu1 %v3577_v60, %s6391_s29  ;;  %v4715_v17 = vadd.f32 %v4617_v23, %v4523_v54  ;;  %v3515_v23 = vld [vmem:[#allocation3 + $0x279] sm:$0xff] }
 0x82a   :  { %4646 = vrot.lane.b32.xlu0 %v3450_v12, %s6390_s26  ;;  %v4142_v35 = vadd.f32 %v6341_v63, %v11670_v18  ;;  %v3471_v12 = vld [vmem:[#allocation3 + $0x39] sm:$0xff] }
 0x82b   :  { %5378 = vmatmul.mubr.f32.gmra.mrb[16].mxu1 %v5098_v45  ;;  %v4809_v51 = vpop.permute.xlu1 %4808 }
 0x82c   :  { %v4427_v48 = vpop.permute.xlu0 %4426  ;;  %5382 = vmatprep.mubr.f32.mxu1 %v6213_v6  ;;  %v4907_v41 = vadd.f32 %v4809_v51, %v4715_v17  ;;  %v6216_v17 = vld [vmem:[#allocation2 + $0x189] sm:$0xff]  ;;  %v6347_v6 = vadd.high.f32.bf16 %v6345_v44, %v11669_v31 }
 0x82d   :  { %4750 = vrot.lane.b32.xlu1 %v3470_v0, %s6389_s3  ;;  %v4524_v25 = vadd.f32 %v4427_v48, %v4332_v42  ;;  %v3452_v0 = vld [vmem:[#allocation3 + $0x288] sm:$0xff] }
 0x82e   :  { %4456 = vrot.lane.b32.xlu0 %v3577_v60, %s6388_s0  ;;  %v11671_v60 = vld [vmem:[#allocation366_spill] sm:$0xff]  ;;  %v4143_v22 = vadd.f32 %v6347_v6, %v11672_v32 }
 0x82f   :  { %v5001_v37 = vpop.permute.xlu1 %5000  ;;  %v4334_v27 = vadd.f32 %v11671_v60, %v4142_v35  ;;  %v3536_v35 = vld [vmem:[#allocation3 + $0x4a] sm:$0xff]  ;;  %v11680_v60 = vld [vmem:[#allocation127_spill] sm:$0xff]  ;;  %v11682_v6 = vld [vmem:[#allocation110_spill] sm:$0xff] }
 0x830   :  { %v5099_v47 = vadd.f32 %v5001_v37, %v4907_v41  ;;  %v6112_v14 = vpop.permute.xlu0 %6111  ;;  %v4335_v40 = vadd.f32 %v11673_v13, %v4143_v22  ;;  %v3517_v22 = vld [vmem:[#allocation3 + $0x291] sm:$0xff] }
 0x831   :  { %4560 = vrot.lane.b32.xlu1 %v3407_v33, %s6390_s26  ;;  %v6338_v34 = vadd.low.f32.bf16 %v4524_v25, %v6112_v14  ;;  %v11674_v33 = vld [vmem:[#allocation342_spill] sm:$0xff] }
 0x832   :  { %4838 = vrot.lane.b32.xlu0 %v3514_v57, %s6389_s3  ;;  %5383 = vmatmul.mubr.f32.gmra.mrb[18].mxu1 %v5099_v47  ;;  %v3535_v47 = vld [vmem:[#allocation3 + $0x3a] sm:$0xff]  ;;  %v3472_v57 = vld [vmem:[#allocation3 + $0x49] sm:$0xff]  ;;  %v3473_v13 = vld [vmem:[#allocation3 + $0x51] sm:$0xff] }
 0x833   :  { %v6117_v62 = vpop.permute.xlu1 %6116  ;;  %5387 = vmatprep.mubr.f32.mxu1 %v6215_v52  ;;  %v11676_v52 = vld [vmem:[#allocation241_spill] sm:$0xff] }
 0x834   :  { %v4429_v55 = vpop.permute.xlu0 %4428  ;;  %v6342_v38 = vadd.low.f32.bf16 %v6338_v34, %v6117_v62 }
 0x835   :  { %v4525_v58 = vadd.f32 %v4429_v55, %v4333_v43  ;;  %4942 = vrot.lane.b32.xlu1 %v3534_v21, %s6391_s29  ;;  %v11675_v43 = vld [vmem:[#allocation17_spill] sm:$0xff] }
 0x836   :  { %4648 = vrot.lane.b32.xlu0 %v3451_v7, %s6390_s26  ;;  %v3409_v7 = vld [vmem:[#allocation3 + $0x50] sm:$0xff] }
 0x837   :  { %v6340_v9 = vadd.high.f32.bf16 %v4525_v58, %v6112_v14  ;;  %v4431_v4 = vpop.permute.xlu1 %4430  ;;  %v6218_v14 = vld [vmem:[#allocation3 + $0x1c8] sm:$0xff] }
 0x838   :  { %v6122_v19 = vpop.permute.xlu0 %6121  ;;  %v4526_v36 = vadd.f32 %v4431_v4, %v4334_v27  ;;  %v3760_v15 = vadd.f32 %v6218_v14, %v11674_v33  ;;  %v3516_v4 = vld [vmem:[#allocation3 + $0x289] sm:$0xff] }
 0x839   :  { %4458 = vrot.lane.b32.xlu1 %v3387_v50, %s6388_s0  ;;  %v6343_v26 = vadd.high.f32.bf16 %v6340_v9, %v6117_v62  ;;  %v6344_v54 = vadd.low.f32.bf16 %v6342_v38, %v6122_v19 }
 0x83a   :  { %5030 = vrot.lane.b32.xlu0 %v3387_v50, %s6391_s29  ;;  %v3952_v25 = vadd.f32 %v11675_v43, %v3760_v15  ;;  %v11678_v50 = vld [vmem:[#allocation225_spill] sm:$0xff]  ;;  %v3454_v15 = vld [vmem:[#allocation3 + $0x2a0] sm:$0xff]  ;;  %v11686_v43 = vld [vmem:[#allocation10_spill] sm:$0xff] }
 0x83b   :  { %v4433_v29 = vpop.permute.xlu1 %4432  ;;  %5388 = vmatmul.mubr.f32.gmra.mrb[20].mxu1 %v6344_v54  ;;  %v6346_v51 = vadd.high.f32.bf16 %v6343_v26, %v6122_v19  ;;  %v6220_v19 = vld [vmem:[#allocation3 + $0x1d0] sm:$0xff]  ;;  %v6221_v26 = vld [vmem:[#allocation2 + $0x1e1] sm:$0xff] }
 0x83c   :  { %v4623_v45 = vpop.permute.xlu0 %4622  ;;  %5392 = vmatprep.mubr.f32.mxu1 %v6216_v17  ;;  %v4527_v56 = vadd.f32 %v4433_v29, %v4335_v40  ;;  %v4144_v55 = vadd.f32 %v11676_v52, %v3952_v25  ;;  %v3761_v31 = vadd.f32 %v6220_v19, %v11678_v50  ;;  %v11679_v29 = vld [vmem:[#allocation290_spill] sm:$0xff]  ;;  %v11684_v40 = vld [vmem:[#allocation23_spill] sm:$0xff] }
 0x83d   :  { %4840 = vrot.lane.b32.xlu1 %v3515_v23, %s6389_s3  ;;  %v4718_v8 = vadd.f32 %v4623_v45, %v4526_v36  ;;  %v3453_v23 = vld [vmem:[#allocation3 + $0x290] sm:$0xff] }
 0x83e   :  { %4752 = vrot.lane.b32.xlu0 %v3471_v12, %s6389_s3  ;;  %v4336_v39 = vadd.f32 %v11677_v10, %v4144_v55  ;;  %v3953_v54 = vadd.f32 %v11679_v29, %v3761_v31  ;;  %v3389_v36 = vld [vmem:[#allocation3 + $0x28a] sm:$0xff] }
 0x83f   :  { %v4625_v20 = vpop.permute.xlu1 %4624  ;;  %5393 = vmatmul.mubr.f32.gmra.mrb[22].mxu1 %v6346_v51  ;;  %v11690_v29 = vld [vmem:[#allocation341_spill] sm:$0xff] }
 0x840   :  { %v4815_v48 = vpop.permute.xlu0 %4814  ;;  %5397 = vmatprep.mubr.f32.mxu1 %v6217_v5  ;;  %v4719_v62 = vadd.f32 %v4625_v20, %v4527_v56  ;;  %v4145_v27 = vadd.f32 %v11680_v60, %v3953_v54  ;;  %v11681_v20 = vld [vmem:[#allocation28_spill] sm:$0xff] }
 0x841   :  { %4650 = vrot.lane.b32.xlu1 %v3452_v0, %s6390_s26  ;;  %v4910_v41 = vadd.f32 %v4815_v48, %v4718_v8  ;;  %v6222_v0 = vld [vmem:[#allocation3 + $0x1e0] sm:$0xff]  ;;  %v11685_v56 = vld [vmem:[#allocation248_spill] sm:$0xff] }
 0x842   :  { %4562 = vrot.lane.b32.xlu0 %v3408_v53, %s6390_s26  ;;  %v4337_v51 = vadd.f32 %v11681_v20, %v4145_v27  ;;  %v3762_v8 = vadd.f32 %v6222_v0, %v11682_v6  ;;  %v3411_v27 = vld [vmem:[#allocation3 + $0x68] sm:$0xff] }
 0x843   :  { %v4435_v1 = vpop.permute.xlu1 %4434  ;;  %v3518_v20 = vld [vmem:[#allocation3 + $0x2a1] sm:$0xff] }
 0x844   :  { %v5007_v46 = vpop.permute.xlu0 %5006  ;;  %v4528_v63 = vadd.f32 %v4435_v1, %v4336_v39  ;;  %v11683_v1 = vld [vmem:[#allocation233_spill] sm:$0xff] }
 0x845   :  { %v5102_v37 = vadd.f32 %v5007_v46, %v4910_v41  ;;  %5032 = vrot.lane.b32.xlu1 %v3579_v2, %s6391_s29  ;;  %v6223_v41 = vld [vmem:[#allocation2 + $0x1e9] sm:$0xff]  ;;  %v3954_v46 = vadd.f32 %v11683_v1, %v3762_v8  ;;  %v3537_v39 = vld [vmem:[#allocation3 + $0x52] sm:$0xff] }
 0x846   :  { %4944 = vrot.lane.b32.xlu0 %v3535_v47, %s6391_s29  ;;  %v11693_v1 = vld [vmem:[#allocation224_spill] sm:$0xff] }
 0x847   :  { %v4627_v24 = vpop.permute.xlu1 %4626  ;;  %5398 = vmatmul.mubr.f32.gmra.mrb[24].mxu1 %v5102_v37  ;;  %v4146_v37 = vadd.f32 %v11684_v40, %v3954_v46 }
 0x848   :  { %v4817_v42 = vpop.permute.xlu0 %4816  ;;  %5402 = vmatprep.mubr.f32.mxu1 %v6219_v49  ;;  %v4720_v45 = vadd.f32 %v4627_v24, %v4528_v63  ;;  %v6224_v49 = vld [vmem:[#allocation3 + $0x1e8] sm:$0xff] }
 0x849   :  { %4754 = vrot.lane.b32.xlu1 %v3472_v57, %s6389_s3  ;;  %v4911_v21 = vadd.f32 %v4817_v42, %v4719_v62  ;;  %v4338_v24 = vadd.f32 %v11685_v56, %v4146_v37  ;;  %v3410_v57 = vld [vmem:[#allocation3 + $0x60] sm:$0xff]  ;;  %v3763_v25 = vadd.f32 %v6224_v49, %v11686_v43  ;;  %v3519_v49 = vld [vmem:[#allocation3 + $0x2a9] sm:$0xff] }
 0x84a   :  { %4460 = vrot.lane.b32.xlu0 %v3579_v2, %s6388_s0  ;;  %v3474_v63 = vld [vmem:[#allocation3 + $0x61] sm:$0xff] }
 0x84b   :  { %v4437_v34 = vpop.permute.xlu1 %4436  ;;  %v3391_v37 = vld [vmem:[#allocation3 + $0x2a2] sm:$0xff] }
 0x84c   :  { %v5009_v58 = vpop.permute.xlu0 %5008  ;;  %v4529_v53 = vadd.f32 %v4437_v34, %v4337_v51  ;;  %v6225_v34 = vld [vmem:[#allocation2 + $0x1f9] sm:$0xff]  ;;  %v11692_v51 = vld [vmem:[#allocation240_spill] sm:$0xff] }
 0x84d   :  { %v5103_v9 = vadd.f32 %v5009_v58, %v4911_v21  ;;  %4564 = vrot.lane.b32.xlu1 %v3409_v7, %s6390_s26  ;;  %v3581_v21 = vld [vmem:[#allocation3 + $0x292] sm:$0xff]  ;;  %v11687_v58 = vld [vmem:[#allocation119_spill] sm:$0xff] }
 0x84e   :  { %4842 = vrot.lane.b32.xlu0 %v3516_v4, %s6389_s3  ;;  %v3955_v7 = vadd.f32 %v11687_v58, %v3763_v25 }
 0x84f   :  { %v4629_v38 = vpop.permute.xlu1 %4628  ;;  %5403 = vmatmul.mubr.f32.gmra.mrb[26].mxu1 %v5103_v9  ;;  %v11688_v9 = vld [vmem:[#allocation358_spill] sm:$0xff] }
 0x850   :  { %v4819_v18 = vpop.permute.xlu0 %4818  ;;  %5407 = vmatprep.mubr.f32.mxu1 %v6221_v26  ;;  %v4721_v2 = vadd.f32 %v4629_v38, %v4529_v53  ;;  %v4147_v4 = vadd.f32 %v11688_v9, %v3955_v7  ;;  %v11689_v38 = vld [vmem:[#allocation137_spill] sm:$0xff]  ;;  %v6226_v26 = vld [vmem:[#allocation3 + $0x1f8] sm:$0xff]  ;;  %v3538_v53 = vld [vmem:[#allocation3 + $0x62] sm:$0xff] }
 0x851   :  { %4946 = vrot.lane.b32.xlu1 %v3536_v35, %s6391_s29  ;;  %v4912_v12 = vadd.f32 %v4819_v18, %v4720_v45  ;;  %v3764_v54 = vadd.f32 %v6226_v26, %v11690_v29  ;;  %v11697_v9 = vld [vmem:[#allocation232_spill] sm:$0xff] }
 0x852   :  { %4652 = vrot.lane.b32.xlu0 %v3453_v23, %s6390_s26  ;;  %v4339_v18 = vadd.f32 %v11689_v38, %v4147_v4 }
 0x853   :  { %v4439_v17 = vpop.permute.xlu1 %4438 }
 0x854   :  { %v5011_v44 = vpop.permute.xlu0 %5010  ;;  %v4530_v62 = vadd.f32 %v4439_v17, %v4338_v24  ;;  %v11691_v17 = vld [vmem:[#allocation18_spill] sm:$0xff] }
 0x855   :  { %v5104_v48 = vadd.f32 %v5011_v44, %v4912_v12  ;;  %4462 = vrot.lane.b32.xlu1 %v3389_v36, %s6388_s0  ;;  %v6227_v12 = vld [vmem:[#allocation2 + $0x201] sm:$0xff]  ;;  %v3956_v44 = vadd.f32 %v11691_v17, %v3764_v54  ;;  %v3539_v54 = vld [vmem:[#allocation3 + $0x6a] sm:$0xff] }
 0x856   :  { %5034 = vrot.lane.b32.xlu0 %v3389_v36, %s6391_s29 }
 0x857   :  { %v4631_v5 = vpop.permute.xlu1 %4630  ;;  %5408 = vmatmul.mubr.f32.gmra.mrb[28].mxu1 %v5104_v48  ;;  %v4148_v48 = vadd.f32 %v11692_v51, %v3956_v44  ;;  %v3476_v44 = vld [vmem:[#allocation3 + $0x79] sm:$0xff] }
 0x858   :  { %v4821_v32 = vpop.permute.xlu0 %4820  ;;  %5412 = vmatprep.mubr.f32.mxu1 %v6223_v41  ;;  %v4722_v10 = vadd.f32 %v4631_v5, %v4530_v62  ;;  %v6228_v41 = vld [vmem:[#allocation3 + $0x200] sm:$0xff]  ;;  %v3475_v62 = vld [vmem:[#allocation3 + $0x69] sm:$0xff] }
 0x859   :  { %4844 = vrot.lane.b32.xlu1 %v3517_v22, %s6389_s3  ;;  %v4913_v47 = vadd.f32 %v4821_v32, %v4721_v2  ;;  %v4340_v5 = vadd.f32 %v9857_v3, %v4148_v48  ;;  %v3455_v22 = vld [vmem:[#allocation3 + $0x2a8] sm:$0xff]  ;;  %v3765_v46 = vadd.f32 %v6228_v41, %v11693_v1  ;;  %v11695_v3 = vld [vmem:[#allocation126_spill] sm:$0xff] }
 0x85a   :  { %4756 = vrot.lane.b32.xlu0 %v3473_v13, %s6389_s3  ;;  %v3520_v1 = vld [vmem:[#allocation3 + $0x2b9] sm:$0xff] }
 0x85b   :  { %v4441_v14 = vpop.permute.xlu1 %4440 }
 0x85c   :  { %v5013_v33 = vpop.permute.xlu0 %5012  ;;  %v4531_v45 = vadd.f32 %v4441_v14, %v4339_v18  ;;  %v11694_v14 = vld [vmem:[#allocation350_spill] sm:$0xff] }
 0x85d   :  { %v5105_v42 = vadd.f32 %v5013_v33, %v4913_v47  ;;  %4654 = vrot.lane.b32.xlu1 %v3454_v15, %s6390_s26  ;;  %v6229_v47 = vld [vmem:[#allocation2 + $0x211] sm:$0xff]  ;;  %v3957_v33 = vadd.f32 %v11694_v14, %v3765_v46  ;;  %v6234_v46 = vld [vmem:[#allocation3 + $0x228] sm:$0xff]  ;;  %v3540_v14 = vld [vmem:[#allocation3 + $0x7a] sm:$0xff] }
 0x85e   :  { %4566 = vrot.lane.b32.xlu0 %v3410_v57, %s6390_s26 }
 0x85f   :  { %v4633_v52 = vpop.permute.xlu1 %4632  ;;  %5413 = vmatmul.mubr.f32.gmra.mrb[30].mxu1 %v5105_v42  ;;  %v4149_v56 = vadd.f32 %v11695_v3, %v3957_v33  ;;  %v6235_v33 = vld [vmem:[#allocation2 + $0x231] sm:$0xff] }
 0x860   :  { %v4823_v55 = vpop.permute.xlu0 %4822  ;;  %5417 = vmatprep.mubr.f32.mxu1 %v6225_v34  ;;  %v4723_v36 = vadd.f32 %v4633_v52, %v4531_v45  ;;  %v6230_v52 = vld [vmem:[#allocation3 + $0x210] sm:$0xff]  ;;  %v6232_v45 = vld [vmem:[#allocation3 + $0x218] sm:$0xff] }
 0x861   :  { %5036 = vrot.lane.b32.xlu1 %v3581_v21, %s6391_s29  ;;  %v4914_v19 = vadd.f32 %v4823_v55, %v4722_v10  ;;  %v4341_v43 = vadd.f32 %v9855_v59, %v4149_v56  ;;  %v11696_v55 = vld [vmem:[#allocation169_spill] sm:$0xff]  ;;  %v3456_v10 = vld [vmem:[#allocation3 + $0x2b8] sm:$0xff] }
 0x862   :  { %4948 = vrot.lane.b32.xlu0 %v3537_v39, %s6391_s29  ;;  %v6231_v39 = vld [vmem:[#allocation2 + $0x219] sm:$0xff] }
 0x863   :  { %v4443_v50 = vpop.permute.xlu1 %4442  ;;  %v3412_v59 = vld [vmem:[#allocation3 + $0x78] sm:$0xff] }
 0x864   :  { %v5015_v31 = vpop.permute.xlu0 %5014  ;;  %v4532_v2 = vadd.f32 %v4443_v50, %v4340_v5  ;;  %v11698_v50 = vld [vmem:[#allocation72_spill] sm:$0xff]  ;;  %v3413_v5 = vld [vmem:[#allocation3 + $0x80] sm:$0xff] }
 0x865   :  { %v5106_v35 = vadd.f32 %v5015_v31, %v4914_v19  ;;  %4758 = vrot.lane.b32.xlu1 %v3474_v63, %s6389_s3 }
 0x866   :  { %4464 = vrot.lane.b32.xlu0 %v3581_v21, %s6388_s0  ;;  %v3766_v21 = vadd.f32 %v6230_v52, %v11696_v55  ;;  %v6236_v52 = vld [vmem:[#allocation3 + $0x230] sm:$0xff] }
 0x867   :  { %v4635_v23 = vpop.permute.xlu1 %4634  ;;  %5418 = vmatmul.mubr.f32.gmra.mrb[32].mxu1 %v5106_v35  ;;  %v3583_v35 = vld [vmem:[#allocation3 + $0x2aa] sm:$0xff] }
 0x868   :  { %v4825_v60 = vpop.permute.xlu0 %4824  ;;  %5422 = vmatprep.mubr.f32.mxu1 %v6227_v12  ;;  %v4724_v15 = vadd.f32 %v4635_v23, %v4532_v2  ;;  %v3958_v4 = vadd.f32 %v11697_v9, %v3766_v21  ;;  %v11699_v23 = vld [vmem:[#allocation56_spill] sm:$0xff]  ;;  %v11703_v2 = vld [vmem:[#allocation59_spill] sm:$0xff]  ;;  %v11706_v55 = vld [vmem:[#allocation285_spill] sm:$0xff] }
 0x869   :  { %4568 = vrot.lane.b32.xlu1 %v3411_v27, %s6390_s26  ;;  %v4915_v0 = vadd.f32 %v4825_v60, %v4723_v36  ;;  %v3767_v60 = vadd.f32 %v6232_v45, %v11699_v23  ;;  %v6233_v36 = vld [vmem:[#allocation2 + $0x229] sm:$0xff]  ;;  %v3769_v21 = vadd.f32 %v6236_v52, %v11706_v55  ;;  %v3542_v52 = vld [vmem:[#allocation3 + $0x92] sm:$0xff] }
 0x86a   :  { %4846 = vrot.lane.b32.xlu0 %v3518_v20, %s6389_s3  ;;  %v4150_v31 = vadd.f32 %v11698_v50, %v3958_v4  ;;  %v11700_v20 = vld [vmem:[#allocation118_spill] sm:$0xff]  ;;  %v11708_v50 = vld [vmem:[#allocation185_spill] sm:$0xff] }
 0x86b   :  { %v4445_v6 = vpop.permute.xlu1 %4444  ;;  %v3959_v51 = vadd.f32 %v11700_v20, %v3767_v60  ;;  %v3414_v60 = vld [vmem:[#allocation3 + $0x90] sm:$0xff] }
 0x86c   :  { %v5017_v8 = vpop.permute.xlu0 %5016  ;;  %v4533_v34 = vadd.f32 %v4445_v6, %v4341_v43  ;;  %v4342_v26 = vadd.f32 %v9863_v11, %v4150_v31  ;;  %v11701_v11 = vld [vmem:[#allocation357_spill] sm:$0xff] }
 0x86d   :  { %v5107_v32 = vadd.f32 %v5017_v8, %v4915_v0  ;;  %4950 = vrot.lane.b32.xlu1 %v3538_v53, %s6391_s29  ;;  %v4151_v0 = vadd.f32 %v11701_v11, %v3959_v51  ;;  %v3541_v51 = vld [vmem:[#allocation3 + $0x82] sm:$0xff]  ;;  %v11710_v11 = vld [vmem:[#allocation338_spill] sm:$0xff] }
 0x86e   :  { %4656 = vrot.lane.b32.xlu0 %v3455_v22, %s6390_s26 }
 0x86f   :  { %v4637_v13 = vpop.permute.xlu1 %4636  ;;  %5423 = vmatmul.mubr.f32.gmra.mrb[34].mxu1 %v5107_v32  ;;  %v11702_v32 = vld [vmem:[#allocation251_spill] sm:$0xff] }
 0x870   :  { %v4827_v40 = vpop.permute.xlu0 %4826  ;;  %5427 = vmatprep.mubr.f32.mxu1 %v6229_v47  ;;  %v4725_v19 = vadd.f32 %v4637_v13, %v4533_v34  ;;  %v4343_v22 = vadd.f32 %v11702_v32, %v4151_v0  ;;  %v3768_v13 = vadd.f32 %v6234_v46, %v11703_v2  ;;  %v6240_v46 = vld [vmem:[#allocation3 + $0x240] sm:$0xff]  ;;  %v11713_v2 = vld [vmem:[#allocation284_spill] sm:$0xff] }
 0x871   :  { %4466 = vrot.lane.b32.xlu1 %v3391_v37, %s6388_s0  ;;  %v4916_v24 = vadd.f32 %v4827_v40, %v4724_v15  ;;  %v11704_v15 = vld [vmem:[#allocation64_spill] sm:$0xff] }
 0x872   :  { %5038 = vrot.lane.b32.xlu0 %v3391_v37, %s6391_s29  ;;  %v3960_v3 = vadd.f32 %v11704_v15, %v3768_v13  ;;  %v3770_v13 = vadd.f32 %v6240_v46, %v11713_v2  ;;  %v3415_v15 = vld [vmem:[#allocation3 + $0x98] sm:$0xff]  ;;  %v11723_v2 = vld [vmem:[#allocation165_spill] sm:$0xff] }
 0x873   :  { %v4447_v42 = vpop.permute.xlu1 %4446  ;;  %v6245_v46 = vld [vmem:[#allocation3 + $0x18] sm:$0xff] }
 0x874   :  { %v5019_v57 = vpop.permute.xlu0 %5018  ;;  %v4534_v27 = vadd.f32 %v4447_v42, %v4342_v26  ;;  %v11705_v42 = vld [vmem:[#allocation301_spill] sm:$0xff] }
 0x875   :  { %v5108_v25 = vadd.f32 %v5019_v57, %v4916_v24  ;;  %4848 = vrot.lane.b32.xlu1 %v3519_v49, %s6389_s3  ;;  %v3457_v24 = vld [vmem:[#allocation3 + $0x2c0] sm:$0xff]  ;;  %v4152_v57 = vadd.f32 %v11705_v42, %v3960_v3  ;;  %v11715_v3 = vld [vmem:[#allocation293_spill] sm:$0xff] }
 0x876   :  { %4760 = vrot.lane.b32.xlu0 %v3475_v62, %s6389_s3  ;;  %v3393_v62 = vld [vmem:[#allocation3 + $0x2ba] sm:$0xff] }
 0x877   :  { %v4639_v58 = vpop.permute.xlu1 %4638  ;;  %5428 = vmatmul.mubr.f32.gmra.mrb[36].mxu1 %v5108_v25  ;;  %v4344_v34 = vadd.f32 %v9870_v30, %v4152_v57  ;;  %v3477_v30 = vld [vmem:[#allocation3 + $0x81] sm:$0xff] }
 0x878   :  { %v4829_v7 = vpop.permute.xlu0 %4828  ;;  %5432 = vmatprep.mubr.f32.mxu1 %v6231_v39  ;;  %v4726_v48 = vadd.f32 %v4639_v58, %v4534_v27  ;;  %v11716_v57 = vld [vmem:[#allocation184_spill] sm:$0xff] }
 0x879   :  { %4658 = vrot.lane.b32.xlu1 %v3456_v10, %s6390_s26  ;;  %v4917_v63 = vadd.f32 %v4829_v7, %v4725_v19  ;;  %v11707_v7 = vld [vmem:[#allocation349_spill] sm:$0xff]  ;;  %v3521_v19 = vld [vmem:[#allocation3 + $0x2c1] sm:$0xff] }
 0x87a   :  { %4570 = vrot.lane.b32.xlu0 %v3412_v59, %s6390_s26  ;;  %v3961_v10 = vadd.f32 %v11707_v7, %v3769_v21  ;;  %v6237_v59 = vld [vmem:[#allocation2 + $0x241] sm:$0xff]  ;;  %v3459_v21 = vld [vmem:[#allocation3 + $0x2d8] sm:$0xff] }
 0x87b   :  { %v4449_v38 = vpop.permute.xlu1 %4448 }
 0x87c   :  { %v5021_v18 = vpop.permute.xlu0 %5020  ;;  %v4535_v40 = vadd.f32 %v4449_v38, %v4343_v22  ;;  %v4153_v31 = vadd.f32 %v11708_v50, %v3961_v10  ;;  %v11709_v38 = vld [vmem:[#allocation365_spill] sm:$0xff] }
 0x87d   :  { %v5109_v29 = vadd.f32 %v5021_v18, %v4917_v63  ;;  %5040 = vrot.lane.b32.xlu1 %v3583_v35, %s6391_s29  ;;  %v3478_v22 = vld [vmem:[#allocation3 + $0x91] sm:$0xff] }
 0x87e   :  { %4952 = vrot.lane.b32.xlu0 %v3539_v54, %s6391_s29  ;;  %v4345_v18 = vadd.f32 %v11709_v38, %v4153_v31  ;;  %v3458_v54 = vld [vmem:[#allocation3 + $0x2d0] sm:$0xff] }
 0x87f   :  { %v4641_v12 = vpop.permute.xlu1 %4640  ;;  %5433 = vmatmul.mubr.f32.gmra.mrb[38].mxu1 %v5109_v29 }
 0x880   :  { %v4831_v17 = vpop.permute.xlu0 %4830  ;;  %5437 = vmatprep.mubr.f32.mxu1 %v6233_v36  ;;  %v4727_v56 = vadd.f32 %v4641_v12, %v4535_v40  ;;  %v6238_v36 = vld [vmem:[#allocation2 + $0x249] sm:$0xff] }
 0x881   :  { %4762 = vrot.lane.b32.xlu1 %v3476_v44, %s6389_s3  ;;  %v4918_v6 = vadd.f32 %v4831_v17, %v4726_v48  ;;  %v3585_v44 = vld [vmem:[#allocation3 + $0x2c2] sm:$0xff] }
 0x882   :  { %4468 = vrot.lane.b32.xlu0 %v3583_v35, %s6388_s0  ;;  %v10223_v48 = vld [vmem:[#allocation2] sm:$0xff] }
 0x883   :  { %v4451_v8 = vpop.permute.xlu1 %4450  ;;  %v6348_v0 = vadd.low.f32.bf16 %v10223_v48, %v11710_v11 }
 0x884   :  { %v5023_v53 = vpop.permute.xlu0 %5022  ;;  %v4536_v39 = vadd.f32 %v4451_v8, %v4344_v34  ;;  %v11711_v8 = vld [vmem:[#allocation114_spill] sm:$0xff] }
 0x885   :  { %v5110_v41 = vadd.f32 %v5023_v53, %v4918_v6  ;;  %4572 = vrot.lane.b32.xlu1 %v3413_v5, %s6390_s26  ;;  %v6349_v53 = vadd.low.f32.bf16 %v6348_v0, %v11711_v8  ;;  %v3416_v0 = vld [vmem:[#allocation3 + $0xa8] sm:$0xff] }
 0x886   :  { %4850 = vrot.lane.b32.xlu0 %v3520_v1, %s6389_s3 }
 0x887   :  { %v4643_v37 = vpop.permute.xlu1 %4642  ;;  %5438 = vmatmul.mubr.f32.gmra.mrb[40].mxu1 %v5110_v41  ;;  %v11712_v41 = vld [vmem:[#allocation354_spill] sm:$0xff] }
 0x888   :  { %v4833_v47 = vpop.permute.xlu0 %4832  ;;  %5442 = vmatprep.mubr.f32.mxu1 %v6235_v33  ;;  %v4728_v63 = vadd.f32 %v4643_v37, %v4536_v39  ;;  %v4110_v1 = vadd.f32 %v6349_v53, %v11712_v41  ;;  %v6241_v37 = vld [vmem:[#allocation2 + $0x259] sm:$0xff] }
 0x889   :  { %4954 = vrot.lane.b32.xlu1 %v3540_v14, %s6391_s29  ;;  %v4919_v49 = vadd.f32 %v4833_v47, %v4727_v56  ;;  %v11714_v47 = vld [vmem:[#allocation244_spill] sm:$0xff]  ;;  %v3962_v56 = vadd.f32 %v11715_v3, %v3770_v13  ;;  %v3395_v39 = vld [vmem:[#allocation3 + $0x2d2] sm:$0xff]  ;;  %v3587_v41 = vld [vmem:[#allocation3 + $0x2da] sm:$0xff]  ;;  %v3728_v13 = vadd.f32 %v6245_v46, %v11723_v2 }
 0x88a   :  { %4660 = vrot.lane.b32.xlu0 %v3457_v24, %s6390_s26  ;;  %v4302_v14 = vadd.f32 %v11714_v47, %v4110_v1  ;;  %v3522_v24 = vld [vmem:[#allocation3 + $0x2d1] sm:$0xff] }
 0x88b   :  { %v4453_v43 = vpop.permute.xlu1 %4452  ;;  %v11737_v2 = vld [vmem:[#allocation122_spill] sm:$0xff] }
 0x88c   :  { %v5025_v25 = vpop.permute.xlu0 %5024  ;;  %v4537_v45 = vadd.f32 %v4453_v43, %v4345_v18  ;;  %v4494_v42 = vadd.f32 %v9944_v61, %v4302_v14  ;;  %v11724_v14 = vld [vmem:[#allocation14_spill] sm:$0xff] }
 0x88d   :  { %v5111_v58 = vadd.f32 %v5025_v25, %v4919_v49  ;;  %4470 = vrot.lane.b32.xlu1 %v3393_v62, %s6388_s0  ;;  %v4154_v49 = vadd.f32 %v11716_v57, %v3962_v56  ;;  %v3480_v56 = vld [vmem:[#allocation3 + $0xa9] sm:$0xff] }
 0x88e   :  { %5042 = vrot.lane.b32.xlu0 %v3393_v62, %s6391_s29 }
 0x88f   :  { %v4645_v9 = vpop.permute.xlu1 %4644  ;;  %5443 = vmatmul.mubr.f32.gmra.mrb[42].mxu1 %v5111_v58  ;;  %v4346_v55 = vadd.f32 %v9877_v16, %v4154_v49  ;;  %v6350_v16 = vadd.high.f32.bf16 %v10223_v48, %v11710_v11  ;;  %v6246_v49 = vld [vmem:[#allocation3 + $0x258] sm:$0xff] }
 0x890   :  { %v4835_v4 = vpop.permute.xlu0 %4834  ;;  %5447 = vmatprep.mubr.f32.mxu1 %v6237_v59  ;;  %v4729_v27 = vadd.f32 %v4645_v9, %v4537_v45  ;;  %v11719_v45 = vld [vmem:[#allocation75_spill] sm:$0xff] }
 0x891   :  { %4852 = vrot.lane.b32.xlu1 %v3521_v19, %s6389_s3  ;;  %v4920_v35 = vadd.f32 %v4835_v4, %v4728_v63  ;;  %v6242_v4 = vld [vmem:[#allocation3 + $0x248] sm:$0xff] }
 0x892   :  { %4764 = vrot.lane.b32.xlu0 %v3477_v30, %s6389_s3  ;;  %v11717_v19 = vld [vmem:[#allocation168_spill] sm:$0xff]  ;;  %v11718_v30 = vld [vmem:[#allocation177_spill] sm:$0xff] }
 0x893   :  { %v4455_v26 = vpop.permute.xlu1 %4454  ;;  %v3771_v59 = vadd.f32 %v6242_v4, %v11717_v19  ;;  %v6243_v63 = vld [vmem:[#allocation2 + $0x21] sm:$0xff] }
 0x894   :  { %v5027_v29 = vpop.permute.xlu0 %5026  ;;  %v4538_v58 = vadd.f32 %v4455_v26, %v4346_v55  ;;  %v6351_v26 = vadd.high.f32.bf16 %v6350_v16, %v11711_v8  ;;  %v11722_v8 = vld [vmem:[#allocation85_spill] sm:$0xff]  ;;  %v11727_v55 = vld [vmem:[#allocation131_spill] sm:$0xff]  ;;  %v11730_v19 = vld [vmem:[#allocation24_spill] sm:$0xff] }
 0x895   :  { %v5112_v23 = vadd.f32 %v5027_v29, %v4920_v35  ;;  %4662 = vrot.lane.b32.xlu1 %v3458_v54, %s6390_s26  ;;  %v3963_v38 = vadd.f32 %v11718_v30, %v3771_v59  ;;  %v3523_v35 = vld [vmem:[#allocation3 + $0x2d9] sm:$0xff]  ;;  %v3544_v30 = vld [vmem:[#allocation3 + $0xaa] sm:$0xff] }
 0x896   :  { %4574 = vrot.lane.b32.xlu0 %v3414_v60, %s6390_s26  ;;  %v3479_v54 = vld [vmem:[#allocation3 + $0x99] sm:$0xff]  ;;  %v11720_v60 = vld [vmem:[#allocation237_spill] sm:$0xff] }
 0x897   :  { %v4559_v12 = vpop.permute.xlu1 %4558  ;;  %5448 = vmatmul.mubr.f32.gmra.mrb[44].mxu1 %v5112_v23  ;;  %v4155_v23 = vadd.f32 %v11719_v45, %v3963_v38  ;;  %v11731_v38 = vld [vmem:[#allocation80_spill] sm:$0xff] }
 0x898   :  { %v4837_v17 = vpop.permute.xlu0 %4836  ;;  %5452 = vmatprep.mubr.f32.mxu1 %v6238_v36  ;;  %v4686_v25 = vadd.f32 %v4559_v12, %v4494_v42  ;;  %v3460_v36 = vld [vmem:[#allocation3 + $0x2e8] sm:$0xff] }
 0x899   :  { %v4921_v20 = vadd.f32 %v4837_v17, %v4729_v27  ;;  %5044 = vrot.lane.b32.xlu1 %v3585_v44, %s6391_s29  ;;  %v4111_v27 = vadd.f32 %v6351_v26, %v11720_v60  ;;  %v4347_v17 = vadd.f32 %v9875_v28, %v4155_v23  ;;  %v3543_v28 = vld [vmem:[#allocation3 + $0x9a] sm:$0xff]  ;;  %v11725_v42 = vld [vmem:[#allocation236_spill] sm:$0xff] }
 0x89a   :  { %4956 = vrot.lane.b32.xlu0 %v3541_v51, %s6391_s29  ;;  %v11721_v51 = vld [vmem:[#allocation76_spill] sm:$0xff] }
 0x89b   :  { %v5029_v6 = vpop.permute.xlu1 %5028  ;;  %v4303_v11 = vadd.f32 %v11721_v51, %v4111_v27  ;;  %v3397_v60 = vld [vmem:[#allocation3 + $0x2ea] sm:$0xff] }
 0x89c   :  { %v5113_v5 = vadd.f32 %v5029_v6, %v4921_v20  ;;  %v4647_v32 = vpop.permute.xlu0 %4646  ;;  %v6244_v20 = vld [vmem:[#allocation2 + $0x261] sm:$0xff] }
 0x89d   :  { %4766 = vrot.lane.b32.xlu1 %v3478_v22, %s6389_s3  ;;  %v4730_v9 = vadd.f32 %v4647_v32, %v4538_v58  ;;  %v4495_v53 = vadd.f32 %v11722_v8, %v4303_v11  ;;  %v3417_v58 = vld [vmem:[#allocation3 + $0xb0] sm:$0xff] }
 0x89e   :  { %4472 = vrot.lane.b32.xlu0 %v3585_v44, %s6388_s0  ;;  %5453 = vmatmul.mubr.f32.gmra.mrb[46].mxu1 %v5113_v5 }
 0x89f   :  { %v4751_v40 = vpop.permute.xlu1 %4750  ;;  %5457 = vmatprep.mubr.f32.mxu1 %v6241_v37 }
 0x8a0   :  { %v4457_v33 = vpop.permute.xlu0 %4456  ;;  %v4878_v34 = vadd.f32 %v4751_v40, %v4686_v25 }
 0x8a1   :  { %4576 = vrot.lane.b32.xlu1 %v3415_v15, %s6390_s26  ;;  %v4539_v6 = vadd.f32 %v4457_v33, %v4347_v17  ;;  %v3920_v33 = vadd.f32 %v11724_v14, %v3728_v13  ;;  %v11732_v17 = vld [vmem:[#allocation11_spill] sm:$0xff] }
 0x8a2   :  { %4854 = vrot.lane.b32.xlu0 %v3522_v24, %s6389_s3 }
 0x8a3   :  { %v4561_v43 = vpop.permute.xlu1 %4560  ;;  %v4112_v57 = vadd.f32 %v11725_v42, %v3920_v33  ;;  %v3462_v33 = vld [vmem:[#allocation3 + $0x300] sm:$0xff] }
 0x8a4   :  { %v4839_v62 = vpop.permute.xlu0 %4838  ;;  %v4687_v1 = vadd.f32 %v4561_v43, %v4495_v53  ;;  %v11726_v43 = vld [vmem:[#allocation113_spill] sm:$0xff]  ;;  %v3418_v42 = vld [vmem:[#allocation3 + $0xc0] sm:$0xff] }
 0x8a5   :  { %4958 = vrot.lane.b32.xlu1 %v3542_v52, %s6391_s29  ;;  %v4922_v50 = vadd.f32 %v4839_v62, %v4730_v9  ;;  %v3772_v25 = vadd.f32 %v6246_v49, %v11726_v43  ;;  %v6247_v52 = vld [vmem:[#allocation2 + $0x271] sm:$0xff] }
 0x8a6   :  { %4664 = vrot.lane.b32.xlu0 %v3459_v21, %s6390_s26  ;;  %v4304_v21 = vadd.f32 %v11727_v55, %v4112_v57  ;;  %v11729_v9 = vld [vmem:[#allocation310_spill] sm:$0xff]  ;;  %v11740_v43 = vld [vmem:[#allocation197_spill] sm:$0xff] }
 0x8a7   :  { %v4943_v7 = vpop.permute.xlu1 %4942 }
 0x8a8   :  { %v5070_v10 = vadd.f32 %v4943_v7, %v4878_v34  ;;  %v4649_v61 = vpop.permute.xlu0 %4648  ;;  %v6248_v7 = vld [vmem:[#allocation2 + $0x31] sm:$0xff]  ;;  %v4496_v4 = vadd.f32 %v11729_v9, %v4304_v21 }
 0x8a9   :  { %4474 = vrot.lane.b32.xlu1 %v3395_v39, %s6388_s0  ;;  %v4731_v32 = vadd.f32 %v4649_v61, %v4539_v6  ;;  %v11734_v6 = vld [vmem:[#allocation67_spill] sm:$0xff]  ;;  %v6253_v9 = vld [vmem:[#allocation3 + $0x30] sm:$0xff] }
 0x8aa   :  { %5046 = vrot.lane.b32.xlu0 %v3395_v39, %s6391_s29  ;;  %5238 = vmatmul.mubr.f32.vlgmr.msra.gmra.mrb[64].mxu0 %v5070_v10  ;;  %v11728_v10 = vld [vmem:[#allocation176_spill] sm:$0xff] }
 0x8ab   :  { %v10247_v31 = vpop.permute.xlu1 %4458  ;;  %5242 = vmatprep.mubr.f32.mxu0 %v6243_v63  ;;  %v3964_v61 = vadd.f32 %v11728_v10, %v3772_v25  ;;  %v3524_v39 = vld [vmem:[#allocation3 + $0x2e9] sm:$0xff] }
 0x8ac   :  { %v5031_v18 = vpop.permute.xlu0 %5030 }
 0x8ad   :  { %v5114_v29 = vadd.f32 %v5031_v18, %v4922_v50  ;;  %4856 = vrot.lane.b32.xlu1 %v3523_v35, %s6389_s3  ;;  %v4156_v59 = vadd.f32 %v11730_v19, %v3964_v61  ;;  %v3461_v35 = vld [vmem:[#allocation3 + $0x2f0] sm:$0xff] }
 0x8ae   :  { %4768 = vrot.lane.b32.xlu0 %v3479_v54, %s6389_s3 }
 0x8af   :  { %v4841_v12 = vpop.permute.xlu1 %4840  ;;  %5458 = vmatmul.mubr.f32.gmra.mrb[48].mxu1 %v5114_v29  ;;  %v4348_v18 = vadd.f32 %v11731_v38, %v4156_v59 }
 0x8b0   :  { %v4753_v44 = vpop.permute.xlu0 %4752  ;;  %5462 = vmatprep.mubr.f32.mxu1 %v6244_v20  ;;  %v4923_v40 = vadd.f32 %v4841_v12, %v4731_v32  ;;  %v6249_v12 = vld [vmem:[#allocation3 + $0x260] sm:$0xff]  ;;  %v11733_v20 = vld [vmem:[#allocation53_spill] sm:$0xff] }
 0x8b1   :  { %4666 = vrot.lane.b32.xlu1 %v3460_v36, %s6390_s26  ;;  %v4879_v37 = vadd.f32 %v4753_v44, %v4687_v1  ;;  %v4540_v29 = vadd.f32 %v10247_v31, %v4348_v18  ;;  %v3773_v44 = vadd.f32 %v6249_v12, %v11732_v17  ;;  %v6250_v36 = vld [vmem:[#allocation3 + $0x20] sm:$0xff]  ;;  %v11735_v32 = vld [vmem:[#allocation345_spill] sm:$0xff] }
 0x8b2   :  { %4578 = vrot.lane.b32.xlu0 %v3416_v0, %s6390_s26  ;;  %v3729_v51 = vadd.f32 %v6250_v36, %v11733_v20  ;;  %v6251_v31 = vld [vmem:[#allocation2 + $0x39] sm:$0xff]  ;;  %v3481_v1 = vld [vmem:[#allocation3 + $0xb1] sm:$0xff] }
 0x8b3   :  { %v4651_v5 = vpop.permute.xlu1 %4650  ;;  %v3965_v8 = vadd.f32 %v11734_v6, %v3773_v44  ;;  %v6255_v44 = vld [vmem:[#allocation2 + $0x289] sm:$0xff]  ;;  %v11746_v6 = vld [vmem:[#allocation19_spill] sm:$0xff] }
 0x8b4   :  { %v4563_v22 = vpop.permute.xlu0 %4562  ;;  %v4732_v27 = vadd.f32 %v4651_v5, %v4540_v29  ;;  %v3525_v5 = vld [vmem:[#allocation3 + $0x2f1] sm:$0xff] }
 0x8b5   :  { %5048 = vrot.lane.b32.xlu1 %v3587_v41, %s6391_s29  ;;  %v4688_v50 = vadd.f32 %v4563_v22, %v4496_v4  ;;  %v3921_v22 = vadd.f32 %v11735_v32, %v3729_v51  ;;  %v11745_v36 = vld [vmem:[#allocation133_spill] sm:$0xff]  ;;  %v11747_v32 = vld [vmem:[#allocation138_spill] sm:$0xff] }
 0x8b6   :  { %4960 = vrot.lane.b32.xlu0 %v3543_v28, %s6391_s29  ;;  %v11736_v28 = vld [vmem:[#allocation300_spill] sm:$0xff] }
 0x8b7   :  { %v5033_v47 = vpop.permute.xlu1 %5032  ;;  %v4157_v46 = vadd.f32 %v11736_v28, %v3965_v8  ;;  %v4113_v13 = vadd.f32 %v11737_v2, %v3921_v22 }
 0x8b8   :  { %v5115_v15 = vadd.f32 %v5033_v47, %v4923_v40  ;;  %v4945_v3 = vpop.permute.xlu0 %4944 }
 0x8b9   :  { %v5071_v24 = vadd.f32 %v4945_v3, %v4879_v37  ;;  %4770 = vrot.lane.b32.xlu1 %v3480_v56, %s6389_s3  ;;  %v11738_v37 = vld [vmem:[#allocation27_spill] sm:$0xff]  ;;  %v11739_v56 = vld [vmem:[#allocation361_spill] sm:$0xff] }
 0x8ba   :  { %4476 = vrot.lane.b32.xlu0 %v3587_v41, %s6388_s0  ;;  %5463 = vmatmul.mubr.f32.gmra.mrb[50].mxu1 %v5115_v15  ;;  %v4349_v47 = vadd.f32 %v11738_v37, %v4157_v46  ;;  %v10294_v15 = vld [vmem:[%s10642_s4] ss:$0 sm:$0xff] }
 0x8bb   :  { %5243 = vmatmul.mubr.f32.gmra.mrb[66].mxu0 %v5071_v24  ;;  %v4755_v62 = vpop.permute.xlu1 %4754  ;;  %5467 = vmatprep.mubr.f32.mxu1 %v6247_v52  ;;  %v6252_v3 = vld [vmem:[#allocation2 + $0x279] sm:$0xff]  ;;  %v4305_v24 = vadd.f32 %v11739_v56, %v4113_v13  ;;  %v3463_v56 = vld [vmem:[#allocation3 + $0x308] sm:$0xff] }
 0x8bc   :  { %v4461_v34 = vpop.permute.xlu0 %4460  ;;  %5247 = vmatprep.mubr.f32.mxu0 %v6248_v7  ;;  %v4880_v26 = vadd.f32 %v4755_v62, %v4688_v50  ;;  %v3589_v7 = vld [vmem:[#allocation3 + $0x2f2] sm:$0xff] }
 0x8bd   :  { %4580 = vrot.lane.b32.xlu1 %v3417_v58, %s6390_s26  ;;  %v4541_v57 = vadd.f32 %v4461_v34, %v4349_v47  ;;  %v4497_v25 = vadd.f32 %v11740_v43, %v4305_v24  ;;  %v11741_v34 = vld [vmem:[#allocation55_spill] sm:$0xff] }
 0x8be   :  { %4858 = vrot.lane.b32.xlu0 %v3524_v39, %s6389_s3  ;;  %v3545_v39 = vld [vmem:[#allocation3 + $0xb2] sm:$0xff]  ;;  %v3730_v4 = vadd.f32 %v6253_v9, %v11741_v34  ;;  %v3546_v47 = vld [vmem:[#allocation3 + $0xc2] sm:$0xff] }
 0x8bf   :  { %v4565_v16 = vpop.permute.xlu1 %4564 }
 0x8c0   :  { %v4843_v63 = vpop.permute.xlu0 %4842  ;;  %v4689_v10 = vadd.f32 %v4565_v16, %v4497_v25  ;;  %v11743_v16 = vld [vmem:[#allocation68_spill] sm:$0xff] }
 0x8c1   :  { %4962 = vrot.lane.b32.xlu1 %v3544_v30, %s6391_s29  ;;  %v4924_v11 = vadd.f32 %v4843_v63, %v4732_v27  ;;  %v11742_v63 = vld [vmem:[#allocation228_spill] sm:$0xff] }
 0x8c2   :  { %4668 = vrot.lane.b32.xlu0 %v3461_v35, %s6390_s26  ;;  %v3922_v30 = vadd.f32 %v11742_v63, %v3730_v4  ;;  %v3482_v35 = vld [vmem:[#allocation3 + $0xc1] sm:$0xff]  ;;  %v3527_v63 = vld [vmem:[#allocation3 + $0x309] sm:$0xff] }
 0x8c3   :  { %v4947_v54 = vpop.permute.xlu1 %4946  ;;  %v3399_v25 = vld [vmem:[#allocation3 + $0x302] sm:$0xff] }
 0x8c4   :  { %v5072_v45 = vadd.f32 %v4947_v54, %v4880_v26  ;;  %v4653_v23 = vpop.permute.xlu0 %4652  ;;  %v4114_v29 = vadd.f32 %v11743_v16, %v3922_v30  ;;  %v11753_v30 = vld [vmem:[#allocation173_spill] sm:$0xff] }
 0x8c5   :  { %4478 = vrot.lane.b32.xlu1 %v3397_v60, %s6388_s0  ;;  %v4733_v21 = vadd.f32 %v4653_v23, %v4541_v57  ;;  %v11744_v23 = vld [vmem:[#allocation344_spill] sm:$0xff]  ;;  %v11754_v16 = vld [vmem:[#allocation129_spill] sm:$0xff] }
 0x8c6   :  { %5050 = vrot.lane.b32.xlu0 %v3397_v60, %s6391_s29  ;;  %5248 = vmatmul.mubr.f32.gmra.mrb[68].mxu0 %v5072_v45  ;;  %v6254_v45 = vld [vmem:[#allocation3 + $0x270] sm:$0xff]  ;;  %v4306_v20 = vadd.f32 %v11745_v36, %v4114_v29 }
 0x8c7   :  { %v10282_v0 = vpop.permute.xlu1 %4462  ;;  %5252 = vmatprep.mubr.f32.mxu0 %v6251_v31  ;;  %v3774_v60 = vadd.f32 %v6254_v45, %v11744_v23  ;;  %v6256_v31 = vld [vmem:[#allocation2 + $0x49] sm:$0xff] }
 0x8c8   :  { %v5035_v53 = vpop.permute.xlu0 %5034  ;;  %v4498_v22 = vadd.f32 %v11747_v32, %v4306_v20  ;;  %v11755_v45 = vld [vmem:[#allocation353_spill] sm:$0xff]  ;;  %v3464_v20 = vld [vmem:[#allocation3 + $0x318] sm:$0xff]  ;;  %v11758_v32 = vld [vmem:[#allocation31_spill] sm:$0xff] }
 0x8c9   :  { %v5116_v41 = vadd.f32 %v5035_v53, %v4924_v11  ;;  %4860 = vrot.lane.b32.xlu1 %v3525_v5, %s6389_s3  ;;  %v3419_v11 = vld [vmem:[#allocation3 + $0xc8] sm:$0xff]  ;;  %v3966_v8 = vadd.f32 %v11746_v6, %v3774_v60 }
 0x8ca   :  { %4772 = vrot.lane.b32.xlu0 %v3481_v1, %s6389_s3  ;;  %v3526_v5 = vld [vmem:[#allocation3 + $0x301] sm:$0xff] }
 0x8cb   :  { %v4845_v40 = vpop.permute.xlu1 %4844  ;;  %5468 = vmatmul.mubr.f32.gmra.mrb[52].mxu1 %v5116_v41  ;;  %v11748_v1 = vld [vmem:[#allocation243_spill] sm:$0xff] }
 0x8cc   :  { %v4757_v14 = vpop.permute.xlu0 %4756  ;;  %5472 = vmatprep.mubr.f32.mxu1 %v6252_v3  ;;  %v4925_v19 = vadd.f32 %v4845_v40, %v4733_v21  ;;  %v4158_v28 = vadd.f32 %v11748_v1, %v3966_v8  ;;  %v11750_v21 = vld [vmem:[#allocation227_spill] sm:$0xff] }
 0x8cd   :  { %4670 = vrot.lane.b32.xlu1 %v3462_v33, %s6390_s26  ;;  %v4881_v59 = vadd.f32 %v4757_v14, %v4689_v10  ;;  %v11749_v14 = vld [vmem:[#allocation309_spill] sm:$0xff]  ;;  %v6258_v10 = vld [vmem:[#allocation3 + $0x38] sm:$0xff] }
 0x8ce   :  { %4582 = vrot.lane.b32.xlu0 %v3418_v42, %s6390_s26  ;;  %v5339_v49 = vpop.f32.mrb[0].mxu1  ;;  %v4350_v33 = vadd.f32 %v11749_v14, %v4158_v28 }
 0x8cf   :  { %v5340_v62 = vadd.f32 %v10294_v15, %v5339_v49  ;;  %v5341_v52 = vpop.f32.mrb[1].mxu1  ;;  %v10301_v55 = vpop.permute.xlu1 %4654 }
 0x8d0   :  { %v4567_v58 = vpop.permute.xlu0 %4566  ;;  %v4542_v42 = vadd.f32 %v10282_v0, %v4350_v33  ;;  %v6257_v52 = vld [vmem:[#allocation3 + $0x278] sm:$0xff] }
 0x8d1   :  { %v5578_v61 = vmax.f32 %v5340_v62, 0.0  ;;  %5052 = vrot.lane.b32.xlu1 %v3589_v7, %s6391_s29  ;;  %v4690_v40 = vadd.f32 %v4567_v58, %v4498_v22  ;;  %v3775_v58 = vadd.f32 %v6257_v52, %v11750_v21  ;;  %v11761_v21 = vld [vmem:[#allocation297_spill] sm:$0xff] }
 0x8d2   :  { %4964 = vrot.lane.b32.xlu0 %v3545_v39, %s6391_s29  ;;  %v4734_v62 = vadd.f32 %v10301_v55, %v4542_v42  ;;  %v11752_v55 = vld [vmem:[#allocation292_spill] sm:$0xff] }
 0x8d3   :  { %5642 = vst [vmem:[#allocation4 + $0xa0] sm:$0xff] %v5578_v61  ;;  %v5037_v50 = vpop.permute.xlu1 %5036  ;;  %v11751_v61 = vld [vmem:[#allocation281_spill] sm:$0xff] }
 0x8d4   :  { %v5117_v38 = vadd.f32 %v5037_v50, %v4925_v19  ;;  %v4949_v18 = vpop.permute.xlu0 %4948  ;;  %v3731_v39 = vadd.f32 %v6258_v10, %v11751_v61  ;;  %v6259_v19 = vld [vmem:[#allocation2 + $0x51] sm:$0xff]  ;;  %v6262_v10 = vld [vmem:[#allocation3 + $0x288] sm:$0xff] }
 0x8d5   :  { %v5073_v26 = vadd.f32 %v4949_v18, %v4881_v59  ;;  %4774 = vrot.lane.b32.xlu1 %v3482_v35, %s6389_s3  ;;  %v3967_v59 = vadd.f32 %v11752_v55, %v3775_v58  ;;  %v11762_v61 = vld [vmem:[#allocation112_spill] sm:$0xff] }
 0x8d6   :  { %4480 = vrot.lane.b32.xlu0 %v3589_v7, %s6388_s0  ;;  %v5344_v54 = vpop.f32.mrb[2].mxu1  ;;  %5473 = vmatmul.mubr.f32.gmra.mrb[54].mxu1 %v5117_v38  ;;  %v3923_v38 = vadd.f32 %v11753_v30, %v3731_v39  ;;  %v3776_v39 = vadd.f32 %v6262_v10, %v11762_v61  ;;  %v11763_v55 = vld [vmem:[#allocation304_spill] sm:$0xff] }
 0x8d7   :  { %v5345_v27 = vadd.f32 %v10294_v15, %v5344_v54  ;;  %v5346_v12 = vpop.f32.mrb[3].mxu1  ;;  %v4759_v17 = vpop.permute.xlu1 %4758  ;;  %5253 = vmatmul.mubr.f32.gmra.mrb[70].mxu0 %v5073_v26  ;;  %5477 = vmatprep.mubr.f32.mxu1 %v6255_v44  ;;  %v3483_v26 = vld [vmem:[#allocation3 + $0xc9] sm:$0xff]  ;;  %v4159_v29 = vadd.f32 %v11754_v16, %v3967_v59  ;;  %v6264_v30 = vld [vmem:[#allocation2 + $0x61] sm:$0xff]  ;;  %v11765_v16 = vld [vmem:[#allocation370_spill] sm:$0xff] }
 0x8d8   :  { %v10313_v51 = vpop.permute.xlu0 %4464  ;;  %5257 = vmatprep.mubr.f32.mxu0 %v6256_v31  ;;  %v4882_v24 = vadd.f32 %v4759_v17, %v4690_v40  ;;  %v4115_v23 = vadd.f32 %v11755_v45, %v3923_v38  ;;  %v11756_v17 = vld [vmem:[#allocation192_spill] sm:$0xff]  ;;  %v11757_v31 = vld [vmem:[#allocation305_spill] sm:$0xff]  ;;  %v11764_v38 = vld [vmem:[#allocation235_spill] sm:$0xff] }
 0x8d9   :  { %v5579_v53 = vmax.f32 %v5345_v27, 0.0  ;;  %4584 = vrot.lane.b32.xlu1 %v3419_v11, %s6390_s26  ;;  %v4351_v44 = vadd.f32 %v11756_v17, %v4159_v29  ;;  %v6260_v11 = vld [vmem:[#allocation2 + $0x291] sm:$0xff]  ;;  %v11767_v17 = vld [vmem:[#allocation195_spill] sm:$0xff] }
 0x8da   :  { %4862 = vrot.lane.b32.xlu0 %v3526_v5, %s6389_s3  ;;  %v5349_v41 = vpop.f32.mrb[4].mxu1  ;;  %v4307_v6 = vadd.f32 %v11757_v31, %v4115_v23  ;;  %v3547_v40 = vld [vmem:[#allocation3 + $0xca] sm:$0xff] }
 0x8db   :  { %5643 = vst [vmem:[#allocation4 + $0xa8] sm:$0xff] %v5579_v53  ;;  %v5350_v46 = vadd.f32 %v10294_v15, %v5349_v41  ;;  %v5351_v2 = vpop.f32.mrb[5].mxu1  ;;  %v10321_v13 = vpop.permute.xlu1 %4568  ;;  %v3420_v53 = vld [vmem:[#allocation3 + $0xd8] sm:$0xff]  ;;  %v4543_v5 = vadd.f32 %v10313_v51, %v4351_v44 }
 0x8dc   :  { %v4847_v37 = vpop.permute.xlu0 %4846  ;;  %v4499_v22 = vadd.f32 %v11758_v32, %v4307_v6 }
 0x8dd   :  { %v5580_v3 = vmax.f32 %v5350_v46, 0.0  ;;  %4966 = vrot.lane.b32.xlu1 %v3546_v47, %s6391_s29  ;;  %v4926_v0 = vadd.f32 %v4847_v37, %v4734_v62  ;;  %v3591_v46 = vld [vmem:[#allocation3 + $0x30a] sm:$0xff] }
 0x8de   :  { %4672 = vrot.lane.b32.xlu0 %v3463_v56, %s6390_s26  ;;  %v4691_v2 = vadd.f32 %v10321_v13, %v4499_v22  ;;  %v6261_v37 = vld [vmem:[#allocation3 + $0x48] sm:$0xff]  ;;  %v3484_v13 = vld [vmem:[#allocation3 + $0xd9] sm:$0xff] }
 0x8df   :  { %5644 = vst [vmem:[#allocation4 + $0xb0] sm:$0xff] %v5580_v3  ;;  %v4951_v57 = vpop.permute.xlu1 %4950  ;;  %v11759_v47 = vld [vmem:[#allocation280_spill] sm:$0xff]  ;;  %v3401_v22 = vld [vmem:[#allocation3 + $0x31a] sm:$0xff] }
 0x8e0   :  { %v5074_v49 = vadd.f32 %v4951_v57, %v4882_v24  ;;  %v4657_v43 = vpop.permute.xlu0 %4656  ;;  %v3732_v14 = vadd.f32 %v6261_v37, %v11759_v47  ;;  %v11760_v57 = vld [vmem:[#allocation60_spill] sm:$0xff] }
 0x8e1   :  { %4482 = vrot.lane.b32.xlu1 %v3399_v25, %s6388_s0  ;;  %v4735_v1 = vadd.f32 %v4657_v43, %v4543_v5  ;;  %v11769_v47 = vld [vmem:[#allocation164_spill] sm:$0xff] }
 0x8e2   :  { %5054 = vrot.lane.b32.xlu0 %v3399_v25, %s6391_s29  ;;  %5258 = vmatmul.mubr.f32.gmra.mrb[72].mxu0 %v5074_v49  ;;  %v5354_v7 = vpop.f32.mrb[6].mxu1  ;;  %v3924_v49 = vadd.f32 %v11760_v57, %v3732_v14 }
 0x8e3   :  { %v5355_v9 = vadd.f32 %v10294_v15, %v5354_v7  ;;  %v5356_v34 = vpop.f32.mrb[7].mxu1  ;;  %v10333_v4 = vpop.permute.xlu1 %4466  ;;  %5262 = vmatprep.mubr.f32.mxu0 %v6259_v19  ;;  %v6263_v19 = vld [vmem:[#allocation2 + $0x2a1] sm:$0xff] }
 0x8e4   :  { %v5039_v50 = vpop.permute.xlu0 %5038  ;;  %v4116_v58 = vadd.f32 %v11761_v21, %v3924_v49  ;;  %v3529_v49 = vld [vmem:[#allocation3 + $0x321] sm:$0xff] }
 0x8e5   :  { %v5581_v18 = vmax.f32 %v5355_v9, 0.0  ;;  %v5118_v35 = vadd.f32 %v5039_v50, %v4926_v0  ;;  %4864 = vrot.lane.b32.xlu1 %v3527_v63, %s6389_s3  ;;  %v3421_v63 = vld [vmem:[#allocation3 + $0xe0] sm:$0xff]  ;;  %v11772_v21 = vld [vmem:[#allocation360_spill] sm:$0xff] }
 0x8e6   :  { %4776 = vrot.lane.b32.xlu0 %v3483_v26, %s6389_s3  ;;  %v5359_v54 = vpop.f32.mrb[8].mxu1  ;;  %v4308_v59 = vadd.f32 %v11763_v55, %v4116_v58  ;;  %v3528_v26 = vld [vmem:[#allocation3 + $0x319] sm:$0xff]  ;;  %v11775_v55 = vld [vmem:[#allocation188_spill] sm:$0xff] }
 0x8e7   :  { %5645 = vst [vmem:[#allocation4 + $0xb8] sm:$0xff] %v5581_v18  ;;  %v5360_v60 = vadd.f32 %v10294_v15, %v5359_v54  ;;  %v5361_v27 = vpop.f32.mrb[9].mxu1  ;;  %v4849_v12 = vpop.permute.xlu1 %4848  ;;  %5478 = vmatmul.mubr.f32.gmra.mrb[56].mxu1 %v5118_v35  ;;  %v3968_v18 = vadd.f32 %v11764_v38, %v3776_v39  ;;  %v11766_v54 = vld [vmem:[#allocation128_spill] sm:$0xff]  ;;  %v11774_v39 = vld [vmem:[#allocation83_spill] sm:$0xff] }
 0x8e8   :  { %v4761_v36 = vpop.permute.xlu0 %4760  ;;  %5482 = vmatprep.mubr.f32.mxu1 %v6260_v11  ;;  %v4927_v33 = vadd.f32 %v4849_v12, %v4735_v1  ;;  %v4500_v29 = vadd.f32 %v11765_v16, %v4308_v59  ;;  %v3548_v12 = vld [vmem:[#allocation3 + $0xda] sm:$0xff] }
 0x8e9   :  { %v5582_v8 = vmax.f32 %v5360_v60, 0.0  ;;  %4674 = vrot.lane.b32.xlu1 %v3464_v20, %s6390_s26  ;;  %v4883_v3 = vadd.f32 %v4761_v36, %v4691_v2  ;;  %v4160_v45 = vadd.f32 %v11766_v54, %v3968_v18  ;;  %v3465_v36 = vld [vmem:[#allocation3 + $0x320] sm:$0xff]  ;;  %v11768_v2 = vld [vmem:[#allocation12_spill] sm:$0xff] }
 0x8ea   :  { %4586 = vrot.lane.b32.xlu0 %v3420_v53, %s6390_s26 }
 0x8eb   :  { %5646 = vst [vmem:[#allocation4 + $0xc0] sm:$0xff] %v5582_v8  ;;  %v10348_v41 = vpop.permute.xlu1 %4658  ;;  %v4352_v44 = vadd.f32 %v11767_v17, %v4160_v45  ;;  %v3549_v17 = vld [vmem:[#allocation3 + $0xe2] sm:$0xff] }
 0x8ec   :  { %v4571_v28 = vpop.permute.xlu0 %4570 }
 0x8ed   :  { %5056 = vrot.lane.b32.xlu1 %v3591_v46, %s6391_s29  ;;  %v4692_v60 = vadd.f32 %v4571_v28, %v4500_v29  ;;  %v4544_v31 = vadd.f32 %v10333_v4, %v4352_v44  ;;  %v6266_v4 = vld [vmem:[#allocation3 + $0x50] sm:$0xff]  ;;  %v6269_v44 = vld [vmem:[#allocation3 + $0x60] sm:$0xff] }
 0x8ee   :  { %4968 = vrot.lane.b32.xlu0 %v3547_v40, %s6391_s29  ;;  %v5364_v51 = vpop.f32.mrb[10].mxu1  ;;  %v3733_v14 = vadd.f32 %v6266_v4, %v11769_v47  ;;  %v11781_v4 = vld [vmem:[#allocation364_spill] sm:$0xff] }
 0x8ef   :  { %v5365_v56 = vadd.f32 %v10294_v15, %v5364_v51  ;;  %v5366_v24 = vpop.f32.mrb[11].mxu1  ;;  %v5041_v42 = vpop.permute.xlu1 %5040  ;;  %v4736_v1 = vadd.f32 %v10348_v41, %v4544_v31  ;;  %v6267_v41 = vld [vmem:[#allocation2 + $0x69] sm:$0xff] }
 0x8f0   :  { %v5119_v43 = vadd.f32 %v5041_v42, %v4927_v33  ;;  %v4953_v25 = vpop.permute.xlu0 %4952  ;;  %v11770_v24 = vld [vmem:[#allocation121_spill] sm:$0xff] }
 0x8f1   :  { %v5583_v62 = vmax.f32 %v5365_v56, 0.0  ;;  %v5075_v52 = vadd.f32 %v4953_v25, %v4883_v3  ;;  %4778 = vrot.lane.b32.xlu1 %v3484_v13, %s6389_s3 }
 0x8f2   :  { %4484 = vrot.lane.b32.xlu0 %v3591_v46, %s6388_s0  ;;  %v5369_v7 = vpop.f32.mrb[12].mxu1  ;;  %5483 = vmatmul.mubr.f32.gmra.mrb[58].mxu1 %v5119_v43  ;;  %v6265_v46 = vld [vmem:[#allocation3 + $0x290] sm:$0xff]  ;;  %v11771_v43 = vld [vmem:[#allocation63_spill] sm:$0xff] }
 0x8f3   :  { %5647 = vst [vmem:[#allocation4 + $0xc8] sm:$0xff] %v5583_v62  ;;  %v5370_v0 = vadd.f32 %v10294_v15, %v5369_v7  ;;  %v5371_v9 = vpop.f32.mrb[13].mxu1  ;;  %v4763_v34 = vpop.permute.xlu1 %4762  ;;  %5263 = vmatmul.mubr.f32.gmra.mrb[74].mxu0 %v5075_v52  ;;  %5487 = vmatprep.mubr.f32.mxu1 %v6263_v19  ;;  %v3777_v40 = vadd.f32 %v6265_v46, %v11768_v2  ;;  %v3485_v52 = vld [vmem:[#allocation3 + $0xe1] sm:$0xff]  ;;  %v11773_v7 = vld [vmem:[#allocation181_spill] sm:$0xff] }
 0x8f4   :  { %v10362_v50 = vpop.permute.xlu0 %4468  ;;  %5267 = vmatprep.mubr.f32.mxu0 %v6264_v30  ;;  %v4884_v20 = vadd.f32 %v4763_v34, %v4692_v60  ;;  %v3925_v25 = vadd.f32 %v11771_v43, %v3733_v14  ;;  %v3466_v34 = vld [vmem:[#allocation3 + $0x330] sm:$0xff]  ;;  %v11780_v46 = vld [vmem:[#allocation343_spill] sm:$0xff] }
 0x8f5   :  { %v5584_v35 = vmax.f32 %v5370_v0, 0.0  ;;  %4588 = vrot.lane.b32.xlu1 %v3421_v63, %s6390_s26  ;;  %v3969_v42 = vadd.f32 %v11770_v24, %v3777_v40  ;;  %v6268_v19 = vld [vmem:[#allocation2 + $0x2a9] sm:$0xff] }
 0x8f6   :  { %4866 = vrot.lane.b32.xlu0 %v3528_v26, %s6389_s3  ;;  %v4117_v10 = vadd.f32 %v11773_v7, %v3925_v25  ;;  %v3422_v30 = vld [vmem:[#allocation3 + $0xf0] sm:$0xff]  ;;  %v11776_v26 = vld [vmem:[#allocation252_spill] sm:$0xff] }
 0x8f7   :  { %5648 = vst [vmem:[#allocation4 + $0xd0] sm:$0xff] %v5584_v35  ;;  %v10369_v23 = vpop.permute.xlu1 %4572  ;;  %v4161_v58 = vadd.f32 %v11772_v21, %v3969_v42  ;;  %v11783_v43 = vld [vmem:[#allocation141_spill] sm:$0xff] }
 0x8f8   :  { %v4851_v27 = vpop.permute.xlu0 %4850  ;;  %v4309_v59 = vadd.f32 %v11775_v55, %v4117_v10 }
 0x8f9   :  { %4970 = vrot.lane.b32.xlu1 %v3548_v12, %s6391_s29  ;;  %v4928_v33 = vadd.f32 %v4851_v27, %v4736_v1  ;;  %v4353_v0 = vadd.f32 %v11774_v39, %v4161_v58  ;;  %v3593_v27 = vld [vmem:[#allocation3 + $0x322] sm:$0xff]  ;;  %v11785_v39 = vld [vmem:[#allocation29_spill] sm:$0xff] }
 0x8fa   :  { %4676 = vrot.lane.b32.xlu0 %v3465_v36, %s6390_s26  ;;  %v5374_v11 = vpop.f32.mrb[14].mxu1  ;;  %v4501_v16 = vadd.f32 %v11776_v26, %v4309_v59 }
 0x8fb   :  { %v5375_v6 = vadd.f32 %v10294_v15, %v5374_v11  ;;  %v5376_v8 = vpop.f32.mrb[15].mxu1  ;;  %v4955_v53 = vpop.permute.xlu1 %4954  ;;  %v4545_v38 = vadd.f32 %v10362_v50, %v4353_v0  ;;  %v11777_v50 = vld [vmem:[#allocation109_spill] sm:$0xff] }
 0x8fc   :  { %v5076_v5 = vadd.f32 %v4955_v53, %v4884_v20  ;;  %v4661_v32 = vpop.permute.xlu0 %4660  ;;  %v4693_v12 = vadd.f32 %v10369_v23, %v4501_v16  ;;  %v3734_v36 = vadd.f32 %v6269_v44, %v11777_v50  ;;  %v11779_v23 = vld [vmem:[#allocation180_spill] sm:$0xff] }
 0x8fd   :  { %v5585_v28 = vmax.f32 %v5375_v6, 0.0  ;;  %4486 = vrot.lane.b32.xlu1 %v3401_v22, %s6388_s0  ;;  %v4737_v54 = vadd.f32 %v4661_v32, %v4545_v38  ;;  %v11778_v6 = vld [vmem:[#allocation289_spill] sm:$0xff]  ;;  %v6273_v16 = vld [vmem:[#allocation3 + $0x2a8] sm:$0xff] }
 0x8fe   :  { %5058 = vrot.lane.b32.xlu0 %v3401_v22, %s6391_s29  ;;  %5268 = vmatmul.mubr.f32.gmra.mrb[76].mxu0 %v5076_v5  ;;  %v5379_v37 = vpop.f32.mrb[16].mxu1  ;;  %v3926_v8 = vadd.f32 %v11778_v6, %v3734_v36  ;;  %v3486_v32 = vld [vmem:[#allocation3 + $0xf1] sm:$0xff]  ;;  %v3531_v6 = vld [vmem:[#allocation3 + $0x339] sm:$0xff] }
 0x8ff   :  { %5649 = vst [vmem:[#allocation4 + $0xd8] sm:$0xff] %v5585_v28  ;;  %v5380_v51 = vadd.f32 %v10294_v15, %v5379_v37  ;;  %v5381_v3 = vpop.f32.mrb[17].mxu1  ;;  %v10382_v56 = vpop.permute.xlu1 %4470  ;;  %5272 = vmatprep.mubr.f32.mxu0 %v6267_v41  ;;  %v6270_v28 = vld [vmem:[#allocation3 + $0x2a0] sm:$0xff]  ;;  %v11782_v41 = vld [vmem:[#allocation20_spill] sm:$0xff] }
 0x900   :  { %v5043_v57 = vpop.permute.xlu0 %5042  ;;  %v4118_v1 = vadd.f32 %v11779_v23, %v3926_v8  ;;  %v3778_v2 = vadd.f32 %v6270_v28, %v11780_v46  ;;  %v6271_v37 = vld [vmem:[#allocation2 + $0x2b9] sm:$0xff]  ;;  %v11789_v8 = vld [vmem:[#allocation288_spill] sm:$0xff]  ;;  %v6125_v23 = vpack.i.bf16 %v10223_v48, %v10223_v48 }
 0x901   :  { %v5586_v13 = vmax.f32 %v5380_v51, 0.0  ;;  %v5120_v62 = vadd.f32 %v5043_v57, %v4928_v33  ;;  %4868 = vrot.lane.b32.xlu1 %v3529_v49, %s6389_s3  ;;  %v3423_v51 = vld [vmem:[#allocation3 + $0xf8] sm:$0xff]  ;;  %v11791_v46 = vld [vmem:[#allocation71_spill] sm:$0xff] }
 0x902   :  { %4780 = vrot.lane.b32.xlu0 %v3485_v52, %s6389_s3  ;;  %v4310_v47 = vadd.f32 %v11781_v4, %v4118_v1  ;;  %v6272_v3 = vld [vmem:[#allocation2 + $0x79] sm:$0xff]  ;;  %v3970_v24 = vadd.f32 %v11782_v41, %v3778_v2  ;;  %v3530_v49 = vld [vmem:[#allocation3 + $0x331] sm:$0xff]  ;;  %v3424_v41 = vld [vmem:[#allocation3 + $0x108] sm:$0xff] }
 0x903   :  { %5650 = vst [vmem:[#allocation4 + $0xe0] sm:$0xff] %v5586_v13  ;;  %v4853_v61 = vpop.permute.xlu1 %4852  ;;  %5488 = vmatmul.mubr.f32.gmra.mrb[60].mxu1 %v5120_v62  ;;  %v11784_v13 = vld [vmem:[#allocation359_spill] sm:$0xff]  ;;  %v11790_v1 = vld [vmem:[#allocation242_spill] sm:$0xff] }
 0x904   :  { %v4765_v9 = vpop.permute.xlu0 %4764  ;;  %5492 = vmatprep.mubr.f32.mxu1 %v6268_v19  ;;  %v4929_v20 = vadd.f32 %v4853_v61, %v4737_v54  ;;  %v4502_v25 = vadd.f32 %v11783_v43, %v4310_v47  ;;  %v4162_v62 = vadd.f32 %v11784_v13, %v3970_v24  ;;  %v3550_v61 = vld [vmem:[#allocation3 + $0xf2] sm:$0xff] }
 0x905   :  { %v5384_v63 = vpop.f32.mrb[18].mxu1  ;;  %4678 = vrot.lane.b32.xlu1 %v3466_v34, %s6390_s26  ;;  %v4885_v11 = vadd.f32 %v4765_v9, %v4693_v12  ;;  %v3467_v19 = vld [vmem:[#allocation3 + $0x338] sm:$0xff]  ;;  %v11787_v12 = vld [vmem:[#allocation7_spill] sm:$0xff] }
 0x906   :  { %v5385_v18 = vadd.f32 %v10294_v15, %v5384_v63  ;;  %4590 = vrot.lane.b32.xlu0 %v3422_v30, %s6390_s26  ;;  %v5386_v35 = vpop.f32.mrb[19].mxu1  ;;  %v4354_v0 = vadd.f32 %v11785_v39, %v4162_v62  ;;  %v11786_v54 = vld [vmem:[#allocation226_spill] sm:$0xff] }
 0x907   :  { %v10397_v29 = vpop.permute.xlu1 %4662  ;;  %v3403_v35 = vld [vmem:[#allocation3 + $0x332] sm:$0xff] }
 0x908   :  { %v5587_v45 = vmax.f32 %v5385_v18, 0.0  ;;  %v4575_v60 = vpop.permute.xlu0 %4574  ;;  %v4546_v59 = vadd.f32 %v10382_v56, %v4354_v0 }
 0x909   :  { %5060 = vrot.lane.b32.xlu1 %v3593_v27, %s6391_s29  ;;  %v4694_v58 = vadd.f32 %v4575_v60, %v4502_v25 }
 0x90a   :  { %5651 = vst [vmem:[#allocation4 + $0xe8] sm:$0xff] %v5587_v45  ;;  %4972 = vrot.lane.b32.xlu0 %v3549_v17, %s6391_s29  ;;  %v4738_v26 = vadd.f32 %v10397_v29, %v4546_v59  ;;  %v3779_v45 = vadd.f32 %v6273_v16, %v11786_v54  ;;  %v6275_v29 = vld [vmem:[#allocation2 + $0x81] sm:$0xff] }
 0x90b   :  { %v5045_v31 = vpop.permute.xlu1 %5044  ;;  %v11798_v16 = vld [vmem:[#allocation171_spill] sm:$0xff] }
 0x90c   :  { %v5121_v53 = vadd.f32 %v5045_v31, %v4929_v20  ;;  %v4957_v5 = vpop.permute.xlu0 %4956  ;;  %v11788_v20 = vld [vmem:[#allocation352_spill] sm:$0xff] }
 0x90d   :  { %v5077_v22 = vadd.f32 %v4957_v5, %v4885_v11  ;;  %4782 = vrot.lane.b32.xlu1 %v3486_v32, %s6389_s3  ;;  %v3971_v11 = vadd.f32 %v11788_v20, %v3779_v45  ;;  %v6280_v20 = vld [vmem:[#allocation2 + $0x91] sm:$0xff] }
 0x90e   :  { %4488 = vrot.lane.b32.xlu0 %v3593_v27, %s6388_s0  ;;  %5493 = vmatmul.mubr.f32.gmra.mrb[62].mxu1 %v5121_v53  ;;  %v5389_v33 = vpop.f32.mrb[20].mxu1  ;;  %v6274_v27 = vld [vmem:[#allocation3 + $0x68] sm:$0xff] }
 0x90f   :  { %v4767_v40 = vpop.permute.xlu1 %4766  ;;  %5273 = vmatmul.mubr.f32.gmra.mrb[78].mxu0 %v5077_v22  ;;  %5497 = vmatprep.mubr.f32.mxu1 %v6271_v37  ;;  %v5390_v42 = vadd.f32 %v10294_v15, %v5389_v33  ;;  %v5391_v57 = vpop.f32.mrb[21].mxu1  ;;  %v3735_v56 = vadd.f32 %v6274_v27, %v11787_v12  ;;  %v3487_v22 = vld [vmem:[#allocation3 + $0xf9] sm:$0xff]  ;;  %v4163_v28 = vadd.f32 %v11790_v1, %v3971_v11  ;;  %v11792_v37 = vld [vmem:[#allocation308_spill] sm:$0xff] }
 0x910   :  { %v10409_v14 = vpop.permute.xlu0 %4472  ;;  %5277 = vmatprep.mubr.f32.mxu0 %v6272_v3  ;;  %v4886_v55 = vadd.f32 %v4767_v40, %v4694_v58  ;;  %v6276_v33 = vld [vmem:[#allocation2 + $0x2c1] sm:$0xff]  ;;  %v3532_v12 = vld [vmem:[#allocation3 + $0x349] sm:$0xff]  ;;  %v11800_v11 = vld [vmem:[#allocation234_spill] sm:$0xff] }
 0x911   :  { %4592 = vrot.lane.b32.xlu1 %v3423_v51, %s6390_s26  ;;  %v5588_v52 = vmax.f32 %v5390_v42, 0.0  ;;  %v3927_v53 = vadd.f32 %v11789_v8, %v3735_v56  ;;  %v4355_v4 = vadd.f32 %v11792_v37, %v4163_v28  ;;  %v11793_v51 = vld [vmem:[#allocation189_spill] sm:$0xff]  ;;  %v11794_v42 = vld [vmem:[#allocation32_spill] sm:$0xff] }
 0x912   :  { %4870 = vrot.lane.b32.xlu0 %v3530_v49, %s6389_s3  ;;  %v5394_v10 = vpop.f32.mrb[22].mxu1  ;;  %v6279_v56 = vld [vmem:[#allocation2 + $0x2d1] sm:$0xff] }
 0x913   :  { %v10417_v21 = vpop.permute.xlu1 %4576  ;;  %5652 = vst [vmem:[#allocation4 + $0xf0] sm:$0xff] %v5588_v52  ;;  %v5395_v9 = vadd.f32 %v10294_v15, %v5394_v10  ;;  %v5396_v34 = vpop.f32.mrb[23].mxu1  ;;  %v4119_v2 = vadd.f32 %v11791_v46, %v3927_v53  ;;  %v4547_v48 = vadd.f32 %v10409_v14, %v4355_v4  ;;  %v3595_v52 = vld [vmem:[#allocation3 + $0x33a] sm:$0xff]  ;;  %v11801_v8 = vld [vmem:[#allocation369_spill] sm:$0xff] }
 0x914   :  { %v4855_v7 = vpop.permute.xlu0 %4854  ;;  %v3551_v10 = vld [vmem:[#allocation3 + $0xfa] sm:$0xff] }
 0x915   :  { %4974 = vrot.lane.b32.xlu1 %v3550_v61, %s6391_s29  ;;  %v5589_v63 = vmax.f32 %v5395_v9, 0.0  ;;  %v4930_v17 = vadd.f32 %v4855_v7, %v4738_v26  ;;  %v4311_v3 = vadd.f32 %v11793_v51, %v4119_v2  ;;  %v6277_v14 = vld [vmem:[#allocation3 + $0x78] sm:$0xff]  ;;  %v11795_v61 = vld [vmem:[#allocation340_spill] sm:$0xff] }
 0x916   :  { %4680 = vrot.lane.b32.xlu0 %v3467_v19, %s6390_s26  ;;  %v3736_v39 = vadd.f32 %v6277_v14, %v11795_v61  ;;  %v11796_v19 = vld [vmem:[#allocation172_spill] sm:$0xff]  ;;  %v6278_v26 = vld [vmem:[#allocation3 + $0x2b8] sm:$0xff] }
 0x917   :  { %v4959_v30 = vpop.permute.xlu1 %4958  ;;  %5653 = vst [vmem:[#allocation4 + $0xf8] sm:$0xff] %v5589_v63  ;;  %v4503_v57 = vadd.f32 %v11794_v42, %v4311_v3  ;;  %v3780_v54 = vadd.f32 %v6278_v26, %v11798_v16  ;;  %v11803_v46 = vld [vmem:[#allocation250_spill] sm:$0xff]  ;;  %v11810_v16 = vld [vmem:[#allocation136_spill] sm:$0xff] }
 0x918   :  { %v5078_v38 = vadd.f32 %v4959_v30, %v4886_v55  ;;  %v4665_v18 = vpop.permute.xlu0 %4664  ;;  %v3928_v55 = vadd.f32 %v11796_v19, %v3736_v39  ;;  %v3488_v30 = vld [vmem:[#allocation3 + $0x109] sm:$0xff]  ;;  %v6283_v61 = vld [vmem:[#allocation2 + $0x99] sm:$0xff] }
 0x919   :  { %4490 = vrot.lane.b32.xlu1 %v3403_v35, %s6388_s0  ;;  %v4739_v13 = vadd.f32 %v4665_v18, %v4547_v48  ;;  %v4695_v58 = vadd.f32 %v10417_v21, %v4503_v57  ;;  %v11797_v21 = vld [vmem:[#allocation22_spill] sm:$0xff] }
 0x91a   :  { %5062 = vrot.lane.b32.xlu0 %v3403_v35, %s6391_s29  ;;  %5278 = vmatmul.mubr.f32.gmra.mrb[80].mxu0 %v5078_v38  ;;  %v5399_v60 = vpop.f32.mrb[24].mxu1  ;;  %v4120_v18 = vadd.f32 %v11797_v21, %v3928_v55  ;;  %v3553_v55 = vld [vmem:[#allocation3 + $0x112] sm:$0xff] }
 0x91b   :  { %v5400_v44 = vadd.f32 %v10294_v15, %v5399_v60  ;;  %v10430_v50 = vpop.permute.xlu1 %4474  ;;  %v5401_v36 = vpop.f32.mrb[25].mxu1  ;;  %5282 = vmatprep.mubr.f32.mxu0 %v6275_v29  ;;  %v3425_v29 = vld [vmem:[#allocation3 + $0x110] sm:$0xff] }
 0x91c   :  { %v5047_v31 = vpop.permute.xlu0 %5046 }
 0x91d   :  { %v5590_v5 = vmax.f32 %v5400_v44, 0.0  ;;  %v5122_v32 = vadd.f32 %v5047_v31, %v4930_v17  ;;  %4872 = vrot.lane.b32.xlu1 %v3531_v6, %s6389_s3  ;;  %v11799_v17 = vld [vmem:[#allocation191_spill] sm:$0xff]  ;;  %v3972_v31 = vadd.f32 %v11800_v11, %v3780_v54 }
 0x91e   :  { %4784 = vrot.lane.b32.xlu0 %v3487_v22, %s6389_s3  ;;  %v4312_v44 = vadd.f32 %v11799_v17, %v4120_v18 }
 0x91f   :  { %5654 = vst [vmem:[#allocation4 + $0x100] sm:$0xff] %v5590_v5  ;;  %v4857_v40 = vpop.permute.xlu1 %4856  ;;  %5498 = vmatmul.mubr.f32.gmra.mrb[64].mxu1 %v5122_v32  ;;  %v3596_v5 = vld [vmem:[#allocation3 + $0x34a] sm:$0xff]  ;;  %v11802_v32 = vld [vmem:[#allocation303_spill] sm:$0xff] }
 0x920   :  { %v4769_v47 = vpop.permute.xlu0 %4768  ;;  %5502 = vmatprep.mubr.f32.mxu1 %v6276_v33  ;;  %v4931_v0 = vadd.f32 %v4857_v40, %v4739_v13  ;;  %v4504_v53 = vadd.f32 %v11801_v8, %v4312_v44  ;;  %v4164_v22 = vadd.f32 %v11802_v32, %v3972_v31  ;;  %v3552_v40 = vld [vmem:[#allocation3 + $0x10a] sm:$0xff]  ;;  %v11804_v13 = vld [vmem:[#allocation58_spill] sm:$0xff]  ;;  %v11812_v44 = vld [vmem:[#allocation255_spill] sm:$0xff] }
 0x921   :  { %6126 = vrot.lane.b32.xlu1 %v6125_v23, %s6390_s26  ;;  %v4887_v9 = vadd.f32 %v4769_v47, %v4695_v58  ;;  %v3533_v47 = vld [vmem:[#allocation3 + $0x351] sm:$0xff]  ;;  %v11805_v58 = vld [vmem:[#allocation223_spill] sm:$0xff] }
 0x922   :  { %4594 = vrot.lane.b32.xlu0 %v3424_v41, %s6390_s26  ;;  %v5404_v24 = vpop.f32.mrb[26].mxu1  ;;  %v4356_v2 = vadd.f32 %v11803_v46, %v4164_v22  ;;  %v6285_v8 = vld [vmem:[#allocation3 + $0x90] sm:$0xff] }
 0x923   :  { %v5405_v49 = vadd.f32 %v10294_v15, %v5404_v24  ;;  %v10447_v43 = vpop.permute.xlu1 %4666  ;;  %v5406_v25 = vpop.f32.mrb[27].mxu1 }
 0x924   :  { %v4579_v62 = vpop.permute.xlu0 %4578  ;;  %v4548_v33 = vadd.f32 %v10430_v50, %v4356_v2  ;;  %v6281_v25 = vld [vmem:[#allocation3 + $0x2c0] sm:$0xff] }
 0x925   :  { %v5591_v7 = vmax.f32 %v5405_v49, 0.0  ;;  %5064 = vrot.lane.b32.xlu1 %v3595_v52, %s6391_s29  ;;  %v4696_v1 = vadd.f32 %v4579_v62, %v4504_v53  ;;  %v3489_v49 = vld [vmem:[#allocation3 + $0x111] sm:$0xff]  ;;  %v3781_v62 = vadd.f32 %v6281_v25, %v11804_v13  ;;  %v6282_v50 = vld [vmem:[#allocation3 + $0x80] sm:$0xff]  ;;  %v11813_v53 = vld [vmem:[#allocation108_spill] sm:$0xff] }
 0x926   :  { %4976 = vrot.lane.b32.xlu0 %v3551_v10, %s6391_s29  ;;  %v4740_v42 = vadd.f32 %v10447_v43, %v4548_v33  ;;  %v11806_v43 = vld [vmem:[#allocation120_spill] sm:$0xff] }
 0x927   :  { %5655 = vst [vmem:[#allocation4 + $0x108] sm:$0xff] %v5591_v7  ;;  %v5049_v34 = vpop.permute.xlu1 %5048  ;;  %v3737_v7 = vadd.f32 %v6282_v50, %v11805_v58  ;;  %v3973_v39 = vadd.f32 %v11806_v43, %v3781_v62  ;;  %v6288_v13 = vld [vmem:[#allocation2 + $0xa9] sm:$0xff]  ;;  %v11818_v62 = vld [vmem:[#allocation66_spill] sm:$0xff] }
 0x928   :  { %v5123_v59 = vadd.f32 %v5049_v34, %v4931_v0  ;;  %v4961_v63 = vpop.permute.xlu0 %4960  ;;  %v11819_v50 = vld [vmem:[#allocation196_spill] sm:$0xff] }
 0x929   :  { %v5079_v38 = vadd.f32 %v4961_v63, %v4887_v9  ;;  %4786 = vrot.lane.b32.xlu1 %v3488_v30, %s6389_s3  ;;  %v11807_v9 = vld [vmem:[#allocation117_spill] sm:$0xff] }
 0x92a   :  { %4492 = vrot.lane.b32.xlu0 %v3595_v52, %s6388_s0  ;;  %v5409_v35 = vpop.f32.mrb[28].mxu1  ;;  %5503 = vmatmul.mubr.f32.gmra.mrb[66].mxu1 %v5123_v59  ;;  %v3597_v52 = vld [vmem:[#allocation3 + $0x352] sm:$0xff]  ;;  %v3929_v34 = vadd.f32 %v11807_v9, %v3737_v7  ;;  %v11808_v59 = vld [vmem:[#allocation187_spill] sm:$0xff] }
 0x92b   :  { %v5410_v45 = vadd.f32 %v10294_v15, %v5409_v35  ;;  %v4771_v60 = vpop.permute.xlu1 %4770  ;;  %5283 = vmatmul.mubr.f32.gmra.mrb[82].mxu0 %v5079_v38  ;;  %v5411_v27 = vpop.f32.mrb[29].mxu1  ;;  %5507 = vmatprep.mubr.f32.mxu1 %v6279_v56  ;;  %v4165_v63 = vadd.f32 %v11808_v59, %v3973_v39  ;;  %v11809_v38 = vld [vmem:[#allocation296_spill] sm:$0xff] }
 0x92c   :  { %v10460_v36 = vpop.permute.xlu0 %4476  ;;  %5287 = vmatprep.mubr.f32.mxu0 %v6280_v20  ;;  %v4888_v37 = vadd.f32 %v4771_v60, %v4696_v1  ;;  %v4121_v21 = vadd.f32 %v11809_v38, %v3929_v34  ;;  %v6284_v60 = vld [vmem:[#allocation2 + $0x2d9] sm:$0xff] }
 0x92d   :  { %v5592_v6 = vmax.f32 %v5410_v45, 0.0  ;;  %4596 = vrot.lane.b32.xlu1 %v3425_v29, %s6390_s26  ;;  %v4357_v54 = vadd.f32 %v11810_v16, %v4165_v63  ;;  %v11811_v27 = vld [vmem:[#allocation79_spill] sm:$0xff] }
 0x92e   :  { %4874 = vrot.lane.b32.xlu0 %v3532_v12, %s6389_s3  ;;  %v4313_v12 = vadd.f32 %v11811_v27, %v4121_v21  ;;  %v11822_v16 = vld [vmem:[#allocation287_spill] sm:$0xff]  ;;  %v11823_v27 = vld [vmem:[#allocation8_spill] sm:$0xff] }
 0x92f   :  { %5656 = vst [vmem:[#allocation4 + $0x110] sm:$0xff] %v5592_v6  ;;  %v4581_v23 = vpop.permute.xlu1 %4580  ;;  %v4549_v17 = vadd.f32 %v10460_v36, %v4357_v54 }
 0x930   :  { %v4859_v28 = vpop.permute.xlu0 %4858  ;;  %v4505_v29 = vadd.f32 %v11812_v44, %v4313_v12 }
 0x931   :  { %5066 = vrot.lane.b32.xlu1 %v3596_v5, %s6391_s29  ;;  %v4932_v10 = vadd.f32 %v4859_v28, %v4740_v42  ;;  %v3738_v5 = vadd.f32 %v6285_v8, %v11813_v53  ;;  %v6287_v42 = vld [vmem:[#allocation2 + $0x2e9] sm:$0xff] }
 0x932   :  { %4978 = vrot.lane.b32.xlu0 %v3552_v40, %s6391_s29  ;;  %v5414_v4 = vpop.f32.mrb[30].mxu1  ;;  %v4697_v6 = vadd.f32 %v4581_v23, %v4505_v29  ;;  %v11814_v40 = vld [vmem:[#allocation15_spill] sm:$0xff]  ;;  %v6286_v23 = vld [vmem:[#allocation3 + $0x2d0] sm:$0xff] }
 0x933   :  { %v5415_v51 = vadd.f32 %v10294_v15, %v5414_v4  ;;  %v4963_v3 = vpop.permute.xlu1 %4962  ;;  %v5416_v41 = vpop.f32.mrb[31].mxu1 }
 0x934   :  { %v5080_v48 = vadd.f32 %v4963_v3, %v4888_v37  ;;  %v4669_v24 = vpop.permute.xlu0 %4668  ;;  %v3930_v37 = vadd.f32 %v11814_v40, %v3738_v5  ;;  %v11816_v41 = vld [vmem:[#allocation61_spill] sm:$0xff] }
 0x935   :  { %v5593_v57 = vmax.f32 %v5415_v51, 0.0  ;;  %4876 = vrot.lane.b32.xlu1 %v3533_v47, %s6389_s3  ;;  %v4741_v11 = vadd.f32 %v4669_v24, %v4549_v17  ;;  %v11815_v51 = vld [vmem:[#allocation239_spill] sm:$0xff] }
 0x936   :  { %4788 = vrot.lane.b32.xlu0 %v3489_v49, %s6389_s3  ;;  %5288 = vmatmul.mubr.f32.gmra.mrb[84].mxu0 %v5080_v48  ;;  %v4122_v3 = vadd.f32 %v11815_v51, %v3930_v37  ;;  %v3782_v48 = vadd.f32 %v6286_v23, %v11816_v41 }
 0x937   :  { %5657 = vst [vmem:[#allocation4 + $0x118] sm:$0xff] %v5593_v57  ;;  %v10477_v14 = vpop.permute.xlu1 %4478  ;;  %5292 = vmatprep.mubr.f32.mxu0 %v6283_v61  ;;  %v11817_v57 = vld [vmem:[#allocation363_spill] sm:$0xff] }
 0x938   :  { %v5051_v0 = vpop.permute.xlu0 %5050  ;;  %v4314_v49 = vadd.f32 %v11817_v57, %v4122_v3  ;;  %v11830_v3 = vld [vmem:[#allocation84_spill] sm:$0xff] }
 0x939   :  { %v5124_v19 = vadd.f32 %v5051_v0, %v4932_v10  ;;  %5068 = vrot.lane.b32.xlu1 %v3597_v52, %s6391_s29  ;;  %v3974_v52 = vadd.f32 %v11818_v62, %v3782_v48  ;;  %v11820_v10 = vld [vmem:[#allocation186_spill] sm:$0xff]  ;;  %v6293_v62 = vld [vmem:[#allocation3 + $0xa8] sm:$0xff] }
 0x93a   :  { %4980 = vrot.lane.b32.xlu0 %v3553_v55, %s6391_s29  ;;  %v5419_v30 = vpop.f32.mrb[32].mxu1  ;;  %v4506_v58 = vadd.f32 %v11819_v50, %v4314_v49 }
 0x93b   :  { %v5420_v18 = vadd.f32 %v10294_v15, %v5419_v30  ;;  %v4861_v35 = vpop.permute.xlu1 %4860  ;;  %v5421_v26 = vpop.f32.mrb[33].mxu1  ;;  %5508 = vmatmul.mubr.f32.gmra.mrb[68].mxu1 %v5124_v19  ;;  %v4166_v61 = vadd.f32 %v11820_v10, %v3974_v52  ;;  %v11821_v19 = vld [vmem:[#allocation30_spill] sm:$0xff]  ;;  %v11831_v52 = vld [vmem:[#allocation339_spill] sm:$0xff] }
 0x93c   :  { %v4773_v45 = vpop.permute.xlu0 %4772  ;;  %5512 = vmatprep.mubr.f32.mxu1 %v6284_v60  ;;  %v4933_v32 = vadd.f32 %v4861_v35, %v4741_v11  ;;  %v6289_v26 = vld [vmem:[#allocation3 + $0x2d8] sm:$0xff]  ;;  %v11824_v11 = vld [vmem:[#allocation351_spill] sm:$0xff]  ;;  %v3740_v50 = vadd.f32 %v6293_v62, %v11831_v52 }
 0x93d   :  { %v5594_v56 = vmax.f32 %v5420_v18, 0.0  ;;  %v4889_v1 = vadd.f32 %v4773_v45, %v4697_v6  ;;  %v4358_v55 = vadd.f32 %v11821_v19, %v4166_v61  ;;  %v3783_v54 = vadd.f32 %v6289_v26, %v11822_v16  ;;  %v6290_v60 = vld [vmem:[#allocation3 + $0x98] sm:$0xff]  ;;  %v11832_v61 = vld [vmem:[#allocation231_spill] sm:$0xff] }
 0x93e   :  { %v3739_v12 = vadd.f32 %v6290_v60, %v11823_v27  ;;  %v11844_v62 = vld [vmem:[#allocation302_spill] sm:$0xff] }
 0x93f   :  { %5658 = vst [vmem:[#allocation4 + $0x120] sm:$0xff] %v5594_v56  ;;  %v4671_v20 = vpop.permute.xlu1 %4670  ;;  %v4550_v30 = vadd.f32 %v10477_v14, %v4358_v55  ;;  %v6291_v14 = vld [vmem:[#allocation2 + $0xb1] sm:$0xff] }
 0x940   :  { %v4583_v31 = vpop.permute.xlu0 %4582 }
 0x941   :  { %v4698_v9 = vadd.f32 %v4583_v31, %v4506_v58  ;;  %v4742_v35 = vadd.f32 %v4671_v20, %v4550_v30  ;;  %v3975_v31 = vadd.f32 %v11824_v11, %v3783_v54  ;;  %v11825_v20 = vld [vmem:[#allocation348_spill] sm:$0xff] }
 0x942   :  { %v5424_v22 = vpop.f32.mrb[34].mxu1  ;;  %v3931_v8 = vadd.f32 %v11825_v20, %v3739_v12  ;;  %v6296_v54 = vld [vmem:[#allocation2 + $0xc1] sm:$0xff] }
 0x943   :  { %v5425_v28 = vadd.f32 %v10294_v15, %v5424_v22  ;;  %v5053_v46 = vpop.permute.xlu1 %5052  ;;  %v5426_v2 = vpop.f32.mrb[35].mxu1  ;;  %v11837_v12 = vld [vmem:[#allocation87_spill] sm:$0xff] }
 0x944   :  { %v5125_v36 = vadd.f32 %v5053_v46, %v4933_v32  ;;  %v4965_v4 = vpop.permute.xlu0 %4964  ;;  %v11826_v32 = vld [vmem:[#allocation77_spill] sm:$0xff]  ;;  %v11828_v2 = vld [vmem:[#allocation368_spill] sm:$0xff] }
 0x945   :  { %v5595_v47 = vmax.f32 %v5425_v28, 0.0  ;;  %v5081_v33 = vadd.f32 %v4965_v4, %v4889_v1  ;;  %v4167_v22 = vadd.f32 %v11826_v32, %v3975_v31  ;;  %v11827_v1 = vld [vmem:[#allocation125_spill] sm:$0xff]  ;;  %v11829_v4 = vld [vmem:[#allocation246_spill] sm:$0xff] }
 0x946   :  { %5513 = vmatmul.mubr.f32.gmra.mrb[70].mxu1 %v5125_v36  ;;  %v4123_v28 = vadd.f32 %v11827_v1, %v3931_v8  ;;  %v6292_v36 = vld [vmem:[#allocation2 + $0x2f1] sm:$0xff] }
 0x947   :  { %5659 = vst [vmem:[#allocation4 + $0x128] sm:$0xff] %v5595_v47  ;;  %v4775_v24 = vpop.permute.xlu1 %4774  ;;  %5293 = vmatmul.mubr.f32.gmra.mrb[86].mxu0 %v5081_v33  ;;  %5517 = vmatprep.mubr.f32.mxu1 %v6287_v42  ;;  %v4359_v40 = vadd.f32 %v11828_v2, %v4167_v22  ;;  %v11839_v31 = vld [vmem:[#allocation253_spill] sm:$0xff] }
 0x948   :  { %v4481_v25 = vpop.permute.xlu0 %4480  ;;  %5297 = vmatprep.mubr.f32.mxu0 %v6288_v13  ;;  %v4890_v63 = vadd.f32 %v4775_v24, %v4698_v9  ;;  %v4315_v47 = vadd.f32 %v11829_v4, %v4123_v28 }
 0x949   :  { %v4551_v33 = vadd.f32 %v4481_v25, %v4359_v40  ;;  %v3932_v25 = vadd.f32 %v11832_v61, %v3740_v50 }
 0x94a   :  { %v5429_v7 = vpop.f32.mrb[36].mxu1  ;;  %v4507_v23 = vadd.f32 %v11830_v3, %v4315_v47  ;;  %v6299_v47 = vld [vmem:[#allocation3 + $0xb0] sm:$0xff] }
 0x94b   :  { %v5430_v43 = vadd.f32 %v10294_v15, %v5429_v7  ;;  %v4585_v39 = vpop.permute.xlu1 %4584  ;;  %v5431_v0 = vpop.f32.mrb[37].mxu1 }
 0x94c   :  { %v4863_v34 = vpop.permute.xlu0 %4862  ;;  %v4699_v49 = vadd.f32 %v4585_v39, %v4507_v23  ;;  %v6300_v23 = vld [vmem:[#allocation2 + $0xc9] sm:$0xff] }
 0x94d   :  { %v5596_v59 = vmax.f32 %v5430_v43, 0.0  ;;  %v4934_v56 = vadd.f32 %v4863_v34, %v4742_v35  ;;  %v11833_v34 = vld [vmem:[#allocation21_spill] sm:$0xff]  ;;  %v11835_v35 = vld [vmem:[#allocation132_spill] sm:$0xff] }
 0x94e   :  { %v4124_v19 = vadd.f32 %v11833_v34, %v3932_v25  ;;  %v11846_v25 = vld [vmem:[#allocation139_spill] sm:$0xff]  ;;  %v6301_v34 = vld [vmem:[#allocation2 + $0x309] sm:$0xff] }
 0x94f   :  { %5660 = vst [vmem:[#allocation4 + $0x130] sm:$0xff] %v5596_v59  ;;  %v4967_v38 = vpop.permute.xlu1 %4966  ;;  %v6294_v59 = vld [vmem:[#allocation3 + $0x2e8] sm:$0xff] }
 0x950   :  { %v5082_v21 = vadd.f32 %v4967_v38, %v4890_v63  ;;  %v4673_v18 = vpop.permute.xlu0 %4672  ;;  %v11834_v63 = vld [vmem:[#allocation286_spill] sm:$0xff]  ;;  %v4316_v26 = vadd.f32 %v11835_v35, %v4124_v19  ;;  %v11847_v19 = vld [vmem:[#allocation247_spill] sm:$0xff] }
 0x951   :  { %v4743_v42 = vadd.f32 %v4673_v18, %v4551_v33  ;;  %v3784_v39 = vadd.f32 %v6294_v59, %v11834_v63  ;;  %v6295_v18 = vld [vmem:[#allocation2 + $0x301] sm:$0xff]  ;;  %v11841_v33 = vld [vmem:[#allocation222_spill] sm:$0xff]  ;;  %v11848_v63 = vld [vmem:[#allocation313_spill] sm:$0xff] }
 0x952   :  { %5298 = vmatmul.mubr.f32.gmra.mrb[88].mxu0 %v5082_v21  ;;  %v5434_v45 = vpop.f32.mrb[38].mxu1  ;;  %v6302_v35 = vld [vmem:[#allocation3 + $0xc0] sm:$0xff] }
 0x953   :  { %v5435_v17 = vadd.f32 %v10294_v15, %v5434_v45  ;;  %v10505_v44 = vpop.permute.xlu1 %4482  ;;  %v5436_v29 = vpop.f32.mrb[39].mxu1  ;;  %5302 = vmatprep.mubr.f32.mxu0 %v6291_v14  ;;  %v11836_v45 = vld [vmem:[#allocation295_spill] sm:$0xff] }
 0x954   :  { %v5055_v6 = vpop.permute.xlu0 %5054  ;;  %v3976_v60 = vadd.f32 %v11836_v45, %v3784_v39 }
 0x955   :  { %v5597_v53 = vmax.f32 %v5435_v17, 0.0  ;;  %v5126_v5 = vadd.f32 %v5055_v6, %v4934_v56  ;;  %v4508_v56 = vadd.f32 %v11837_v12, %v4316_v26  ;;  %v11838_v17 = vld [vmem:[#allocation26_spill] sm:$0xff]  ;;  %v11849_v26 = vld [vmem:[#allocation167_spill] sm:$0xff]  ;;  %v11850_v12 = vld [vmem:[#allocation16_spill] sm:$0xff] }
 0x956   :  { %v4168_v29 = vadd.f32 %v11838_v17, %v3976_v60 }
 0x957   :  { %5661 = vst [vmem:[#allocation4 + $0x138] sm:$0xff] %v5597_v53  ;;  %v4865_v46 = vpop.permute.xlu1 %4864  ;;  %5518 = vmatmul.mubr.f32.gmra.mrb[72].mxu1 %v5126_v5  ;;  %v10529_v5 = vld [vmem:[%s10642_s4] ss:$0 sm:$0xff]  ;;  %s6392_s4 = smov [#allocation4]  }
 0x958   :  { %v4777_v37 = vpop.permute.xlu0 %4776  ;;  %5522 = vmatprep.mubr.f32.mxu1 %v6292_v36  ;;  %v4935_v58 = vadd.f32 %v4865_v46, %v4743_v42  ;;  %v4360_v6 = vadd.f32 %v11839_v31, %v4168_v29  ;;  %v11840_v36 = vld [vmem:[#allocation170_spill] sm:$0xff]  ;;  %s5691_s8 = sshll.u32 %s6392_s4, 4  ;;  %s5692_s8 = int_to_ptr.vmem [resolvable:$true] %s5691_s8 }
 0x959   :  { %v4891_v7 = vadd.f32 %v4777_v37, %v4699_v49  ;;  %v6298_v37 = vld [vmem:[#allocation3 + $0x2f0] sm:$0xff]  ;;  %s6354_s9 = scalar_lea.vmem %s5692_s8, 8192  ;;  %p6359_p1 = scmp.lt.s32.totalorder %s5692_s8, %s5692_s8 }
 0x95a   :  { %v5439_v51 = vpop.f32.mrb[40].mxu1  ;;  %v4552_v53 = vadd.f32 %v10505_v44, %v4360_v6  ;;  %v3785_v4 = vadd.f32 %v6298_v37, %v11840_v36  ;;  %v3741_v44 = vadd.f32 %v6299_v47, %v11841_v33  ;;  %v11854_v37 = vld [vmem:[#allocation178_spill] sm:$0xff]  ;;  %p6355_p0 = scmp.ne.s32.totalorder %s5692_s8, %s6354_s9  ;;  %p6360_p2 = scmp.lt.s32.totalorder %s6354_s9, %s6354_s9 }
 0x95b   :  { %v5440_v41 = vadd.f32 %v10294_v15, %v5439_v51  ;;  %v4675_v48 = vpop.permute.xlu1 %4674  ;;  %v5441_v24 = vpop.f32.mrb[41].mxu1 }
 0x95c   :  { %v4587_v57 = vpop.permute.xlu0 %4586  ;;  %v4744_v2 = vadd.f32 %v4675_v48, %v4552_v53  ;;  %p6361_p3 = por %p6360_p2, %p6359_p1 }
 0x95d   :  { %v5598_v13 = vmax.f32 %v5440_v41, 0.0  ;;  %v11842_v41 = vld [vmem:[#allocation179_spill] sm:$0xff] }
 0x95e   :  { %v3977_v24 = vadd.f32 %v11842_v41, %v3785_v4  ;;  %v11855_v4 = vld [vmem:[#allocation312_spill] sm:$0xff]  ;;  %p6362_p4 = pnand %p6361_p3, %p6355_p0 }
 0x95f   :  { %5662 = vst [vmem:[#allocation4 + $0x140] sm:$0xff] %v5598_v13  ;;  %v5057_v10 = vpop.permute.xlu1 %5056 }
 0x960   :  { %v5127_v43 = vadd.f32 %v5057_v10, %v4935_v58  ;;  %v4969_v0 = vpop.permute.xlu0 %4968  ;;  %v4169_v52 = vadd.f32 %v11844_v62, %v3977_v24 }
 0x961   :  { %v5083_v9 = vadd.f32 %v4969_v0, %v4891_v7  ;;  %v11845_v7 = vld [vmem:[#allocation356_spill] sm:$0xff] }
 0x962   :  { %v5444_v55 = vpop.f32.mrb[42].mxu1  ;;  %5523 = vmatmul.mubr.f32.gmra.mrb[74].mxu1 %v5127_v43  ;;  %v4361_v43 = vadd.f32 %v11846_v25, %v4169_v52  ;;  %v11858_v25 = vld [vmem:[#allocation13_spill] sm:$0xff] }
 0x963   :  { %v5445_v30 = vadd.f32 %v10294_v15, %v5444_v55  ;;  %v4779_v38 = vpop.permute.xlu1 %4778  ;;  %5303 = vmatmul.mubr.f32.gmra.mrb[90].mxu0 %v5083_v9  ;;  %v5446_v21 = vpop.f32.mrb[43].mxu1  ;;  %5527 = vmatprep.mubr.f32.mxu1 %v6295_v18  ;;  %v4700_v15 = vadd.f32 %v4587_v57, %v4508_v56  ;;  %v11843_v57 = vld [vmem:[#allocation116_spill] sm:$0xff] }
 0x964   :  { %v4485_v16 = vpop.permute.xlu0 %4484  ;;  %5307 = vmatprep.mubr.f32.mxu0 %v6296_v54  ;;  %v3933_v49 = vadd.f32 %v11843_v57, %v3741_v44  ;;  %v3742_v54 = vadd.f32 %v6302_v35, %v11849_v26  ;;  %v11856_v44 = vld [vmem:[#allocation245_spill] sm:$0xff]  ;;  %v11862_v26 = vld [vmem:[#allocation74_spill] sm:$0xff] }
 0x965   :  { %v5599_v27 = vmax.f32 %v5445_v30, 0.0  ;;  %v4892_v20 = vadd.f32 %v4779_v38, %v4700_v15  ;;  %v4553_v59 = vadd.f32 %v4485_v16, %v4361_v43  ;;  %v11851_v16 = vld [vmem:[#allocation238_spill] sm:$0xff] }
 0x966   :  { %v4125_v10 = vadd.f32 %v11845_v7, %v3933_v49  ;;  %v3934_v56 = vadd.f32 %v11850_v12, %v3742_v54  ;;  %v11857_v49 = vld [vmem:[#allocation82_spill] sm:$0xff] }
 0x967   :  { %5663 = vst [vmem:[#allocation4 + $0x148] sm:$0xff] %v5599_v27  ;;  %v4589_v14 = vpop.permute.xlu1 %4588 }
 0x968   :  { %v4867_v11 = vpop.permute.xlu0 %4866  ;;  %v4317_v55 = vadd.f32 %v11847_v19, %v4125_v10  ;;  %v4126_v31 = vadd.f32 %v11851_v16, %v3934_v56 }
 0x969   :  { %v4936_v51 = vadd.f32 %v4867_v11, %v4744_v2 }
 0x96a   :  { %v5449_v8 = vpop.f32.mrb[44].mxu1  ;;  %v4509_v39 = vadd.f32 %v11848_v63, %v4317_v55  ;;  %v11860_v63 = vld [vmem:[#allocation69_spill] sm:$0xff] }
 0x96b   :  { %v5450_v32 = vadd.f32 %v10529_v5, %v5449_v8  ;;  %v4971_v22 = vpop.permute.xlu1 %4970  ;;  %v5451_v1 = vpop.f32.mrb[45].mxu1  ;;  %v6303_v8 = vld [vmem:[#allocation3 + $0x300] sm:$0xff] }
 0x96c   :  { %v5084_v28 = vadd.f32 %v4971_v22, %v4892_v20  ;;  %v4677_v46 = vpop.permute.xlu0 %4676  ;;  %v4701_v18 = vadd.f32 %v4589_v14, %v4509_v39  ;;  %v11852_v14 = vld [vmem:[#allocation115_spill] sm:$0xff]  ;;  %v11853_v1 = vld [vmem:[#allocation249_spill] sm:$0xff] }
 0x96d   :  { %v5600_v40 = vmax.f32 %v5450_v32, 0.0  ;;  %v4745_v38 = vadd.f32 %v4677_v46, %v4553_v59  ;;  %v3786_v53 = vadd.f32 %v6303_v8, %v11852_v14  ;;  %v6304_v22 = vld [vmem:[#allocation2 + $0x319] sm:$0xff]  ;;  %v6308_v59 = vld [vmem:[#allocation2 + $0xe1] sm:$0xff] }
 0x96e   :  { %5308 = vmatmul.mubr.f32.gmra.mrb[92].mxu0 %v5084_v28  ;;  %v4318_v28 = vadd.f32 %v11853_v1, %v4126_v31 }
 0x96f   :  { %5664 = vst [vmem:[#allocation4 + $0x150] sm:$0xff] %v5600_v40  ;;  %v10534_v3 = vpop.permute.xlu1 %4486  ;;  %5312 = vmatprep.mubr.f32.mxu0 %v6300_v23  ;;  %v6305_v40 = vld [vmem:[#allocation2 + $0xd9] sm:$0xff]  ;;  %v3978_v36 = vadd.f32 %v11854_v37, %v3786_v53 }
 0x970   :  { %v5059_v42 = vpop.permute.xlu0 %5058  ;;  %v4510_v47 = vadd.f32 %v11855_v4, %v4318_v28  ;;  %v11867_v37 = vld [vmem:[#allocation346_spill] sm:$0xff] }
 0x971   :  { %v5128_v48 = vadd.f32 %v5059_v42, %v4936_v51  ;;  %v5454_v13 = vpop.f32.mrb[46].mxu1  ;;  %v4170_v51 = vadd.f32 %v11856_v44, %v3978_v36  ;;  %v11868_v44 = vld [vmem:[#allocation57_spill] sm:$0xff] }
 0x972   :  { %v5455_v50 = vadd.f32 %v10529_v5, %v5454_v13  ;;  %v5456_v58 = vpop.f32.mrb[47].mxu1 }
 0x973   :  { %v4869_v61 = vpop.permute.xlu1 %4868  ;;  %5528 = vmatmul.mubr.f32.gmra.mrb[76].mxu1 %v5128_v48  ;;  %v4362_v48 = vadd.f32 %v11857_v49, %v4170_v51 }
 0x974   :  { %v5601_v0 = vmax.f32 %v5455_v50, 0.0  ;;  %v4781_v9 = vpop.permute.xlu0 %4780  ;;  %5532 = vmatprep.mubr.f32.mxu1 %v6301_v34  ;;  %v4937_v45 = vadd.f32 %v4869_v61, %v4745_v38  ;;  %v6306_v61 = vld [vmem:[#allocation3 + $0x308] sm:$0xff] }
 0x975   :  { %v4893_v60 = vadd.f32 %v4781_v9, %v4701_v18  ;;  %v4554_v52 = vadd.f32 %v10534_v3, %v4362_v48  ;;  %v3787_v43 = vadd.f32 %v6306_v61, %v11858_v25  ;;  %v11859_v9 = vld [vmem:[#allocation54_spill] sm:$0xff]  ;;  %v11861_v3 = vld [vmem:[#allocation347_spill] sm:$0xff] }
 0x976   :  { %5665 = vst [vmem:[#allocation4 + $0x158] sm:$0xff] %v5601_v0  ;;  %v6307_v0 = vld [vmem:[#allocation3 + $0xc8] sm:$0xff]  ;;  %v11870_v48 = vld [vmem:[#allocation230_spill] sm:$0xff]  ;;  %v11873_v25 = vld [vmem:[#allocation311_spill] sm:$0xff] }
 0x977   :  { %v4679_v30 = vpop.permute.xlu1 %4678  ;;  %v3743_v34 = vadd.f32 %v6307_v0, %v11859_v9  ;;  %v3979_v39 = vadd.f32 %v11860_v63, %v3787_v43  ;;  %v6312_v9 = vld [vmem:[#allocation2 + $0x331] sm:$0xff] }
 0x978   :  { %v4591_v21 = vpop.permute.xlu0 %4590  ;;  %v4746_v10 = vadd.f32 %v4679_v30, %v4554_v52 }
 0x979   :  { %v4702_v42 = vadd.f32 %v4591_v21, %v4510_v47  ;;  %v3935_v21 = vadd.f32 %v11861_v3, %v3743_v34  ;;  %v4171_v30 = vadd.f32 %v11862_v26, %v3979_v39  ;;  %v6313_v34 = vld [vmem:[#allocation3 + $0x320] sm:$0xff]  ;;  %v11875_v3 = vld [vmem:[#allocation78_spill] sm:$0xff] }
 0x97b   :  { %v5061_v27 = vpop.permute.xlu1 %5060 }
 0x97c   :  { %v5129_v17 = vadd.f32 %v5061_v27, %v4937_v45  ;;  %v4973_v29 = vpop.permute.xlu0 %4972  ;;  %v11863_v27 = vld [vmem:[#allocation124_spill] sm:$0xff] }
 0x97d   :  { %v5085_v15 = vadd.f32 %v4973_v29, %v4893_v60  ;;  %v5239_v11 = vpop.f32.mrb[64].mxu0  ;;  %v4127_v12 = vadd.f32 %v11863_v27, %v3935_v21  ;;  %v11878_v27 = vld [vmem:[#allocation140_spill] sm:$0xff] }
 0x97e   :  { %v5240_v6 = vadd.f32 %v10529_v5, %v5239_v11  ;;  %v5241_v20 = vpop.f32.mrb[65].mxu0  ;;  %5533 = vmatmul.mubr.f32.gmra.mrb[78].mxu1 %v5129_v17 }
 0x97f   :  { %v4783_v32 = vpop.permute.xlu1 %4782  ;;  %5313 = vmatmul.mubr.f32.gmra.mrb[94].mxu0 %v5085_v15  ;;  %5537 = vmatprep.mubr.f32.mxu1 %v6304_v22  ;;  %v11864_v15 = vld [vmem:[#allocation367_spill] sm:$0xff] }
 0x980   :  { %v5558_v46 = vmax.f32 %v5240_v6, 0.0  ;;  %v4489_v2 = vpop.permute.xlu0 %4488  ;;  %5317 = vmatprep.mubr.f32.mxu0 %v6305_v40  ;;  %v4894_v62 = vadd.f32 %v4783_v32, %v4702_v42  ;;  %v4363_v11 = vadd.f32 %v11864_v15, %v4171_v30  ;;  %v6309_v6 = vld [vmem:[#allocation2 + $0x321] sm:$0xff]  ;;  %v6310_v40 = vld [vmem:[#allocation3 + $0x318] sm:$0xff] }
 0x981   :  { %v11865_v20 = vld [vmem:[#allocation135_spill] sm:$0xff]  ;;  %v3788_v36 = vadd.f32 %v6310_v40, %v11867_v37 }
 0x982   :  { %5622 = vst [vmem:[#allocation4] sm:$0xff] %v5558_v46  ;;  %v5459_v33 = vpop.f32.mrb[48].mxu1  ;;  %v4319_v8 = vadd.f32 %v11865_v20, %v4127_v12  ;;  %v4555_v53 = vadd.f32 %v4489_v2, %v4363_v11  ;;  %v11866_v32 = vld [vmem:[#allocation199_spill] sm:$0xff]  ;;  %v11879_v11 = vld [vmem:[#allocation362_spill] sm:$0xff] }
 0x983   :  { %v5460_v23 = vadd.f32 %v10529_v5, %v5459_v33  ;;  %v4593_v41 = vpop.permute.xlu1 %4592  ;;  %v5461_v24 = vpop.f32.mrb[49].mxu1  ;;  %v6311_v33 = vld [vmem:[#allocation3 + $0xd8] sm:$0xff] }
 0x984   :  { %v4871_v57 = vpop.permute.xlu0 %4870  ;;  %v4511_v22 = vadd.f32 %v11866_v32, %v4319_v8  ;;  %v3744_v51 = vadd.f32 %v6311_v33, %v11868_v44  ;;  %v11883_v33 = vld [vmem:[#allocation25_spill] sm:$0xff] }
 0x985   :  { %v5602_v13 = vmax.f32 %v5460_v23, 0.0  ;;  %v4938_v19 = vadd.f32 %v4871_v57, %v4746_v10  ;;  %v11869_v23 = vld [vmem:[#allocation123_spill] sm:$0xff] }
 0x986   :  { %v4703_v4 = vadd.f32 %v4593_v41, %v4511_v22  ;;  %v3980_v24 = vadd.f32 %v11869_v23, %v3788_v36  ;;  %v11872_v41 = vld [vmem:[#allocation70_spill] sm:$0xff]  ;;  %v11882_v22 = vld [vmem:[#allocation355_spill] sm:$0xff]  ;;  %v11884_v23 = vld [vmem:[#allocation33_spill] sm:$0xff] }
 0x987   :  { %5666 = vst [vmem:[#allocation4 + $0x160] sm:$0xff] %v5602_v13  ;;  %v4975_v50 = vpop.permute.xlu1 %4974  ;;  %v3936_v13 = vadd.f32 %v11870_v48, %v3744_v51 }
 0x988   :  { %v5086_v58 = vadd.f32 %v4975_v50, %v4894_v62  ;;  %v4681_v7 = vpop.permute.xlu0 %4680  ;;  %v11871_v62 = vld [vmem:[#allocation130_spill] sm:$0xff] }
 0x989   :  { %v4747_v28 = vadd.f32 %v4681_v7, %v4555_v53  ;;  %v4172_v52 = vadd.f32 %v11871_v62, %v3980_v24  ;;  %v4128_v61 = vadd.f32 %v11872_v41, %v3936_v13  ;;  %v11881_v53 = vld [vmem:[#allocation194_spill] sm:$0xff] }
 0x98a   :  { %5318 = vmatmul.mubr.f32.gmra.mrb[96].mxu0 %v5086_v58 }
 0x98b   :  { %v4491_v55 = vpop.permute.xlu1 %4490  ;;  %5322 = vmatprep.mubr.f32.mxu0 %v6308_v59  ;;  %v4364_v43 = vadd.f32 %v11873_v25, %v4172_v52  ;;  %v4320_v21 = vadd.f32 %v11875_v3, %v4128_v61 }
 0x98c   :  { %v5063_v38 = vpop.permute.xlu0 %5062 }
 0x98d   :  { %v5130_v18 = vadd.f32 %v5063_v38, %v4938_v19  ;;  %v5464_v35 = vpop.f32.mrb[50].mxu1  ;;  %v11874_v19 = vld [vmem:[#allocation229_spill] sm:$0xff]  ;;  %v4512_v12 = vadd.f32 %v11878_v27, %v4320_v21 }
 0x98e   :  { %v5465_v54 = vadd.f32 %v10529_v5, %v5464_v35  ;;  %v5244_v45 = vpop.f32.mrb[66].mxu0  ;;  %v5466_v60 = vpop.f32.mrb[51].mxu1  ;;  %v3789_v59 = vadd.f32 %v6313_v34, %v11874_v19  ;;  %v6314_v38 = vld [vmem:[#allocation2 + $0xf1] sm:$0xff] }
 0x98f   :  { %v5245_v56 = vadd.f32 %v10529_v5, %v5244_v45  ;;  %v5246_v17 = vpop.f32.mrb[67].mxu0  ;;  %v4873_v29 = vpop.permute.xlu1 %4872  ;;  %5538 = vmatmul.mubr.f32.gmra.mrb[80].mxu1 %v5130_v18  ;;  %v4556_v18 = vadd.f32 %v4491_v55, %v4364_v43  ;;  %v11876_v35 = vld [vmem:[#allocation294_spill] sm:$0xff]  ;;  %v11877_v45 = vld [vmem:[#allocation283_spill] sm:$0xff] }
 0x990   :  { %v5603_v16 = vmax.f32 %v5465_v54, 0.0  ;;  %v4785_v31 = vpop.permute.xlu0 %4784  ;;  %5542 = vmatprep.mubr.f32.mxu1 %v6309_v6  ;;  %v4939_v47 = vadd.f32 %v4873_v29, %v4747_v28  ;;  %v3981_v26 = vadd.f32 %v11876_v35, %v3789_v59  ;;  %v6315_v54 = vld [vmem:[#allocation3 + $0xe0] sm:$0xff]  ;;  %v11880_v6 = vld [vmem:[#allocation62_spill] sm:$0xff] }
 0x991   :  { %v5559_v14 = vmax.f32 %v5245_v56, 0.0  ;;  %v4895_v42 = vadd.f32 %v4785_v31, %v4703_v4  ;;  %v3745_v60 = vadd.f32 %v6315_v54, %v11877_v45 }
 0x992   :  { %5667 = vst [vmem:[#allocation4 + $0x168] sm:$0xff] %v5603_v16  ;;  %v4173_v16 = vadd.f32 %v11879_v11, %v3981_v26 }
 0x993   :  { %5623 = vst [vmem:[#allocation4 + $0x8] sm:$0xff] %v5559_v14  ;;  %v10567_v1 = vpop.permute.xlu1 %6126  ;;  %v3937_v55 = vadd.f32 %v11880_v6, %v3745_v60 }
 0x994   :  { %v4595_v46 = vpop.permute.xlu0 %4594  ;;  %v6352_v15 = vadd.low.f32.bf16 %v4556_v18, %v10567_v1  ;;  %v4365_v32 = vadd.f32 %v11881_v53, %v4173_v16 }
 0x995   :  { %v4704_v20 = vadd.f32 %v4595_v46, %v4512_v12  ;;  %v4129_v28 = vadd.f32 %v11882_v22, %v3937_v55  ;;  %v6316_v46 = vld [vmem:[#allocation2 + $0x339] sm:$0xff] }
 0x997   :  { %v5065_v2 = vpop.permute.xlu1 %5064  ;;  %v4321_v44 = vadd.f32 %v11883_v33, %v4129_v28 }
 0x998   :  { %v5131_v57 = vadd.f32 %v5065_v2, %v4939_v47  ;;  %v4977_v49 = vpop.permute.xlu0 %4976 }
 0x999   :  { %v5087_v50 = vadd.f32 %v4977_v49, %v4895_v42  ;;  %v5249_v58 = vpop.f32.mrb[68].mxu0  ;;  %v4513_v24 = vadd.f32 %v11884_v23, %v4321_v44  ;;  %v6317_v49 = vld [vmem:[#allocation2 + $0xf9] sm:$0xff] }
 0x99a   :  { %v5250_v7 = vadd.f32 %v10529_v5, %v5249_v58  ;;  %v5251_v10 = vpop.f32.mrb[69].mxu0  ;;  %5543 = vmatmul.mubr.f32.gmra.mrb[82].mxu1 %v5131_v57 }
 0x99b   :  { %v4787_v0 = vpop.permute.xlu1 %4786  ;;  %5323 = vmatmul.mubr.f32.gmra.mrb[98].mxu0 %v5087_v50  ;;  %5547 = vmatprep.mubr.f32.mxu1 %v6312_v9 }
 0x99c   :  { %v5560_v63 = vmax.f32 %v5250_v7, 0.0  ;;  %v4493_v39 = vpop.permute.xlu0 %4492  ;;  %5327 = vmatprep.mubr.f32.mxu0 %v6314_v38  ;;  %v4896_v40 = vadd.f32 %v4787_v0, %v4704_v20 }
 0x99d   :  { %v4557_v36 = vadd.f32 %v4493_v39, %v4365_v32 }
 0x99e   :  { %5624 = vst [vmem:[#allocation4 + $0x10] sm:$0xff] %v5560_v63  ;;  %v5469_v30 = vpop.f32.mrb[52].mxu1 }
 0x99f   :  { %v5470_v56 = vadd.f32 %v10529_v5, %v5469_v30  ;;  %v4597_v17 = vpop.permute.xlu1 %4596  ;;  %v5471_v29 = vpop.f32.mrb[53].mxu1  ;;  %v6353_v2 = vadd.high.f32.bf16 %v4557_v36, %v10567_v1 }
 0x9a0   :  { %v4875_v31 = vpop.permute.xlu0 %4874  ;;  %v4705_v48 = vadd.f32 %v4597_v17, %v4513_v24 }
 0x9a1   :  { %v5604_v8 = vmax.f32 %v5470_v56, 0.0  ;;  %v4940_v14 = vadd.f32 %v6352_v15, %v4875_v31 }
 0x9a3   :  { %5668 = vst [vmem:[#allocation4 + $0x170] sm:$0xff] %v5604_v8  ;;  %v5067_v37 = vpop.permute.xlu1 %5066 }
 0x9a4   :  { %v5132_v4 = vadd.f32 %v5067_v37, %v4940_v14  ;;  %v4979_v47 = vpop.permute.xlu0 %4978 }
 0x9a5   :  { %v5088_v51 = vadd.f32 %v4979_v47, %v4896_v40 }
 0x9a6   :  { %5548 = vmatmul.mubr.f32.gmra.mrb[84].mxu1 %v5132_v4 }
 0x9a7   :  { %v4877_v42 = vpop.permute.xlu1 %4876  ;;  %5328 = vmatmul.mubr.f32.gmra.mrb[100].mxu0 %v5088_v51  ;;  %5552 = vmatprep.mubr.f32.mxu1 %v6316_v46 }
 0x9a8   :  { %v4789_v57 = vpop.permute.xlu0 %4788  ;;  %5332 = vmatprep.mubr.f32.mxu0 %v6317_v49  ;;  %v4941_v62 = vadd.f32 %v6353_v2, %v4877_v42 }
 0x9a9   :  { %v5474_v13 = vpop.f32.mrb[54].mxu1  ;;  %v4897_v7 = vadd.f32 %v4789_v57, %v4705_v48 }
 0x9aa   :  { %v5475_v52 = vadd.f32 %v10529_v5, %v5474_v13  ;;  %v5254_v50 = vpop.f32.mrb[70].mxu0  ;;  %v5476_v58 = vpop.f32.mrb[55].mxu1 }
 0x9ab   :  { %v5255_v10 = vadd.f32 %v10529_v5, %v5254_v50  ;;  %v5069_v41 = vpop.permute.xlu1 %5068  ;;  %v5256_v61 = vpop.f32.mrb[71].mxu0 }
 0x9ac   :  { %v5605_v25 = vmax.f32 %v5475_v52, 0.0  ;;  %v5133_v43 = vadd.f32 %v5069_v41, %v4941_v62  ;;  %v4981_v0 = vpop.permute.xlu0 %4980 }
 0x9ad   :  { %v5561_v9 = vmax.f32 %v5255_v10, 0.0  ;;  %v5089_v1 = vadd.f32 %v4981_v0, %v4897_v7 }
 0x9ae   :  { %5669 = vst [vmem:[#allocation4 + $0x178] sm:$0xff] %v5605_v25  ;;  %5553 = vmatmul.mubr.f32.gmra.mrb[86].mxu1 %v5133_v43 }
 0x9af   :  { %5625 = vst [vmem:[#allocation4 + $0x18] sm:$0xff] %v5561_v9  ;;  %5333 = vmatmul.mubr.f32.gmra.mrb[102].mxu0 %v5089_v1 }
 0x9b5   :  { %v5259_v34 = vpop.f32.mrb[72].mxu0 }
 0x9b6   :  { %v5260_v19 = vadd.f32 %v10529_v5, %v5259_v34  ;;  %v5261_v59 = vpop.f32.mrb[73].mxu0 }
 0x9b8   :  { %v5562_v63 = vmax.f32 %v5260_v19, 0.0 }
 0x9ba   :  { %5626 = vst [vmem:[#allocation4 + $0x20] sm:$0xff] %v5562_v63  ;;  %v5479_v39 = vpop.f32.mrb[56].mxu1 }
 0x9bb   :  { %v5480_v38 = vadd.f32 %v10529_v5, %v5479_v39  ;;  %v5481_v3 = vpop.f32.mrb[57].mxu1 }
 0x9bd   :  { %v5606_v21 = vmax.f32 %v5480_v38, 0.0 }
 0x9bf   :  { %5670 = vst [vmem:[#allocation4 + $0x180] sm:$0xff] %v5606_v21 }
 0x9c5   :  { %v5484_v18 = vpop.f32.mrb[58].mxu1 }
 0x9c6   :  { %v5485_v35 = vadd.f32 %v10529_v5, %v5484_v18  ;;  %v5264_v26 = vpop.f32.mrb[74].mxu0  ;;  %v5486_v30 = vpop.f32.mrb[59].mxu1 }
 0x9c7   :  { %v5265_v54 = vadd.f32 %v10529_v5, %v5264_v26  ;;  %v5266_v45 = vpop.f32.mrb[75].mxu0 }
 0x9c8   :  { %v5607_v60 = vmax.f32 %v5485_v35, 0.0 }
 0x9c9   :  { %v5563_v27 = vmax.f32 %v5265_v54, 0.0 }
 0x9ca   :  { %5671 = vst [vmem:[#allocation4 + $0x188] sm:$0xff] %v5607_v60 }
 0x9cb   :  { %5627 = vst [vmem:[#allocation4 + $0x28] sm:$0xff] %v5563_v27 }
 0x9d1   :  { %v5269_v12 = vpop.f32.mrb[76].mxu0 }
 0x9d2   :  { %v5270_v56 = vadd.f32 %v10529_v5, %v5269_v12  ;;  %v5271_v17 = vpop.f32.mrb[77].mxu0 }
 0x9d4   :  { %v5564_v29 = vmax.f32 %v5270_v56, 0.0 }
 0x9d6   :  { %5628 = vst [vmem:[#allocation4 + $0x30] sm:$0xff] %v5564_v29  ;;  %v5489_v15 = vpop.f32.mrb[60].mxu1 }
 0x9d7   :  { %v5490_v11 = vadd.f32 %v10529_v5, %v5489_v15  ;;  %v5491_v16 = vpop.f32.mrb[61].mxu1 }
 0x9d9   :  { %v5608_v31 = vmax.f32 %v5490_v11, 0.0 }
 0x9db   :  { %5672 = vst [vmem:[#allocation4 + $0x190] sm:$0xff] %v5608_v31 }
 0x9e1   :  { %v5494_v6 = vpop.f32.mrb[62].mxu1 }
 0x9e2   :  { %v5495_v55 = vadd.f32 %v10529_v5, %v5494_v6  ;;  %v5274_v20 = vpop.f32.mrb[78].mxu0  ;;  %v5496_v8 = vpop.f32.mrb[63].mxu1 }
 0x9e3   :  { %v5275_v14 = vadd.f32 %v10529_v5, %v5274_v20  ;;  %v5276_v53 = vpop.f32.mrb[79].mxu0 }
 0x9e4   :  { %v5609_v32 = vmax.f32 %v5495_v55, 0.0 }
 0x9e5   :  { %v5565_v22 = vmax.f32 %v5275_v14, 0.0 }
 0x9e6   :  { %5673 = vst [vmem:[#allocation4 + $0x198] sm:$0xff] %v5609_v32 }
 0x9e7   :  { %5629 = vst [vmem:[#allocation4 + $0x38] sm:$0xff] %v5565_v22 }
 0x9ed   :  { %v5279_v28 = vpop.f32.mrb[80].mxu0 }
 0x9ee   :  { %v5280_v40 = vadd.f32 %v10529_v5, %v5279_v28  ;;  %v5281_v37 = vpop.f32.mrb[81].mxu0 }
 0x9f0   :  { %v5566_v36 = vmax.f32 %v5280_v40, 0.0 }
 0x9f2   :  { %5630 = vst [vmem:[#allocation4 + $0x40] sm:$0xff] %v5566_v36  ;;  %v5499_v4 = vpop.f32.mrb[64].mxu1 }
 0x9f3   :  { %v5500_v47 = vadd.f32 %v10529_v5, %v5499_v4  ;;  %v5501_v33 = vpop.f32.mrb[65].mxu1 }
 0x9f5   :  { %v5610_v44 = vmax.f32 %v5500_v47, 0.0 }
 0x9f7   :  { %5674 = vst [vmem:[#allocation4 + $0x1a0] sm:$0xff] %v5610_v44 }
 0x9fd   :  { %v5504_v51 = vpop.f32.mrb[66].mxu1 }
 0x9fe   :  { %v5505_v23 = vadd.f32 %v10529_v5, %v5504_v51  ;;  %v5284_v24 = vpop.f32.mrb[82].mxu0  ;;  %v5506_v42 = vpop.f32.mrb[67].mxu1 }
 0x9ff   :  { %v5285_v46 = vadd.f32 %v10529_v5, %v5284_v24  ;;  %v5286_v2 = vpop.f32.mrb[83].mxu0 }
 0xa00   :  { %v5611_v57 = vmax.f32 %v5505_v23, 0.0 }
 0xa01   :  { %v5567_v49 = vmax.f32 %v5285_v46, 0.0 }
 0xa02   :  { %5675 = vst [vmem:[#allocation4 + $0x1a8] sm:$0xff] %v5611_v57 }
 0xa03   :  { %5631 = vst [vmem:[#allocation4 + $0x48] sm:$0xff] %v5567_v49 }
 0xa09   :  { %v5289_v48 = vpop.f32.mrb[84].mxu0 }
 0xa0a   :  { %v5290_v13 = vadd.f32 %v10529_v5, %v5289_v48  ;;  %v5291_v62 = vpop.f32.mrb[85].mxu0 }
 0xa0c   :  { %v5568_v52 = vmax.f32 %v5290_v13, 0.0 }
 0xa0e   :  { %5632 = vst [vmem:[#allocation4 + $0x50] sm:$0xff] %v5568_v52  ;;  %v5509_v50 = vpop.f32.mrb[68].mxu1 }
 0xa0f   :  { %v5510_v58 = vadd.f32 %v10529_v5, %v5509_v50  ;;  %v5511_v7 = vpop.f32.mrb[69].mxu1 }
 0xa11   :  { %v5612_v10 = vmax.f32 %v5510_v58, 0.0 }
 0xa13   :  { %5676 = vst [vmem:[#allocation4 + $0x1b0] sm:$0xff] %v5612_v10 }
 0xa19   :  { %v5514_v41 = vpop.f32.mrb[70].mxu1 }
 0xa1a   :  { %v5515_v61 = vadd.f32 %v10529_v5, %v5514_v41  ;;  %v5294_v25 = vpop.f32.mrb[86].mxu0  ;;  %v5516_v43 = vpop.f32.mrb[71].mxu1 }
 0xa1b   :  { %v5295_v0 = vadd.f32 %v10529_v5, %v5294_v25  ;;  %v5296_v9 = vpop.f32.mrb[87].mxu0 }
 0xa1c   :  { %v5613_v1 = vmax.f32 %v5515_v61, 0.0 }
 0xa1d   :  { %v5569_v34 = vmax.f32 %v5295_v0, 0.0 }
 0xa1e   :  { %5677 = vst [vmem:[#allocation4 + $0x1b8] sm:$0xff] %v5613_v1 }
 0xa1f   :  { %5633 = vst [vmem:[#allocation4 + $0x58] sm:$0xff] %v5569_v34 }
 0xa25   :  { %v5299_v19 = vpop.f32.mrb[88].mxu0 }
 0xa26   :  { %v5300_v59 = vadd.f32 %v10529_v5, %v5299_v19  ;;  %v5301_v63 = vpop.f32.mrb[89].mxu0 }
 0xa28   :  { %v5570_v39 = vmax.f32 %v5300_v59, 0.0 }
 0xa2a   :  { %5634 = vst [vmem:[#allocation4 + $0x60] sm:$0xff] %v5570_v39  ;;  %v5519_v38 = vpop.f32.mrb[72].mxu1 }
 0xa2b   :  { %v5520_v3 = vadd.f32 %v10529_v5, %v5519_v38  ;;  %v5521_v21 = vpop.f32.mrb[73].mxu1 }
 0xa2d   :  { %v5614_v18 = vmax.f32 %v5520_v3, 0.0 }
 0xa2f   :  { %5678 = vst [vmem:[#allocation4 + $0x1c0] sm:$0xff] %v5614_v18 }
 0xa35   :  { %v5524_v35 = vpop.f32.mrb[74].mxu1 }
 0xa36   :  { %v5525_v26 = vadd.f32 %v10529_v5, %v5524_v35  ;;  %v5304_v30 = vpop.f32.mrb[90].mxu0  ;;  %v5526_v54 = vpop.f32.mrb[75].mxu1 }
 0xa37   :  { %v5305_v45 = vadd.f32 %v10529_v5, %v5304_v30  ;;  %v5306_v60 = vpop.f32.mrb[91].mxu0 }
 0xa38   :  { %v5615_v27 = vmax.f32 %v5525_v26, 0.0 }
 0xa39   :  { %v5571_v12 = vmax.f32 %v5305_v45, 0.0 }
 0xa3a   :  { %5679 = vst [vmem:[#allocation4 + $0x1c8] sm:$0xff] %v5615_v27 }
 0xa3b   :  { %5635 = vst [vmem:[#allocation4 + $0x68] sm:$0xff] %v5571_v12 }
 0xa41   :  { %v5309_v56 = vpop.f32.mrb[92].mxu0 }
 0xa42   :  { %v5310_v17 = vadd.f32 %v10529_v5, %v5309_v56  ;;  %v5311_v29 = vpop.f32.mrb[93].mxu0 }
 0xa44   :  { %v5572_v15 = vmax.f32 %v5310_v17, 0.0 }
 0xa46   :  { %5636 = vst [vmem:[#allocation4 + $0x70] sm:$0xff] %v5572_v15  ;;  %v5529_v11 = vpop.f32.mrb[76].mxu1 }
 0xa47   :  { %v5530_v16 = vadd.f32 %v10529_v5, %v5529_v11  ;;  %v5531_v31 = vpop.f32.mrb[77].mxu1 }
 0xa49   :  { %v5616_v6 = vmax.f32 %v5530_v16, 0.0 }
 0xa4b   :  { %5680 = vst [vmem:[#allocation4 + $0x1d0] sm:$0xff] %v5616_v6 }
 0xa51   :  { %v5534_v55 = vpop.f32.mrb[78].mxu1 }
 0xa52   :  { %v5535_v20 = vadd.f32 %v10529_v5, %v5534_v55  ;;  %v5314_v8 = vpop.f32.mrb[94].mxu0  ;;  %v5536_v14 = vpop.f32.mrb[79].mxu1 }
 0xa53   :  { %v5315_v53 = vadd.f32 %v10529_v5, %v5314_v8  ;;  %v5316_v32 = vpop.f32.mrb[95].mxu0 }
 0xa54   :  { %v5617_v22 = vmax.f32 %v5535_v20, 0.0 }
 0xa55   :  { %v5573_v28 = vmax.f32 %v5315_v53, 0.0 }
 0xa56   :  { %5681 = vst [vmem:[#allocation4 + $0x1d8] sm:$0xff] %v5617_v22 }
 0xa57   :  { %5637 = vst [vmem:[#allocation4 + $0x78] sm:$0xff] %v5573_v28 }
 0xa5d   :  { %v5319_v40 = vpop.f32.mrb[96].mxu0 }
 0xa5e   :  { %v5320_v37 = vadd.f32 %v10529_v5, %v5319_v40  ;;  %v5321_v36 = vpop.f32.mrb[97].mxu0 }
 0xa60   :  { %v5574_v4 = vmax.f32 %v5320_v37, 0.0 }
 0xa62   :  { %5638 = vst [vmem:[#allocation4 + $0x80] sm:$0xff] %v5574_v4  ;;  %v5539_v47 = vpop.f32.mrb[80].mxu1 }
 0xa63   :  { %v5540_v33 = vadd.f32 %v10529_v5, %v5539_v47  ;;  %v5541_v44 = vpop.f32.mrb[81].mxu1 }
 0xa65   :  { %v5618_v51 = vmax.f32 %v5540_v33, 0.0 }
 0xa67   :  { %5682 = vst [vmem:[#allocation4 + $0x1e0] sm:$0xff] %v5618_v51 }
 0xa6d   :  { %v5544_v23 = vpop.f32.mrb[82].mxu1 }
 0xa6e   :  { %v5545_v24 = vadd.f32 %v10529_v5, %v5544_v23  ;;  %v5324_v42 = vpop.f32.mrb[98].mxu0  ;;  %v5546_v46 = vpop.f32.mrb[83].mxu1 }
 0xa6f   :  { %v5325_v2 = vadd.f32 %v10529_v5, %v5324_v42  ;;  %v5326_v57 = vpop.f32.mrb[99].mxu0 }
 0xa70   :  { %v5619_v49 = vmax.f32 %v5545_v24, 0.0 }
 0xa71   :  { %v5575_v48 = vmax.f32 %v5325_v2, 0.0 }
 0xa72   :  { %5683 = vst [vmem:[#allocation4 + $0x1e8] sm:$0xff] %v5619_v49 }
 0xa73   :  { %5639 = vst [vmem:[#allocation4 + $0x88] sm:$0xff] %v5575_v48 }
 0xa79   :  { %v5549_v13 = vpop.f32.mrb[84].mxu1 }
 0xa7a   :  { %v5550_v62 = vadd.f32 %v10529_v5, %v5549_v13  ;;  %v5329_v52 = vpop.f32.mrb[100].mxu0  ;;  %v5551_v50 = vpop.f32.mrb[85].mxu1 }
 0xa7b   :  { %v5330_v58 = vadd.f32 %v10529_v5, %v5329_v52  ;;  %v5331_v7 = vpop.f32.mrb[101].mxu0 }
 0xa7c   :  { %v5620_v10 = vmax.f32 %v5550_v62, 0.0 }
 0xa7d   :  { %v5576_v41 = vmax.f32 %v5330_v58, 0.0 }
 0xa7e   :  { %5684 = vst [vmem:[#allocation4 + $0x1f0] sm:$0xff] %v5620_v10 }
 0xa7f   :  { %5640 = vst [vmem:[#allocation4 + $0x90] sm:$0xff] %v5576_v41 }
 0xa81   :  { %v5554_v61 = vpop.f32.mrb[86].mxu1 }
 0xa82   :  { %v5555_v25 = vadd.f32 %v10529_v5, %v5554_v61  ;;  %v5334_v43 = vpop.f32.mrb[102].mxu0  ;;  %v5556_v0 = vpop.f32.mrb[87].mxu1 }
 0xa83   :  { %v5335_v9 = vadd.f32 %v10529_v5, %v5334_v43  ;;  %v5336_v1 = vpop.f32.mrb[103].mxu0 }
 0xa84   :  { %v5621_v34 = vmax.f32 %v5555_v25, 0.0 }
 0xa85   :  { %v5577_v19 = vmax.f32 %v5335_v9, 0.0 }
 0xa86   :  { %5685 = vst [vmem:[#allocation4 + $0x1f8] sm:$0xff] %v5621_v34 }
 0xa87   :  { %5641 = vst [vmem:[#allocation4 + $0x98] sm:$0xff] %v5577_v19 }
 0xa88   :  { %6365 = shalt.err (!%p6362_p4)
}
 0xa89   :  { %s6366_s12 = scalar_lea.hbm %s10643_s5, 8192 }
 0xa8a   :  { %p6367_p5 = scmp.ne.s32.totalorder %s10643_s5, %s6366_s12  ;;  %p6370_p6 = scmp.lt.u32.totalorder %s6366_s12, %s10643_s5 }
 0xa8c   :  { %p6372_p7 = pnand %p6370_p6, %p6367_p5 }
 0xa8e   :  { %6375 = shalt.err (!%p6372_p7)
}
 0xa8f   :  { %s6393_s2 = smov 128  }
 0xa90   :  { %5697 = dma.vmem_to_hbm [thread:$0]  %s5692_s8, 8192, %s10643_s5, [#allocation5], %s6393_s2, %s6393_s2, %s6380_s16  }
 0xa91   :  { %6376 = dma.done.wait [#allocation5], 8192  }
 0xa92   :  { %6377 = vsyncadd [#allocation5], 4294959104 }
 0xa93   :  { %5701 = vsyncpa [#allocation5], 1 }

</bundles_post_ra>
